<compile_context>
chip_gen: v5e
topology: v5e:2x2
jax: 0.10.0
libtpu: 0.0.40
codegen_flags: <defaults>
</compile_context>

<pallas_src>
import functools
import math
import numpy as np
import jax
import jax.numpy as jnp
from jax.experimental import pallas as pl
from jax.experimental.pallas import tpu as pltpu


# ----------------------------------------------------------------------------
# Deterministic parameter construction (replicates init_kernel from PyTorch).
# ----------------------------------------------------------------------------
def make_istft_weights(frame_len, frame_hop, window="sqrt_hann",
                       normalize=True, round_pow_of_two=True):
    """Returns (Kr, Ki) each (F, L) float32, plus N (fft size) and F (=N//2+1)."""
    if window not in ("sqrt_hann", "hann"):
        raise RuntimeError("Now only support sqrt hanning window or hann window")
    N = 2 ** math.ceil(math.log2(frame_len)) if round_pow_of_two else frame_len
    n = np.arange(frame_len)
    W = 0.5 * (1.0 - np.cos(2.0 * np.pi * n / frame_len))   # torch.hann_window (periodic)
    if window == "sqrt_hann":
        W = np.sqrt(W)
    if window == "sqrt_hann" and normalize:
        S = 0.5 * (N * N / frame_hop) ** 0.5
    else:
        S = 1.0
    # rfft(eye(N)/S)[l, f] = exp(-2*pi*i*f*l/N) / S ; keep first frame_len rows.
    K = np.fft.rfft(np.eye(N) / S, axis=-1)[:frame_len]      # (L, F) complex
    F_ = N // 2 + 1
    Kr = (K.real.T * W).astype(np.float32)                   # (F, L)
    Ki = (K.imag.T * W).astype(np.float32)                   # (F, L)
    return Kr, Ki, N, F_


# ----------------------------------------------------------------------------
# Kernel: per (batch, T-tile) step
#   frames = (re^T @ Kr') + (im^T @ Ki')      # (tile_t, Lp_pad), time-major, f32 acc
#   overlap-add via shifted value adds; (R-1, hop) halo carried in VMEM scratch;
#   one dense lane-aligned store per tile.
# ----------------------------------------------------------------------------
def _istft_kernel(m_ref, p_ref, kr_ref, ki_ref, out_ref, *scratch, n_frames,
                  hop, n_overlap, tile_t, group, lane_w, fold_nyquist, dot_dtype):
    i = pl.program_id(1)
    R = n_overlap
    f32 = jnp.float32

    m = m_ref[...].astype(f32)        # (F, tile_t); bf16 inputs are fine (cast here)
    p = p_ref[...].astype(f32)

    # Frame columns past the real sequence (ragged edge tile, clamped flush
    # tiles) hold unspecified data.  Mask BOTH inputs before cos/sin and the
    # dot: the garbage may contain Inf/NaN, so masking only m (0*NaN==NaN) or
    # masking after the matmul would be unsafe.
    col = i * tile_t + jax.lax.broadcasted_iota(jnp.int32, m.shape, 1)
    valid = col < n_frames
    m = jnp.where(valid, m, 0.0)
    p = jnp.where(valid, p, 0.0)

    re = m * jnp.cos(p)               # f32 on VPU/EUP
    im = m * jnp.sin(p)

    if fold_nyquist:
        # rfft of an even-length frame: Ki rows 0 (DC) and F-1 (Nyquist) vanish.
        # Contract over K = F-1 bins and recover the real Nyquist term through
        # the dead DC slot of the imaginary matmul (wrapper put Kr[F-1] there).
        fm = m.shape[0] - 1
        row = jax.lax.broadcasted_iota(jnp.int32, (fm, m.shape[1]), 0)
        re_main = re[0:fm, :]
        im_main = jnp.where(row == 0, re[fm:fm + 1, :], im[0:fm, :])
    else:
        re_main, im_main = re, im

    # Transpose in the dot dtype BEFORE the matmul: the MXU emits frames
    # directly in time-major layout -- no f32 (Lp_pad x tile_t) result transpose.
    reT = jnp.transpose(re_main.astype(dot_dtype))       # (tile_t, F')
    imT = jnp.transpose(im_main.astype(dot_dtype))
    frames = jnp.dot(reT, kr_ref[...], preferred_element_type=f32)
    frames = frames + jnp.dot(imT, ki_ref[...], preferred_element_type=f32)
    # frames: (tile_t, Lp_pad) f32; tap columns >= L are zero (zero-padded weights).

    # ---- overlap-add: pure value math + an (R-1, hop) halo carried in VMEM ----
    body = frames[:, 0:hop]
    if R > 1:
        ola_ref = scratch[0]

        @pl.when(i == 0)
        def _reset_halo():            # new batch row: drop the previous carry
            ola_ref[...] = jnp.zeros_like(ola_ref)

        halo_in = ola_ref[...]        # (R-1, hop): prev tiles' spill into rows 0..R-2
        spill = None
        for r in range(1, R):
            fr = frames[:, r * hop:(r + 1) * hop]        # tap group r, (tile_t, hop)
            # Rows t >= r get fr[t - r]; rows t < r are covered by the carried
            # halo, folded into the top rows of the r == R-1 shift for free.
            top = halo_in if r == R - 1 else jnp.zeros((r, hop), f32)
            body = body + jnp.concatenate([top, fr[0:tile_t - r, :]], axis=0)
            # This tile's spill into the next tile's output rows 0..r-1.
            tail = fr[tile_t - r:, :]
            if r < R - 1:
                tail = jnp.concatenate(
                    [tail, jnp.zeros((R - 1 - r, hop), f32)], axis=0)
            spill = tail if spill is None else spill + tail
        ola_ref[...] = spill          # tiny aligned store

    if group > 1:
        # hop < 128: pack `group` consecutive hop-rows per 128-lane output row
        # so the store below stays lane-dense (unmasked vst).
        body = body.reshape(tile_t // group, lane_w)
    out_ref[...] = body.astype(out_ref.dtype)            # ONE dense, lane-aligned store


# ----------------------------------------------------------------------------
# Wrapper
# ----------------------------------------------------------------------------
def istft_pallas(m, p, Kr, Ki, frame_hop, *, tile_t=512, dot_dtype=jnp.bfloat16):
    """m, p: (B, F, T) float32 (or bfloat16).  Returns s: (B, S) with
    S = (T - 1) * frame_hop + frame_len.  Use dot_dtype=jnp.float32 for a
    higher-precision MXU path."""
    B, n_bins, T = m.shape
    assert Kr.shape[0] == n_bins and Ki.shape == Kr.shape
    L = Kr.shape[1]
    hop = int(frame_hop)
    R = -(-L // hop)                          # frames overlapping one output sample
    lp_pad = -(-(R * hop) // 128) * 128       # lane-aligned tap axis (>= L)

    # Lane-dense output grouping: stored block's last dim is `lane_w`.
    if hop % 128 == 0:
        group, lane_w = 1, hop
    elif 128 % hop == 0:
        group, lane_w = 128 // hop, 128
    else:
        group, lane_w = 1, hop                # odd hop: masked stores (known perf cliff)

    assert tile_t % 128 == 0, "tile_t must be a multiple of 128"
    assert R <= tile_t
    rows_per_tile = tile_t * hop // lane_w
    assert rows_per_tile % 8 == 0

    n_t = -(-(T + R - 1) // tile_t)           # last tile may only flush the halo
    rows_total = n_t * rows_per_tile
    s_len = (T - 1) * hop + L                 # exact conv_transpose1d output length

    # Nyquist fold: valid whenever the imag parts of the DC and Nyquist bins
    # vanish (any rfft kernel of an even-length frame).
    Kr_np = np.asarray(Kr, np.float32)
    Ki_np = np.asarray(Ki, np.float32)
    fold = (n_bins % 2 == 1 and n_bins > 2
            and np.allclose(Ki_np[0], 0.0, atol=1e-6)
            and np.allclose(Ki_np[-1], 0.0, atol=1e-6))
    Fm = n_bins - 1 if fold else n_bins

    # Synthesis weights, untransposed (F', Lp_pad): zero-padded taps, dot dtype.
    Kr_m = np.zeros((Fm, lp_pad), np.float32)
    Ki_m = np.zeros((Fm, lp_pad), np.float32)
    Kr_m[:, :L] = Kr_np[:Fm]
    Ki_m[:, :L] = Ki_np[:Fm]
    if fold:
        Ki_m[0, :L] = Kr_np[n_bins - 1]       # Nyquist real term via the dead DC slot
    Kr_j = jnp.asarray(Kr_m, dtype=dot_dtype)
    Ki_j = jnp.asarray(Ki_m, dtype=dot_dtype)

    m = jnp.asarray(m)                        # f32 or bf16 accepted; cast in-kernel
    p = jnp.asarray(p)
    if T < tile_t:                            # very short inputs: cheap zero-pad so a
        pad = tile_t - T                      # (F, tile_t) block never exceeds the array
        m = jnp.pad(m, ((0, 0), (0, 0), (0, pad)))
        p = jnp.pad(p, ((0, 0), (0, 0), (0, pad)))
    in_last = -(-m.shape[2] // tile_t) - 1    # flush-only tiles re-read a valid block

    kernel = functools.partial(
        _istft_kernel, n_frames=T, hop=hop, n_overlap=R, tile_t=tile_t,
        group=group, lane_w=lane_w, fold_nyquist=fold, dot_dtype=dot_dtype)

    in_map = lambda b, i: (b, 0, jnp.minimum(i, in_last))
    w_map = lambda b, i: (0, 0)               # constant block index -> no re-fetch
    scratch = [pltpu.VMEM((R - 1, hop), jnp.float32)] if R > 1 else []

    # VMEM budget: actual working set + headroom (do NOT request the entire
    # 64 MiB v7x VMEM).
    in_bytes = m.dtype.itemsize
    dot_bytes = np.dtype(dot_dtype).itemsize
    vmem_bytes = int(
        2 * 2 * n_bins * tile_t * in_bytes          # m, p blocks (double-buffered)
        + 2 * 2 * Fm * lp_pad * dot_bytes           # weight blocks (double-buffered)
        + 2 * rows_per_tile * lane_w * 4            # output block (double-buffered)
        + 10 * tile_t * max(n_bins, lp_pad) * 4     # live value intermediates
        + (2 << 20))                                # compiler scratch headroom
    vmem_bytes = min(max(vmem_bytes, 4 << 20), 96 << 20)

    # TODO(synk): on v7x with B == 1 the second TensorCore idles; a core-parallel
    # split of the T axis (per-core halo scratch + one seam fix-up) would recover it.
    out = pl.pallas_call(
        kernel,
        out_shape=jax.ShapeDtypeStruct((B, rows_total, lane_w), jnp.float32),
        grid=(B, n_t),
        in_specs=[
            pl.BlockSpec((None, n_bins, tile_t), in_map),
            pl.BlockSpec((None, n_bins, tile_t), in_map),
            pl.BlockSpec((Fm, lp_pad), w_map),
            pl.BlockSpec((Fm, lp_pad), w_map),
        ],
        out_specs=pl.BlockSpec((None, rows_per_tile, lane_w), lambda b, i: (b, i, 0)),
        scratch_shapes=scratch,
        compiler_params=pltpu.CompilerParams(
            dimension_semantics=("parallel", "arbitrary"),
            vmem_limit_bytes=vmem_bytes),
    )(m, p, Kr_j, Ki_j)

    return out.reshape(B, rows_total * lane_w)[:, :s_len]


# ----------------------------------------------------------------------------
# Pure numpy reference (mirrors F.conv_transpose1d semantics), float64 gold.
# ----------------------------------------------------------------------------
def istft_reference(m, p, Kr, Ki, frame_hop):
    B, F_, T = m.shape
    L = Kr.shape[1]
    re = m.astype(np.float64) * np.cos(p.astype(np.float64))
    im = m.astype(np.float64) * np.sin(p.astype(np.float64))
    frames = (np.einsum("bft,fl->btl", re, Kr.astype(np.float64))
              + np.einsum("bft,fl->btl", im, Ki.astype(np.float64)))
    S_len = (T - 1) * frame_hop + L
    s = np.zeros((B, S_len), dtype=np.float64)
    for t in range(T):
        s[:, t * frame_hop:t * frame_hop + L] += frames[:, t, :]
    return s.astype(np.float32)


if __name__ == "__main__":
    frame_len, frame_hop = 512, 256           # N = 512, F = 257, R = 2 (32ms / 16ms)
    Kr, Ki, N, F = make_istft_weights(frame_len, frame_hop)

    B = 2
    # (T, tile_t, dot dtype, tolerance):
    #   T=200 @ 128 : ragged last tile + cross-tile halo carry, f32 MXU path
    #   T=256 @ 128 : trailing flush-only tile, bf16 path
    #   T=520 @ 512 : default tile size, carry across two tiles, bf16 path
    # Tolerances are loose because the MXU path may use bf16 passes internally.
    cases = [(200, 128, jnp.float32, 2e-2),
             (256, 128, jnp.bfloat16, 5e-2),
             (520, 512, jnp.bfloat16, 5e-2)]

    key = jax.random.PRNGKey(0)
    for T, tt, ddt, tol in cases:
        key, km, kp = jax.random.split(key, 3)
        m = jnp.abs(jax.random.normal(km, (B, F, T), dtype=jnp.float32))     # magnitude
        p = jax.random.uniform(kp, (B, F, T), dtype=jnp.float32,
                               minval=-np.pi, maxval=np.pi)                  # phase

        s = istft_pallas(m, p, Kr, Ki, frame_hop, tile_t=tt, dot_dtype=ddt)
        s = jax.block_until_ready(s)

        s_ref = istft_reference(np.asarray(m), np.asarray(p), Kr, Ki, frame_hop)
        assert s.shape == s_ref.shape, (s.shape, s_ref.shape)
        np.testing.assert_allclose(np.asarray(s), s_ref, rtol=tol, atol=tol)

    print("KERNEL_OK")
</pallas_src>

<mosaic_0001>
module attributes {stable_mosaic.version = 11 : i64} {
  func.func @_istft_kernel(%arg0: i32, %arg1: i32, %arg2: memref<1x257x128xf32, #tpu.memory_space<vmem>>, %arg3: memref<1x257x128xf32, #tpu.memory_space<vmem>>, %arg4: memref<256x512xf32, #tpu.memory_space<vmem>>, %arg5: memref<256x512xf32, #tpu.memory_space<vmem>>, %arg6: memref<1x128x256xf32, #tpu.memory_space<vmem>>, %arg7: memref<1x256xf32, #tpu.memory_space<vmem>>) attributes {dimension_semantics = [#tpu.dimension_semantics<parallel>, #tpu.dimension_semantics<arbitrary>], iteration_bounds = array<i64: 2, 2>, scalar_prefetch = 0 : i64, scratch_operands = 1 : i64, tpu.core_type = #tpu.core_type<tc>, window_params = [{transform_indices = @transform_0, window_bounds = array<i64: 1, 257, 128>}, {transform_indices = @transform_1, window_bounds = array<i64: 1, 257, 128>}, {pipeline_mode = #tpu.pipeline_mode<synchronous>, transform_indices = @transform_2, window_bounds = array<i64: 256, 512>}, {pipeline_mode = #tpu.pipeline_mode<synchronous>, transform_indices = @transform_3, window_bounds = array<i64: 256, 512>}, {transform_indices = @transform_4, window_bounds = array<i64: 1, 128, 256>}]} {
    %c0 = arith.constant 0 : index
    %c0_0 = arith.constant 0 : index
    %c0_1 = arith.constant 0 : index
    %0 = vector.load %arg2[%c0, %c0_0, %c0_1] : memref<1x257x128xf32, #tpu.memory_space<vmem>>, vector<1x257x128xf32>
    %1 = vector.shape_cast %0 : vector<1x257x128xf32> to vector<257x128xf32>
    %c0_2 = arith.constant 0 : index
    %c0_3 = arith.constant 0 : index
    %c0_4 = arith.constant 0 : index
    %2 = vector.load %arg3[%c0_2, %c0_3, %c0_4] : memref<1x257x128xf32, #tpu.memory_space<vmem>>, vector<1x257x128xf32>
    %3 = vector.shape_cast %2 : vector<1x257x128xf32> to vector<257x128xf32>
    %c128_i32 = arith.constant 128 : i32
    %4 = arith.muli %arg1, %c128_i32 : i32
    %5 = tpu.iota {dimensions = array<i32: 1>} : vector<257x128xi32>
    %6 = vector.broadcast %4 : i32 to vector<257x128xi32>
    %7 = arith.addi %6, %5 : vector<257x128xi32>
    %c200_i32 = arith.constant 200 : i32
    %8 = vector.broadcast %c200_i32 : i32 to vector<257x128xi32>
    %9 = arith.cmpi slt, %7, %8 : vector<257x128xi32>
    %cst = arith.constant 0.000000e+00 : f32
    %10 = vector.broadcast %cst : f32 to vector<257x128xf32>
    %11 = arith.select %9, %1, %10 : vector<257x128xi1>, vector<257x128xf32>
    %cst_5 = arith.constant 0.000000e+00 : f32
    %12 = vector.broadcast %cst_5 : f32 to vector<257x128xf32>
    %13 = arith.select %9, %3, %12 : vector<257x128xi1>, vector<257x128xf32>
    %14 = math.cos %13 : vector<257x128xf32>
    %15 = arith.mulf %11, %14 : vector<257x128xf32>
    %16 = math.sin %13 : vector<257x128xf32>
    %17 = arith.mulf %11, %16 : vector<257x128xf32>
    %18 = tpu.iota {dimensions = array<i32: 0>} : vector<256x128xi32>
    %19 = vector.extract_strided_slice %15 {offsets = [0, 0], sizes = [256, 128], strides = [1, 1]} : vector<257x128xf32> to vector<256x128xf32>
    %c0_i32 = arith.constant 0 : i32
    %20 = vector.broadcast %c0_i32 : i32 to vector<256x128xi32>
    %21 = arith.cmpi eq, %18, %20 : vector<256x128xi32>
    %22 = vector.extract_strided_slice %15 {offsets = [256, 0], sizes = [1, 128], strides = [1, 1]} : vector<257x128xf32> to vector<1x128xf32>
    %23 = vector.extract_strided_slice %17 {offsets = [0, 0], sizes = [256, 128], strides = [1, 1]} : vector<257x128xf32> to vector<256x128xf32>
    %24 = vector.shape_cast %22 : vector<1x128xf32> to vector<1x128xf32>
    %25 = vector.broadcast %24 : vector<1x128xf32> to vector<256x128xf32>
    %26 = arith.select %21, %25, %23 : vector<256x128xi1>, vector<256x128xf32>
    %27 = tpu.transpose %19, [1, 0] : vector<256x128xf32> -> vector<128x256xf32>
    %28 = tpu.transpose %26, [1, 0] : vector<256x128xf32> -> vector<128x256xf32>
    %c0_6 = arith.constant 0 : index
    %c0_7 = arith.constant 0 : index
    %29 = vector.load %arg4[%c0_6, %c0_7] : memref<256x512xf32, #tpu.memory_space<vmem>>, vector<256x512xf32>
    %cst_8 = arith.constant dense<0.000000e+00> : vector<128x512xf32>
    %30 = tpu.matmul %27, %29, %cst_8 {dimension_numbers = #tpu.dot_dimension_numbers<[1], [0], [0], [1], [0, 0, 1, 1], [], []>} : vector<128x256xf32>, vector<256x512xf32>, vector<128x512xf32> -> vector<128x512xf32>
    %c0_9 = arith.constant 0 : index
    %c0_10 = arith.constant 0 : index
    %31 = vector.load %arg5[%c0_9, %c0_10] : memref<256x512xf32, #tpu.memory_space<vmem>>, vector<256x512xf32>
    %cst_11 = arith.constant dense<0.000000e+00> : vector<128x512xf32>
    %32 = tpu.matmul %28, %31, %cst_11 {dimension_numbers = #tpu.dot_dimension_numbers<[1], [0], [0], [1], [0, 0, 1, 1], [], []>} : vector<128x256xf32>, vector<256x512xf32>, vector<128x512xf32> -> vector<128x512xf32>
    %33 = arith.addf %30, %32 : vector<128x512xf32>
    %34 = vector.extract_strided_slice %33 {offsets = [0, 0], sizes = [128, 256], strides = [1, 1]} : vector<128x512xf32> to vector<128x256xf32>
    %c0_i32_12 = arith.constant 0 : i32
    %35 = arith.cmpi eq, %arg1, %c0_i32_12 : i32
    %36 = arith.extui %35 : i1 to i32
    %c0_i32_13 = arith.constant 0 : i32
    %37 = arith.cmpi ne, %36, %c0_i32_13 : i32
    scf.if %37 {
      %cst_21 = arith.constant 0.000000e+00 : f32
      %48 = vector.broadcast %cst_21 : f32 to vector<1x256xf32>
      %c0_22 = arith.constant 0 : index
      %c0_23 = arith.constant 0 : index
      %49 = vector.load %arg7[%c0_22, %c0_23] : memref<1x256xf32, #tpu.memory_space<vmem>>, vector<1x256xf32>
      tpu.vector_store %arg7[%c0_22, %c0_23], %48 {strides = array<i32>} : memref<1x256xf32, #tpu.memory_space<vmem>>, vector<1x256xf32>,
    } else {
    }
    %c0_14 = arith.constant 0 : index
    %c0_15 = arith.constant 0 : index
    %38 = vector.load %arg7[%c0_14, %c0_15] : memref<1x256xf32, #tpu.memory_space<vmem>>, vector<1x256xf32>
    %39 = vector.extract_strided_slice %33 {offsets = [0, 256], sizes = [128, 256], strides = [1, 1]} : vector<128x512xf32> to vector<128x256xf32>
    %40 = vector.extract_strided_slice %39 {offsets = [0, 0], sizes = [127, 256], strides = [1, 1]} : vector<128x256xf32> to vector<127x256xf32>
    %41 = tpu.concatenate %38, %40 in 0 : vector<1x256xf32>, vector<127x256xf32> -> vector<128x256xf32>
    %42 = arith.addf %34, %41 : vector<128x256xf32>
    %43 = vector.extract_strided_slice %39 {offsets = [127, 0], sizes = [1, 256], strides = [1, 1]} : vector<128x256xf32> to vector<1x256xf32>
    %c0_16 = arith.constant 0 : index
    %c0_17 = arith.constant 0 : index
    %44 = vector.load %arg7[%c0_16, %c0_17] : memref<1x256xf32, #tpu.memory_space<vmem>>, vector<1x256xf32>
    tpu.vector_store %arg7[%c0_16, %c0_17], %43 {strides = array<i32>} : memref<1x256xf32, #tpu.memory_space<vmem>>, vector<1x256xf32>,
    %c0_18 = arith.constant 0 : index
    %c0_19 = arith.constant 0 : index
    %c0_20 = arith.constant 0 : index
    %45 = vector.load %arg6[%c0_18, %c0_19, %c0_20] : memref<1x128x256xf32, #tpu.memory_space<vmem>>, vector<1x128x256xf32>
    %46 = vector.shape_cast %45 : vector<1x128x256xf32> to vector<128x256xf32>
    %47 = vector.shape_cast %42 : vector<128x256xf32> to vector<1x128x256xf32>
    tpu.vector_store %arg6[%c0_18, %c0_19, %c0_20], %47 {strides = array<i32>} : memref<1x128x256xf32, #tpu.memory_space<vmem>>, vector<1x128x256xf32>,
    return
  }
  func.func @transform_0(%arg0: i32, %arg1: i32) -> (i32, i32, i32) {
    %c1_i32 = arith.constant 1 : i32
    %0 = arith.minsi %arg1, %c1_i32 : i32
    %c0_i32 = arith.constant 0 : i32
    %c0_i32_0 = arith.constant 0 : i32
    return %arg0, %c0_i32, %0 : i32, i32, i32
  }
  func.func @transform_1(%arg0: i32, %arg1: i32) -> (i32, i32, i32) {
    %c1_i32 = arith.constant 1 : i32
    %0 = arith.minsi %arg1, %c1_i32 : i32
    %c0_i32 = arith.constant 0 : i32
    %c0_i32_0 = arith.constant 0 : i32
    return %arg0, %c0_i32, %0 : i32, i32, i32
  }
  func.func @transform_2(%arg0: i32, %arg1: i32) -> (i32, i32) {
    %c0_i32 = arith.constant 0 : i32
    %c0_i32_0 = arith.constant 0 : i32
    %c0_i32_1 = arith.constant 0 : i32
    return %c0_i32, %c0_i32_0 : i32, i32
  }
  func.func @transform_3(%arg0: i32, %arg1: i32) -> (i32, i32) {
    %c0_i32 = arith.constant 0 : i32
    %c0_i32_0 = arith.constant 0 : i32
    %c0_i32_1 = arith.constant 0 : i32
    return %c0_i32, %c0_i32_0 : i32, i32
  }
  func.func @transform_4(%arg0: i32, %arg1: i32) -> (i32, i32, i32) {
    %c0_i32 = arith.constant 0 : i32
    %c0_i32_0 = arith.constant 0 : i32
    return %arg0, %arg1, %c0_i32 : i32, i32, i32
  }
}

</mosaic_0001>

<bundles_post_ra>
// kernel: tpu_custom_call.1
= control target key start
LH: loop header
LB: loop body
LE: loop exit
PB: predicated region body
PF: predicated region fallthrough
CT: control target
= control target key end

     0   :  { %s20123_s0 = inlined_call_operand.vmem [shape: f32[2,257,200], index: 0, kind: input, shape index: {}]   ;;  %s20124_s1 = inlined_call_operand.vmem [shape: f32[2,257,200], index: 1, kind: input, shape index: {}]   ;;  %s20125_s2 = inlined_call_operand.vmem [shape: f32[256,512], index: 2, kind: input, shape index: {}]   ;;  %s20126_s3 = inlined_call_operand.vmem [shape: f32[256,512], index: 3, kind: input, shape index: {}]   ;;  %s20127_s4 = inlined_call_operand.hbm [shape: f32[2,256,256], index: 4, kind: output, shape index: {}]  }
   0x1   :  { %20446 = sst [smem:[#allocation151_spill]] %s20123_s0 }
   0x2   :  { %9 = vsyncpa [#allocation6], 0 }
   0x3   :  { %11 = vsyncpa [#allocation6 + $0x1], 0  ;;  %s13493_s15 = smov 0   ;;  %s13495_s16 = smov 0  }
   0x4   :  { %s13497_s17 = smov 0   ;;  %s13499_s18 = smov 0  }
   0x5   :  { %s13501_s19 = smov 0   ;;  %s13503_s20 = smov 0  }
   0x6   :  { %s13505_s21 = smov 0   ;;  %s13507_s22 = smov 0  }
   0x7   :  { %s13509_s23 = smov 0   ;;  %s13511_s24 = smov 0  }
   0x8 LB: > { %s12689_s25 = sadd.s32 4294967295, %s13452_s24   ;;  %s12690_s26 = sadd.s32 4294967294, %s13452_s24   ;;  %s13452_s24 = sphi %s13511_s24, %s17_s24   ;;  %s13448_s23 = sphi %s13509_s23, %s21122_s23   ;;  %s13444_s22 = sphi %s13507_s22, %s21121_s22   ;;  %s13440_s21 = sphi %s13505_s21, %s21120_s21   ;;  %s13436_s20 = sphi %s13503_s20, %s21119_s20   ;;  %s13432_s19 = sphi %s13501_s19, %s21118_s19   ;;  %s13428_s18 = sphi %s13499_s18, %s21117_s18   ;;  %s13424_s17 = sphi %s13497_s17, %s21116_s17   ;;  %s13420_s16 = sphi %s13495_s16, %s21115_s16   ;;  %s13416_s15 = sphi %s13493_s15, %s21114_s15  }
   0x9   : > { %s26_s27 = sadd.s32 1, %s13444_s22  ;;  %s29_s28 = sadd.s32 1, %s13448_s23 }
   0xa   : > { %p27_p0 = scmp.ge.s32.totalorder %s26_s27, 2  ;;  %p33_p1 = scmp.lt.s32.totalorder %s13444_s22, 1 }
   0xb   : > { %s42_s29 = sadd.s32 1, %s13432_s19  ;;  %p49_p2 = scmp.ne.s32.totalorder %s13432_s19, %s13428_s18 }
   0xc   : > { %s21124_s27 = smov (%p27_p0, %s26_s27), 0  ;;  %s21126_s28 = smov (!%p27_p0, %s29_s28), %s13448_s23 }
   0xd   : > { %s13555_s30 = scalar_select %p33_p1, %s13444_s22, 1 }
   0xe   : > { %p31_p3 = scmp.ge.s32.totalorder %s21126_s28, 2  ;;  %p35_p4 = scmp.lt.s32.totalorder %s21124_s27, 1 }
   0xf   : > { %p50_p5 = scmp.eq.s32.totalorder %s13452_s24, 0  ;;  %s140_s5 = ssub.s32 %s13444_s22, %s21124_s27 }
  0x10   : > { %s21128_s28 = smov (%p31_p3, %s21126_s28), 0  ;;  %s144_s12 = sadd.s32 1, %s13424_s17 }
  0x11   : > { %20447 = sst [smem:[#allocation8_spill]] %s21128_s28  ;;  %s37_s7 = ssub.s32 %s13448_s23, %s21128_s28 }
  0x12   : > { %s36_s6 = scalar_select %p35_p4, %s21124_s27, 1 }
  0x13   : > { %p13566_p6 = por %p50_p5, %p49_p2  ;;  %s141_s10 = sor.u32 %s140_s5, %s37_s7 }
  0x14   : > { %s38_s9 = ssub.s32 %s13555_s30, %s36_s6  ;;  %p142_p7 = scmp.eq.s32.totalorder %s141_s10, 0 }
  0x15   : > { %s39_s11 = sor.u32 %s38_s9, %s37_s7  ;;  %p154_p9 = scmp.ne.s32.totalorder %s13424_s17, %s13420_s16 }
  0x16   : > { %p40_p8 = scmp.eq.s32.totalorder %s39_s11, 0  ;;  %p155_p10 = scmp.eq.s32.totalorder %s12689_s25, 3 }
  0x17   : > { %s13573_s13 = scalar_select %p142_p7, %s13424_s17, %s144_s12  }
  0x18   : > { %s13576_s14 = scalar_select %p40_p8, %s13432_s19, %s42_s29  }
  0x19   : > { %p160_p11 = scmp.ne.s32.totalorder %s13420_s16, %s13416_s15  ;;  %p161_p12 = scmp.eq.s32.totalorder %s12690_s26, 3 }
  0x1a   : > { %p13584_p13 = por %p155_p10, %p154_p9  ;;  %p12692_p1 = scmp.ge.s32.totalorder %s13452_s24, 4 }
  0x1b   : > { %p13588_p0 = por %p161_p12, %p160_p11 }
  0x1c   : > { %183 = sbr.rel (%p12692_p1) target bundleno = 115 (0x73), region = 24 }
  0x21   : > { %186 = sbr.rel (!%p13566_p6) target bundleno = 75 (0x4b), region = 28  ;;  %s188_s25 = sand.u32 (%p13566_p6), 1, %s13432_s19  }
  0x22   : > { %s13129_s29 = smul.u32 (%p13566_p6), 66, %s13448_s23  ;;  %s20451_s0 = sld [smem:[#allocation151_spill]] (%p13566_p6) }
  0x23   : > { %s13128_s26 = smul.u32 (%p13566_p6), 264, %s188_s25 }
  0x24   : > { %s194_s5 = sadd.s32 (%p13566_p6), %s13129_s29, %s13555_s30 }
  0x25   : > { %s12693_s7 = sshll.u32 (%p13566_p6), %s194_s5, 3  ;;  %s13606_s12 = scalar_lea.vmem (%p13566_p6), [#allocation3], %s13128_s26 }
  0x28   : > { %s13601_s11 = scalar_lea.vmem %s20451_s0, %s12693_s7 }
  0x29   : > { %v289_v0 = vld [vmem:[%s13601_s11] sm:$0xff]  ;;  %v291_v1 = vld [vmem:[%s13601_s11 + $0x10] sm:$0xff] }
  0x2a   : > { %v293_v2 = vld [vmem:[%s13601_s11 + $0x20] sm:$0xff]  ;;  %290 = vst [vmem:[%s13606_s12] sm:$0xff] %v289_v0  ;;  %v295_v3 = vld [vmem:[%s13601_s11 + $0x30] sm:$0xff] }
  0x2b   : > { %292 = vst [vmem:[%s13606_s12 + $0x8] sm:$0xff] %v291_v1  ;;  %v297_v4 = vld [vmem:[%s13601_s11 + $0x40] sm:$0xff]  ;;  %v299_v5 = vld [vmem:[%s13601_s11 + $0x50] sm:$0xff] }
  0x2c   : > { %294 = vst [vmem:[%s13606_s12 + $0x10] sm:$0xff] %v293_v2  ;;  %v301_v6 = vld [vmem:[%s13601_s11 + $0x60] sm:$0xff]  ;;  %v303_v7 = vld [vmem:[%s13601_s11 + $0x70] sm:$0xff] }
  0x2d   : > { %296 = vst [vmem:[%s13606_s12 + $0x18] sm:$0xff] %v295_v3  ;;  %v305_v8 = vld [vmem:[%s13601_s11 + $0x80] sm:$0xff]  ;;  %v307_v9 = vld [vmem:[%s13601_s11 + $0x90] sm:$0xff] }
  0x2e   : > { %298 = vst [vmem:[%s13606_s12 + $0x20] sm:$0xff] %v297_v4  ;;  %v309_v10 = vld [vmem:[%s13601_s11 + $0xa0] sm:$0xff]  ;;  %v311_v11 = vld [vmem:[%s13601_s11 + $0xb0] sm:$0xff] }
  0x2f   : > { %300 = vst [vmem:[%s13606_s12 + $0x28] sm:$0xff] %v299_v5  ;;  %v313_v12 = vld [vmem:[%s13601_s11 + $0xc0] sm:$0xff]  ;;  %v315_v13 = vld [vmem:[%s13601_s11 + $0xd0] sm:$0xff] }
  0x30   : > { %302 = vst [vmem:[%s13606_s12 + $0x30] sm:$0xff] %v301_v6  ;;  %v317_v14 = vld [vmem:[%s13601_s11 + $0xe0] sm:$0xff]  ;;  %v319_v15 = vld [vmem:[%s13601_s11 + $0xf0] sm:$0xff] }
  0x31   : > { %304 = vst [vmem:[%s13606_s12 + $0x38] sm:$0xff] %v303_v7  ;;  %v321_v16 = vld [vmem:[%s13601_s11 + $0x100] sm:$0xff]  ;;  %v323_v17 = vld [vmem:[%s13601_s11 + $0x110] sm:$0xff] }
  0x32   : > { %306 = vst [vmem:[%s13606_s12 + $0x40] sm:$0xff] %v305_v8  ;;  %v325_v18 = vld [vmem:[%s13601_s11 + $0x120] sm:$0xff]  ;;  %v327_v19 = vld [vmem:[%s13601_s11 + $0x130] sm:$0xff] }
  0x33   : > { %308 = vst [vmem:[%s13606_s12 + $0x48] sm:$0xff] %v307_v9  ;;  %v329_v20 = vld [vmem:[%s13601_s11 + $0x140] sm:$0xff]  ;;  %v331_v21 = vld [vmem:[%s13601_s11 + $0x150] sm:$0xff] }
  0x34   : > { %310 = vst [vmem:[%s13606_s12 + $0x50] sm:$0xff] %v309_v10  ;;  %v333_v22 = vld [vmem:[%s13601_s11 + $0x160] sm:$0xff]  ;;  %v335_v23 = vld [vmem:[%s13601_s11 + $0x170] sm:$0xff] }
  0x35   : > { %312 = vst [vmem:[%s13606_s12 + $0x58] sm:$0xff] %v311_v11  ;;  %v337_v24 = vld [vmem:[%s13601_s11 + $0x180] sm:$0xff]  ;;  %v339_v25 = vld [vmem:[%s13601_s11 + $0x190] sm:$0xff] }
  0x36   : > { %314 = vst [vmem:[%s13606_s12 + $0x60] sm:$0xff] %v313_v12  ;;  %v341_v26 = vld [vmem:[%s13601_s11 + $0x1a0] sm:$0xff]  ;;  %v343_v27 = vld [vmem:[%s13601_s11 + $0x1b0] sm:$0xff] }
  0x37   : > { %316 = vst [vmem:[%s13606_s12 + $0x68] sm:$0xff] %v315_v13  ;;  %v345_v28 = vld [vmem:[%s13601_s11 + $0x1c0] sm:$0xff]  ;;  %v347_v29 = vld [vmem:[%s13601_s11 + $0x1d0] sm:$0xff] }
  0x38   : > { %318 = vst [vmem:[%s13606_s12 + $0x70] sm:$0xff] %v317_v14  ;;  %v349_v30 = vld [vmem:[%s13601_s11 + $0x1e0] sm:$0xff]  ;;  %v351_v31 = vld [vmem:[%s13601_s11 + $0x1f0] sm:$0xff] }
  0x39   : > { %320 = vst [vmem:[%s13606_s12 + $0x78] sm:$0xff] %v319_v15  ;;  %v353_v32 = vld [vmem:[%s13601_s11 + $0x200] sm:$0xff] }
  0x3a   : > { %322 = vst [vmem:[%s13606_s12 + $0x80] sm:$0xff] %v321_v16 }
  0x3b   : > { %324 = vst [vmem:[%s13606_s12 + $0x88] sm:$0xff] %v323_v17 }
  0x3c   : > { %326 = vst [vmem:[%s13606_s12 + $0x90] sm:$0xff] %v325_v18 }
  0x3d   : > { %328 = vst [vmem:[%s13606_s12 + $0x98] sm:$0xff] %v327_v19 }
  0x3e   : > { %330 = vst [vmem:[%s13606_s12 + $0xa0] sm:$0xff] %v329_v20 }
  0x3f   : > { %332 = vst [vmem:[%s13606_s12 + $0xa8] sm:$0xff] %v331_v21 }
  0x40   : > { %334 = vst [vmem:[%s13606_s12 + $0xb0] sm:$0xff] %v333_v22 }
  0x41   : > { %336 = vst [vmem:[%s13606_s12 + $0xb8] sm:$0xff] %v335_v23 }
  0x42   : > { %338 = vst [vmem:[%s13606_s12 + $0xc0] sm:$0xff] %v337_v24 }
  0x43   : > { %340 = vst [vmem:[%s13606_s12 + $0xc8] sm:$0xff] %v339_v25 }
  0x44   : > { %342 = vst [vmem:[%s13606_s12 + $0xd0] sm:$0xff] %v341_v26 }
  0x45   : > { %344 = vst [vmem:[%s13606_s12 + $0xd8] sm:$0xff] %v343_v27 }
  0x46   : > { %346 = vst [vmem:[%s13606_s12 + $0xe0] sm:$0xff] %v345_v28 }
  0x47   : > { %348 = vst [vmem:[%s13606_s12 + $0xe8] sm:$0xff] %v347_v29 }
  0x48   : > { %350 = vst [vmem:[%s13606_s12 + $0xf0] sm:$0xff] %v349_v30 }
  0x49   : > { %352 = vst [vmem:[%s13606_s12 + $0xf8] sm:$0xff] %v351_v31 }
  0x4a   : > { %354 = vst [vmem:[%s13606_s12 + $0x100] sm:$0xff] %v353_v32 }
  0x4b PF: > { %360 = sbr.rel (!%p13566_p6) target bundleno = 115 (0x73), region = 66  ;;  %s362_s25 = sand.u32 (%p13566_p6), 1, %s13432_s19  }
  0x4c   : > { %s13131_s29 = smul.u32 (%p13566_p6), 66, %s13448_s23 }
  0x4d   : > { %s13130_s26 = smul.u32 (%p13566_p6), 264, %s362_s25 }
  0x4e   : > { %s368_s5 = sadd.s32 (%p13566_p6), %s13131_s29, %s13555_s30 }
  0x4f   : > { %s12694_s7 = sshll.u32 (%p13566_p6), %s368_s5, 3  ;;  %s13684_s30 = scalar_lea.vmem (%p13566_p6), [#allocation4], %s13130_s26 }
  0x50   : > { %s13679_s0 = scalar_lea.vmem %s20124_s1, %s12694_s7 }
  0x51   : > { %v463_v33 = vld [vmem:[%s13679_s0] sm:$0xff]  ;;  %v465_v34 = vld [vmem:[%s13679_s0 + $0x10] sm:$0xff] }
  0x52   : > { %v467_v35 = vld [vmem:[%s13679_s0 + $0x20] sm:$0xff]  ;;  %464 = vst [vmem:[%s13684_s30] sm:$0xff] %v463_v33  ;;  %v469_v36 = vld [vmem:[%s13679_s0 + $0x30] sm:$0xff] }
  0x53   : > { %466 = vst [vmem:[%s13684_s30 + $0x8] sm:$0xff] %v465_v34  ;;  %v471_v37 = vld [vmem:[%s13679_s0 + $0x40] sm:$0xff]  ;;  %v473_v38 = vld [vmem:[%s13679_s0 + $0x50] sm:$0xff] }
  0x54   : > { %468 = vst [vmem:[%s13684_s30 + $0x10] sm:$0xff] %v467_v35  ;;  %v475_v39 = vld [vmem:[%s13679_s0 + $0x60] sm:$0xff]  ;;  %v477_v40 = vld [vmem:[%s13679_s0 + $0x70] sm:$0xff] }
  0x55   : > { %470 = vst [vmem:[%s13684_s30 + $0x18] sm:$0xff] %v469_v36  ;;  %v479_v41 = vld [vmem:[%s13679_s0 + $0x80] sm:$0xff]  ;;  %v481_v42 = vld [vmem:[%s13679_s0 + $0x90] sm:$0xff] }
  0x56   : > { %472 = vst [vmem:[%s13684_s30 + $0x20] sm:$0xff] %v471_v37  ;;  %v483_v43 = vld [vmem:[%s13679_s0 + $0xa0] sm:$0xff]  ;;  %v485_v44 = vld [vmem:[%s13679_s0 + $0xb0] sm:$0xff] }
  0x57   : > { %474 = vst [vmem:[%s13684_s30 + $0x28] sm:$0xff] %v473_v38  ;;  %v487_v45 = vld [vmem:[%s13679_s0 + $0xc0] sm:$0xff]  ;;  %v489_v46 = vld [vmem:[%s13679_s0 + $0xd0] sm:$0xff] }
  0x58   : > { %476 = vst [vmem:[%s13684_s30 + $0x30] sm:$0xff] %v475_v39  ;;  %v491_v47 = vld [vmem:[%s13679_s0 + $0xe0] sm:$0xff]  ;;  %v493_v48 = vld [vmem:[%s13679_s0 + $0xf0] sm:$0xff] }
  0x59   : > { %478 = vst [vmem:[%s13684_s30 + $0x38] sm:$0xff] %v477_v40  ;;  %v495_v49 = vld [vmem:[%s13679_s0 + $0x100] sm:$0xff]  ;;  %v497_v50 = vld [vmem:[%s13679_s0 + $0x110] sm:$0xff] }
  0x5a   : > { %480 = vst [vmem:[%s13684_s30 + $0x40] sm:$0xff] %v479_v41  ;;  %v499_v51 = vld [vmem:[%s13679_s0 + $0x120] sm:$0xff]  ;;  %v501_v52 = vld [vmem:[%s13679_s0 + $0x130] sm:$0xff] }
  0x5b   : > { %482 = vst [vmem:[%s13684_s30 + $0x48] sm:$0xff] %v481_v42  ;;  %v503_v53 = vld [vmem:[%s13679_s0 + $0x140] sm:$0xff]  ;;  %v505_v54 = vld [vmem:[%s13679_s0 + $0x150] sm:$0xff] }
  0x5c   : > { %484 = vst [vmem:[%s13684_s30 + $0x50] sm:$0xff] %v483_v43  ;;  %v507_v55 = vld [vmem:[%s13679_s0 + $0x160] sm:$0xff]  ;;  %v509_v56 = vld [vmem:[%s13679_s0 + $0x170] sm:$0xff] }
  0x5d   : > { %486 = vst [vmem:[%s13684_s30 + $0x58] sm:$0xff] %v485_v44  ;;  %v511_v57 = vld [vmem:[%s13679_s0 + $0x180] sm:$0xff]  ;;  %v513_v58 = vld [vmem:[%s13679_s0 + $0x190] sm:$0xff] }
  0x5e   : > { %488 = vst [vmem:[%s13684_s30 + $0x60] sm:$0xff] %v487_v45  ;;  %v515_v59 = vld [vmem:[%s13679_s0 + $0x1a0] sm:$0xff]  ;;  %v517_v60 = vld [vmem:[%s13679_s0 + $0x1b0] sm:$0xff] }
  0x5f   : > { %490 = vst [vmem:[%s13684_s30 + $0x68] sm:$0xff] %v489_v46  ;;  %v519_v61 = vld [vmem:[%s13679_s0 + $0x1c0] sm:$0xff]  ;;  %v521_v62 = vld [vmem:[%s13679_s0 + $0x1d0] sm:$0xff] }
  0x60   : > { %492 = vst [vmem:[%s13684_s30 + $0x70] sm:$0xff] %v491_v47  ;;  %v523_v63 = vld [vmem:[%s13679_s0 + $0x1e0] sm:$0xff]  ;;  %v525_v0 = vld [vmem:[%s13679_s0 + $0x1f0] sm:$0xff] }
  0x61   : > { %494 = vst [vmem:[%s13684_s30 + $0x78] sm:$0xff] %v493_v48  ;;  %v527_v1 = vld [vmem:[%s13679_s0 + $0x200] sm:$0xff] }
  0x62   : > { %496 = vst [vmem:[%s13684_s30 + $0x80] sm:$0xff] %v495_v49 }
  0x63   : > { %498 = vst [vmem:[%s13684_s30 + $0x88] sm:$0xff] %v497_v50 }
  0x64   : > { %500 = vst [vmem:[%s13684_s30 + $0x90] sm:$0xff] %v499_v51 }
  0x65   : > { %502 = vst [vmem:[%s13684_s30 + $0x98] sm:$0xff] %v501_v52 }
  0x66   : > { %504 = vst [vmem:[%s13684_s30 + $0xa0] sm:$0xff] %v503_v53 }
  0x67   : > { %506 = vst [vmem:[%s13684_s30 + $0xa8] sm:$0xff] %v505_v54 }
  0x68   : > { %508 = vst [vmem:[%s13684_s30 + $0xb0] sm:$0xff] %v507_v55 }
  0x69   : > { %510 = vst [vmem:[%s13684_s30 + $0xb8] sm:$0xff] %v509_v56 }
  0x6a   : > { %512 = vst [vmem:[%s13684_s30 + $0xc0] sm:$0xff] %v511_v57 }
  0x6b   : > { %514 = vst [vmem:[%s13684_s30 + $0xc8] sm:$0xff] %v513_v58 }
  0x6c   : > { %516 = vst [vmem:[%s13684_s30 + $0xd0] sm:$0xff] %v515_v59 }
  0x6d   : > { %518 = vst [vmem:[%s13684_s30 + $0xd8] sm:$0xff] %v517_v60 }
  0x6e   : > { %520 = vst [vmem:[%s13684_s30 + $0xe0] sm:$0xff] %v519_v61 }
  0x6f   : > { %522 = vst [vmem:[%s13684_s30 + $0xe8] sm:$0xff] %v521_v62 }
  0x70   : > { %524 = vst [vmem:[%s13684_s30 + $0xf0] sm:$0xff] %v523_v63 }
  0x71   : > { %526 = vst [vmem:[%s13684_s30 + $0xf8] sm:$0xff] %v525_v0 }
  0x72   : > { %528 = vst [vmem:[%s13684_s30 + $0x100] sm:$0xff] %v527_v1 }
  0x73 PF: > { %p12695_p2 = scmp.ge.s32.totalorder %s13452_s24, 1  ;;  %p533_p3 = scmp.lt.s32.totalorder %s13452_s24, 5 }
  0x75   : > { %p534_p4 = pnand %p12695_p2, %p533_p3 }
  0x77   : > { %537 = sbr.rel (%p534_p4) target bundleno = 2197 (0x895), region = 104 }
  0x7c   : > { %s540_s8 = sand.u32 1, %s13428_s18   ;;  %s12697_s11 = sshll.u32 %s13436_s20, 7  ;;  %v20130_v2 = vlaneseq  ;;  %v20144_v37 = vmov 683565275   ;;  %v20155_v39 = vmov 2475754826  }
  0x7d   : > { %s13753_s12 = smul.u32 264, %s540_s8  ;;  %v650_v3 = vstv %s12697_s11  ;;  %v20153_v41 = vmov 2131351028   ;;  %v20151_v43 = vmov 2102212464   ;;  %s573_s25 = sand.u32 1, %s13420_s16  }
  0x7e   : > { %v649_v4 = vand.u32 127, %v20130_v2  ;;  %v20147_v45 = vmov 920167782   ;;  %v20149_v54 = vmov 1326507024   ;;  %s17838_s29 = sshll.u32 %s573_s25, 8 }
  0x7f   : > { %s13759_s0 = scalar_lea.vmem [#allocation4], %s13753_s12  ;;  %s14075_s18 = scalar_lea.vmem [#allocation3], %s13753_s12 }
  0x80   : > { %v13756_v5 = vadd.s32 %v650_v3, %v649_v4  ;;  %v614_v6 = vld [vmem:[%s13759_s0] sm:$0xff]  ;;  %s19936_s10 = scalar_lea.vmem [#allocation5], %s17838_s29  ;;  %p12893_p5 = scmp.ne.s32.totalorder %s13436_s20, 0 }
  0x81   : > { %v630_v7 = vld [vmem:[%s13759_s0 + $0x80] sm:$0xff] }
  0x82   : > { %v646_v8 = vld [vmem:[%s13759_s0 + $0x100] sm:$0x1]  ;;  %vm652_vm0 = vcmp.lt.s32.totalorder %v13756_v5, 200 }
  0x83   : > { %v13767_v9 = vsel %vm652_vm0, %v614_v6, 0.0  ;;  %v13771_v10 = vsel %vm652_vm0, %v630_v7, 0.0  ;;  %v13775_v11 = vsel %vm652_vm0, %v646_v8, 0.0 }
  0x84   : > { %20452 = vst [vmem:[#allocation9_spill] sm:$0xff] %v13767_v9  ;;  %v719_v12 = vand.u32 2147483647, %v13767_v9  ;;  %v722_v13 = vand.u32 2139095040, %v13767_v9  ;;  %v3183_v14 = vand.u32 2147483647, %v13771_v10 }
  0x85   : > { %20453 = vst [vmem:[#allocation10_spill] sm:$0xff] %v13771_v10  ;;  %v3186_v15 = vand.u32 2139095040, %v13771_v10  ;;  %v5650_v19 = vand.u32 2139095040, %v13775_v11 }
  0x86   : > { %v726_v16 = vand.u32 8388607, %v719_v12  ;;  %v723_v17 = vshrl.u32 %v722_v13, 23  ;;  %v3190_v20 = vand.u32 8388607, %v3183_v14 }
  0x87   : > { %v3187_v18 = vshrl.u32 %v3186_v15, 23  ;;  %v5651_v26 = vshrl.u32 %v5650_v19, 23 }
  0x88   : > { %v12698_v21 = vadd.s32 4294967169, %v723_v17  ;;  %v727_v23 = vor.u32 8388608, %v726_v16  ;;  %v3191_v27 = vor.u32 8388608, %v3190_v20 }
  0x89   : > { %v12746_v22 = vadd.s32 4294967169, %v3187_v18  ;;  %v12794_v32 = vadd.s32 4294967169, %v5651_v26 }
  0x8a   : > { %v729_v24 = vadd.s32 1, %v12698_v21  ;;  %v13786_v29 = vshll.u32 %v727_v23, 8  ;;  %v13792_v35 = vshll.u32 %v3191_v27, 8 }
  0x8b   : > { %v3193_v25 = vadd.s32 1, %v12746_v22  ;;  %v13804_v52 = vadd.s32 1, %v12794_v32 }
  0x8c   : > { %vm730_vm1 = vcmp.gt.s32.totalorder %v729_v24, 0  ;;  %v768_v47 = vand.u32 65535, %v13786_v29  ;;  %v769_v48 = vshrl.u32 %v13786_v29, 16 }
  0x8d   : > { %vm3194_vm2 = vcmp.gt.s32.totalorder %v3193_v25, 0  ;;  %v731_v28 = vsel %vm730_vm1, %v729_v24, 0  ;;  %vm5658_vm1 = vcmp.gt.s32.totalorder %v13804_v52, 0 }
  0x8e   : > { %v3195_v30 = vsel %vm3194_vm2, %v3193_v25, 0  ;;  %v733_v31 = vand.u32 31, %v731_v28  ;;  %v13788_v33 = vshrl.u32 %v731_v28, 5 }
  0x8f   : > { %v13790_v34 = vand.u32 31, %v3195_v30  ;;  %v13820_v1 = vshrl.u32 %v3195_v30, 5 }
  0x90   : > { %v734_v36 = vsub.s32 32, %v733_v31  ;;  %v736_v38 = vshll.u32 %v20144_v37, %v733_v31  ;;  %v739_v40 = vshll.u32 %v20155_v39, %v733_v31  ;;  %v742_v42 = vshll.u32 %v20153_v41, %v733_v31 }
  0x91   : > { %v745_v44 = vshll.u32 %v20151_v43, %v733_v31  ;;  %v748_v46 = vshll.u32 %v20147_v45, %v733_v31  ;;  %vm751_vm3 = vcmp.lt.s32.totalorder %v13788_v33, 1  ;;  %vm754_vm4 = vcmp.lt.s32.totalorder %v13788_v33, 4 }
  0x92   : > { %v737_v49 = vshrl.u32 %v20155_v39, %v734_v36  ;;  %v740_v50 = vshrl.u32 %v20153_v41, %v734_v36  ;;  %v743_v51 = vshrl.u32 %v20151_v43, %v734_v36  ;;  %v746_v53 = vshrl.u32 %v20147_v45, %v734_v36 }
  0x93   : > { %v749_v55 = vshrl.u32 %v20149_v54, %v734_v36  ;;  %v13811_v59 = vsub.s32 32, %v13790_v34  ;;  %v735_v60 = vshrl.u32 %v20144_v37, %v734_v36  ;;  %vm753_vm5 = vcmp.lt.s32.totalorder %v13788_v33, 3 }
  0x94   : > { %v738_v56 = vor.u32 %v737_v49, %v736_v38  ;;  %v741_v57 = vor.u32 %v740_v50, %v739_v40  ;;  %v744_v58 = vor.u32 %v743_v51, %v742_v42  ;;  %v747_v61 = vor.u32 %v746_v53, %v745_v44 }
  0x95   : > { %v750_v62 = vor.u32 %v749_v55, %v748_v46  ;;  %vm752_vm6 = vcmp.lt.s32.totalorder %v13788_v33, 2  ;;  %v3200_v6 = vshll.u32 %v20144_v37, %v13790_v34  ;;  %v3203_v7 = vshll.u32 %v20155_v39, %v13790_v34 }
  0x96   : > { %v759_v63 = vsel %vm751_vm3, %v738_v56, %v741_v57  ;;  %v763_v0 = vsel %vm751_vm3, %v741_v57, %v744_v58  ;;  %v760_v3 = vsel %vm754_vm4, %v747_v61, 920167782  ;;  %v756_v8 = vsel %vm754_vm4, %v744_v58, 2102212464 }
  0x97   : > { %v764_v4 = vsel %vm754_vm4, %v750_v62, 1326507024  ;;  %v761_v13 = vsel %vm753_vm5, %v744_v58, %v760_v3  ;;  %v3201_v16 = vshrl.u32 %v20155_v39, %v13811_v59  ;;  %v755_v17 = vsel %vm751_vm3, %v735_v60, %v738_v56 }
  0x98   : > { %v765_v15 = vsel %vm753_vm5, %v747_v61, %v764_v4  ;;  %v762_v18 = vsel %vm752_vm6, %v759_v63, %v761_v13  ;;  %v3204_v20 = vshrl.u32 %v20153_v41, %v13811_v59  ;;  %v757_v25 = vsel %vm753_vm5, %v741_v57, %v756_v8 }
  0x99   : > { %v766_v19 = vsel %vm752_vm6, %v763_v0, %v765_v15  ;;  %v792_v23 = vand.u32 65535, %v762_v18  ;;  %v793_v24 = vshrl.u32 %v762_v18, 16  ;;  %v13848_v26 = vor.u32 %v3201_v16, %v3200_v6 }
  0x9a   : > { %v770_v21 = vand.u32 65535, %v766_v19  ;;  %v771_v22 = vshrl.u32 %v766_v19, 16  ;;  %v13850_v27 = vor.u32 %v3204_v20, %v3203_v7  ;;  %v3206_v28 = vshll.u32 %v20153_v41, %v13790_v34 }
  0x9b   : > { %v3207_v36 = vshrl.u32 %v20151_v43, %v13811_v59  ;;  %v794_v40 = vmul.u32 %v792_v23, %v768_v47  ;;  %v795_v42 = vmul.u32 %v793_v24, %v768_v47  ;;  %v796_v44 = vmul.u32 %v792_v23, %v769_v48 }
  0x9c   : > { %v772_v30 = vmul.u32 %v770_v21, %v768_v47  ;;  %v773_v31 = vmul.u32 %v771_v22, %v768_v47  ;;  %v774_v32 = vmul.u32 %v770_v21, %v769_v48  ;;  %v775_v38 = vmul.u32 %v771_v22, %v769_v48 }
  0x9d   : > { %v797_v51 = vmul.u32 %v793_v24, %v769_v48  ;;  %v798_v55 = vshll.u32 %v795_v42, 16  ;;  %v799_v56 = vshrl.u32 %v795_v42, 16  ;;  %v800_v57 = vshll.u32 %v796_v44, 16 }
  0x9e   : > { %v776_v46 = vshll.u32 %v773_v31, 16  ;;  %v777_v49 = vshrl.u32 %v773_v31, 16  ;;  %v778_v50 = vshll.u32 %v774_v32, 16  ;;  %v779_v53 = vshrl.u32 %v774_v32, 16 }
  0x9f   : > { %v801_v60 = vshrl.u32 %v796_v44, 16  ;;  %v3209_v61 = vshll.u32 %v20151_v43, %v13790_v34  ;;  %v20142_v62 = vmov 0   ;;  %vm802_vm8 = vc.u32 %v794_v40, %v798_v55 }
  0xa0   : > { %vm780_vm7 = vc.u32 %v772_v30, %v776_v46  ;;  %v782_v58 = vadd.s32 %v776_v46, %v772_v30  ;;  %v804_v47 = vadd.s32 %v798_v55, %v794_v40  ;;  %v3210_v0 = vshrl.u32 %v20147_v45, %v13811_v59 }
  0xa1   : > { %v781_v63 = vsel %vm780_vm7, 1, %v20142_v62  ;;  %v803_v48 = vsel %vm802_vm8, 1, %v20142_v62  ;;  %v3212_v4 = vshll.u32 %v20147_v45, %v13790_v34  ;;  %v3208_v8 = vor.u32 %v3207_v36, %v3206_v28 }
  0xa2   : > { %v783_v3 = vadd.s32 %v781_v63, %v775_v38  ;;  %vm784_vm9 = vc.u32 %v782_v58, %v778_v50  ;;  %v805_v7 = vadd.s32 %v803_v48, %v797_v51  ;;  %vm806_vm10 = vc.u32 %v804_v47, %v800_v57 }
  0xa3   : > { %v785_v6 = vsel %vm784_vm9, 1, %v20142_v62  ;;  %v807_v15 = vsel %vm806_vm10, 1, %v20142_v62  ;;  %v3211_v16 = vor.u32 %v3210_v0, %v3209_v61  ;;  %v3213_v18 = vshrl.u32 %v20149_v54, %v13811_v59 }
  0xa4   : > { %v787_v13 = vadd.s32 %v785_v6, %v783_v3  ;;  %v13868_v19 = vadd.s32 %v804_v47, %v800_v57  ;;  %v809_v20 = vadd.s32 %v807_v15, %v805_v7  ;;  %vm3215_vm11 = vcmp.lt.s32.totalorder %v13820_v1, 1 }
  0xa5   : > { %vm3217_vm12 = vcmp.lt.s32.totalorder %v13820_v1, 3  ;;  %v3214_v21 = vor.u32 %v3213_v18, %v3212_v4  ;;  %vm3216_vm13 = vcmp.lt.s32.totalorder %v13820_v1, 2  ;;  %vm3218_vm14 = vcmp.lt.s32.totalorder %v13820_v1, 4 }
  0xa6   : > { %v788_v34 = vadd.s32 %v787_v13, %v777_v49  ;;  %v758_v22 = vsel %vm752_vm6, %v755_v17, %v757_v25  ;;  %v810_v23 = vadd.s32 %v809_v20, %v799_v56  ;;  %v3223_v24 = vsel %vm3215_vm11, %v13848_v26, %v13850_v27 }
  0xa7   : > { %v3224_v28 = vsel %vm3218_vm14, %v3211_v16, 920167782  ;;  %v3227_v32 = vsel %vm3215_vm11, %v13850_v27, %v3208_v8  ;;  %v3232_v33 = vand.u32 65535, %v13792_v35  ;;  %v3228_v36 = vsel %vm3218_vm14, %v3214_v21, 1326507024 }
  0xa8   : > { %v13882_v30 = vadd.s32 %v788_v34, %v779_v53  ;;  %v3225_v31 = vsel %vm3217_vm12, %v3208_v8, %v3224_v28  ;;  %v811_v17 = vadd.s32 %v810_v23, %v801_v60  ;;  %v3233_v38 = vshrl.u32 %v13792_v35, 16 }
  0xa9   : > { %v3226_v25 = vsel %vm3216_vm13, %v3223_v24, %v3225_v31  ;;  %v812_v40 = vmul.u32 %v13786_v29, %v758_v22  ;;  %v3229_v42 = vsel %vm3217_vm12, %v3211_v16, %v3228_v36  ;;  %v3199_v51 = vshrl.u32 %v20144_v37, %v13811_v59 }
  0xaa   : > { %vm814_vm15 = vc.u32 %v13882_v30, %v13868_v19  ;;  %v3256_v44 = vand.u32 65535, %v3226_v25  ;;  %v815_v46 = vadd.s32 1, %v811_v17  ;;  %v3230_v49 = vsel %vm3216_vm13, %v3227_v32, %v3229_v42 }
  0xab   : > { %v3257_v50 = vshrl.u32 %v3226_v25, 16  ;;  %v3220_v29 = vsel %vm3218_vm14, %v3208_v8, 2102212464  ;;  %v3234_v53 = vand.u32 65535, %v3230_v49  ;;  %v3235_v55 = vshrl.u32 %v3230_v49, 16 }
  0xac   : > { %v816_v56 = vsel %vm814_vm15, %v815_v46, %v811_v17  ;;  %v3258_v57 = vmul.u32 %v3256_v44, %v3232_v33  ;;  %v3260_v60 = vmul.u32 %v3256_v44, %v3233_v38  ;;  %v5659_v48 = vsel %vm5658_vm1, %v13804_v52, 0 }
  0xad   : > { %v3259_v58 = vmul.u32 %v3257_v50, %v3232_v33  ;;  %v817_v61 = vadd.s32 %v816_v56, %v812_v40  ;;  %v3236_v63 = vmul.u32 %v3234_v53, %v3232_v33  ;;  %v3237_v47 = vmul.u32 %v3235_v55, %v3232_v33 }
  0xae   : > { %v3238_v0 = vmul.u32 %v3234_v53, %v3233_v38  ;;  %v3219_v59 = vsel %vm3215_vm11, %v3199_v51, %v13848_v26  ;;  %v3239_v6 = vmul.u32 %v3235_v55, %v3233_v38  ;;  %v3221_v8 = vsel %vm3217_vm12, %v13850_v27, %v3220_v29 }
  0xaf   : > { %v3262_v3 = vshll.u32 %v3259_v58, 16  ;;  %v818_v4 = vadd.s32 536870912, %v817_v61  ;;  %v3240_v7 = vshll.u32 %v3237_v47, 16  ;;  %v3261_v15 = vmul.u32 %v3257_v50, %v3233_v38 }
  0xb0   : > { %v3242_v13 = vshll.u32 %v3238_v0, 16  ;;  %v3264_v16 = vshll.u32 %v3260_v60, 16  ;;  %v5661_v26 = vand.u32 31, %v5659_v48  ;;  %v3241_v23 = vshrl.u32 %v3237_v47, 16 }
  0xb1   : > { %v13914_v18 = vshrl.u32 %v818_v4, 30  ;;  %vm3244_vm2 = vc.u32 %v3236_v63, %v3240_v7  ;;  %v3246_v20 = vadd.s32 %v3240_v7, %v3236_v63  ;;  %vm3266_vm3 = vc.u32 %v3258_v57, %v3262_v3 }
  0xb2   : > { %v3245_v52 = vsel %vm3244_vm2, 1, %v20142_v62  ;;  %v3267_v34 = vsel %vm3266_vm3, 1, %v20142_v62  ;;  %v3268_v21 = vadd.s32 %v3262_v3, %v3258_v57  ;;  %v3263_v28 = vshrl.u32 %v3259_v58, 16 }
  0xb3   : > { %v820_v22 = vshll.u32 %v13914_v18, 30  ;;  %v3247_v24 = vadd.s32 %v3245_v52, %v3239_v6  ;;  %vm3248_vm4 = vc.u32 %v3246_v20, %v3242_v13  ;;  %v3269_v31 = vadd.s32 %v3267_v34, %v3261_v15 }
  0xb4   : > { %v3249_v27 = vsel %vm3248_vm4, 1, %v20142_v62  ;;  %vm3270_vm5 = vc.u32 %v3268_v21, %v3264_v16  ;;  %v3243_v33 = vshrl.u32 %v3238_v0, 16  ;;  %v3265_v36 = vshrl.u32 %v3260_v60, 16 }
  0xb5   : > { %v821_v32 = vsub.s32 %v817_v61, %v820_v22  ;;  %v3251_v17 = vadd.s32 %v3249_v27, %v3247_v24  ;;  %v3271_v25 = vsel %vm3270_vm5, 1, %v20142_v62  ;;  %v5647_v40 = vand.u32 2147483647, %v13775_v11 }
  0xb6   : > { %v3273_v38 = vadd.s32 %v3271_v25, %v3269_v31  ;;  %v13922_v42 = vsub.s32 32, %v5661_v26  ;;  %v13924_v49 = vadd.s32 %v3268_v21, %v3264_v16  ;;  %v3222_v50 = vsel %vm3216_vm13, %v3219_v59, %v3221_v8 }
  0xb7   : > { %vm822_vm6 = vcmp.lt.s32.totalorder %v821_v32, 0  ;;  %v823_v44 = vsub.s32 0, %v821_v32  ;;  %v3252_v46 = vadd.s32 %v3251_v17, %v3241_v23  ;;  %v5664_v29 = vshll.u32 %v20144_v37, %v5661_v26 }
  0xb8   : > { %v3274_v51 = vadd.s32 %v3273_v38, %v3263_v28  ;;  %v5667_v53 = vshll.u32 %v20155_v39, %v5661_v26  ;;  %v5665_v57 = vshrl.u32 %v20155_v39, %v13922_v42  ;;  %v5668_v58 = vshrl.u32 %v20153_v41, %v13922_v42 }
  0xb9   : > { %v824_v55 = vsel %vm822_vm6, %v823_v44, %v821_v32  ;;  %v13930_v56 = vadd.s32 %v3252_v46, %v3243_v33  ;;  %v5670_v63 = vshll.u32 %v20153_v41, %v5661_v26  ;;  %v5671_v1 = vshrl.u32 %v20151_v43, %v13922_v42 }
  0xba   : > { %v825_v60 = vclz %v824_v55  ;;  %v3275_v61 = vadd.s32 %v3274_v51, %v3265_v36  ;;  %v3276_v47 = vmul.u32 %v13792_v35, %v3222_v50  ;;  %v13942_v0 = vshrl.u32 %v5659_v48, 5 }
  0xbb   : > { %vm3278_vm7 = vc.u32 %v13930_v56, %v13924_v49  ;;  %v5673_v3 = vshll.u32 %v20151_v43, %v5661_v26  ;;  %v5654_v6 = vand.u32 8388607, %v5647_v40  ;;  %v5674_v7 = vshrl.u32 %v20147_v45, %v13922_v42 }
  0xbc   : > { %v12699_v4 = vadd.s32 4294967294, %v825_v60  ;;  %v3279_v59 = vadd.s32 1, %v3275_v61  ;;  %v813_v8 = vadd.s32 %v13868_v19, %v13882_v30  ;;  %v13951_v13 = vor.u32 %v5665_v57, %v5664_v29 }
  0xbd   : > { %v5676_v35 = vshll.u32 %v20147_v45, %v5661_v26  ;;  %v5677_v48 = vshrl.u32 %v20149_v54, %v13922_v42  ;;  %v13956_v16 = vor.u32 %v5668_v58, %v5667_v53  ;;  %v13958_v20 = vor.u32 %v5671_v1, %v5670_v63 }
  0xbe   : > { %vm12700_vm8 = vcmp.lt.s32.totalorder %v12699_v4, 0  ;;  %v3280_v15 = vsel %vm3278_vm7, %v3279_v59, %v3275_v61  ;;  %v5675_v21 = vor.u32 %v5674_v7, %v5673_v3  ;;  %vm5679_vm9 = vcmp.lt.s32.totalorder %v13942_v0, 1 }
  0xbf   : > { %v828_v52 = vsel %vm12700_vm8, 0, %v12699_v4  ;;  %v3281_v34 = vadd.s32 %v3280_v15, %v3276_v47  ;;  %vm5681_vm10 = vcmp.lt.s32.totalorder %v13942_v0, 3  ;;  %v5655_v23 = vor.u32 8388608, %v5654_v6 }
  0xc0   : > { %v829_v22 = vsub.s32 32, %v828_v52  ;;  %v830_v19 = vshll.u32 %v821_v32, %v828_v52  ;;  %v833_v30 = vsub.s32 4294967266, %v828_v52  ;;  %v5678_v24 = vor.u32 %v5677_v48, %v5676_v35 }
  0xc1   : > { %v3282_v26 = vadd.s32 536870912, %v3281_v34  ;;  %vm5682_vm11 = vcmp.lt.s32.totalorder %v13942_v0, 4  ;;  %vm5680_vm12 = vcmp.lt.s32.totalorder %v13942_v0, 2  ;;  %v5687_v32 = vsel %vm5679_vm9, %v13951_v13, %v13956_v16 }
  0xc2   : > { %v831_v27 = vshrl.u32 %v813_v8, %v829_v22  ;;  %v834_v28 = vadd.s32 127, %v833_v30  ;;  %v5688_v31 = vsel %vm5682_vm11, %v5675_v21, 920167782  ;;  %v5691_v38 = vsel %vm5679_vm9, %v13956_v16, %v13958_v20 }
  0xc3   : > { %v13965_v33 = vshrl.u32 %v3282_v26, 30  ;;  %v5689_v17 = vsel %vm5681_vm10, %v13958_v20, %v5688_v31  ;;  %v5692_v46 = vsel %vm5682_vm11, %v5678_v24, 1326507024  ;;  %v13982_v50 = vshll.u32 %v5655_v23, 8 }
  0xc4   : > { %v832_v25 = vor.u32 %v831_v27, %v830_v19  ;;  %v835_v36 = vshll.u32 %v834_v28, 23  ;;  %v5690_v53 = vsel %vm5680_vm12, %v5687_v32, %v5689_v17  ;;  %v5693_v55 = vsel %vm5681_vm10, %v5675_v21, %v5692_v46 }
  0xc5   : > { %v3284_v44 = vshll.u32 %v13965_v33, 30  ;;  %v5694_v58 = vsel %vm5680_vm12, %v5691_v38, %v5693_v55  ;;  %v5696_v60 = vand.u32 65535, %v13982_v50  ;;  %v5697_v63 = vshrl.u32 %v13982_v50, 16 }
  0xc6   : > { %v836_v51 = vor.u32 4788187, %v835_v36  ;;  %v839_v29 = vcvt.s32.f32 %v832_v25  ;;  %v5698_v1 = vand.u32 65535, %v5694_v58  ;;  %v5720_v47 = vand.u32 65535, %v5690_v53 }
  0xc7   : > { %v3285_v57 = vsub.s32 %v3281_v34, %v3284_v44  ;;  %v5699_v4 = vshrl.u32 %v5694_v58, 16  ;;  %v5721_v59 = vshrl.u32 %v5690_v53, 16  ;;  %vm13994_vm14 = vcmp.le.f32.partialorder %v719_v12, 0.7853982 }
  0xc8   : > { %v837_v61 = vand.u32 2147483647, %v836_v51  ;;  %vm721_vm15 = vcmp.lt.s32.totalorder %v13767_v9, 0  ;;  %v13999_v8 = vmul.u32 %v5698_v1, %v5697_v63  ;;  %v5700_v48 = vmul.u32 %v5698_v1, %v5696_v60 }
  0xc9   : > { %vm3286_vm13 = vcmp.lt.s32.totalorder %v3285_v57, 0  ;;  %v3287_v3 = vsub.s32 0, %v3285_v57  ;;  %v5701_v15 = vmul.u32 %v5699_v4, %v5696_v60  ;;  %v14001_v52 = vmul.u32 %v5721_v59, %v5696_v60 }
  0xca   : > { %v840_v7 = vmul.f32 %v839_v29, %v837_v61  ;;  %v3277_v21 = vadd.s32 %v13924_v49, %v13930_v56  ;;  %v5663_v12 = vshrl.u32 %v20144_v37, %v13922_v42  ;;  %v5703_v19 = vmul.u32 %v5699_v4, %v5697_v63 }
  0xcb   : > { %v3288_v35 = vsel %vm3286_vm13, %v3287_v3, %v3285_v57  ;;  %v5704_v30 = vshll.u32 %v5701_v15, 16  ;;  %v5706_v26 = vshll.u32 %v13999_v8, 16  ;;  %v14008_v23 = vmul.u32 %v5720_v47, %v5697_v63 }
  0xcc   : > { %v841_v34 = vxor.u32 2147483648, %v840_v7  ;;  %v3289_v22 = vclz %v3288_v35  ;;  %v5705_v28 = vshrl.u32 %v5701_v15, 16  ;;  %v5722_v31 = vmul.u32 %v5720_v47, %v5696_v60  ;;  %v615_v15 = vld [vmem:[%s13759_s0 + $0x8] sm:$0xff] }
  0xcd   : > { %vm5708_vm1 = vc.u32 %v5700_v48, %v5704_v30  ;;  %v5710_v56 = vadd.s32 %v5704_v30, %v5700_v48  ;;  %v5726_v42 = vshll.u32 %v14001_v52, 16  ;;  %v5725_v25 = vmul.u32 %v5721_v59, %v5697_v63 }
  0xce   : > { %v842_v24 = vsel %vm721_vm15, %v841_v34, %v840_v7  ;;  %v12747_v27 = vadd.s32 4294967294, %v3289_v22  ;;  %v5709_v17 = vsel %vm5708_vm1, 1, %v20142_v62  ;;  %v5728_v44 = vshll.u32 %v14008_v23, 16  ;;  %v631_v34 = vld [vmem:[%s13759_s0 + $0x88] sm:$0xff] }
  0xcf   : > { %v14015_v49 = vsel %vm13994_vm14, %v13767_v9, %v842_v24  ;;  %v5711_v38 = vadd.s32 %v5709_v17, %v5703_v19  ;;  %vm5712_vm3 = vc.u32 %v5710_v56, %v5706_v26  ;;  %vm5730_vm4 = vc.u32 %v5722_v31, %v5726_v42 }
  0xd0   : > { %v14020_v32 = vmul.f32 %v14015_v49, %v14015_v49  ;;  %vm12748_vm2 = vcmp.lt.s32.totalorder %v12747_v27, 0  ;;  %v5713_v58 = vsel %vm5712_vm3, 1, %v20142_v62  ;;  %v5732_v60 = vadd.s32 %v5726_v42, %v5722_v31 }
  0xd1   : > { %v3292_v36 = vsel %vm12748_vm2, 0, %v12747_v27  ;;  %v5684_v1 = vsel %vm5682_vm11, %v13958_v20, 2102212464  ;;  %v5715_v47 = vadd.s32 %v5713_v58, %v5711_v38  ;;  %v5707_v4 = vshrl.u32 %v13999_v8, 16 }
  0xd2   : > { %v848_v46 = vmul.f32 -0.001358992, %v14020_v32  ;;  %v855_v51 = vmul.f32 -0.00019511016, %v14020_v32  ;;  %v3293_v29 = vsub.s32 32, %v3292_v36  ;;  %v3294_v53 = vshll.u32 %v3285_v57, %v3292_v36 }
  0xd3   : > { %v3297_v55 = vsub.s32 4294967266, %v3292_v36  ;;  %v5731_v59 = vsel %vm5730_vm4, 1, %v20142_v62  ;;  %vm5734_vm5 = vc.u32 %v5732_v60, %v5728_v44  ;;  %v5716_v48 = vadd.s32 %v5715_v47, %v5705_v28 }
  0xd4   : > { %v856_v61 = vadd.f32 0.008332121, %v855_v51  ;;  %v3295_v63 = vshrl.u32 %v3277_v21, %v3293_v29  ;;  %v849_v57 = vadd.f32 0.041655596, %v848_v46  ;;  %v5727_v21 = vshrl.u32 %v14001_v52, 16 }
  0xd5   : > { %v3298_v3 = vadd.s32 127, %v3297_v55  ;;  %v5733_v19 = vadd.s32 %v5731_v59, %v5725_v25  ;;  %v5735_v20 = vsel %vm5734_vm5, 1, %v20142_v62  ;;  %v5683_v8 = vsel %vm5679_vm9, %v5663_v12, %v13951_v13 }
  0xd6   : > { %v857_v7 = vmul.f32 %v856_v61, %v14020_v32  ;;  %v3296_v35 = vor.u32 %v3295_v63, %v3294_v53  ;;  %v5685_v26 = vsel %vm5681_vm10, %v13956_v16, %v5684_v1  ;;  %v5729_v24 = vshrl.u32 %v14008_v23, 16  ;;  %v581_v1 = vld [vmem:[%s14075_s18] sm:$0xff] }
  0xd7   : > { %v3299_v22 = vshll.u32 %v3298_v3, 23  ;;  %v5737_v28 = vadd.s32 %v5735_v20, %v5733_v19  ;;  %v14046_v31 = vsel %vm652_vm0, %v615_v15, 0.0  ;;  %v14050_v52 = vsel %vm652_vm0, %v631_v34, 0.0 }
  0xd8   : > { %v3303_v30 = vcvt.s32.f32 %v3296_v35  ;;  %20456 = vst [vmem:[#allocation11_spill] sm:$0xff] %v14046_v31  ;;  %v850_v56 = vmul.f32 %v849_v57, %v14020_v32  ;;  %v858_v42 = vadd.f32 -0.16666654, %v857_v7  ;;  %v14053_v13 = vadd.s32 %v5716_v48, %v5707_v4 }
  0xd9   : > { %v3300_v27 = vor.u32 4788187, %v3299_v22  ;;  %20457 = vst [vmem:[#allocation12_spill] sm:$0xff] %v14050_v52  ;;  %v14055_v12 = vadd.s32 %v5732_v60, %v5728_v44  ;;  %v5686_v23 = vsel %vm5680_vm12, %v5683_v8, %v5685_v26  ;;  %v5738_v17 = vadd.s32 %v5737_v28, %v5727_v21  ;;  %v613_v22 = vld [vmem:[%s14075_s18 + $0x100] sm:$0x1] }
  0xda   : > { %v876_v25 = vand.u32 2139095040, %v14046_v31  ;;  %vm3185_vm6 = vcmp.lt.s32.totalorder %v13771_v10, 0  ;;  %v3340_v36 = vand.u32 2139095040, %v14050_v52  ;;  %vm14064_vm7 = vcmp.le.f32.partialorder %v3183_v14, 0.7853982 }
  0xdb   : > { %v3301_v16 = vand.u32 2147483647, %v3300_v27  ;;  %v5739_v46 = vadd.s32 %v5738_v17, %v5729_v24  ;;  %v851_v29 = vadd.f32 -0.4999988, %v850_v56  ;;  %v859_v0 = vmul.f32 %v858_v42, %v14020_v32 }
  0xdc   : > { %v877_v51 = vshrl.u32 %v876_v25, 23  ;;  %v5740_v53 = vmul.u32 %v13982_v50, %v5686_v23  ;;  %vm5742_vm8 = vc.u32 %v14053_v13, %v14055_v12  ;;  %v873_v60 = vand.u32 2147483647, %v14046_v31 }
  0xdd   : > { %v3304_v44 = vmul.f32 %v3303_v30, %v3301_v16  ;;  %v5743_v58 = vadd.s32 1, %v5739_v46  ;;  %v843_v14 = vsub.s32 4, %v13914_v18  ;;  %v3341_v63 = vshrl.u32 %v3340_v36, 23  ;;  %v597_v30 = vld [vmem:[%s14075_s18 + $0x80] sm:$0xff] }
  0xde   : > { %v12701_v61 = vadd.s32 4294967169, %v877_v51  ;;  %v3307_v50 = vsub.s32 4, %v13965_v33  ;;  %v852_v59 = vmul.f32 %v851_v29, %v14020_v32  ;;  %v3337_v35 = vand.u32 2147483647, %v14050_v52 }
  0xdf   : > { %v3305_v55 = vxor.u32 2147483648, %v3304_v44  ;;  %v5744_v3 = vsel %vm5742_vm8, %v5743_v58, %v5739_v46  ;;  %v860_v48 = vadd.f32 1.0, %v859_v0  ;;  %v880_v34 = vand.u32 8388607, %v873_v60 }
  0xe0   : > { %v883_v4 = vadd.s32 1, %v12701_v61  ;;  %v5745_v7 = vadd.s32 %v5744_v3, %v5740_v53  ;;  %v14097_v32 = vsel %vm652_vm0, %v581_v1, 0.0  ;;  %v12749_v20 = vadd.s32 4294967169, %v3341_v63 }
  0xe1   : > { %v3306_v47 = vsel %vm3185_vm6, %v3305_v55, %v3304_v44  ;;  %20460 = vst [vmem:[#allocation13_spill] sm:$0xff] %v14097_v32  ;;  %v844_v8 = vsel %vm721_vm15, %v843_v14, %v13914_v18  ;;  %v14105_v28 = vadd.f32 1.0, %v852_v59  ;;  %v3308_v56 = vsel %vm3185_vm6, %v3307_v50, %v13965_v33 }
  0xe2   : > { %v14085_v57 = vsel %vm14064_vm7, %v13771_v10, %v3306_v47  ;;  %vm884_vm9 = vcmp.gt.s32.totalorder %v883_v4, 0  ;;  %v5746_v21 = vadd.s32 536870912, %v5745_v7  ;;  %v14114_v16 = vand.u32 8388607, %v3337_v35 }
  0xe3   : > { %v14090_v15 = vmul.f32 %v14085_v57, %v14085_v57  ;;  %v885_v19 = vsel %vm884_vm9, %v883_v4, 0  ;;  %20461 = vst [vmem:[#allocation14_spill] sm:$0xff] %v14105_v28  ;;  %v14117_v23 = vmul.f32 %v860_v48, %v14015_v49  ;;  %v881_v25 = vor.u32 8388608, %v880_v34 }
  0xe4   : > { %v887_v27 = vand.u32 31, %v885_v19  ;;  %v14110_v42 = vshrl.u32 %v5746_v21, 30  ;;  %v14121_v36 = vsel %vm652_vm0, %v597_v30, 0.0  ;;  %v14125_v44 = vsel %vm652_vm0, %v613_v22, 0.0 }
  0xe5   : > { %v3312_v26 = vmul.f32 -0.001358992, %v14090_v15  ;;  %v3319_v24 = vmul.f32 -0.00019511016, %v14090_v15  ;;  %20462 = vst [vmem:[#allocation15_spill] sm:$0xff] %v14117_v23  ;;  %v3347_v46 = vadd.s32 1, %v12749_v20  ;;  %v5741_v58 = vadd.s32 %v14055_v12, %v14053_v13 }
  0xe6   : > { %20463 = vst [vmem:[#allocation16_spill] sm:$0xff] %v14121_v36  ;;  %v5748_v33 = vshll.u32 %v14110_v42, 30  ;;  %v14130_v51 = vsel %vm13994_vm14, 0, %v844_v8  ;;  %v14134_v49 = vsel %vm14064_vm7, 0, %v3308_v56  ;;  %v888_v0 = vsub.s32 32, %v887_v27 }
  0xe7   : > { %v3313_v18 = vadd.f32 0.041655596, %v3312_v26  ;;  %v3320_v17 = vadd.f32 0.008332121, %v3319_v24  ;;  %20464 = vst [vmem:[#allocation17_spill] sm:$0xff] %v14130_v51  ;;  %v20132_v53 = vxor.u32 2147483648, %v14105_v28  ;;  %v890_v50 = vshll.u32 %v20144_v37, %v887_v27 }
  0xe8   : > { %20465 = vst [vmem:[#allocation18_spill] sm:$0xff] %v14134_v49  ;;  %v5749_v61 = vsub.s32 %v5745_v7, %v5748_v33  ;;  %v20133_v14 = vxor.u32 2147483648, %v14117_v23  ;;  %v14142_v63 = vshll.u32 %v881_v25, 8  ;;  %v3345_v38 = vor.u32 8388608, %v14114_v16 }
  0xe9   : > { %v3321_v29 = vmul.f32 %v3320_v17, %v14090_v15  ;;  %v3314_v55 = vmul.f32 %v3313_v18, %v14090_v15  ;;  %v14145_v47 = vshrl.u32 %v885_v19, 5  ;;  %vm3348_vm11 = vcmp.gt.s32.totalorder %v3347_v46, 0 }
  0xea   : > { %vm5750_vm10 = vcmp.lt.s32.totalorder %v5749_v61, 0  ;;  %v5751_v1 = vsub.s32 0, %v5749_v61  ;;  %v893_v3 = vshll.u32 %v20155_v39, %v887_v27  ;;  %v899_v4 = vshll.u32 %v20151_v43, %v887_v27 }
  0xeb   : > { %v3322_v6 = vadd.f32 -0.16666654, %v3321_v29  ;;  %v900_v13 = vshrl.u32 %v20147_v45, %v888_v0  ;;  %v3315_v12 = vadd.f32 -0.4999988, %v3314_v55  ;;  %vm5649_vm12 = vcmp.lt.s32.totalorder %v13775_v11, 0 }
  0xec   : > { %v5752_v59 = vsel %vm5750_vm10, %v5751_v1, %v5749_v61  ;;  %v891_v7 = vshrl.u32 %v20155_v39, %v888_v0  ;;  %v894_v48 = vshrl.u32 %v20153_v41, %v888_v0  ;;  %v896_v21 = vshll.u32 %v20153_v41, %v887_v27 }
  0xed   : > { %v3323_v34 = vmul.f32 %v3322_v6, %v14090_v15  ;;  %v5753_v22 = vclz %v5752_v59  ;;  %v897_v19 = vshrl.u32 %v20151_v43, %v888_v0  ;;  %v902_v20 = vshll.u32 %v20147_v45, %v887_v27 }
  0xee   : > { %v903_v30 = vshrl.u32 %v20149_v54, %v888_v0  ;;  %v14160_v8 = vand.u32 65535, %v14142_v63  ;;  %v14163_v26 = vshrl.u32 %v14142_v63, 16  ;;  %vm14167_vm13 = vcmp.le.f32.partialorder %v5647_v40, 0.7853982 }
  0xef   : > { %v12795_v56 = vadd.s32 4294967294, %v5753_v22  ;;  %v5771_v18 = vsub.s32 4, %v14110_v42  ;;  %v901_v17 = vor.u32 %v900_v13, %v899_v4  ;;  %v14173_v27 = vsel %vm3348_vm11, %v3347_v46, 0 }
  0xf0   : > { %v3316_v25 = vmul.f32 %v3315_v12, %v14090_v15  ;;  %v892_v33 = vor.u32 %v891_v7, %v890_v50  ;;  %v895_v29 = vor.u32 %v894_v48, %v893_v3  ;;  %vm908_vm14 = vcmp.lt.s32.totalorder %v14145_v47, 4 }
  0xf1   : > { %v3324_v55 = vadd.f32 1.0, %v3323_v34  ;;  %vm12796_vm15 = vcmp.lt.s32.totalorder %v12795_v56, 0  ;;  %v898_v6 = vor.u32 %v897_v19, %v896_v21  ;;  %vm905_vm1 = vcmp.lt.s32.totalorder %v14145_v47, 1 }
  0xf2   : > { %v5756_v40 = vsel %vm12796_vm15, 0, %v12795_v56  ;;  %v5978_v1 = vadd.s32 3, %v14130_v51  ;;  %v904_v59 = vor.u32 %v903_v30, %v902_v20  ;;  %vm907_vm2 = vcmp.lt.s32.totalorder %v14145_v47, 3 }
  0xf3   : > { %v5757_v4 = vsub.s32 32, %v5756_v40  ;;  %v5758_v46 = vshll.u32 %v5749_v61, %v5756_v40  ;;  %v5761_v13 = vsub.s32 4294967266, %v5756_v40  ;;  %v914_v15 = vsel %vm908_vm14, %v901_v17, 920167782 }
  0xf4   : > { %v14182_v50 = vadd.f32 1.0, %v3316_v25  ;;  %v5979_v3 = vand.u32 3, %v5978_v1  ;;  %v8458_v12 = vadd.s32 3, %v14134_v49  ;;  %v889_v7 = vshrl.u32 %v20144_v37, %v888_v0 }
  0xf5   : > { %vm20225_vm3 = vweird.f32 %v13767_v9  ;;  %v5759_v48 = vshrl.u32 %v5741_v58, %v5757_v4  ;;  %v5762_v34 = vadd.s32 127, %v5761_v13  ;;  %v5772_v22 = vsel %vm5649_vm12, %v5771_v18, %v14110_v42 }
  0xf6   : > { %20468 = vst [vmem:[#allocation19_spill] sm:$0xff] %v14182_v50  ;;  %vm906_vm4 = vcmp.lt.s32.totalorder %v14145_v47, 2  ;;  %v14192_v61 = vmul.f32 %v3324_v55, %v14085_v57  ;;  %vm5981_vm5 = vcmp.eq.s32.totalorder %v5979_v3, 0  ;;  %v913_v21 = vsel %vm905_vm1, %v892_v33, %v895_v29 }
  0xf7   : > { %v915_v0 = vsel %vm907_vm2, %v898_v6, %v914_v15  ;;  %v5760_v19 = vor.u32 %v5759_v48, %v5758_v46  ;;  %v5763_v20 = vshll.u32 %v5762_v34, 23  ;;  %vm5984_vm6 = vcmp.eq.s32.totalorder %v5979_v3, 2 }
  0xf8   : > { %20469 = vst [vmem:[#allocation20_spill] sm:$0xff] %v14192_v61  ;;  %v918_v58 = vsel %vm908_vm14, %v904_v59, 1326507024  ;;  %v20129_v42 = vxor.u32 2147483648, %v14182_v50  ;;  %v5774_v30 = vsel %vm14167_vm13, 0, %v5772_v22  ;;  %v14203_v57 = vand.u32 3, %v8458_v12 }
  0xf9   : > { %v917_v56 = vsel %vm905_vm1, %v895_v29, %v898_v6  ;;  %v5764_v18 = vor.u32 4788187, %v5763_v20  ;;  %v5767_v25 = vcvt.s32.f32 %v5760_v19  ;;  %v910_v55 = vsel %vm908_vm14, %v898_v6, 2102212464 }
  0xfa   : > { %v916_v40 = vsel %vm906_vm4, %v913_v21, %v915_v0  ;;  %vm5980_vm7 = vcmp.lt.s32.totalorder %v5979_v3, 2  ;;  %v5983_v1 = vsel %vm5981_vm5, %v14105_v28, %v20133_v14  ;;  %v5986_v59 = vsel %vm5984_vm6, %v20132_v53, %v14117_v23 }
  0xfb   : > { %v919_v4 = vsel %vm907_vm2, %v901_v17, %v918_v58  ;;  %v20131_v46 = vxor.u32 2147483648, %v14192_v61  ;;  %v5765_v13 = vand.u32 2147483647, %v5764_v18  ;;  %v909_v6 = vsel %vm905_vm1, %v889_v7, %v892_v33 }
  0xfc   : > { %v920_v15 = vsel %vm906_vm4, %v917_v56, %v919_v4  ;;  %vm8461_vm8 = vcmp.eq.s32.totalorder %v14203_v57, 0  ;;  %v911_v3 = vsel %vm907_vm2, %v895_v29, %v910_v55  ;;  %v5987_v22 = vsel %vm5980_vm7, %v5983_v1, %v5986_v59 }
  0xfd   : > { %v924_v12 = vand.u32 65535, %v920_v15  ;;  %v925_v48 = vshrl.u32 %v920_v15, 16  ;;  %v5768_v34 = vmul.f32 %v5767_v25, %v5765_v13  ;;  %v946_v21 = vand.u32 65535, %v916_v40 }
  0xfe   : > { %v947_v17 = vshrl.u32 %v916_v40, 16  ;;  %v14228_v0 = vand.u32 3, %v5774_v30  ;;  %vm8460_vm9 = vcmp.lt.s32.totalorder %v14203_v57, 2  ;;  %vm8464_vm10 = vcmp.eq.s32.totalorder %v14203_v57, 2 }
  0xff   : > { %v926_v19 = vmul.u32 %v924_v12, %v14160_v8  ;;  %v927_v33 = vmul.u32 %v925_v48, %v14160_v8  ;;  %v928_v7 = vmul.u32 %v924_v12, %v14163_v26  ;;  %v5769_v20 = vxor.u32 2147483648, %v5768_v34 }
 0x100   : > { %v14237_v29 = vsel %vm906_vm4, %v909_v6, %v911_v3  ;;  %v14241_v58 = vsel %vm20225_vm3, nan, %v5987_v22  ;;  %v8463_v30 = vsel %vm8461_vm8, %v14182_v50, %v20131_v46  ;;  %v929_v56 = vmul.u32 %v925_v48, %v14163_v26 }
 0x101   : > { %v930_v18 = vshll.u32 %v927_v33, 16  ;;  %v5770_v25 = vsel %vm5649_vm12, %v5769_v20, %v5768_v34  ;;  %v932_v55 = vshll.u32 %v928_v7, 16  ;;  %v948_v47 = vmul.u32 %v946_v21, %v14160_v8 }
 0x102   : > { %v949_v40 = vmul.u32 %v947_v17, %v14160_v8  ;;  %v14256_v1 = vsel %vm14167_vm13, %v13775_v11, %v5770_v25  ;;  %v950_v4 = vmul.u32 %v946_v21, %v14163_v26  ;;  %v931_v6 = vshrl.u32 %v927_v33, 16 }
 0x103   : > { %vm934_vm11 = vc.u32 %v926_v19, %v930_v18  ;;  %v936_v59 = vadd.s32 %v930_v18, %v926_v19  ;;  %v5775_v13 = vmul.f32 %v14256_v1, %v14256_v1  ;;  %v951_v8 = vmul.u32 %v947_v17, %v14163_v26 }
 0x104   : > { %v935_v15 = vsel %vm934_vm11, 1, %v20142_v62  ;;  %v952_v3 = vshll.u32 %v949_v40, 16  ;;  %v954_v48 = vshll.u32 %v950_v4, 16  ;;  %v8466_v22 = vsel %vm8464_vm10, %v20129_v42, %v14192_v61 }
 0x105   : > { %v937_v12 = vadd.s32 %v935_v15, %v929_v56  ;;  %vm938_vm12 = vc.u32 %v936_v59, %v932_v55  ;;  %v5776_v34 = vmul.f32 -0.001358992, %v5775_v13  ;;  %v5783_v24 = vmul.f32 -0.00019511016, %v5775_v13 }
 0x106   : > { %v939_v21 = vsel %vm938_vm12, 1, %v20142_v62  ;;  %v14270_v19 = vshrl.u32 %v20130_v2, 7  ;;  %vm956_vm13 = vc.u32 %v948_v47, %v952_v3  ;;  %v958_v20 = vadd.s32 %v952_v3, %v948_v47 }
 0x107   : > { %v941_v33 = vadd.s32 %v939_v21, %v937_v12  ;;  %v5777_v56 = vadd.f32 0.041655596, %v5776_v34  ;;  %v5784_v18 = vadd.f32 0.008332121, %v5783_v24  ;;  %v933_v26 = vshrl.u32 %v928_v7, 16 }
 0x108   : > { %v957_v17 = vsel %vm956_vm13, 1, %v20142_v62  ;;  %vm5796_vm14 = vcmp.eq.s32.totalorder %v14228_v0, 2  ;;  %v953_v55 = vshrl.u32 %v949_v40, 16  ;;  %vm960_vm15 = vc.u32 %v958_v20, %v954_v48 }
 0x109   : > { %v942_v25 = vadd.s32 %v941_v33, %v931_v6  ;;  %v959_v59 = vadd.s32 %v957_v17, %v951_v8  ;;  %vm20207_vm1 = vweird.f32 %v13771_v10  ;;  %v5778_v15 = vmul.f32 %v5777_v56, %v5775_v13 }
 0x10a   : > { %v5785_v42 = vmul.f32 %v5784_v18, %v5775_v13  ;;  %v961_v2 = vsel %vm960_vm15, 1, %v20142_v62  ;;  %v3351_v12 = vand.u32 31, %v14173_v27  ;;  %vm5793_vm2 = vcmp.eq.s32.totalorder %v14228_v0, 0 }
 0x10b   : > { %v8467_v7 = vsel %vm8460_vm9, %v8463_v30, %v8466_v22  ;;  %v955_v47 = vshrl.u32 %v950_v4, 16  ;;  %v14280_v3 = vadd.s32 %v958_v20, %v954_v48  ;;  %v963_v6 = vadd.s32 %v961_v2, %v959_v59 }
 0x10c   : > { %v5779_v40 = vadd.f32 -0.4999988, %v5778_v15  ;;  %v5786_v8 = vadd.f32 -0.16666654, %v5785_v42  ;;  %vm5792_vm4 = vcmp.lt.s32.totalorder %v14228_v0, 2  ;;  %v14283_v34 = vadd.s32 %v942_v25, %v933_v26 }
 0x10d   : > { %v3352_v24 = vsub.s32 32, %v3351_v12  ;;  %vm5790_vm5 = vweird.f32 %v13775_v11  ;;  %v964_v21 = vadd.s32 %v963_v6, %v953_v55  ;;  %v966_v33 = vmul.u32 %v14142_v63, %v14237_v29 }
 0x10e   : > { %v3354_v57 = vshll.u32 %v20144_v37, %v3351_v12  ;;  %v3357_v30 = vshll.u32 %v20155_v39, %v3351_v12  ;;  %v5780_v4 = vmul.f32 %v5779_v40, %v5775_v13  ;;  %v5787_v48 = vmul.f32 %v5786_v8, %v5775_v13 }
 0x10f   : > { %v14291_v2 = vshrl.u32 %v14173_v27, 5  ;;  %v3355_v42 = vshrl.u32 %v20155_v39, %v3352_v24  ;;  %v965_v22 = vadd.s32 %v964_v21, %v955_v47  ;;  %v3358_v20 = vshrl.u32 %v20153_v41, %v3352_v24 }
 0x110   : > { %v3360_v56 = vshll.u32 %v20153_v41, %v3351_v12  ;;  %v3361_v18 = vshrl.u32 %v20151_v43, %v3352_v24  ;;  %v5781_v26 = vadd.f32 1.0, %v5780_v4  ;;  %v5788_v63 = vadd.f32 1.0, %v5787_v48 }
 0x111   : > { %vm968_vm6 = vc.u32 %v14283_v34, %v14280_v3  ;;  %v3363_v29 = vshll.u32 %v20151_v43, %v3351_v12  ;;  %v969_v13 = vadd.s32 1, %v965_v22  ;;  %v3356_v17 = vor.u32 %v3355_v42, %v3354_v57 }
 0x112   : > { %v14300_v27 = vor.u32 %v3358_v20, %v3357_v30  ;;  %v3364_v25 = vshrl.u32 %v20147_v45, %v3352_v24  ;;  %v5789_v55 = vmul.f32 %v5788_v63, %v14256_v1  ;;  %v5797_v59 = vxor.u32 2147483648, %v5781_v26 }
 0x113   : > { %v3366_v15 = vshll.u32 %v20147_v45, %v3351_v12  ;;  %v3367_v47 = vshrl.u32 %v20149_v54, %v3352_v24  ;;  %v970_v6 = vsel %vm968_vm6, %v969_v13, %v965_v22  ;;  %v3362_v40 = vor.u32 %v3361_v18, %v3360_v56 }
 0x114   : > { %v3365_v8 = vor.u32 %v3364_v25, %v3363_v29  ;;  %vm3369_vm7 = vcmp.lt.s32.totalorder %v14291_v2, 1  ;;  %v5794_v21 = vxor.u32 2147483648, %v5789_v55  ;;  %v5798_v57 = vsel %vm5796_vm14, %v5797_v59, %v5789_v55 }
 0x115   : > { %v971_v30 = vadd.s32 %v970_v6, %v966_v33  ;;  %vm3372_vm8 = vcmp.lt.s32.totalorder %v14291_v2, 4  ;;  %v8468_v1 = vsel %vm20207_vm1, nan, %v8467_v7  ;;  %v10794_v12 = vmul.f32 %v14241_v58, %v14097_v32 }
 0x116   : > { %v3368_v4 = vor.u32 %v3367_v47, %v3366_v15  ;;  %vm3371_vm9 = vcmp.lt.s32.totalorder %v14291_v2, 3  ;;  %v5795_v48 = vsel %vm5793_vm2, %v5781_v26, %v5794_v21  ;;  %vm3370_vm10 = vcmp.lt.s32.totalorder %v14291_v2, 2 }
 0x117   : > { %v972_v42 = vadd.s32 536870912, %v971_v30  ;;  %v3377_v33 = vsel %vm3369_vm7, %v3356_v17, %v14300_v27  ;;  %v5799_v22 = vsel %vm5792_vm4, %v5795_v48, %v5798_v57  ;;  %vm10859_vm11 = vcmp.eq.s32.totalorder %v14270_v19, 0 }
 0x118   : > { %v3378_v58 = vsel %vm3372_vm8, %v3365_v8, 920167782  ;;  %v3381_v7 = vsel %vm3369_vm7, %v14300_v27, %v3362_v40  ;;  %v5800_v20 = vsel %vm5790_vm5, nan, %v5799_v22  ;;  %v3382_v0 = vsel %vm3372_vm8, %v3368_v4, 1326507024 }
 0x119   : > { %v14331_v56 = vshrl.u32 %v972_v42, 30  ;;  %v3379_v18 = vsel %vm3371_vm9, %v3362_v40, %v3378_v58  ;;  %v5833_v26 = vmul.f32 %v5800_v20, %v14125_v44  ;;  %v3383_v29 = vsel %vm3371_vm9, %v3365_v8, %v3382_v0 }
 0x11a   : > { %v3380_v63 = vsel %vm3370_vm10, %v3377_v33, %v3379_v18  ;;  %v14344_v11 = vshll.u32 %v3345_v38, 8  ;;  %v10810_v13 = vmul.f32 %v8468_v1, %v14121_v36  ;;  %v3353_v55 = vshrl.u32 %v20144_v37, %v3352_v24 }
 0x11b   : > { %v974_v25 = vshll.u32 %v14331_v56, 30  ;;  %v3384_v59 = vsel %vm3370_vm10, %v3381_v7, %v3383_v29  ;;  %v10891_v44 = vperm.slane %v5833_v26, 0  ;;  %v3410_v38 = vand.u32 65535, %v3380_v63 }
 0x11c   : > { %v3386_v15 = vand.u32 65535, %v14344_v11  ;;  %v3387_v47 = vshrl.u32 %v14344_v11, 16  ;;  %v3388_v6 = vand.u32 65535, %v3384_v59  ;;  %v3389_v16 = vshrl.u32 %v3384_v59, 16 }
 0x11d   : > { %v14353_v8 = vsub.s32 %v971_v30, %v974_v25  ;;  %v3411_v21 = vshrl.u32 %v3380_v63, 16  ;;  %v10892_v57 = vsel %vm10859_vm11, %v10891_v44, %v10794_v12  ;;  %v3374_v24 = vsel %vm3372_vm8, %v3362_v40, 2102212464 }
 0x11e   : > { %v3390_v1 = vmul.u32 %v3388_v6, %v3386_v15  ;;  %v3392_v4 = vmul.u32 %v3388_v6, %v3387_v47  ;;  %v13230_v48 = vpack.i.bf16 %v10810_v13, %v10892_v57  ;;  %v3391_v33 = vmul.u32 %v3389_v16, %v3386_v15 }
 0x11f   : > { %vm976_vm12 = vcmp.lt.s32.totalorder %v14353_v8, 0  ;;  %v977_v42 = vsub.s32 0, %v14353_v8  ;;  %v967_v30 = vadd.s32 %v14280_v3, %v14283_v34  ;;  %v3373_v22 = vsel %vm3369_vm7, %v3353_v55, %v3356_v17 }
 0x120   : > { %v3393_v58 = vmul.u32 %v3389_v16, %v3387_v47  ;;  %v3396_v19 = vshll.u32 %v3392_v4, 16  ;;  %13231 = vxpose.xlu0.b32.start [1/16] %v13230_v48, 128  ;;  %v3394_v40 = vshll.u32 %v3391_v33, 16  ;;  %v3412_v7 = vmul.u32 %v3410_v38, %v3386_v15  ;;  %v616_v16 = vld [vmem:[%s13759_s0 + $0x10] sm:$0xff] }
 0x121   : > { %v978_v12 = vsel %vm976_vm12, %v977_v42, %v14353_v8  ;;  %v3413_v20 = vmul.u32 %v3411_v21, %v3386_v15  ;;  %v3375_v0 = vsel %vm3371_vm9, %v14300_v27, %v3374_v24  ;;  %v3397_v26 = vshrl.u32 %v3392_v4, 16 }
 0x122   : > { %v979_v18 = vclz %v978_v12  ;;  %v3414_v63 = vmul.u32 %v3410_v38, %v3387_v47  ;;  %vm3398_vm13 = vc.u32 %v3390_v1, %v3394_v40  ;;  %v3400_v3 = vadd.s32 %v3394_v40, %v3390_v1 }
 0x123   : > { %v3415_v34 = vmul.u32 %v3411_v21, %v3387_v47  ;;  %v3416_v17 = vshll.u32 %v3413_v20, 16  ;;  %v3395_v13 = vshrl.u32 %v3391_v33, 16  ;;  %v3399_v25 = vsel %vm3398_vm13, 1, %v20142_v62 }
 0x124   : > { %v12702_v29 = vadd.s32 4294967294, %v979_v18  ;;  %v3418_v55 = vshll.u32 %v3414_v63, 16  ;;  %v3401_v59 = vadd.s32 %v3399_v25, %v3393_v58  ;;  %vm3402_vm14 = vc.u32 %v3400_v3, %v3396_v19  ;;  %v632_v58 = vld [vmem:[%s13759_s0 + $0x90] sm:$0xff] }
 0x125   : > { %vm3420_vm15 = vc.u32 %v3412_v7, %v3416_v17  ;;  %v3422_v44 = vadd.s32 %v3416_v17, %v3412_v7  ;;  %v3403_v27 = vsel %vm3402_vm14, 1, %v20142_v62  ;;  %v3417_v15 = vshrl.u32 %v3413_v20, 16 }
 0x126   : > { %vm12703_vm2 = vcmp.lt.s32.totalorder %v12702_v29, 0  ;;  %v3421_v6 = vsel %vm3420_vm15, 1, %v20142_v62  ;;  %v3405_v47 = vadd.s32 %v3403_v27, %v3401_v59  ;;  %v3419_v42 = vshrl.u32 %v3414_v63, 16 }
 0x127   : > { %v982_v38 = vsel %vm12703_vm2, 0, %v12702_v29  ;;  %v3423_v21 = vadd.s32 %v3421_v6, %v3415_v34  ;;  %vm3424_vm4 = vc.u32 %v3422_v44, %v3418_v55  ;;  %v14378_v19 = vsel %vm652_vm0, %v616_v16, 0.0 }
 0x128   : > { %v983_v57 = vsub.s32 32, %v982_v38  ;;  %v984_v24 = vshll.u32 %v14353_v8, %v982_v38  ;;  %v987_v1 = vsub.s32 4294967266, %v982_v38  ;;  %v3425_v4 = vsel %vm3424_vm4, 1, %v20142_v62  ;;  %20470 = vst [vmem:[#allocation21_spill] sm:$0xff] %v14378_v19 }
 0x129   : > { %v3406_v48 = vadd.s32 %v3405_v47, %v3395_v13  ;;  %v3427_v33 = vadd.s32 %v3425_v4, %v3423_v21  ;;  %v3376_v7 = vsel %vm3370_vm10, %v3373_v22, %v3375_v0  ;;  %v3426_v20 = vadd.s32 %v3422_v44, %v3418_v55  ;;  %v582_v4 = vld [vmem:[%s14075_s18 + $0x8] sm:$0xff] }
 0x12a   : > { %v985_v12 = vshrl.u32 %v967_v30, %v983_v57  ;;  %v988_v40 = vadd.s32 127, %v987_v1  ;;  %v1030_v8 = vand.u32 2139095040, %v14378_v19  ;;  %v14385_v63 = vsel %vm652_vm0, %v632_v58, 0.0 }
 0x12b   : > { %v3407_v18 = vadd.s32 %v3406_v48, %v3397_v26  ;;  %v3428_v3 = vadd.s32 %v3427_v33, %v3417_v15  ;;  %20471 = vst [vmem:[#allocation22_spill] sm:$0xff] %v14385_v63  ;;  %v3430_v13 = vmul.u32 %v14344_v11, %v3376_v7  ;;  %v20137_v2 = vand.u32 2147483647, %v14378_v19 }
 0x12c   : > { %v986_v34 = vor.u32 %v985_v12, %v984_v24  ;;  %v989_v17 = vshll.u32 %v988_v40, 23  ;;  %v1031_v25 = vshrl.u32 %v1030_v8, 23  ;;  %v3494_v26 = vand.u32 2139095040, %v14385_v63 }
 0x12d   : > { %v3429_v29 = vadd.s32 %v3428_v3, %v3419_v42  ;;  %vm3432_vm5 = vc.u32 %v3407_v18, %v3426_v20  ;;  %v997_v6 = vsub.s32 4, %v14331_v56  ;;  %v1034_v11 = vand.u32 8388607, %v20137_v2 }
 0x12e   : > { %v990_v30 = vor.u32 4788187, %v989_v17  ;;  %v993_v59 = vcvt.s32.f32 %v986_v34  ;;  %v12704_v0 = vadd.s32 4294967169, %v1031_v25  ;;  %vm875_vm6 = vcmp.lt.s32.totalorder %v14046_v31, 0 }
 0x12f   : > { %v3433_v22 = vadd.s32 1, %v3429_v29  ;;  %v20134_v38 = vand.u32 2147483647, %v14385_v63  ;;  %v3495_v47 = vshrl.u32 %v3494_v26, 23  ;;  %vm14397_vm8 = vcmp.le.f32.partialorder %v873_v60, 0.7853982 }
 0x130   : > { %v991_v55 = vand.u32 2147483647, %v990_v30  ;;  %v1037_v27 = vadd.s32 1, %v12704_v0  ;;  %v998_v33 = vsel %vm875_vm6, %v997_v6, %v14331_v56  ;;  %v1035_v12 = vor.u32 8388608, %v1034_v11 }
 0x131   : > { %v3434_v44 = vsel %vm3432_vm5, %v3433_v22, %v3429_v29  ;;  %v12752_v7 = vadd.s32 4294967169, %v3495_v47  ;;  %v14410_v60 = vand.u32 8388607, %v20134_v38  ;;  %v14414_v3 = vsel %vm652_vm0, %v582_v4, 0.0 }
 0x132   : > { %v994_v15 = vmul.f32 %v993_v59, %v991_v55  ;;  %v3435_v16 = vadd.s32 %v3434_v44, %v3430_v13  ;;  %vm1038_vm7 = vcmp.gt.s32.totalorder %v1037_v27, 0  ;;  %20474 = vst [vmem:[#allocation23_spill] sm:$0xff] %v14414_v3  ;;  %vm3339_vm9 = vcmp.lt.s32.totalorder %v14050_v52, 0 }
 0x133   : > { %v1039_v1 = vsel %vm1038_vm7, %v1037_v27, 0  ;;  %v14421_v34 = vsel %vm14397_vm8, 0, %v998_v33  ;;  %vm14425_vm10 = vcmp.le.f32.partialorder %v3337_v35, 0.7853982  ;;  %v3431_v29 = vadd.s32 %v3426_v20, %v3407_v18 }
 0x134   : > { %v995_v57 = vxor.u32 2147483648, %v994_v15  ;;  %v3436_v24 = vadd.s32 536870912, %v3435_v16  ;;  %v1041_v48 = vand.u32 31, %v1039_v1  ;;  %20475 = vst [vmem:[#allocation24_spill] sm:$0xff] %v14421_v34  ;;  %v14429_v22 = vshll.u32 %v1035_v12, 8 }
 0x135   : > { %v14431_v26 = vshrl.u32 %v1039_v1, 5  ;;  %v3499_v55 = vor.u32 8388608, %v14410_v60  ;;  %v3501_v44 = vadd.s32 1, %v12752_v7 }
 0x136   : > { %v996_v42 = vsel %vm875_vm6, %v995_v57, %v994_v15  ;;  %v3437_v58 = vshrl.u32 %v3436_v24, 30  ;;  %v1042_v13 = vsub.s32 32, %v1041_v48  ;;  %v1044_v6 = vshll.u32 %v20144_v37, %v1041_v48 }
 0x137   : > { %v14406_v40 = vsel %vm14397_vm8, %v14046_v31, %v996_v42  ;;  %v1047_v18 = vshll.u32 %v20155_v39, %v1041_v48  ;;  %v1050_v42 = vshll.u32 %v20153_v41, %v1041_v48  ;;  %v1056_v7 = vshll.u32 %v20147_v45, %v1041_v48 }
 0x138   : > { %v1001_v8 = vmul.f32 %v14406_v40, %v14406_v40  ;;  %v3438_v56 = vshll.u32 %v3437_v58, 30  ;;  %v3461_v0 = vsub.s32 4, %v3437_v58  ;;  %v1045_v20 = vshrl.u32 %v20155_v39, %v1042_v13 }
 0x139   : > { %v1054_v57 = vshrl.u32 %v20147_v45, %v1042_v13  ;;  %v1048_v4 = vshrl.u32 %v20153_v41, %v1042_v13  ;;  %v1051_v12 = vshrl.u32 %v20151_v43, %v1042_v13  ;;  %vm3502_vm12 = vcmp.gt.s32.totalorder %v3501_v44, 0 }
 0x13a   : > { %v1002_v25 = vmul.f32 -0.001358992, %v1001_v8  ;;  %v1009_v30 = vmul.f32 -0.00019511016, %v1001_v8  ;;  %v3439_v59 = vsub.s32 %v3435_v16, %v3438_v56  ;;  %v1053_v16 = vshll.u32 %v20151_v43, %v1041_v48 }
 0x13b   : > { %v3462_v1 = vsel %vm3339_vm9, %v3461_v0, %v3437_v58  ;;  %v1057_v56 = vshrl.u32 %v20149_v54, %v1042_v13  ;;  %v1046_v0 = vor.u32 %v1045_v20, %v1044_v6  ;;  %vm1062_vm14 = vcmp.lt.s32.totalorder %v14431_v26, 4 }
 0x13c   : > { %v1003_v27 = vadd.f32 0.041655596, %v1002_v25  ;;  %v1010_v15 = vadd.f32 0.008332121, %v1009_v30  ;;  %vm3440_vm11 = vcmp.lt.s32.totalorder %v3439_v59, 0  ;;  %v3441_v35 = vsub.s32 0, %v3439_v59 }
 0x13d   : > { %v14452_v58 = vsel %vm14425_vm10, 0, %v3462_v1  ;;  %vm1059_vm15 = vcmp.lt.s32.totalorder %v14431_v26, 1  ;;  %v6133_v1 = vadd.s32 3, %v14421_v34  ;;  %vm1060_vm2 = vcmp.lt.s32.totalorder %v14431_v26, 2 }
 0x13e   : > { %v1004_v11 = vmul.f32 %v1003_v27, %v1001_v8  ;;  %v1011_v47 = vmul.f32 %v1010_v15, %v1001_v8  ;;  %v3442_v21 = vsel %vm3440_vm11, %v3441_v35, %v3439_v59  ;;  %v1076_v27 = vand.u32 65535, %v14429_v22  ;;  %20478 = vst [vmem:[#allocation25_spill] sm:$0xff] %v14452_v58 }
 0x13f   : > { %v3443_v24 = vclz %v3442_v21  ;;  %v14448_v15 = vshrl.u32 %v14429_v22, 16  ;;  %v1055_v35 = vor.u32 %v1054_v57, %v1053_v16  ;;  %v1049_v21 = vor.u32 %v1048_v4, %v1047_v18 }
 0x140   : > { %v1012_v33 = vadd.f32 -0.16666654, %v1011_v47  ;;  %v1005_v25 = vadd.f32 -0.4999988, %v1004_v11  ;;  %v1052_v11 = vor.u32 %v1051_v12, %v1050_v42  ;;  %vm1061_vm4 = vcmp.lt.s32.totalorder %v14431_v26, 3 }
 0x141   : > { %v12750_v30 = vadd.s32 4294967294, %v3443_v24  ;;  %v1058_v24 = vor.u32 %v1057_v56, %v1056_v7  ;;  %v1068_v6 = vsel %vm1062_vm14, %v1055_v35, 920167782  ;;  %v1067_v57 = vsel %vm1059_vm15, %v1046_v0, %v1049_v21 }
 0x142   : > { %v1013_v47 = vmul.f32 %v1012_v33, %v1001_v8  ;;  %v1006_v46 = vmul.f32 %v1005_v25, %v1001_v8  ;;  %v8613_v8 = vadd.s32 3, %v14452_v58  ;;  %v1064_v4 = vsel %vm1062_vm14, %v1052_v11, 2102212464 }
 0x143   : > { %vm12751_vm13 = vcmp.lt.s32.totalorder %v12750_v30, 0  ;;  %v14468_v42 = vsel %vm3502_vm12, %v3501_v44, 0  ;;  %v1072_v56 = vsel %vm1062_vm14, %v1058_v24, 1326507024  ;;  %vm20238_vm12 = vweird.f32 %v14046_v31 }
 0x144   : > { %v3446_v48 = vsel %vm12751_vm13, 0, %v12750_v30  ;;  %v1014_v20 = vadd.f32 1.0, %v1013_v47  ;;  %v14470_v33 = vadd.f32 1.0, %v1006_v46  ;;  %v1073_v25 = vsel %vm1061_vm4, %v1055_v35, %v1072_v56 }
 0x145   : > { %v3447_v53 = vsub.s32 32, %v3446_v48  ;;  %v3448_v14 = vshll.u32 %v3439_v59, %v3446_v48  ;;  %v3451_v38 = vsub.s32 4294967266, %v3446_v48  ;;  %v1043_v59 = vshrl.u32 %v20144_v37, %v1042_v13 }
 0x146   : > { %20479 = vst [vmem:[#allocation26_spill] sm:$0xff] %v14470_v33  ;;  %v1071_v13 = vsel %vm1059_vm15, %v1049_v21, %v1052_v11  ;;  %v14483_v44 = vmul.f32 %v1014_v20, %v14406_v40  ;;  %v14493_v40 = vand.u32 3, %v8613_v8  ;;  %v1065_v35 = vsel %vm1061_vm4, %v1049_v21, %v1064_v4 }
 0x147   : > { %v3449_v18 = vshrl.u32 %v3431_v29, %v3447_v53  ;;  %v3452_v16 = vadd.s32 127, %v3451_v38  ;;  %v1069_v53 = vsel %vm1061_vm4, %v1052_v11, %v1068_v6  ;;  %v14474_v38 = vand.u32 3, %v6133_v1 }
 0x148   : > { %v1070_v29 = vsel %vm1060_vm2, %v1067_v57, %v1069_v53  ;;  %20480 = vst [vmem:[#allocation27_spill] sm:$0xff] %v14483_v44  ;;  %v1063_v30 = vsel %vm1059_vm15, %v1043_v59, %v1046_v0  ;;  %v1074_v47 = vsel %vm1060_vm2, %v1071_v13, %v1073_v25  ;;  %v20135_v11 = vxor.u32 2147483648, %v14470_v33 }
 0x149   : > { %v3450_v12 = vor.u32 %v3449_v18, %v3448_v14  ;;  %v3453_v7 = vshll.u32 %v3452_v16, 23  ;;  %v1100_v48 = vand.u32 65535, %v1070_v29  ;;  %v1101_v1 = vshrl.u32 %v1070_v29, 16 }
 0x14a   : > { %v1078_v24 = vand.u32 65535, %v1074_v47  ;;  %v1079_v18 = vshrl.u32 %v1074_v47, 16  ;;  %vm6139_vm5 = vcmp.eq.s32.totalorder %v14474_v38, 2  ;;  %v20136_v0 = vxor.u32 2147483648, %v14483_v44 }
 0x14b   : > { %v3454_v46 = vor.u32 4788187, %v3453_v7  ;;  %v3457_v14 = vcvt.s32.f32 %v3450_v12  ;;  %v1103_v20 = vmul.u32 %v1101_v1, %v1076_v27  ;;  %vm6135_vm6 = vcmp.lt.s32.totalorder %v14474_v38, 2 }
 0x14c   : > { %vm6136_vm7 = vcmp.eq.s32.totalorder %v14474_v38, 0  ;;  %v1102_v57 = vmul.u32 %v1100_v48, %v1076_v27  ;;  %v1080_v59 = vmul.u32 %v1078_v24, %v1076_v27  ;;  %v1081_v12 = vmul.u32 %v1079_v18, %v1076_v27 }
 0x14d   : > { %v3455_v6 = vand.u32 2147483647, %v3454_v46  ;;  %v1082_v7 = vmul.u32 %v1078_v24, %v14448_v15  ;;  %v1104_v53 = vmul.u32 %v1100_v48, %v14448_v15  ;;  %v6141_v21 = vsel %vm6139_vm5, %v20135_v11, %v14483_v44 }
 0x14e   : > { %v1105_v4 = vmul.u32 %v1101_v1, %v14448_v15  ;;  %v1106_v29 = vshll.u32 %v1103_v20, 16  ;;  %v14508_v13 = vsel %vm1060_vm2, %v1063_v30, %v1065_v35  ;;  %v1083_v56 = vmul.u32 %v1079_v18, %v14448_v15 }
 0x14f   : > { %v3458_v16 = vmul.f32 %v3457_v14, %v3455_v6  ;;  %v1084_v46 = vshll.u32 %v1081_v12, 16  ;;  %v1086_v27 = vshll.u32 %v1082_v7, 16  ;;  %v6138_v25 = vsel %vm6136_vm7, %v14470_v33, %v20136_v0 }
 0x150   : > { %v1108_v47 = vshll.u32 %v1104_v53, 16  ;;  %vm1110_vm8 = vc.u32 %v1102_v57, %v1106_v29  ;;  %v1112_v6 = vadd.s32 %v1106_v29, %v1102_v57  ;;  %v1085_v18 = vshrl.u32 %v1081_v12, 16 }
 0x151   : > { %v3459_v8 = vxor.u32 2147483648, %v3458_v16  ;;  %vm1088_vm11 = vc.u32 %v1080_v59, %v1084_v46  ;;  %v1090_v26 = vadd.s32 %v1084_v46, %v1080_v59  ;;  %v1111_v15 = vsel %vm1110_vm8, 1, %v20142_v62 }
 0x152   : > { %v1089_v1 = vsel %vm1088_vm11, 1, %v20142_v62  ;;  %v1113_v24 = vadd.s32 %v1111_v15, %v1105_v4  ;;  %v3505_v0 = vand.u32 31, %v14468_v42  ;;  %v1109_v4 = vshrl.u32 %v1104_v53, 16 }
 0x153   : > { %v3460_v14 = vsel %vm3339_vm9, %v3459_v8, %v3458_v16  ;;  %v1091_v35 = vadd.s32 %v1089_v1, %v1083_v56  ;;  %vm1092_vm9 = vc.u32 %v1090_v26, %v1086_v27  ;;  %v1107_v16 = vshrl.u32 %v1103_v20, 16 }
 0x154   : > { %v14519_v48 = vsel %vm14425_vm10, %v14050_v52, %v3460_v14  ;;  %v1093_v17 = vsel %vm1092_vm9, 1, %v20142_v62  ;;  %vm1114_vm10 = vc.u32 %v1112_v6, %v1108_v47  ;;  %v1087_v14 = vshrl.u32 %v1082_v7, 16 }
 0x155   : > { %v3465_v30 = vmul.f32 %v14519_v48, %v14519_v48  ;;  %v1095_v59 = vadd.s32 %v1093_v17, %v1091_v35  ;;  %v1115_v46 = vsel %vm1114_vm10, 1, %v20142_v62  ;;  %v6142_v20 = vsel %vm6135_vm6, %v6138_v25, %v6141_v21 }
 0x156   : > { %v1117_v12 = vadd.s32 %v1115_v46, %v1113_v24  ;;  %vm8619_vm13 = vcmp.eq.s32.totalorder %v14493_v40, 2  ;;  %v14532_v56 = vadd.s32 %v1112_v6, %v1108_v47  ;;  %v14534_v7 = vsub.s32 32, %v3505_v0 }
 0x157   : > { %v3466_v8 = vmul.f32 -0.001358992, %v3465_v30  ;;  %v3473_v11 = vmul.f32 -0.00019511016, %v3465_v30  ;;  %v1096_v29 = vadd.s32 %v1095_v59, %v1085_v18  ;;  %v14537_v1 = vshrl.u32 %v14468_v42, 5 }
 0x158   : > { %v1118_v15 = vadd.s32 %v1117_v12, %v1107_v16  ;;  %v3508_v38 = vshll.u32 %v20144_v37, %v3505_v0  ;;  %v3511_v53 = vshll.u32 %v20155_v39, %v3505_v0  ;;  %vm8615_vm14 = vcmp.lt.s32.totalorder %v14493_v40, 2 }
 0x159   : > { %v3467_v2 = vadd.f32 0.041655596, %v3466_v8  ;;  %v3474_v57 = vadd.f32 0.008332121, %v3473_v11  ;;  %v14539_v35 = vadd.s32 %v1096_v29, %v1087_v14  ;;  %v1120_v11 = vmul.u32 %v14429_v22, %v14508_v13 }
 0x15a   : > { %v1119_v47 = vadd.s32 %v1118_v15, %v1109_v4  ;;  %vm20213_vm15 = vweird.f32 %v14050_v52  ;;  %v3512_v22 = vshrl.u32 %v20153_v41, %v14534_v7  ;;  %v3514_v42 = vshll.u32 %v20153_v41, %v3505_v0 }
 0x15b   : > { %v3468_v27 = vmul.f32 %v3467_v2, %v3465_v30  ;;  %v3475_v26 = vmul.f32 %v3474_v57, %v3465_v30  ;;  %v3509_v2 = vshrl.u32 %v20155_v39, %v14534_v7  ;;  %vm1122_vm2 = vc.u32 %v14539_v35, %v14532_v56 }
 0x15c   : > { %v3515_v13 = vshrl.u32 %v20151_v43, %v14534_v7  ;;  %v1123_v18 = vadd.s32 1, %v1119_v47  ;;  %vm3523_vm4 = vcmp.lt.s32.totalorder %v14537_v1, 1  ;;  %v3517_v16 = vshll.u32 %v20151_v43, %v3505_v0 }
 0x15d   : > { %v3469_v21 = vadd.f32 -0.4999988, %v3468_v27  ;;  %v3476_v25 = vadd.f32 -0.16666654, %v3475_v26  ;;  %v3518_v8 = vshrl.u32 %v20147_v45, %v14534_v7  ;;  %v3520_v17 = vshll.u32 %v20147_v45, %v3505_v0  ;;  %v598_v0 = vld [vmem:[%s14075_s18 + $0x88] sm:$0xff] }
 0x15e   : > { %v3521_v14 = vshrl.u32 %v20149_v54, %v14534_v7  ;;  %v1124_v57 = vsel %vm1122_vm2, %v1123_v18, %v1119_v47  ;;  %v3510_v4 = vor.u32 %v3509_v2, %v3508_v38  ;;  %v14565_v12 = vor.u32 %v3512_v22, %v3511_v53 }
 0x15f   : > { %v3470_v6 = vmul.f32 %v3469_v21, %v3465_v30  ;;  %v3477_v24 = vmul.f32 %v3476_v25, %v3465_v30  ;;  %v1125_v30 = vadd.s32 %v1124_v57, %v1120_v11  ;;  %v3516_v29 = vor.u32 %v3515_v13, %v3514_v42 }
 0x160   : > { %v3519_v27 = vor.u32 %v3518_v8, %v3517_v16  ;;  %v3522_v21 = vor.u32 %v3521_v14, %v3520_v17  ;;  %vm3525_vm5 = vcmp.lt.s32.totalorder %v14537_v1, 3  ;;  %v6143_v25 = vsel %vm20238_vm12, nan, %v6142_v20 }
 0x161   : > { %v14563_v59 = vadd.f32 1.0, %v3470_v6  ;;  %v3478_v46 = vadd.f32 1.0, %v3477_v24  ;;  %vm8616_vm6 = vcmp.eq.s32.totalorder %v14493_v40, 0  ;;  %v1126_v38 = vadd.s32 536870912, %v1125_v30 }
 0x162   : > { %vm3526_vm7 = vcmp.lt.s32.totalorder %v14537_v1, 4  ;;  %vm3524_vm8 = vcmp.lt.s32.totalorder %v14537_v1, 2  ;;  %v3531_v20 = vsel %vm3523_vm4, %v3510_v4, %v14565_v12  ;;  %v3535_v22 = vsel %vm3523_vm4, %v14565_v12, %v3516_v29 }
 0x163   : > { %20481 = vst [vmem:[#allocation28_spill] sm:$0xff] %v14563_v59  ;;  %v14568_v26 = vmul.f32 %v3478_v46, %v14519_v48  ;;  %v20138_v15 = vxor.u32 2147483648, %v14563_v59  ;;  %v3532_v53 = vsel %vm3526_vm7, %v3519_v27, 920167782  ;;  %v14586_v47 = vshrl.u32 %v1126_v38, 30 }
 0x164   : > { %v3533_v2 = vsel %vm3525_vm5, %v3516_v29, %v3532_v53  ;;  %v14598_v42 = vsel %vm652_vm0, %v598_v0, 0.0  ;;  %v3536_v6 = vsel %vm3526_vm7, %v3522_v21, 1326507024  ;;  %v10795_v18 = vmul.f32 %v6143_v25, %v14414_v3 }
 0x165   : > { %20482 = vst [vmem:[#allocation29_spill] sm:$0xff] %v14568_v26  ;;  %v20139_v11 = vxor.u32 2147483648, %v14568_v26  ;;  %v8621_v48 = vsel %vm8619_vm13, %v20138_v15, %v14568_v26  ;;  %v1128_v16 = vshll.u32 %v14586_v47, 30  ;;  %v3537_v8 = vsel %vm3525_vm5, %v3519_v27, %v3536_v6 }
 0x166   : > { %20483 = vst [vmem:[#allocation30_spill] sm:$0xff] %v14598_v42  ;;  %v3534_v14 = vsel %vm3524_vm8, %v3531_v20, %v3533_v2  ;;  %v3538_v46 = vsel %vm3524_vm8, %v3535_v22, %v3537_v8  ;;  %v14619_v40 = vshll.u32 %v3499_v55, 8  ;;  %v3507_v27 = vshrl.u32 %v20144_v37, %v14534_v7 }
 0x167   : > { %v8618_v13 = vsel %vm8616_vm6, %v14563_v59, %v20139_v11  ;;  %v1129_v21 = vsub.s32 %v1125_v30, %v1128_v16  ;;  %v3542_v0 = vand.u32 65535, %v3538_v46  ;;  %v3564_v25 = vand.u32 65535, %v3534_v14 }
 0x168   : > { %v8622_v24 = vsel %vm8615_vm14, %v8618_v13, %v8621_v48  ;;  %v3540_v38 = vand.u32 65535, %v14619_v40  ;;  %v3541_v48 = vshrl.u32 %v14619_v40, 16  ;;  %v3543_v53 = vshrl.u32 %v3538_v46, 16 }
 0x169   : > { %v8623_v17 = vsel %vm20213_vm15, nan, %v8622_v24  ;;  %vm1130_vm11 = vcmp.lt.s32.totalorder %v1129_v21, 0  ;;  %v1131_v2 = vsub.s32 0, %v1129_v21  ;;  %v3565_v22 = vshrl.u32 %v3534_v14, 16 }
 0x16a   : > { %v10811_v57 = vmul.f32 %v8623_v17, %v14598_v42  ;;  %v1121_v60 = vadd.s32 %v14532_v56, %v14539_v35  ;;  %v3544_v55 = vmul.u32 %v3542_v0, %v3540_v38  ;;  %v3545_v13 = vmul.u32 %v3543_v53, %v3540_v38 }
 0x16b   : > { %v3546_v30 = vmul.u32 %v3542_v0, %v3541_v48  ;;  %v1132_v6 = vsel %vm1130_vm11, %v1131_v2, %v1129_v21  ;;  %v3566_v24 = vmul.u32 %v3564_v25, %v3540_v38  ;;  %v3567_v16 = vmul.u32 %v3565_v22, %v3540_v38 }
 0x16c   : > { %v13232_v20 = vpack.i.bf16 %v10811_v57, %v10795_v18  ;;  %v3568_v7 = vmul.u32 %v3564_v25, %v3541_v48  ;;  %v1133_v8 = vclz %v1132_v6  ;;  %v3547_v17 = vmul.u32 %v3543_v53, %v3541_v48 }
 0x16d   : > { %v3548_v15 = vshll.u32 %v3545_v13, 16  ;;  %v3550_v11 = vshll.u32 %v3546_v30, 16  ;;  %v3527_v18 = vsel %vm3523_vm4, %v3507_v27, %v3510_v4  ;;  %v3528_v14 = vsel %vm3526_vm7, %v3516_v29, 2102212464 }
 0x16e   : > { %13233 = vxpose.xlu0.b32.cont [2/16] %v13232_v20, 128  ;;  %v3549_v46 = vshrl.u32 %v3545_v13, 16  ;;  %v3570_v56 = vshll.u32 %v3567_v16, 16  ;;  %v12705_v35 = vadd.s32 4294967294, %v1133_v8  ;;  %v3572_v0 = vshll.u32 %v3568_v7, 16  ;;  %v617_v13 = vld [vmem:[%s13759_s0 + $0x18] sm:$0xff] }
 0x16f   : > { %vm3552_vm9 = vc.u32 %v3544_v55, %v3548_v15  ;;  %v3554_v57 = vadd.s32 %v3548_v15, %v3544_v55  ;;  %v3569_v25 = vmul.u32 %v3565_v22, %v3541_v48  ;;  %v3551_v20 = vshrl.u32 %v3546_v30, 16 }
 0x170   : > { %v3553_v38 = vsel %vm3552_vm9, 1, %v20142_v62  ;;  %vm3574_vm10 = vc.u32 %v3566_v24, %v3570_v56  ;;  %v3576_v53 = vadd.s32 %v3570_v56, %v3566_v24  ;;  %vm12706_vm13 = vcmp.lt.s32.totalorder %v12705_v35, 0 }
 0x171   : > { %v3555_v2 = vadd.s32 %v3553_v38, %v3547_v17  ;;  %vm3556_vm14 = vc.u32 %v3554_v57, %v3550_v11  ;;  %v1136_v4 = vsel %vm12706_vm13, 0, %v12705_v35  ;;  %v3575_v29 = vsel %vm3574_vm10, 1, %v20142_v62 }
 0x172   : > { %v3557_v27 = vsel %vm3556_vm14, 1, %v20142_v62  ;;  %vm3578_vm2 = vc.u32 %v3576_v53, %v3572_v0  ;;  %v1137_v6 = vsub.s32 32, %v1136_v4  ;;  %v1138_v8 = vshll.u32 %v1129_v21, %v1136_v4 }
 0x173   : > { %v1141_v15 = vsub.s32 4294967266, %v1136_v4  ;;  %v3559_v55 = vadd.s32 %v3557_v27, %v3555_v2  ;;  %v3529_v48 = vsel %vm3525_vm5, %v14565_v12, %v3528_v14  ;;  %v3571_v22 = vshrl.u32 %v3567_v16, 16 }
 0x174   : > { %v3577_v24 = vadd.s32 %v3575_v29, %v3569_v25  ;;  %v3579_v30 = vsel %vm3578_vm2, 1, %v20142_v62  ;;  %v1139_v11 = vshrl.u32 %v1121_v60, %v1137_v6  ;;  %v14642_v35 = vsel %vm652_vm0, %v617_v13, 0.0 }
 0x175   : > { %v1142_v17 = vadd.s32 127, %v1141_v15  ;;  %v3560_v56 = vadd.s32 %v3559_v55, %v3549_v46  ;;  %20484 = vst [vmem:[#allocation31_spill] sm:$0xff] %v14642_v35  ;;  %v3573_v57 = vshrl.u32 %v3568_v7, 16  ;;  %v1184_v38 = vand.u32 2139095040, %v14642_v35  ;;  %v633_v7 = vld [vmem:[%s13759_s0 + $0x98] sm:$0xff] }
 0x176   : > { %v3581_v21 = vadd.s32 %v3579_v30, %v3577_v24  ;;  %v1140_v2 = vor.u32 %v1139_v11, %v1138_v8  ;;  %v14647_v12 = vadd.s32 %v3576_v53, %v3572_v0  ;;  %v3530_v60 = vsel %vm3524_vm8, %v3527_v18, %v3529_v48  ;;  %v583_v48 = vld [vmem:[%s14075_s18 + $0x10] sm:$0xff] }
 0x177   : > { %v1143_v4 = vshll.u32 %v1142_v17, 23  ;;  %v14645_v27 = vadd.s32 %v3560_v56, %v3551_v20  ;;  %v1185_v14 = vshrl.u32 %v1184_v38, 23  ;;  %v3584_v8 = vmul.u32 %v14619_v40, %v3530_v60 }
 0x178   : > { %v3582_v16 = vadd.s32 %v3581_v21, %v3571_v22  ;;  %v1147_v25 = vcvt.s32.f32 %v1140_v2  ;;  %v20141_v53 = vand.u32 2147483647, %v14642_v35  ;;  %v14658_v20 = vsel %vm652_vm0, %v633_v7, 0.0  ;;  %v599_v22 = vld [vmem:[%s14075_s18 + $0x90] sm:$0xff] }
 0x179   : > { %v1144_v46 = vor.u32 4788187, %v1143_v4  ;;  %v12707_v13 = vadd.s32 4294967169, %v1185_v14  ;;  %vm3586_vm4 = vc.u32 %v14645_v27, %v14647_v12  ;;  %20485 = vst [vmem:[#allocation32_spill] sm:$0xff] %v14658_v20  ;;  %v20486_v15 = vand.u32 2147483647, %v14378_v19 }
 0x17a   : > { %v3583_v29 = vadd.s32 %v3582_v16, %v3573_v57  ;;  %vm1029_vm6 = vcmp.lt.s32.totalorder %v14378_v19, 0  ;;  %v1151_v30 = vsub.s32 4, %v14586_v47  ;;  %v1188_v56 = vand.u32 8388607, %v20141_v53 }
 0x17b   : > { %v1145_v6 = vand.u32 2147483647, %v1144_v46  ;;  %v1191_v1 = vadd.s32 1, %v12707_v13  ;;  %vm14662_vm5 = vcmp.le.f32.partialorder %v20486_v15, 0.7853982  ;;  %v3648_v38 = vand.u32 2139095040, %v14658_v20 }
 0x17c   : > { %v3587_v0 = vadd.s32 1, %v3583_v29  ;;  %v20140_v21 = vand.u32 2147483647, %v14658_v20  ;;  %v14678_v60 = vsel %vm652_vm0, %v583_v48, 0.0  ;;  %v14687_v46 = vsel %vm652_vm0, %v599_v22, 0.0 }
 0x17d   : > { %v1148_v18 = vmul.f32 %v1147_v25, %v1145_v6  ;;  %vm1192_vm7 = vcmp.gt.s32.totalorder %v1191_v1, 0  ;;  %20489 = vst [vmem:[#allocation33_spill] sm:$0xff] %v14678_v60  ;;  %v1152_v25 = vsel %vm1029_vm6, %v1151_v30, %v14586_v47  ;;  %v1189_v13 = vor.u32 8388608, %v1188_v56 }
 0x17e   : > { %v3588_v40 = vsel %vm3586_vm4, %v3587_v0, %v3583_v29  ;;  %v1193_v17 = vsel %vm1192_vm7, %v1191_v1, 0  ;;  %20490 = vst [vmem:[#allocation34_spill] sm:$0xff] %v14687_v46  ;;  %v14698_v0 = vand.u32 8388607, %v20140_v21  ;;  %vm3493_vm8 = vcmp.lt.s32.totalorder %v14385_v63, 0 }
 0x17f   : > { %v1149_v24 = vxor.u32 2147483648, %v1148_v18  ;;  %v3589_v11 = vadd.s32 %v3588_v40, %v3584_v8  ;;  %v1195_v57 = vand.u32 31, %v1193_v17  ;;  %v14694_v6 = vshrl.u32 %v1193_v17, 5 }
 0x180   : > { %v3649_v8 = vshrl.u32 %v3648_v38, 23  ;;  %v20505_v59 = vmov 1326507024  }
 0x181   : > { %v1150_v2 = vsel %vm1029_vm6, %v1149_v24, %v1148_v18  ;;  %v3590_v4 = vadd.s32 536870912, %v3589_v11  ;;  %v1196_v14 = vsub.s32 32, %v1195_v57  ;;  %v1198_v40 = vshll.u32 %v20144_v37, %v1195_v57 }
 0x182   : > { %v14683_v16 = vsel %vm14662_vm5, %v14378_v19, %v1150_v2  ;;  %v1201_v48 = vshll.u32 %v20155_v39, %v1195_v57  ;;  %v1204_v47 = vshll.u32 %v20153_v41, %v1195_v57  ;;  %v1207_v22 = vshll.u32 %v20151_v43, %v1195_v57 }
 0x183   : > { %v1155_v29 = vmul.f32 %v14683_v16, %v14683_v16  ;;  %v3591_v7 = vshrl.u32 %v3590_v4, 30  ;;  %v1208_v24 = vshrl.u32 %v20147_v45, %v1196_v14  ;;  %v1199_v38 = vshrl.u32 %v20155_v39, %v1196_v14 }
 0x184   : > { %v1202_v2 = vshrl.u32 %v20153_v41, %v1196_v14  ;;  %v1205_v4 = vshrl.u32 %v20151_v43, %v1196_v14  ;;  %v1210_v21 = vshll.u32 %v20147_v45, %v1195_v57  ;;  %v1211_v53 = vshrl.u32 %v20149_v54, %v1196_v14 }
 0x185   : > { %v1156_v1 = vmul.f32 -0.001358992, %v1155_v29  ;;  %v1163_v18 = vmul.f32 -0.00019511016, %v1155_v29  ;;  %v3592_v15 = vshll.u32 %v3591_v7, 30  ;;  %v1209_v57 = vor.u32 %v1208_v24, %v1207_v22 }
 0x186   : > { %v14723_v45 = vshll.u32 %v1189_v13, 8  ;;  %vm1216_vm10 = vcmp.lt.s32.totalorder %v14694_v6, 4  ;;  %v12755_v54 = vadd.s32 4294967169, %v3649_v8  ;;  %v1200_v43 = vor.u32 %v1199_v38, %v1198_v40 }
 0x187   : > { %v1157_v30 = vadd.f32 0.041655596, %v1156_v1  ;;  %v1164_v17 = vadd.f32 0.008332121, %v1163_v18  ;;  %v3593_v56 = vsub.s32 %v3589_v11, %v3592_v15  ;;  %v14713_v1 = vsel %vm14662_vm5, 0, %v1152_v25 }
 0x188   : > { %20491 = vst [vmem:[#allocation35_spill] sm:$0xff] %v14713_v1  ;;  %v20492_v11 = vand.u32 2147483647, %v14385_v63  ;;  %v3585_v15 = vadd.s32 %v14647_v12, %v14645_v27  ;;  %v3615_v25 = vsub.s32 4, %v3591_v7  ;;  %v1203_v39 = vor.u32 %v1202_v2, %v1201_v48 }
 0x189   : > { %v1158_v62 = vmul.f32 %v1157_v30, %v1155_v29  ;;  %v1165_v37 = vmul.f32 %v1164_v17, %v1155_v29  ;;  %vm3594_vm11 = vcmp.lt.s32.totalorder %v3593_v56, 0  ;;  %v3595_v36 = vsub.s32 0, %v3593_v56 }
 0x18a   : > { %vm14717_vm9 = vcmp.le.f32.partialorder %v20492_v11, 0.7853982  ;;  %v1206_v10 = vor.u32 %v1205_v4, %v1204_v47  ;;  %v1212_v42 = vor.u32 %v1211_v53, %v1210_v21  ;;  %vm1213_vm13 = vcmp.lt.s32.totalorder %v14694_v6, 1 }
 0x18b   : > { %v1166_v30 = vadd.f32 -0.16666654, %v1165_v37  ;;  %v3596_v17 = vsel %vm3594_vm11, %v3595_v36, %v3593_v56  ;;  %v1159_v11 = vadd.f32 -0.4999988, %v1158_v62  ;;  %vm1215_vm14 = vcmp.lt.s32.totalorder %v14694_v6, 3 }
 0x18c   : > { %v3597_v55 = vclz %v3596_v17  ;;  %v1222_v37 = vsel %vm1216_vm10, %v1209_v57, 920167782  ;;  %v20495_v27 = vmov 683565275   ;;  %v1230_v13 = vand.u32 65535, %v14723_v45 }
 0x18d   : > { %v1167_v36 = vmul.f32 %v1166_v30, %v1155_v29  ;;  %v1197_v12 = vshrl.u32 %v20495_v27, %v1196_v14  ;;  %v1231_v8 = vshrl.u32 %v14723_v45, 16  ;;  %v3616_v62 = vsel %vm3493_vm8, %v3615_v25, %v3591_v7 }
 0x18e   : > { %v12753_v50 = vadd.s32 4294967294, %v3597_v55  ;;  %vm1214_vm4 = vcmp.lt.s32.totalorder %v14694_v6, 2  ;;  %v1218_v53 = vsel %vm1216_vm10, %v1206_v10, 2102212464  ;;  %v1160_v21 = vmul.f32 %v1159_v11, %v1155_v29 }
 0x18f   : > { %v1221_v48 = vsel %vm1213_vm13, %v1200_v43, %v1203_v39  ;;  %v1223_v14 = vsel %vm1215_vm14, %v1206_v10, %v1222_v37  ;;  %v1226_v38 = vsel %vm1216_vm10, %v1212_v42, 1326507024  ;;  %v1168_v7 = vadd.f32 1.0, %v1167_v36 }
 0x190   : > { %vm12754_vm2 = vcmp.lt.s32.totalorder %v12753_v50, 0  ;;  %v14747_v2 = vsel %vm14717_vm9, 0, %v3616_v62  ;;  %v14751_v29 = vadd.s32 1, %v12755_v54  ;;  %v6288_v17 = vadd.s32 3, %v14713_v1 }
 0x191   : > { %v3600_v40 = vsel %vm12754_vm2, 0, %v12753_v50  ;;  %20496 = vst [vmem:[#allocation36_spill] sm:$0xff] %v14747_v2  ;;  %v1225_v50 = vsel %vm1213_vm13, %v1203_v39, %v1206_v10  ;;  %v14756_v55 = vadd.f32 1.0, %v1160_v21  ;;  %v1219_v42 = vsel %vm1215_vm14, %v1203_v39, %v1218_v53 }
 0x192   : > { %v3601_v47 = vsub.s32 32, %v3600_v40  ;;  %v3602_v22 = vshll.u32 %v3593_v56, %v3600_v40  ;;  %v3605_v24 = vsub.s32 4294967266, %v3600_v40  ;;  %v1217_v56 = vsel %vm1213_vm13, %v1197_v12, %v1200_v43 }
 0x193   : > { %20497 = vst [vmem:[#allocation37_spill] sm:$0xff] %v14756_v55  ;;  %v1224_v25 = vsel %vm1214_vm4, %v1221_v48, %v1223_v14  ;;  %v1227_v10 = vsel %vm1215_vm14, %v1209_v57, %v1226_v38  ;;  %v14768_v43 = vmul.f32 %v1168_v7, %v14683_v16  ;;  %v14770_v21 = vand.u32 3, %v6288_v17 }
 0x194   : > { %v3603_v4 = vshrl.u32 %v3585_v15, %v3601_v47  ;;  %v3606_v30 = vadd.s32 127, %v3605_v24  ;;  %v8768_v15 = vadd.s32 3, %v14747_v2  ;;  %v1228_v37 = vsel %vm1214_vm4, %v1225_v50, %v1227_v10 }
 0x195   : > { %20498 = vst [vmem:[#allocation38_spill] sm:$0xff] %v14768_v43  ;;  %v1232_v36 = vand.u32 65535, %v1228_v37  ;;  %v1233_v12 = vshrl.u32 %v1228_v37, 16  ;;  %v1254_v62 = vand.u32 65535, %v1224_v25  ;;  %v1255_v40 = vshrl.u32 %v1224_v25, 16 }
 0x196   : > { %v3604_v54 = vor.u32 %v3603_v4, %v3602_v22  ;;  %v3607_v11 = vshll.u32 %v3606_v30, 23  ;;  %vm3656_vm5 = vcmp.gt.s32.totalorder %v14751_v29, 0  ;;  %v20161_v47 = vxor.u32 2147483648, %v14756_v55 }
 0x197   : > { %v1234_v48 = vmul.u32 %v1232_v36, %v1230_v13  ;;  %v1235_v57 = vmul.u32 %v1233_v12, %v1230_v13  ;;  %v1236_v14 = vmul.u32 %v1232_v36, %v1231_v8  ;;  %v14776_v16 = vsel %vm1214_vm4, %v1217_v56, %v1219_v42 }
 0x198   : > { %v3608_v39 = vor.u32 4788187, %v3607_v11  ;;  %v3611_v53 = vcvt.s32.f32 %v3604_v54  ;;  %v1257_v24 = vmul.u32 %v1255_v40, %v1230_v13  ;;  %v14778_v38 = vand.u32 3, %v8768_v15 }
 0x199   : > { %v1237_v7 = vmul.u32 %v1233_v12, %v1231_v8  ;;  %v1238_v50 = vshll.u32 %v1235_v57, 16  ;;  %v1258_v4 = vmul.u32 %v1254_v62, %v1231_v8  ;;  %v20162_v30 = vxor.u32 2147483648, %v14768_v43 }
 0x19a   : > { %v3609_v22 = vand.u32 2147483647, %v3608_v39  ;;  %vm6291_vm6 = vcmp.eq.s32.totalorder %v14770_v21, 0  ;;  %v1256_v25 = vmul.u32 %v1254_v62, %v1230_v13  ;;  %vm6294_vm7 = vcmp.eq.s32.totalorder %v14770_v21, 2 }
 0x19b   : > { %v1240_v10 = vshll.u32 %v1236_v14, 16  ;;  %vm1242_vm11 = vc.u32 %v1234_v48, %v1238_v50  ;;  %v1244_v54 = vadd.s32 %v1238_v50, %v1234_v48  ;;  %v20499_v56 = vmov 0  }
 0x19c   : > { %v3612_v17 = vmul.f32 %v3611_v53, %v3609_v22  ;;  %v1243_v42 = vsel %vm1242_vm11, 1, %v20499_v56  ;;  %v1259_v11 = vmul.u32 %v1255_v40, %v1231_v8  ;;  %v1260_v15 = vshll.u32 %v1257_v24, 16 }
 0x19d   : > { %v1239_v37 = vshrl.u32 %v1235_v57, 16  ;;  %v1245_v36 = vadd.s32 %v1243_v42, %v1237_v7  ;;  %vm1246_vm10 = vc.u32 %v1244_v54, %v1240_v10  ;;  %v1262_v12 = vshll.u32 %v1258_v4, 16 }
 0x19e   : > { %v3613_v6 = vxor.u32 2147483648, %v3612_v17  ;;  %v1247_v53 = vsel %vm1246_vm10, 1, %v20499_v56  ;;  %vm1264_vm13 = vc.u32 %v1256_v25, %v1260_v15  ;;  %v1266_v13 = vadd.s32 %v1260_v15, %v1256_v25 }
 0x19f   : > { %v1241_v48 = vshrl.u32 %v1236_v14, 16  ;;  %v1249_v22 = vadd.s32 %v1247_v53, %v1245_v36  ;;  %v1265_v8 = vsel %vm1264_vm13, 1, %v20499_v56  ;;  %v1261_v57 = vshrl.u32 %v1257_v24, 16 }
 0x1a0   : > { %v3614_v39 = vsel %vm3493_vm8, %v3613_v6, %v3612_v17  ;;  %v1267_v7 = vadd.s32 %v1265_v8, %v1259_v11  ;;  %vm1268_vm14 = vc.u32 %v1266_v13, %v1262_v12  ;;  %v14796_v10 = vadd.s32 %v1266_v13, %v1262_v12 }
 0x1a1   : > { %v14790_v62 = vsel %vm14717_vm9, %v14385_v63, %v3614_v39  ;;  %v1250_v50 = vadd.s32 %v1249_v22, %v1239_v37  ;;  %v1269_v17 = vsel %vm1268_vm14, 1, %v20499_v56  ;;  %v3657_v18 = vsel %vm3656_vm5, %v14751_v29, 0 }
 0x1a2   : > { %v3619_v40 = vmul.f32 %v14790_v62, %v14790_v62  ;;  %v1263_v54 = vshrl.u32 %v1258_v4, 16  ;;  %v1271_v6 = vadd.s32 %v1269_v17, %v1267_v7  ;;  %vm6290_vm8 = vcmp.lt.s32.totalorder %v14770_v21, 2 }
 0x1a3   : > { %v6296_v24 = vsel %vm6294_vm7, %v20161_v47, %v14768_v43  ;;  %v14807_v42 = vadd.s32 %v1250_v50, %v1241_v48  ;;  %v3659_v11 = vand.u32 31, %v3657_v18  ;;  %v6293_v29 = vsel %vm6291_vm6, %v14756_v55, %v20162_v30 }
 0x1a4   : > { %v3620_v25 = vmul.f32 -0.001358992, %v3619_v40  ;;  %v3627_v14 = vmul.f32 -0.00019511016, %v3619_v40  ;;  %v1272_v4 = vadd.s32 %v1271_v6, %v1261_v57  ;;  %vm20269_vm9 = vweird.f32 %v14378_v19 }
 0x1a5   : > { %vm8774_vm2 = vcmp.eq.s32.totalorder %v14778_v38, 2  ;;  %v1274_v36 = vmul.u32 %v14723_v45, %v14776_v16  ;;  %vm1276_vm4 = vc.u32 %v14807_v42, %v14796_v10  ;;  %v14820_v12 = vshrl.u32 %v3657_v18, 5 }
 0x1a6   : > { %v3621_v15 = vadd.f32 0.041655596, %v3620_v25  ;;  %v3628_v37 = vadd.f32 0.008332121, %v3627_v14  ;;  %v3660_v39 = vsub.s32 32, %v3659_v11  ;;  %v1273_v48 = vadd.s32 %v1272_v4, %v1263_v54 }
 0x1a7   : > { %v3662_v22 = vshll.u32 %v20495_v27, %v3659_v11  ;;  %v20500_v8 = vmov 2475754826   ;;  %v20501_v50 = vmov 2131351028   ;;  %vm8770_vm5 = vcmp.lt.s32.totalorder %v14778_v38, 2 }
 0x1a8   : > { %v3622_v53 = vmul.f32 %v3621_v15, %v3619_v40  ;;  %v3629_v13 = vmul.f32 %v3628_v37, %v3619_v40  ;;  %v3663_v57 = vshrl.u32 %v20500_v8, %v3660_v39  ;;  %v3665_v7 = vshll.u32 %v20500_v8, %v3659_v11 }
 0x1a9   : > { %v3666_v17 = vshrl.u32 %v20501_v50, %v3660_v39  ;;  %v3668_v25 = vshll.u32 %v20501_v50, %v3659_v11  ;;  %v1277_v18 = vadd.s32 1, %v1273_v48  ;;  %v20502_v14 = vmov 2102212464  }
 0x1aa   : > { %v3623_v45 = vadd.f32 -0.4999988, %v3622_v53  ;;  %v3630_v16 = vadd.f32 -0.16666654, %v3629_v13  ;;  %v3669_v6 = vshrl.u32 %v20502_v14, %v3660_v39  ;;  %vm20232_vm6 = vweird.f32 %v14385_v63 }
 0x1ab   : > { %v6297_v54 = vsel %vm6290_vm8, %v6293_v29, %v6296_v24  ;;  %v3671_v15 = vshll.u32 %v20502_v14, %v3659_v11  ;;  %v20503_v37 = vmov 920167782   ;;  %vm3677_vm7 = vcmp.lt.s32.totalorder %v14820_v12, 1 }
 0x1ac   : > { %v3672_v4 = vshrl.u32 %v20503_v37, %v3660_v39  ;;  %v3624_v47 = vmul.f32 %v3623_v45, %v3619_v40  ;;  %v3631_v30 = vmul.f32 %v3630_v16, %v3619_v40  ;;  %v1278_v53 = vsel %vm1276_vm4, %v1277_v18, %v1273_v48 }
 0x1ad   : > { %v3664_v13 = vor.u32 %v3663_v57, %v3662_v22  ;;  %v1279_v41 = vadd.s32 %v1278_v53, %v1274_v36  ;;  %v3667_v61 = vor.u32 %v3666_v17, %v3665_v7  ;;  %v3674_v32 = vshll.u32 %v20503_v37, %v3659_v11 }
 0x1ae   : > { %v3673_v52 = vor.u32 %v3672_v4, %v3671_v15  ;;  %v14839_v21 = vadd.f32 1.0, %v3624_v47  ;;  %v3632_v24 = vadd.f32 1.0, %v3631_v30  ;;  %v3670_v29 = vor.u32 %v3669_v6, %v3668_v25 }
 0x1af   : > { %v3675_v26 = vshrl.u32 %v20505_v59, %v3660_v39  ;;  %v1280_v9 = vadd.s32 536870912, %v1279_v41  ;;  %vm3679_vm11 = vcmp.lt.s32.totalorder %v14820_v12, 3  ;;  %vm3680_vm10 = vcmp.lt.s32.totalorder %v14820_v12, 4 }
 0x1b0   : > { %20504 = vst [vmem:[#allocation39_spill] sm:$0xff] %v14839_v21  ;;  %v20506_v40 = vor.u32 8388608, %v14698_v0  ;;  %v14849_v36 = vmul.f32 %v3632_v24, %v14790_v62  ;;  %v20172_v11 = vxor.u32 2147483648, %v14839_v21  ;;  %vm3678_vm13 = vcmp.lt.s32.totalorder %v14820_v12, 2  ;;  %v634_v12 = vld [vmem:[%s13759_s0 + $0xa0] sm:$0xff] }
 0x1b1   : > { %v3676_v47 = vor.u32 %v3675_v26, %v3674_v32  ;;  %vm8771_vm14 = vcmp.eq.s32.totalorder %v14778_v38, 0  ;;  %v14854_v30 = vshrl.u32 %v1280_v9, 30  ;;  %v3685_v22 = vsel %vm3677_vm7, %v3664_v13, %v3667_v61 }
 0x1b2   : > { %v14846_v48 = vshll.u32 %v20506_v40, 8  ;;  %20507 = vst [vmem:[#allocation40_spill] sm:$0xff] %v14849_v36  ;;  %v3686_v0 = vsel %vm3680_vm10, %v3673_v52, 920167782  ;;  %v20173_v57 = vxor.u32 2147483648, %v14849_v36  ;;  %v6298_v62 = vsel %vm20269_vm9, nan, %v6297_v54 }
 0x1b3   : > { %v8776_v32 = vsel %vm8774_vm2, %v20172_v11, %v14849_v36  ;;  %v3687_v9 = vsel %vm3679_vm11, %v3670_v29, %v3686_v0  ;;  %v1282_v26 = vshll.u32 %v14854_v30, 30  ;;  %v3689_v16 = vsel %vm3677_vm7, %v3667_v61, %v3670_v29 }
 0x1b4   : > { %v3688_v7 = vsel %vm3678_vm13, %v3685_v22, %v3687_v9  ;;  %v3694_v17 = vand.u32 65535, %v14846_v48  ;;  %v3695_v25 = vshrl.u32 %v14846_v48, 16  ;;  %v8773_v45 = vsel %vm8771_vm14, %v14839_v21, %v20173_v57 }
 0x1b5   : > { %v3690_v18 = vsel %vm3680_vm10, %v3676_v47, 1326507024  ;;  %v3718_v6 = vand.u32 65535, %v3688_v7  ;;  %v8777_v54 = vsel %vm8770_vm5, %v8773_v45, %v8776_v32  ;;  %v10796_v15 = vmul.f32 %v6298_v62, %v14678_v60 }
 0x1b6   : > { %v1283_v4 = vsub.s32 %v1279_v41, %v1282_v26  ;;  %v3691_v53 = vsel %vm3679_vm11, %v3673_v52, %v3690_v18  ;;  %v8778_v24 = vsel %vm20232_vm6, nan, %v8777_v54  ;;  %v3661_v40 = vshrl.u32 %v20495_v27, %v3660_v39 }
 0x1b7   : > { %v3692_v22 = vsel %vm3678_vm13, %v3689_v16, %v3691_v53  ;;  %v3719_v0 = vshrl.u32 %v3688_v7, 16  ;;  %v10812_v47 = vmul.f32 %v8778_v24, %v14687_v46  ;;  %v3682_v41 = vsel %vm3680_vm10, %v3670_v29, 2102212464 }
 0x1b8   : > { %vm1284_vm8 = vcmp.lt.s32.totalorder %v1283_v4, 0  ;;  %v1285_v38 = vsub.s32 0, %v1283_v4  ;;  %v3696_v32 = vand.u32 65535, %v3692_v22  ;;  %v3697_v62 = vshrl.u32 %v3692_v22, 16 }
 0x1b9   : > { %v3721_v9 = vmul.u32 %v3719_v0, %v3694_v17  ;;  %v3722_v52 = vmul.u32 %v3718_v6, %v3695_v25  ;;  %v13234_v26 = vpack.i.bf16 %v10812_v47, %v10796_v15  ;;  %v3720_v54 = vmul.u32 %v3718_v6, %v3694_v17 }
 0x1ba   : > { %v1286_v45 = vsel %vm1284_vm8, %v1285_v38, %v1283_v4  ;;  %v3700_v18 = vmul.u32 %v3696_v32, %v3695_v25  ;;  %v3698_v11 = vmul.u32 %v3696_v32, %v3694_v17  ;;  %v3699_v57 = vmul.u32 %v3697_v62, %v3694_v17 }
 0x1bb   : > { %v1287_v39 = vclz %v1286_v45  ;;  %13235 = vxpose.xlu0.b32.cont [3/16] %v13234_v26, 128  ;;  %v1275_v7 = vadd.s32 %v14796_v10, %v14807_v42  ;;  %v3681_v16 = vsel %vm3677_vm7, %v3661_v40, %v3664_v13  ;;  %v3683_v29 = vsel %vm3679_vm11, %v3667_v61, %v3682_v41  ;;  %v618_v61 = vld [vmem:[%s13759_s0 + $0x20] sm:$0xff] }
 0x1bc   : > { %v3724_v53 = vshll.u32 %v3721_v9, 16  ;;  %v3701_v15 = vmul.u32 %v3697_v62, %v3695_v25  ;;  %v3702_v22 = vshll.u32 %v3699_v57, 16  ;;  %v3726_v47 = vshll.u32 %v3722_v52, 16 }
 0x1bd   : > { %v12708_v24 = vadd.s32 4294967294, %v1287_v39  ;;  %v3704_v6 = vshll.u32 %v3700_v18, 16  ;;  %v3723_v38 = vmul.u32 %v3719_v0, %v3695_v25  ;;  %v3725_v10 = vshrl.u32 %v3721_v9, 16 }
 0x1be   : > { %vm3728_vm2 = vc.u32 %v3720_v54, %v3724_v53  ;;  %v3730_v17 = vadd.s32 %v3724_v53, %v3720_v54  ;;  %vm3706_vm5 = vc.u32 %v3698_v11, %v3702_v22  ;;  %v3708_v32 = vadd.s32 %v3702_v22, %v3698_v11 }
 0x1bf   : > { %vm12709_vm4 = vcmp.lt.s32.totalorder %v12708_v24, 0  ;;  %v3707_v13 = vsel %vm3706_vm5, 1, %v20499_v56  ;;  %v3729_v40 = vsel %vm3728_vm2, 1, %v20499_v56  ;;  %v3703_v39 = vshrl.u32 %v3699_v57, 16 }
 0x1c0   : > { %v1290_v42 = vsel %vm12709_vm4, 0, %v12708_v24  ;;  %vm3732_vm7 = vc.u32 %v3730_v17, %v3726_v47  ;;  %v3709_v45 = vadd.s32 %v3707_v13, %v3701_v15  ;;  %vm3710_vm11 = vc.u32 %v3708_v32, %v3704_v6 }
 0x1c1   : > { %v1291_v41 = vsub.s32 32, %v1290_v42  ;;  %v1292_v26 = vshll.u32 %v1283_v4, %v1290_v42  ;;  %v1295_v62 = vsub.s32 4294967266, %v1290_v42  ;;  %v3731_v25 = vadd.s32 %v3729_v40, %v3723_v38 }
 0x1c2   : > { %v3733_v0 = vsel %vm3732_vm7, 1, %v20499_v56  ;;  %v3711_v11 = vsel %vm3710_vm11, 1, %v20499_v56  ;;  %v14908_v9 = vsel %vm652_vm0, %v618_v61, 0.0  ;;  %v3705_v24 = vshrl.u32 %v3700_v18, 16 }
 0x1c3   : > { %v1293_v54 = vshrl.u32 %v1275_v7, %v1291_v41  ;;  %v1296_v53 = vadd.s32 127, %v1295_v62  ;;  %20508 = vst [vmem:[#allocation41_spill] sm:$0xff] %v14908_v9  ;;  %v3713_v22 = vadd.s32 %v3711_v11, %v3709_v45  ;;  %v3727_v49 = vshrl.u32 %v3722_v52, 16  ;;  %v600_v11 = vld [vmem:[%s14075_s18 + $0x98] sm:$0xff] }
 0x1c4   : > { %v3735_v46 = vadd.s32 %v3733_v0, %v3731_v25  ;;  %v1338_v57 = vand.u32 2139095040, %v14908_v9  ;;  %v3684_v15 = vsel %vm3678_vm13, %v3681_v16, %v3683_v29  ;;  %v3734_v6 = vadd.s32 %v3730_v17, %v3726_v47 }
 0x1c5   : > { %v1294_v4 = vor.u32 %v1293_v54, %v1292_v26  ;;  %v1297_v42 = vshll.u32 %v1296_v53, 23  ;;  %v3714_v7 = vadd.s32 %v3713_v22, %v3703_v39  ;;  %v20177_v18 = vand.u32 2147483647, %v14908_v9  ;;  %v584_v53 = vld [vmem:[%s14075_s18 + $0x18] sm:$0xff] }
 0x1c6   : > { %v3736_v38 = vadd.s32 %v3735_v46, %v3725_v10  ;;  %v1339_v40 = vshrl.u32 %v1338_v57, 23  ;;  %v3738_v26 = vmul.u32 %v14846_v48, %v3684_v15  ;;  %v20509_v16 = vand.u32 2147483647, %v14642_v35 }
 0x1c7   : > { %v1298_v32 = vor.u32 4788187, %v1297_v42  ;;  %v1301_v13 = vcvt.s32.f32 %v1294_v4  ;;  %v3715_v61 = vadd.s32 %v3714_v7, %v3705_v24  ;;  %vm1183_vm14 = vcmp.lt.s32.totalorder %v14642_v35, 0 }
 0x1c8   : > { %v3737_v41 = vadd.s32 %v3736_v38, %v3727_v49  ;;  %v12710_v62 = vadd.s32 4294967169, %v1339_v40  ;;  %vm14918_vm13 = vcmp.le.f32.partialorder %v20509_v16, 0.7853982  ;;  %v1305_v49 = vsub.s32 4, %v14854_v30 }
 0x1c9   : > { %v1299_v52 = vand.u32 2147483647, %v1298_v32  ;;  %vm3740_vm10 = vc.u32 %v3715_v61, %v3734_v6  ;;  %v1342_v48 = vand.u32 8388607, %v20177_v18  ;;  %v14928_v25 = vsel %vm652_vm0, %v634_v12, 0.0 }
 0x1ca   : > { %v3741_v45 = vadd.s32 1, %v3737_v41  ;;  %v1345_v47 = vadd.s32 1, %v12710_v62  ;;  %20512 = vst [vmem:[#allocation42_spill] sm:$0xff] %v14928_v25  ;;  %v20176_v54 = vand.u32 2147483647, %v14928_v25  ;;  %v1306_v42 = vsel %vm1183_vm14, %v1305_v49, %v14854_v30 }
 0x1cb   : > { %v1302_v29 = vmul.f32 %v1301_v13, %v1299_v52  ;;  %v1343_v15 = vor.u32 8388608, %v1342_v48  ;;  %v3802_v7 = vand.u32 2139095040, %v14928_v25  ;;  %v14944_v13 = vsel %vm652_vm0, %v584_v53, 0.0 }
 0x1cc   : > { %v3742_v17 = vsel %vm3740_vm10, %v3741_v45, %v3737_v41  ;;  %vm1346_vm8 = vcmp.gt.s32.totalorder %v1345_v47, 0  ;;  %20513 = vst [vmem:[#allocation43_spill] sm:$0xff] %v14944_v13  ;;  %v14948_v40 = vsel %vm652_vm0, %v600_v11, 0.0  ;;  %v14952_v41 = vand.u32 8388607, %v20176_v54 }
 0x1cd   : > { %v1303_v10 = vxor.u32 2147483648, %v1302_v29  ;;  %v3743_v39 = vadd.s32 %v3742_v17, %v3738_v26  ;;  %v1347_v0 = vsel %vm1346_vm8, %v1345_v47, 0  ;;  %20514 = vst [vmem:[#allocation44_spill] sm:$0xff] %v14948_v40  ;;  %v14956_v52 = vsel %vm14918_vm13, 0, %v1306_v42 }
 0x1ce   : > { %v1349_v4 = vand.u32 31, %v1347_v0  ;;  %20515 = vst [vmem:[#allocation45_spill] sm:$0xff] %v14956_v52  ;;  %v3739_v12 = vadd.s32 %v3734_v6, %v3715_v61  ;;  %v14958_v16 = vshrl.u32 %v1347_v0, 5  ;;  %v3803_v47 = vshrl.u32 %v3802_v7, 23 }
 0x1cf   : > { %v1304_v24 = vsel %vm1183_vm14, %v1303_v10, %v1302_v29  ;;  %v3744_v22 = vadd.s32 536870912, %v3743_v39  ;;  %v14960_v29 = vshll.u32 %v1343_v15, 8  ;;  %vm3647_vm2 = vcmp.lt.s32.totalorder %v14658_v20, 0 }
 0x1d0   : > { %v14937_v57 = vsel %vm14918_vm13, %v14642_v35, %v1304_v24  ;;  %v1350_v30 = vsub.s32 32, %v1349_v4  ;;  %v1352_v10 = vshll.u32 %v20495_v27, %v1349_v4  ;;  %v1355_v53 = vshll.u32 %v20500_v8, %v1349_v4 }
 0x1d1   : > { %v1309_v38 = vmul.f32 %v14937_v57, %v14937_v57  ;;  %v3745_v32 = vshrl.u32 %v3744_v22, 30  ;;  %v1361_v6 = vshll.u32 %v20502_v14, %v1349_v4  ;;  %v20516_v22 = vand.u32 2147483647, %v14658_v20 }
 0x1d2   : > { %v1353_v46 = vshrl.u32 %v20500_v8, %v1350_v30  ;;  %v1356_v11 = vshrl.u32 %v20501_v50, %v1350_v30  ;;  %v1359_v15 = vshrl.u32 %v20502_v14, %v1350_v30  ;;  %v1362_v7 = vshrl.u32 %v20503_v37, %v1350_v30 }
 0x1d3   : > { %v1310_v26 = vmul.f32 -0.001358992, %v1309_v38  ;;  %v1317_v62 = vmul.f32 -0.00019511016, %v1309_v38  ;;  %v3746_v45 = vshll.u32 %v3745_v32, 30  ;;  %v3769_v18 = vsub.s32 4, %v3745_v32 }
 0x1d4   : > { %vm14970_vm5 = vcmp.le.f32.partialorder %v20516_v22, 0.7853982  ;;  %v1363_v58 = vor.u32 %v1362_v7, %v1361_v6  ;;  %vm1370_vm7 = vcmp.lt.s32.totalorder %v14958_v16, 4  ;;  %v1354_v28 = vor.u32 %v1353_v46, %v1352_v10 }
 0x1d5   : > { %v1311_v49 = vadd.f32 0.041655596, %v1310_v26  ;;  %v1318_v17 = vadd.f32 0.008332121, %v1317_v62  ;;  %v3747_v48 = vsub.s32 %v3743_v39, %v3746_v45  ;;  %v1358_v39 = vshll.u32 %v20501_v50, %v1349_v4 }
 0x1d6   : > { %v12758_v26 = vadd.s32 4294967169, %v3803_v47  ;;  %v1357_v23 = vor.u32 %v1356_v11, %v1355_v53  ;;  %v1364_v63 = vshll.u32 %v20503_v37, %v1349_v4  ;;  %v1351_v21 = vshrl.u32 %v20495_v27, %v1350_v30 }
 0x1d7   : > { %v1312_v61 = vmul.f32 %v1311_v49, %v1309_v38  ;;  %v1319_v0 = vmul.f32 %v1318_v17, %v1309_v38  ;;  %vm3748_vm4 = vcmp.lt.s32.totalorder %v3747_v48, 0  ;;  %v3749_v24 = vsub.s32 0, %v3747_v48 }
 0x1d8   : > { %v14978_v49 = vand.u32 65535, %v14960_v29  ;;  %v1360_v47 = vor.u32 %v1359_v15, %v1358_v39  ;;  %vm1367_vm11 = vcmp.lt.s32.totalorder %v14958_v16, 1  ;;  %vm1369_vm10 = vcmp.lt.s32.totalorder %v14958_v16, 3 }
 0x1d9   : > { %v1313_v62 = vadd.f32 -0.4999988, %v1312_v61  ;;  %v1320_v45 = vadd.f32 -0.16666654, %v1319_v0  ;;  %v3750_v54 = vsel %vm3748_vm4, %v3749_v24, %v3747_v48  ;;  %v1365_v0 = vshrl.u32 %v20505_v59, %v1350_v30 }
 0x1da   : > { %v3751_v17 = vclz %v3750_v54  ;;  %v1376_v54 = vsel %vm1370_vm7, %v1363_v58, 920167782  ;;  %v3770_v10 = vsel %vm3647_vm2, %v3769_v18, %v3745_v32  ;;  %vm1368_vm14 = vcmp.lt.s32.totalorder %v14958_v16, 2 }
 0x1db   : > { %v1321_v22 = vmul.f32 %v1320_v45, %v1309_v38  ;;  %v1314_v61 = vmul.f32 %v1313_v62, %v1309_v38  ;;  %v6443_v46 = vadd.s32 3, %v14956_v52  ;;  %v1372_v38 = vsel %vm1370_vm7, %v1360_v47, 2102212464 }
 0x1dc   : > { %v12756_v3 = vadd.s32 4294967294, %v3751_v17  ;;  %v1375_v30 = vsel %vm1367_vm11, %v1354_v28, %v1357_v23  ;;  %v1377_v39 = vsel %vm1369_vm10, %v1360_v47, %v1376_v54  ;;  %v15002_v18 = vsel %vm14970_vm5, 0, %v3770_v10 }
 0x1dd   : > { %v1322_v6 = vadd.f32 1.0, %v1321_v22  ;;  %v14998_v15 = vadd.f32 1.0, %v1314_v61  ;;  %20520 = vst [vmem:[#allocation47_spill] sm:$0xff] %v15002_v18  ;;  %v1385_v32 = vshrl.u32 %v14960_v29, 16  ;;  %v3809_v17 = vadd.s32 1, %v12758_v26 }
 0x1de   : > { %vm12757_vm13 = vcmp.lt.s32.totalorder %v12756_v3, 0  ;;  %v1371_v22 = vsel %vm1367_vm11, %v1351_v21, %v1354_v28  ;;  %v1373_v61 = vsel %vm1369_vm10, %v1357_v23, %v1372_v38  ;;  %v1378_v54 = vsel %vm1368_vm14, %v1375_v30, %v1377_v39 }
 0x1df   : > { %v3754_v4 = vsel %vm12757_vm13, 0, %v12756_v3  ;;  %20519 = vst [vmem:[#allocation46_spill] sm:$0xff] %v14998_v15  ;;  %v1366_v3 = vor.u32 %v1365_v0, %v1364_v63  ;;  %v15006_v7 = vmul.f32 %v1322_v6, %v14937_v57  ;;  %v8923_v10 = vadd.s32 3, %v15002_v18 }
 0x1e0   : > { %v3755_v53 = vsub.s32 32, %v3754_v4  ;;  %v3756_v11 = vshll.u32 %v3747_v48, %v3754_v4  ;;  %v3759_v24 = vsub.s32 4294967266, %v3754_v4  ;;  %v15008_v48 = vand.u32 3, %v6443_v46 }
 0x1e1   : > { %20521 = vst [vmem:[#allocation48_spill] sm:$0xff] %v15006_v7  ;;  %v1379_v57 = vsel %vm1367_vm11, %v1357_v23, %v1360_v47  ;;  %v1380_v26 = vsel %vm1370_vm7, %v1366_v3, 1326507024  ;;  %v1408_v6 = vand.u32 65535, %v1378_v54  ;;  %v1409_v28 = vshrl.u32 %v1378_v54, 16 }
 0x1e2   : > { %v3757_v62 = vshrl.u32 %v3739_v12, %v3755_v53  ;;  %v3760_v45 = vadd.s32 127, %v3759_v24  ;;  %v20187_v12 = vxor.u32 2147483648, %v14998_v15  ;;  %v20188_v21 = vxor.u32 2147483648, %v15006_v7 }
 0x1e3   : > { %v1381_v38 = vsel %vm1369_vm10, %v1363_v58, %v1380_v26  ;;  %vm6449_vm8 = vcmp.eq.s32.totalorder %v15008_v48, 2  ;;  %v1410_v23 = vmul.u32 %v1408_v6, %v14978_v49  ;;  %v1411_v47 = vmul.u32 %v1409_v28, %v14978_v49 }
 0x1e4   : > { %v3758_v63 = vor.u32 %v3757_v62, %v3756_v11  ;;  %v3761_v0 = vshll.u32 %v3760_v45, 23  ;;  %v1382_v30 = vsel %vm1368_vm14, %v1379_v57, %v1381_v38  ;;  %v1412_v39 = vmul.u32 %v1408_v6, %v1385_v32 }
 0x1e5   : > { %v1386_v11 = vand.u32 65535, %v1382_v30  ;;  %v1387_v24 = vshrl.u32 %v1382_v30, 16  ;;  %vm6446_vm4 = vcmp.eq.s32.totalorder %v15008_v48, 0  ;;  %v1414_v3 = vshll.u32 %v1411_v47, 16 }
 0x1e6   : > { %v3762_v4 = vor.u32 4788187, %v3761_v0  ;;  %v3765_v46 = vcvt.s32.f32 %v3758_v63  ;;  %vm3810_vm7 = vcmp.gt.s32.totalorder %v3809_v17, 0  ;;  %v15035_v45 = vsel %vm6449_vm8, %v20187_v12, %v15006_v7 }
 0x1e7   : > { %v15037_v54 = vand.u32 3, %v8923_v10  ;;  %v15041_v63 = vsel %vm1368_vm14, %v1371_v22, %v1373_v61  ;;  %v1388_v0 = vmul.u32 %v1386_v11, %v14978_v49  ;;  %v1389_v57 = vmul.u32 %v1387_v24, %v14978_v49 }
 0x1e8   : > { %v3763_v53 = vand.u32 2147483647, %v3762_v4  ;;  %v1390_v26 = vmul.u32 %v1386_v11, %v1385_v32  ;;  %v1413_v6 = vmul.u32 %v1409_v28, %v1385_v32  ;;  %v1416_v38 = vshll.u32 %v1412_v39, 16 }
 0x1e9   : > { %vm1418_vm11 = vc.u32 %v1410_v23, %v1414_v3  ;;  %v1391_v30 = vmul.u32 %v1387_v24, %v1385_v32  ;;  %v1392_v10 = vshll.u32 %v1389_v57, 16  ;;  %v1415_v12 = vshrl.u32 %v1411_v47, 16 }
 0x1ea   : > { %v3766_v58 = vmul.f32 %v3765_v46, %v3763_v53  ;;  %v6448_v46 = vsel %vm6446_vm4, %v14998_v15, %v20188_v21  ;;  %v1394_v53 = vshll.u32 %v1390_v26, 16  ;;  %vm6445_vm10 = vcmp.lt.s32.totalorder %v15008_v48, 2 }
 0x1eb   : > { %v1417_v22 = vshrl.u32 %v1412_v39, 16  ;;  %v1419_v49 = vsel %vm1418_vm11, 1, %v20499_v56  ;;  %v1420_v61 = vadd.s32 %v1414_v3, %v1410_v23  ;;  %vm1396_vm13 = vc.u32 %v1388_v0, %v1392_v10 }
 0x1ec   : > { %v3767_v4 = vxor.u32 2147483648, %v3766_v58  ;;  %v1398_v11 = vadd.s32 %v1392_v10, %v1388_v0  ;;  %v1421_v32 = vadd.s32 %v1419_v49, %v1413_v6  ;;  %v1397_v24 = vsel %vm1396_vm13, 1, %v20499_v56 }
 0x1ed   : > { %v1393_v39 = vshrl.u32 %v1389_v57, 16  ;;  %v1395_v0 = vshrl.u32 %v1390_v26, 16  ;;  %v1428_v10 = vmul.u32 %v14960_v29, %v15041_v63  ;;  %v15066_v57 = vadd.s32 %v1420_v61, %v1416_v38 }
 0x1ee   : > { %v3768_v16 = vsel %vm3647_vm2, %v3767_v4, %v3766_v58  ;;  %vm1422_vm2 = vc.u32 %v1420_v61, %v1416_v38  ;;  %v3811_v58 = vsel %vm3810_vm7, %v3809_v17, 0  ;;  %v1399_v4 = vadd.s32 %v1397_v24, %v1391_v30 }
 0x1ef   : > { %v15055_v28 = vsel %vm14970_vm5, %v14658_v20, %v3768_v16  ;;  %vm1400_vm14 = vc.u32 %v1398_v11, %v1394_v53  ;;  %v1423_v23 = vsel %vm1422_vm2, 1, %v20499_v56  ;;  %vm20272_vm5 = vweird.f32 %v14642_v35 }
 0x1f0   : > { %v3773_v47 = vmul.f32 %v15055_v28, %v15055_v28  ;;  %v1401_v16 = vsel %vm1400_vm14, 1, %v20499_v56  ;;  %v1425_v21 = vadd.s32 %v1423_v23, %v1421_v32  ;;  %v3813_v49 = vand.u32 31, %v3811_v58 }
 0x1f1   : > { %v1403_v6 = vadd.s32 %v1401_v16, %v1399_v4  ;;  %v15068_v11 = vshrl.u32 %v3811_v58, 5  ;;  %vm8925_vm8 = vcmp.lt.s32.totalorder %v15037_v54, 2  ;;  %vm20249_vm4 = vweird.f32 %v14658_v20 }
 0x1f2   : > { %v3774_v3 = vmul.f32 -0.001358992, %v3773_v47  ;;  %v3781_v42 = vmul.f32 -0.00019511016, %v3773_v47  ;;  %v1426_v30 = vadd.s32 %v1425_v21, %v1415_v12  ;;  %v3814_v24 = vsub.s32 32, %v3813_v49 }
 0x1f3   : > { %v1404_v53 = vadd.s32 %v1403_v6, %v1393_v39  ;;  %v3816_v36 = vshll.u32 %v20495_v27, %v3813_v49  ;;  %v3819_v26 = vshll.u32 %v20500_v8, %v3813_v49  ;;  %v3822_v38 = vshll.u32 %v20501_v50, %v3813_v49 }
 0x1f4   : > { %v3775_v62 = vadd.f32 0.041655596, %v3774_v3  ;;  %v3782_v17 = vadd.f32 0.008332121, %v3781_v42  ;;  %v1427_v31 = vadd.s32 %v1426_v30, %v1417_v22  ;;  %v3817_v29 = vshrl.u32 %v20500_v8, %v3814_v24 }
 0x1f5   : > { %v15072_v4 = vadd.s32 %v1404_v53, %v1395_v0  ;;  %v3820_v63 = vshrl.u32 %v20501_v50, %v3814_v24  ;;  %v3823_v58 = vshrl.u32 %v20502_v14, %v3814_v24  ;;  %vm8929_vm7 = vcmp.eq.s32.totalorder %v15037_v54, 2 }
 0x1f6   : > { %v3776_v32 = vmul.f32 %v3775_v62, %v3773_v47  ;;  %v3783_v23 = vmul.f32 %v3782_v17, %v3773_v47  ;;  %v1431_v61 = vadd.s32 1, %v1427_v31  ;;  %v6452_v62 = vsel %vm6445_vm10, %v6448_v46, %v15035_v45 }
 0x1f7   : > { %vm1430_vm11 = vc.u32 %v15072_v4, %v15066_v57  ;;  %vm3831_vm13 = vcmp.lt.s32.totalorder %v15068_v11, 1  ;;  %v3818_v42 = vor.u32 %v3817_v29, %v3816_v36  ;;  %v3821_v0 = vor.u32 %v3820_v63, %v3819_v26 }
 0x1f8   : > { %v3777_v12 = vadd.f32 -0.4999988, %v3776_v32  ;;  %v3784_v21 = vadd.f32 -0.16666654, %v3783_v23  ;;  %v1432_v3 = vsel %vm1430_vm11, %v1431_v61, %v1427_v31  ;;  %v3825_v6 = vshll.u32 %v20502_v14, %v3813_v49 }
 0x1f9   : > { %v1433_v16 = vadd.s32 %v1432_v3, %v1428_v10  ;;  %v3826_v17 = vshrl.u32 %v20503_v37, %v3814_v24  ;;  %v3824_v45 = vor.u32 %v3823_v58, %v3822_v38  ;;  %v3828_v46 = vshll.u32 %v20503_v37, %v3813_v49 }
 0x1fa   : > { %v3778_v22 = vmul.f32 %v3777_v12, %v3773_v47  ;;  %v3785_v39 = vmul.f32 %v3784_v21, %v3773_v47  ;;  %v3829_v23 = vshrl.u32 %v20505_v59, %v3814_v24  ;;  %vm3834_vm10 = vcmp.lt.s32.totalorder %v15068_v11, 4 }
 0x1fb   : > { %v1434_v53 = vadd.s32 536870912, %v1433_v16  ;;  %v3827_v32 = vor.u32 %v3826_v17, %v3825_v6  ;;  %v6453_v47 = vsel %vm20272_vm5, nan, %v6452_v62  ;;  %vm3833_vm2 = vcmp.lt.s32.totalorder %v15068_v11, 3 }
 0x1fc   : > { %v15089_v30 = vadd.f32 1.0, %v3778_v22  ;;  %v3786_v48 = vadd.f32 1.0, %v3785_v39  ;;  %vm8926_vm14 = vcmp.eq.s32.totalorder %v15037_v54, 0  ;;  %v3830_v49 = vor.u32 %v3829_v23, %v3828_v46 }
 0x1fd   : > { %v15102_v10 = vshrl.u32 %v1434_v53, 30  ;;  %vm3832_vm11 = vcmp.lt.s32.totalorder %v15068_v11, 2  ;;  %v3839_v29 = vsel %vm3831_vm13, %v3818_v42, %v3821_v0  ;;  %v3840_v63 = vsel %vm3834_vm10, %v3827_v32, 920167782 }
 0x1fe   : > { %20522 = vst [vmem:[#allocation49_spill] sm:$0xff] %v15089_v30  ;;  %v15095_v31 = vmul.f32 %v3786_v48, %v15055_v28  ;;  %v20192_v36 = vxor.u32 2147483648, %v15089_v30  ;;  %v10797_v38 = vmul.f32 %v6453_v47, %v14944_v13  ;;  %v3841_v21 = vsel %vm3833_vm2, %v3824_v45, %v3840_v63 }
 0x1ff   : > { %v1436_v12 = vshll.u32 %v15102_v10, 30  ;;  %v3843_v61 = vsel %vm3831_vm13, %v3821_v0, %v3824_v45  ;;  %v3815_v62 = vshrl.u32 %v20495_v27, %v3814_v24  ;;  %v3844_v22 = vsel %vm3834_vm10, %v3830_v49, 1326507024 }
 0x200   : > { %20523 = vst [vmem:[#allocation50_spill] sm:$0xff] %v15095_v31  ;;  %v20193_v26 = vxor.u32 2147483648, %v15095_v31  ;;  %v8931_v28 = vsel %vm8929_vm7, %v20192_v36, %v15095_v31  ;;  %v20524_v39 = vor.u32 8388608, %v14952_v41  ;;  %v3842_v48 = vsel %vm3832_vm11, %v3839_v29, %v3841_v21 }
 0x201   : > { %v1437_v17 = vsub.s32 %v1433_v16, %v1436_v12  ;;  %v3845_v46 = vsel %vm3833_vm2, %v3827_v32, %v3844_v22  ;;  %v3836_v53 = vsel %vm3834_vm10, %v3824_v45, 2102212464  ;;  %v3873_v29 = vshrl.u32 %v3842_v48, 16 }
 0x202   : > { %v8928_v58 = vsel %vm8926_vm14, %v15089_v30, %v20193_v26  ;;  %v15129_v3 = vshll.u32 %v20524_v39, 8  ;;  %v3846_v41 = vsel %vm3832_vm11, %v3843_v61, %v3845_v46  ;;  %v3835_v45 = vsel %vm3831_vm13, %v3815_v62, %v3818_v42 }
 0x203   : > { %v8932_v6 = vsel %vm8925_vm8, %v8928_v58, %v8931_v28  ;;  %vm1438_vm8 = vcmp.lt.s32.totalorder %v1437_v17, 0  ;;  %v1439_v16 = vsub.s32 0, %v1437_v17  ;;  %v3850_v49 = vand.u32 65535, %v3846_v41 }
 0x204   : > { %v8933_v24 = vsel %vm20249_vm4, nan, %v8932_v6  ;;  %v3848_v23 = vand.u32 65535, %v15129_v3  ;;  %v3849_v47 = vshrl.u32 %v15129_v3, 16  ;;  %v3851_v32 = vshrl.u32 %v3846_v41, 16  ;;  %v619_v6 = vld [vmem:[%s13759_s0 + $0x28] sm:$0xff] }
 0x205   : > { %v10813_v54 = vmul.f32 %v8933_v24, %v14948_v40  ;;  %v3872_v28 = vand.u32 65535, %v3842_v48  ;;  %v1440_v12 = vsel %vm1438_vm8, %v1439_v16, %v1437_v17  ;;  %v3837_v21 = vsel %vm3833_vm2, %v3821_v0, %v3836_v53 }
 0x206   : > { %v1441_v61 = vclz %v1440_v12  ;;  %v3852_v58 = vmul.u32 %v3850_v49, %v3848_v23  ;;  %v3853_v22 = vmul.u32 %v3851_v32, %v3848_v23  ;;  %v3854_v39 = vmul.u32 %v3850_v49, %v3849_v47 }
 0x207   : > { %v13236_v63 = vpack.i.bf16 %v10813_v54, %v10797_v38  ;;  %v1429_v46 = vadd.s32 %v15066_v57, %v15072_v4  ;;  %v3875_v24 = vmul.u32 %v3873_v29, %v3848_v23  ;;  %v3876_v41 = vmul.u32 %v3872_v28, %v3849_v47 }
 0x208   : > { %v12711_v48 = vadd.s32 4294967294, %v1441_v61  ;;  %v15155_v38 = vsel %vm3832_vm11, %v3835_v45, %v3837_v21  ;;  %v3855_v42 = vmul.u32 %v3851_v32, %v3849_v47  ;;  %v3856_v62 = vshll.u32 %v3853_v22, 16 }
 0x209   : > { %13237 = vxpose.xlu0.b32.cont [4/16] %v13236_v63, 128  ;;  %v3858_v54 = vshll.u32 %v3854_v39, 16  ;;  %v3874_v0 = vmul.u32 %v3872_v28, %v3848_v23  ;;  %v3878_v53 = vshll.u32 %v3875_v24, 16  ;;  %v15159_v16 = vsel %vm652_vm0, %v619_v6, 0.0  ;;  %v635_v6 = vld [vmem:[%s13759_s0 + $0xa8] sm:$0xff] }
 0x20a   : > { %20525 = vst [vmem:[#allocation51_spill] sm:$0xff] %v15159_v16  ;;  %vm12712_vm7 = vcmp.lt.s32.totalorder %v12711_v48, 0  ;;  %v3857_v49 = vshrl.u32 %v3853_v22, 16  ;;  %vm3860_vm13 = vc.u32 %v3852_v58, %v3856_v62  ;;  %v3862_v57 = vadd.s32 %v3856_v62, %v3852_v58 }
 0x20b   : > { %v1444_v4 = vsel %vm12712_vm7, 0, %v12711_v48  ;;  %v3861_v63 = vsel %vm3860_vm13, 1, %v20499_v56  ;;  %v3877_v11 = vmul.u32 %v3873_v29, %v3849_v47  ;;  %v3880_v12 = vshll.u32 %v3876_v41, 16 }
 0x20c   : > { %v1445_v45 = vsub.s32 32, %v1444_v4  ;;  %v1446_v32 = vshll.u32 %v1437_v17, %v1444_v4  ;;  %v1449_v21 = vsub.s32 4294967266, %v1444_v4  ;;  %v3863_v61 = vadd.s32 %v3861_v63, %v3855_v42 }
 0x20d   : > { %v3859_v23 = vshrl.u32 %v3854_v39, 16  ;;  %vm3864_vm10 = vc.u32 %v3862_v57, %v3858_v54  ;;  %vm3882_vm2 = vc.u32 %v3874_v0, %v3878_v53  ;;  %v3884_v28 = vadd.s32 %v3878_v53, %v3874_v0 }
 0x20e   : > { %v1447_v36 = vshrl.u32 %v1429_v46, %v1445_v45  ;;  %v1450_v26 = vadd.s32 127, %v1449_v21  ;;  %v3865_v22 = vsel %vm3864_vm10, 1, %v20499_v56  ;;  %v3883_v58 = vsel %vm3882_vm2, 1, %v20499_v56 }
 0x20f   : > { %v3867_v48 = vadd.s32 %v3865_v22, %v3863_v61  ;;  %v3879_v62 = vshrl.u32 %v3875_v24, 16  ;;  %v3885_v40 = vadd.s32 %v3883_v58, %v3877_v11  ;;  %vm3886_vm14 = vc.u32 %v3884_v28, %v3880_v12 }
 0x210   : > { %v1448_v47 = vor.u32 %v1447_v36, %v1446_v32  ;;  %v1451_v29 = vshll.u32 %v1450_v26, 23  ;;  %v3887_v17 = vsel %vm3886_vm14, 1, %v20499_v56  ;;  %v15168_v39 = vsel %vm652_vm0, %v635_v6, 0.0 }
 0x211   : > { %20526 = vst [vmem:[#allocation52_spill] sm:$0xff] %v15168_v39  ;;  %v3868_v42 = vadd.s32 %v3867_v48, %v3857_v49  ;;  %v3881_v54 = vshrl.u32 %v3876_v41, 16  ;;  %v3889_v46 = vadd.s32 %v3887_v17, %v3885_v40  ;;  %v1492_v0 = vand.u32 2139095040, %v15159_v16 }
 0x212   : > { %v1452_v53 = vor.u32 4788187, %v1451_v29  ;;  %v1455_v57 = vcvt.s32.f32 %v1448_v47  ;;  %v3888_v4 = vadd.s32 %v3884_v28, %v3880_v12  ;;  %v20196_v24 = vand.u32 2147483647, %v15159_v16  ;;  %v585_v47 = vld [vmem:[%s14075_s18 + $0x20] sm:$0xff] }
 0x213   : > { %v3869_v63 = vadd.s32 %v3868_v42, %v3859_v23  ;;  %v3890_v11 = vadd.s32 %v3889_v46, %v3879_v62  ;;  %v1493_v36 = vshrl.u32 %v1492_v0, 23  ;;  %v3956_v26 = vand.u32 2139095040, %v15168_v39 }
 0x214   : > { %v1453_v45 = vand.u32 2147483647, %v1452_v53  ;;  %v1459_v32 = vsub.s32 4, %v15102_v10  ;;  %vm1337_vm11 = vcmp.lt.s32.totalorder %v14908_v9, 0  ;;  %v3892_v49 = vmul.u32 %v15129_v3, %v15155_v38  ;;  %v601_v3 = vld [vmem:[%s14075_s18 + $0xa0] sm:$0xff] }
 0x215   : > { %v3891_v21 = vadd.s32 %v3890_v11, %v3881_v54  ;;  %v12713_v41 = vadd.s32 4294967169, %v1493_v36  ;;  %vm3894_vm8 = vc.u32 %v3869_v63, %v3888_v4  ;;  %v1496_v61 = vand.u32 8388607, %v20196_v24 }
 0x216   : > { %v1456_v40 = vmul.f32 %v1455_v57, %v1453_v45  ;;  %v3957_v28 = vshrl.u32 %v3956_v26, 23  ;;  %v20527_v6 = vand.u32 2147483647, %v14908_v9  ;;  %v1460_v48 = vsel %vm1337_vm11, %v1459_v32, %v15102_v10 }
 0x217   : > { %v3895_v12 = vadd.s32 1, %v3891_v21  ;;  %v1499_v23 = vadd.s32 1, %v12713_v41  ;;  %v20195_v42 = vand.u32 2147483647, %v15168_v39  ;;  %v1497_v46 = vor.u32 8388608, %v1496_v61 }
 0x218   : > { %vm15181_vm7 = vcmp.le.f32.partialorder %v20527_v6, 0.7853982  ;;  %v1457_v58 = vxor.u32 2147483648, %v1456_v40  ;;  %v12761_v53 = vadd.s32 4294967169, %v3957_v28  ;;  %v15198_v11 = vsel %vm652_vm0, %v585_v47, 0.0 }
 0x219   : > { %v3896_v62 = vsel %vm3894_vm8, %v3895_v12, %v3891_v21  ;;  %vm1500_vm13 = vcmp.gt.s32.totalorder %v1499_v23, 0  ;;  %20530 = vst [vmem:[#allocation53_spill] sm:$0xff] %v15198_v11  ;;  %v15202_v36 = vsel %vm652_vm0, %v601_v3, 0.0  ;;  %v15206_v45 = vsel %vm15181_vm7, 0, %v1460_v48 }
 0x21a   : > { %v1458_v38 = vsel %vm1337_vm11, %v1457_v58, %v1456_v40  ;;  %v3897_v29 = vadd.s32 %v3896_v62, %v3892_v49  ;;  %v1501_v17 = vsel %vm1500_vm13, %v1499_v23, 0  ;;  %20531 = vst [vmem:[#allocation54_spill] sm:$0xff] %v15202_v36  ;;  %v15208_v40 = vadd.s32 %v3888_v4, %v3869_v63 }
 0x21b   : > { %v15192_v54 = vsel %vm15181_vm7, %v14908_v9, %v1458_v38  ;;  %v1503_v0 = vand.u32 31, %v1501_v17  ;;  %20532 = vst [vmem:[#allocation55_spill] sm:$0xff] %v15206_v45  ;;  %v15210_v49 = vshll.u32 %v1497_v46, 8  ;;  %v15214_v12 = vand.u32 8388607, %v20195_v42 }
 0x21c   : > { %v1463_v10 = vmul.f32 %v15192_v54, %v15192_v54  ;;  %v3898_v57 = vadd.s32 536870912, %v3897_v29  ;;  %v3963_v61 = vadd.s32 1, %v12761_v53  ;;  %v15216_v58 = vshrl.u32 %v1501_v17, 5 }
 0x21d   : > { %v1504_v26 = vsub.s32 32, %v1503_v0  ;;  %vm3801_vm10 = vcmp.lt.s32.totalorder %v14928_v25, 0  ;;  %v1506_v22 = vshll.u32 %v20495_v27, %v1503_v0  ;;  %v1509_v48 = vshll.u32 %v20500_v8, %v1503_v0 }
 0x21e   : > { %v1464_v32 = vmul.f32 -0.001358992, %v1463_v10  ;;  %v1471_v21 = vmul.f32 -0.00019511016, %v1463_v10  ;;  %v3899_v41 = vshrl.u32 %v3898_v57, 30  ;;  %v1515_v4 = vshll.u32 %v20502_v14, %v1503_v0 }
 0x21f   : > { %v1516_v63 = vshrl.u32 %v20503_v37, %v1504_v26  ;;  %v1512_v38 = vshll.u32 %v20501_v50, %v1503_v0  ;;  %v1507_v46 = vshrl.u32 %v20500_v8, %v1504_v26  ;;  %v1510_v17 = vshrl.u32 %v20501_v50, %v1504_v26 }
 0x220   : > { %v1465_v23 = vadd.f32 0.041655596, %v1464_v32  ;;  %v1472_v28 = vadd.f32 0.008332121, %v1471_v21  ;;  %v3900_v6 = vshll.u32 %v3899_v41, 30  ;;  %v1518_v53 = vshll.u32 %v20503_v37, %v1503_v0 }
 0x221   : > { %v1519_v57 = vshrl.u32 %v20505_v59, %v1504_v26  ;;  %v1513_v42 = vshrl.u32 %v20502_v14, %v1504_v26  ;;  %v20533_v24 = vand.u32 2147483647, %v14928_v25  ;;  %vm3964_vm11 = vcmp.gt.s32.totalorder %v3963_v61, 0 }
 0x222   : > { %v1466_v62 = vmul.f32 %v1465_v23, %v1463_v10  ;;  %v1473_v47 = vmul.f32 %v1472_v28, %v1463_v10  ;;  %v3901_v3 = vsub.s32 %v3897_v29, %v3900_v6  ;;  %v1517_v29 = vor.u32 %v1516_v63, %v1515_v4 }
 0x223   : > { %vm15231_vm14 = vcmp.le.f32.partialorder %v20533_v24, 0.7853982  ;;  %v15236_v28 = vand.u32 65535, %v15210_v49  ;;  %vm1524_vm8 = vcmp.lt.s32.totalorder %v15216_v58, 4  ;;  %v1508_v20 = vor.u32 %v1507_v46, %v1506_v22 }
 0x224   : > { %v1474_v32 = vadd.f32 -0.16666654, %v1473_v47  ;;  %vm3902_vm2 = vcmp.lt.s32.totalorder %v3901_v3, 0  ;;  %v3903_v21 = vsub.s32 0, %v3901_v3  ;;  %v1467_v0 = vadd.f32 -0.4999988, %v1466_v62 }
 0x225   : > { %v3923_v47 = vsub.s32 4, %v3899_v41  ;;  %v1511_v51 = vor.u32 %v1510_v17, %v1509_v48  ;;  %v1520_v30 = vor.u32 %v1519_v57, %v1518_v53  ;;  %v1514_v31 = vor.u32 %v1513_v42, %v1512_v38 }
 0x226   : > { %v3904_v33 = vsel %vm3902_vm2, %v3903_v21, %v3901_v3  ;;  %v1475_v24 = vmul.f32 %v1474_v32, %v1463_v10  ;;  %vm1521_vm7 = vcmp.lt.s32.totalorder %v15216_v58, 1  ;;  %v15242_v4 = vshrl.u32 %v15210_v49, 16 }
 0x227   : > { %v3905_v44 = vclz %v3904_v33  ;;  %vm1523_vm13 = vcmp.lt.s32.totalorder %v15216_v58, 3  ;;  %v1530_v62 = vsel %vm1524_vm8, %v1517_v29, 920167782  ;;  %v3965_v21 = vsel %vm3964_vm11, %v3963_v61, 0 }
 0x228   : > { %v1468_v6 = vmul.f32 %v1467_v0, %v1463_v10  ;;  %v3924_v33 = vsel %vm3801_vm10, %v3923_v47, %v3899_v41  ;;  %v1505_v22 = vshrl.u32 %v20495_v27, %v1504_v26  ;;  %vm1522_vm2 = vcmp.lt.s32.totalorder %v15216_v58, 2 }
 0x229   : > { %v12759_v63 = vadd.s32 4294967294, %v3905_v44  ;;  %v1526_v42 = vsel %vm1524_vm8, %v1514_v31, 2102212464  ;;  %v1529_v44 = vsel %vm1521_vm7, %v1508_v20, %v1511_v51  ;;  %v1534_v48 = vsel %vm1524_vm8, %v1520_v30, 1326507024 }
 0x22a   : > { %v1476_v38 = vadd.f32 1.0, %v1475_v24  ;;  %v1531_v10 = vsel %vm1523_vm13, %v1514_v31, %v1530_v62  ;;  %v1533_v26 = vsel %vm1521_vm7, %v1511_v51, %v1514_v31  ;;  %v1535_v53 = vsel %vm1523_vm13, %v1517_v29, %v1534_v48 }
 0x22b   : > { %vm12760_vm1 = vcmp.lt.s32.totalorder %v12759_v63, 0  ;;  %v15266_v57 = vsel %vm15231_vm14, 0, %v3924_v33  ;;  %v1525_v30 = vsel %vm1521_vm7, %v1505_v22, %v1508_v20  ;;  %v1527_v32 = vsel %vm1523_vm13, %v1511_v51, %v1526_v42 }
 0x22c   : > { %v3908_v61 = vsel %vm12760_vm1, 0, %v12759_v63  ;;  %20536 = vst [vmem:[#allocation56_spill] sm:$0xff] %v15266_v57  ;;  %v15272_v0 = vshrl.u32 %v3965_v21, 5  ;;  %v1532_v29 = vsel %vm1522_vm2, %v1529_v44, %v1531_v10  ;;  %v15278_v24 = vadd.f32 1.0, %v1468_v6 }
 0x22d   : > { %v3909_v41 = vsub.s32 32, %v3908_v61  ;;  %v3910_v46 = vshll.u32 %v3901_v3, %v3908_v61  ;;  %v3913_v17 = vsub.s32 4294967266, %v3908_v61  ;;  %v6598_v3 = vadd.s32 3, %v15206_v45 }
 0x22e   : > { %20537 = vst [vmem:[#allocation57_spill] sm:$0xff] %v15278_v24  ;;  %v15281_v63 = vmul.f32 %v1476_v38, %v15192_v54  ;;  %v1536_v20 = vsel %vm1522_vm2, %v1533_v26, %v1535_v53  ;;  %v15285_v62 = vand.u32 31, %v3965_v21  ;;  %v15290_v42 = vsel %vm1522_vm2, %v1525_v30, %v1527_v32 }
 0x22f   : > { %v3911_v31 = vshrl.u32 %v15208_v40, %v3909_v41  ;;  %v3914_v47 = vadd.s32 127, %v3913_v17  ;;  %v9078_v40 = vadd.s32 3, %v15266_v57  ;;  %v1540_v22 = vand.u32 65535, %v1536_v20 }
 0x230   : > { %20538 = vst [vmem:[#allocation58_spill] sm:$0xff] %v15281_v63  ;;  %v1541_v44 = vshrl.u32 %v1536_v20, 16  ;;  %v1562_v6 = vand.u32 65535, %v1532_v29  ;;  %v1563_v48 = vshrl.u32 %v1532_v29, 16  ;;  %v15292_v38 = vand.u32 3, %v6598_v3 }
 0x231   : > { %v3912_v51 = vor.u32 %v3911_v31, %v3910_v46  ;;  %v3915_v33 = vshll.u32 %v3914_v47, 23  ;;  %v1544_v10 = vmul.u32 %v1540_v22, %v15242_v4  ;;  %v1542_v26 = vmul.u32 %v1540_v22, %v15236_v28 }
 0x232   : > { %v1543_v41 = vmul.u32 %v1541_v44, %v15236_v28  ;;  %v1565_v46 = vmul.u32 %v1563_v48, %v15236_v28  ;;  %v15300_v53 = vand.u32 3, %v9078_v40  ;;  %v1566_v30 = vmul.u32 %v1562_v6, %v15242_v4 }
 0x233   : > { %v3916_v61 = vor.u32 4788187, %v3915_v33  ;;  %v3919_v54 = vcvt.s32.f32 %v3912_v51  ;;  %v1545_v32 = vmul.u32 %v1541_v44, %v15242_v4  ;;  %v1548_v47 = vshll.u32 %v1544_v10, 16 }
 0x234   : > { %v1546_v31 = vshll.u32 %v1543_v41, 16  ;;  %v1564_v3 = vmul.u32 %v1562_v6, %v15236_v28  ;;  %vm6601_vm1 = vcmp.eq.s32.totalorder %v15292_v38, 0  ;;  %vm6604_vm11 = vcmp.eq.s32.totalorder %v15292_v38, 2 }
 0x235   : > { %v3917_v17 = vand.u32 2147483647, %v3916_v61  ;;  %v1549_v20 = vshrl.u32 %v1544_v10, 16  ;;  %v1567_v33 = vmul.u32 %v1563_v48, %v15242_v4  ;;  %v1568_v40 = vshll.u32 %v1565_v46, 16 }
 0x236   : > { %vm1550_vm8 = vc.u32 %v1542_v26, %v1546_v31  ;;  %v1552_v51 = vadd.s32 %v1546_v31, %v1542_v26  ;;  %v1547_v61 = vshrl.u32 %v1543_v41, 16  ;;  %v1570_v44 = vshll.u32 %v1566_v30, 16 }
 0x237   : > { %v3920_v29 = vmul.f32 %v3919_v54, %v3917_v17  ;;  %v1551_v21 = vsel %vm1550_vm8, 1, %v20499_v56  ;;  %vm1572_vm13 = vc.u32 %v1564_v3, %v1568_v40  ;;  %v1574_v28 = vadd.s32 %v1568_v40, %v1564_v3 }
 0x238   : > { %v1553_v58 = vadd.s32 %v1551_v21, %v1545_v32  ;;  %vm1554_vm7 = vc.u32 %v1552_v51, %v1548_v47  ;;  %v1569_v10 = vshrl.u32 %v1565_v46, 16  ;;  %v1573_v26 = vsel %vm1572_vm13, 1, %v20499_v56 }
 0x239   : > { %v3921_v22 = vxor.u32 2147483648, %v3920_v29  ;;  %v1555_v54 = vsel %vm1554_vm7, 1, %v20499_v56  ;;  %v1575_v41 = vadd.s32 %v1573_v26, %v1567_v33  ;;  %vm1576_vm2 = vc.u32 %v1574_v28, %v1570_v44 }
 0x23a   : > { %v1557_v48 = vadd.s32 %v1555_v54, %v1553_v58  ;;  %vm6600_vm8 = vcmp.lt.s32.totalorder %v15292_v38, 2  ;;  %v1577_v21 = vsel %vm1576_vm2, 1, %v20499_v56  ;;  %v15319_v32 = vsub.s32 32, %v15285_v62 }
 0x23b   : > { %v3922_v6 = vsel %vm3801_vm10, %v3921_v22, %v3920_v29  ;;  %v20539_v31 = vxor.u32 2147483648, %v15281_v63  ;;  %v1571_v23 = vshrl.u32 %v1566_v30, 16  ;;  %v1579_v3 = vadd.s32 %v1577_v21, %v1575_v41 }
 0x23c   : > { %v3925_v4 = vsel %vm15231_vm14, %v14928_v25, %v3922_v6  ;;  %v1558_v47 = vadd.s32 %v1557_v48, %v1547_v61  ;;  %v20540_v51 = vxor.u32 2147483648, %v15278_v24  ;;  %v15331_v40 = vadd.s32 %v1574_v28, %v1570_v44 }
 0x23d   : > { %v3927_v17 = vmul.f32 %v3925_v4, %v3925_v4  ;;  %v6603_v46 = vsel %vm6601_vm1, %v15278_v24, %v20539_v31  ;;  %v1580_v6 = vadd.s32 %v1579_v3, %v1569_v10  ;;  %v1582_v54 = vmul.u32 %v15210_v49, %v15290_v42 }
 0x23e   : > { %v6606_v33 = vsel %vm6604_vm11, %v20540_v51, %v15281_v63  ;;  %v15333_v22 = vadd.s32 %v1558_v47, %v1549_v20  ;;  %v3970_v30 = vshll.u32 %v20495_v27, %v15285_v62  ;;  %v3971_v48 = vshrl.u32 %v20500_v8, %v15319_v32 }
 0x23f   : > { %v3928_v58 = vmul.f32 -0.001358992, %v3927_v17  ;;  %v3935_v29 = vmul.f32 -0.00019511016, %v3927_v17  ;;  %v3973_v41 = vshll.u32 %v20500_v8, %v15285_v62  ;;  %vm20312_vm10 = vweird.f32 %v14908_v9 }
 0x240   : > { %v1581_v44 = vadd.s32 %v1580_v6, %v1571_v23  ;;  %v3974_v20 = vshrl.u32 %v20501_v50, %v15319_v32  ;;  %v3976_v49 = vshll.u32 %v20501_v50, %v15285_v62  ;;  %v3977_v42 = vshrl.u32 %v20502_v14, %v15319_v32 }
 0x241   : > { %v3929_v61 = vadd.f32 0.041655596, %v3928_v58  ;;  %v3936_v26 = vadd.f32 0.008332121, %v3935_v29  ;;  %vm1584_vm14 = vc.u32 %v15333_v22, %v15331_v40  ;;  %v3979_v21 = vshll.u32 %v20502_v14, %v15285_v62 }
 0x242   : > { %v1585_v31 = vadd.s32 1, %v1581_v44  ;;  %v3980_v47 = vshrl.u32 %v20503_v37, %v15319_v32  ;;  %v3982_v23 = vshll.u32 %v20503_v37, %v15285_v62  ;;  %v3983_v3 = vshrl.u32 %v20505_v59, %v15319_v32 }
 0x243   : > { %v3930_v28 = vmul.f32 %v3929_v61, %v3927_v17  ;;  %v3937_v10 = vmul.f32 %v3936_v26, %v3927_v17  ;;  %v6607_v51 = vsel %vm6600_vm8, %v6603_v46, %v6606_v33  ;;  %vm9080_vm1 = vcmp.lt.s32.totalorder %v15300_v53, 2 }
 0x244   : > { %v1586_v6 = vsel %vm1584_vm14, %v1585_v31, %v1581_v44  ;;  %v15363_v61 = vor.u32 %v3974_v20, %v3973_v41  ;;  %v3981_v26 = vor.u32 %v3980_v47, %v3979_v21  ;;  %v3984_v60 = vor.u32 %v3983_v3, %v3982_v23 }
 0x245   : > { %v3931_v58 = vadd.f32 -0.4999988, %v3930_v28  ;;  %v3938_v29 = vadd.f32 -0.16666654, %v3937_v10  ;;  %v1587_v34 = vadd.s32 %v1586_v6, %v1582_v54  ;;  %v3978_v18 = vor.u32 %v3977_v42, %v3976_v49 }
 0x246   : > { %vm9081_vm11 = vcmp.eq.s32.totalorder %v15300_v53, 0  ;;  %v15366_v62 = vor.u32 %v3971_v48, %v3970_v30  ;;  %vm3985_vm7 = vcmp.lt.s32.totalorder %v15272_v0, 1  ;;  %vm3988_vm13 = vcmp.lt.s32.totalorder %v15272_v0, 4 }
 0x247   : > { %v3932_v19 = vmul.f32 %v3931_v58, %v3927_v17  ;;  %v3939_v2 = vmul.f32 %v3938_v29, %v3927_v17  ;;  %v1588_v33 = vadd.s32 536870912, %v1587_v34  ;;  %vm3987_vm2 = vcmp.lt.s32.totalorder %v15272_v0, 3 }
 0x248   : > { %vm9084_vm8 = vcmp.eq.s32.totalorder %v15300_v53, 2  ;;  %vm3986_vm14 = vcmp.lt.s32.totalorder %v15272_v0, 2  ;;  %v3994_v17 = vsel %vm3988_vm13, %v3981_v26, 920167782  ;;  %v3998_v54 = vsel %vm3988_vm13, %v3984_v60, 1326507024 }
 0x249   : > { %v15370_v38 = vadd.f32 1.0, %v3932_v19  ;;  %v3940_v46 = vadd.f32 1.0, %v3939_v2  ;;  %v15382_v19 = vshrl.u32 %v1588_v33, 30  ;;  %v3997_v2 = vsel %vm3985_vm7, %v15363_v61, %v3978_v18 }
 0x24a   : > { %v3993_v41 = vsel %vm3985_vm7, %v15366_v62, %v15363_v61  ;;  %v3995_v44 = vsel %vm3987_vm2, %v3978_v18, %v3994_v17  ;;  %v3999_v60 = vsel %vm3987_vm2, %v3981_v26, %v3998_v54  ;;  %v6608_v42 = vsel %vm20312_vm10, nan, %v6607_v51 }
 0x24b   : > { %20541 = vst [vmem:[#allocation59_spill] sm:$0xff] %v15370_v38  ;;  %v15379_v30 = vmul.f32 %v3940_v46, %v3925_v4  ;;  %v20214_v48 = vxor.u32 2147483648, %v15370_v38  ;;  %v20543_v4 = vor.u32 8388608, %v15214_v12  ;;  %v1590_v10 = vshll.u32 %v15382_v19, 30 }
 0x24c   : > { %vm20270_vm15 = vweird.f32 %v14928_v25  ;;  %v4000_v21 = vsel %vm3986_vm14, %v3997_v2, %v3999_v60  ;;  %v3996_v3 = vsel %vm3986_vm14, %v3993_v41, %v3995_v44  ;;  %v10798_v51 = vmul.f32 %v6608_v42, %v15198_v11  ;;  %v620_v42 = vld [vmem:[%s13759_s0 + $0x30] sm:$0xff] }
 0x24d   : > { %20542 = vst [vmem:[#allocation60_spill] sm:$0xff] %v15379_v30  ;;  %v15397_v20 = vshll.u32 %v20543_v4, 8  ;;  %v20215_v49 = vxor.u32 2147483648, %v15379_v30  ;;  %v9086_v28 = vsel %vm9084_vm8, %v20214_v48, %v15379_v30  ;;  %v1591_v23 = vsub.s32 %v1587_v34, %v1590_v10 }
 0x24e   : > { %v4004_v58 = vand.u32 65535, %v4000_v21  ;;  %v4005_v6 = vshrl.u32 %v4000_v21, 16  ;;  %v4026_v26 = vand.u32 65535, %v3996_v3  ;;  %v3969_v34 = vshrl.u32 %v20495_v27, %v15319_v32 }
 0x24f   : > { %v4002_v12 = vand.u32 65535, %v15397_v20  ;;  %v4003_v31 = vshrl.u32 %v15397_v20, 16  ;;  %v9083_v47 = vsel %vm9081_vm11, %v15370_v38, %v20215_v49  ;;  %vm1592_vm8 = vcmp.lt.s32.totalorder %v1591_v23, 0 }
 0x250   : > { %v9087_v29 = vsel %vm9080_vm1, %v9083_v47, %v9086_v28  ;;  %v1593_v33 = vsub.s32 0, %v1591_v23  ;;  %v1583_v53 = vadd.s32 %v15331_v40, %v15333_v22  ;;  %v4027_v60 = vshrl.u32 %v3996_v3, 16 }
 0x251   : > { %v9088_v46 = vsel %vm20270_vm15, nan, %v9087_v29  ;;  %v4006_v54 = vmul.u32 %v4004_v58, %v4002_v12  ;;  %v4007_v2 = vmul.u32 %v4005_v6, %v4002_v12  ;;  %v4008_v41 = vmul.u32 %v4004_v58, %v4003_v31 }
 0x252   : > { %v10814_v17 = vmul.f32 %v9088_v46, %v15202_v36  ;;  %v1594_v44 = vsel %vm1592_vm8, %v1593_v33, %v1591_v23  ;;  %v4030_v4 = vmul.u32 %v4026_v26, %v4003_v31  ;;  %v4009_v21 = vmul.u32 %v4005_v6, %v4003_v31 }
 0x253   : > { %v1595_v10 = vclz %v1594_v44  ;;  %v4010_v47 = vshll.u32 %v4007_v2, 16  ;;  %v3990_v29 = vsel %vm3988_vm13, %v3978_v18, 2102212464  ;;  %v4012_v32 = vshll.u32 %v4008_v41, 16 }
 0x254   : > { %v13238_v28 = vpack.i.bf16 %v10814_v17, %v10798_v51  ;;  %v4028_v48 = vmul.u32 %v4026_v26, %v4002_v12  ;;  %v4029_v46 = vmul.u32 %v4027_v60, %v4002_v12  ;;  %v15433_v40 = vsel %vm652_vm0, %v620_v42, 0.0 }
 0x255   : > { %v12714_v49 = vadd.s32 4294967294, %v1595_v10  ;;  %vm4014_vm1 = vc.u32 %v4006_v54, %v4010_v47  ;;  %v4016_v58 = vadd.s32 %v4010_v47, %v4006_v54  ;;  %20544 = vst [vmem:[#allocation61_spill] sm:$0xff] %v15433_v40  ;;  %v4011_v22 = vshrl.u32 %v4007_v2, 16 }
 0x256   : > { %13239 = vxpose.xlu0.b32.cont [5/16] %v13238_v28, 128  ;;  %v4015_v3 = vsel %vm4014_vm1, 1, %v20499_v56  ;;  %v4032_v51 = vshll.u32 %v4029_v46, 16  ;;  %v4034_v6 = vshll.u32 %v4030_v4, 16  ;;  %v4031_v18 = vmul.u32 %v4027_v60, %v4003_v31 }
 0x257   : > { %vm12715_vm11 = vcmp.lt.s32.totalorder %v12714_v49, 0  ;;  %v4017_v33 = vadd.s32 %v4015_v3, %v4009_v21  ;;  %vm4018_vm8 = vc.u32 %v4016_v58, %v4012_v32  ;;  %v4013_v42 = vshrl.u32 %v4008_v41, 16 }
 0x258   : > { %v1598_v17 = vsel %vm12715_vm11, 0, %v12714_v49  ;;  %v4019_v12 = vsel %vm4018_vm8, 1, %v20499_v56  ;;  %vm4036_vm13 = vc.u32 %v4028_v48, %v4032_v51  ;;  %v4038_v26 = vadd.s32 %v4032_v51, %v4028_v48 }
 0x259   : > { %v1599_v44 = vsub.s32 32, %v1598_v17  ;;  %v1600_v54 = vshll.u32 %v1591_v23, %v1598_v17  ;;  %v1603_v28 = vsub.s32 4294967266, %v1598_v17  ;;  %v4021_v10 = vadd.s32 %v4019_v12, %v4017_v33 }
 0x25a   : > { %v4033_v47 = vshrl.u32 %v4029_v46, 16  ;;  %v4037_v2 = vsel %vm4036_vm13, 1, %v20499_v56  ;;  %vm4040_vm1 = vc.u32 %v4038_v26, %v4034_v6  ;;  %v3989_v49 = vsel %vm3985_vm7, %v3969_v34, %v15366_v62 }
 0x25b   : > { %v1601_v55 = vshrl.u32 %v1583_v53, %v1599_v44  ;;  %v1604_v43 = vadd.s32 127, %v1603_v28  ;;  %v4022_v21 = vadd.s32 %v4021_v10, %v4011_v22  ;;  %v4039_v32 = vadd.s32 %v4037_v2, %v4031_v18  ;;  %v636_v22 = vld [vmem:[%s13759_s0 + $0xb0] sm:$0xff]  ;;  %v586_v2 = vld [vmem:[%s14075_s18 + $0x28] sm:$0xff] }
 0x25c   : > { %v3991_v48 = vsel %vm3987_vm2, %v15363_v61, %v3990_v29  ;;  %v4041_v31 = vsel %vm4040_vm1, 1, %v20499_v56  ;;  %v1646_v23 = vand.u32 2139095040, %v15433_v40  ;;  %v4035_v46 = vshrl.u32 %v4030_v4, 16 }
 0x25d   : > { %v1602_v41 = vor.u32 %v1601_v55, %v1600_v54  ;;  %v1605_v60 = vshll.u32 %v1604_v43, 23  ;;  %v4043_v58 = vadd.s32 %v4041_v31, %v4039_v32  ;;  %v4023_v53 = vadd.s32 %v4022_v21, %v4013_v42 }
 0x25e   : > { %v4042_v3 = vadd.s32 %v4038_v26, %v4034_v6  ;;  %v1647_v51 = vshrl.u32 %v1646_v23, 23  ;;  %v3992_v62 = vsel %vm3986_vm14, %v3989_v49, %v3991_v48  ;;  %v20221_v61 = vand.u32 2147483647, %v15433_v40  ;;  %v602_v49 = vld [vmem:[%s14075_s18 + $0xa8] sm:$0xff] }
 0x25f   : > { %v1606_v33 = vor.u32 4788187, %v1605_v60  ;;  %v1609_v18 = vcvt.s32.f32 %v1602_v41  ;;  %v4044_v34 = vadd.s32 %v4043_v58, %v4033_v47  ;;  %v15452_v55 = vsel %vm652_vm0, %v636_v22, 0.0 }
 0x260   : > { %v12716_v29 = vadd.s32 4294967169, %v1647_v51  ;;  %20545 = vst [vmem:[#allocation62_spill] sm:$0xff] %v15452_v55  ;;  %v4046_v43 = vmul.u32 %v15397_v20, %v3992_v62  ;;  %vm4048_vm7 = vc.u32 %v4023_v53, %v4042_v3  ;;  %v1613_v0 = vsub.s32 4, %v15382_v19 }
 0x261   : > { %v1607_v17 = vand.u32 2147483647, %v1606_v33  ;;  %v4045_v12 = vadd.s32 %v4044_v34, %v4035_v46  ;;  %vm1491_vm2 = vcmp.lt.s32.totalorder %v15159_v16, 0  ;;  %v1650_v44 = vand.u32 8388607, %v20221_v61 }
 0x262   : > { %v1653_v4 = vadd.s32 1, %v12716_v29  ;;  %v4110_v54 = vand.u32 2139095040, %v15452_v55  ;;  %v20546_v28 = vand.u32 2147483647, %v15159_v16  ;;  %v1614_v31 = vsel %vm1491_vm2, %v1613_v0, %v15382_v19 }
 0x263   : > { %v1610_v6 = vmul.f32 %v1609_v18, %v1607_v17  ;;  %v4049_v26 = vadd.s32 1, %v4045_v12  ;;  %v20220_v23 = vand.u32 2147483647, %v15452_v55  ;;  %v1651_v46 = vor.u32 8388608, %v1650_v44 }
 0x264   : > { %vm1654_vm14 = vcmp.gt.s32.totalorder %v1653_v4, 0  ;;  %vm15462_vm11 = vcmp.le.f32.partialorder %v20546_v28, 0.7853982  ;;  %v4111_v58 = vshrl.u32 %v4110_v54, 23  ;;  %v15477_v22 = vsel %vm652_vm0, %v586_v2, 0.0 }
 0x265   : > { %v1611_v20 = vxor.u32 2147483648, %v1610_v6  ;;  %v4050_v42 = vsel %vm4048_vm7, %v4049_v26, %v4045_v12  ;;  %v1655_v47 = vsel %vm1654_vm14, %v1653_v4, 0  ;;  %20549 = vst [vmem:[#allocation63_spill] sm:$0xff] %v15477_v22  ;;  %v15483_v19 = vsel %vm652_vm0, %v602_v49, 0.0 }
 0x266   : > { %v4051_v21 = vadd.s32 %v4050_v42, %v4046_v43  ;;  %v1657_v32 = vand.u32 31, %v1655_v47  ;;  %20550 = vst [vmem:[#allocation64_spill] sm:$0xff] %v15483_v19  ;;  %v15487_v33 = vsel %vm15462_vm11, 0, %v1614_v31  ;;  %v15489_v17 = vadd.s32 %v4042_v3, %v4023_v53 }
 0x267   : > { %v1612_v48 = vsel %vm1491_vm2, %v1611_v20, %v1610_v6  ;;  %20551 = vst [vmem:[#allocation65_spill] sm:$0xff] %v15487_v33  ;;  %v15493_v12 = vand.u32 8388607, %v20220_v23  ;;  %vm3955_vm8 = vcmp.lt.s32.totalorder %v15168_v39, 0  ;;  %v15496_v4 = vshrl.u32 %v1655_v47, 5 }
 0x268   : > { %v15473_v41 = vsel %vm15462_vm11, %v15159_v16, %v1612_v48  ;;  %v4052_v60 = vadd.s32 536870912, %v4051_v21  ;;  %v1658_v62 = vsub.s32 32, %v1657_v32  ;;  %v15498_v6 = vshll.u32 %v1651_v46, 8 }
 0x269   : > { %v1617_v51 = vmul.f32 %v15473_v41, %v15473_v41  ;;  %v12764_v0 = vadd.s32 4294967169, %v4111_v58  ;;  %v1663_v54 = vshll.u32 %v20500_v8, %v1657_v32  ;;  %v1666_v28 = vshll.u32 %v20501_v50, %v1657_v32 }
 0x26a   : > { %v4053_v18 = vshrl.u32 %v4052_v60, 30  ;;  %v1669_v3 = vshll.u32 %v20502_v14, %v1657_v32  ;;  %v1672_v10 = vshll.u32 %v20503_v37, %v1657_v32  ;;  %v1673_v20 = vshrl.u32 %v20505_v59, %v1658_v62 }
 0x26b   : > { %v1618_v34 = vmul.f32 -0.001358992, %v1617_v51  ;;  %v1625_v29 = vmul.f32 -0.00019511016, %v1617_v51  ;;  %v20552_v47 = vand.u32 2147483647, %v15168_v39  ;;  %v1664_v49 = vshrl.u32 %v20501_v50, %v1658_v62 }
 0x26c   : > { %v4054_v43 = vshll.u32 %v4053_v18, 30  ;;  %v1667_v48 = vshrl.u32 %v20502_v14, %v1658_v62  ;;  %v1670_v31 = vshrl.u32 %v20503_v37, %v1658_v62  ;;  %v1674_v46 = vor.u32 %v1673_v20, %v1672_v10 }
 0x26d   : > { %v1619_v26 = vadd.f32 0.041655596, %v1618_v34  ;;  %v1626_v44 = vadd.f32 0.008332121, %v1625_v29  ;;  %vm15507_vm13 = vcmp.le.f32.partialorder %v20552_v47, 0.7853982  ;;  %v1660_v34 = vshll.u32 %v20495_v27, %v1657_v32 }
 0x26e   : > { %v4055_v53 = vsub.s32 %v4051_v21, %v4054_v43  ;;  %v4077_v58 = vsub.s32 4, %v4053_v18  ;;  %v1661_v29 = vshrl.u32 %v20500_v8, %v1658_v62  ;;  %vm1678_vm7 = vcmp.lt.s32.totalorder %v15496_v4, 4 }
 0x26f   : > { %v1627_v42 = vmul.f32 %v1626_v44, %v1617_v51  ;;  %v1620_v21 = vmul.f32 %v1619_v26, %v1617_v51  ;;  %v15518_v47 = vand.u32 65535, %v15498_v6  ;;  %v1665_v36 = vor.u32 %v1664_v49, %v1663_v54 }
 0x270   : > { %vm4056_vm1 = vcmp.lt.s32.totalorder %v4055_v53, 0  ;;  %v4057_v60 = vsub.s32 0, %v4055_v53  ;;  %v1668_v26 = vor.u32 %v1667_v48, %v1666_v28  ;;  %v1671_v25 = vor.u32 %v1670_v31, %v1669_v3 }
 0x271   : > { %v1628_v43 = vadd.f32 -0.16666654, %v1627_v42  ;;  %v1621_v13 = vadd.f32 -0.4999988, %v1620_v21  ;;  %vm1675_vm2 = vcmp.lt.s32.totalorder %v15496_v4, 1  ;;  %vm1677_vm14 = vcmp.lt.s32.totalorder %v15496_v4, 3 }
 0x272   : > { %v4058_v44 = vsel %vm4056_vm1, %v4057_v60, %v4055_v53  ;;  %v1688_v32 = vsel %vm1678_vm7, %v1674_v46, 1326507024  ;;  %v4078_v20 = vsel %vm3955_vm8, %v4077_v58, %v4053_v18  ;;  %v1662_v42 = vor.u32 %v1661_v29, %v1660_v34 }
 0x273   : > { %v4059_v61 = vclz %v4058_v44  ;;  %v1693_v60 = vshrl.u32 %v15498_v6, 16  ;;  %v1629_v23 = vmul.f32 %v1628_v43, %v1617_v51  ;;  %v1659_v54 = vshrl.u32 %v20495_v27, %v1658_v62 }
 0x274   : > { %vm1676_vm11 = vcmp.lt.s32.totalorder %v15496_v4, 2  ;;  %v4117_v28 = vadd.s32 1, %v12764_v0  ;;  %v1684_v3 = vsel %vm1678_vm7, %v1671_v25, 920167782  ;;  %v1687_v49 = vsel %vm1675_vm2, %v1665_v36, %v1668_v26 }
 0x275   : > { %v12762_v10 = vadd.s32 4294967294, %v4059_v61  ;;  %v1689_v61 = vsel %vm1677_vm14, %v1671_v25, %v1688_v32  ;;  %v1622_v18 = vmul.f32 %v1621_v13, %v1617_v51  ;;  %v15538_v31 = vsel %vm15507_vm13, 0, %v4078_v20 }
 0x276   : > { %20555 = vst [vmem:[#allocation66_spill] sm:$0xff] %v15538_v31  ;;  %v1680_v62 = vsel %vm1678_vm7, %v1668_v26, 2102212464  ;;  %v1683_v58 = vsel %vm1675_vm2, %v1662_v42, %v1665_v36  ;;  %v1630_v34 = vadd.f32 1.0, %v1629_v23  ;;  %v6753_v29 = vadd.s32 3, %v15487_v33 }
 0x277   : > { %vm12763_vm1 = vcmp.lt.s32.totalorder %v12762_v10, 0  ;;  %v1685_v25 = vsel %vm1677_vm14, %v1668_v26, %v1684_v3  ;;  %v1690_v13 = vsel %vm1676_vm11, %v1687_v49, %v1689_v61  ;;  %v1679_v44 = vsel %vm1675_vm2, %v1659_v54, %v1662_v42 }
 0x278   : > { %v4062_v48 = vsel %vm12763_vm1, 0, %v12762_v10  ;;  %vm4118_vm7 = vcmp.gt.s32.totalorder %v4117_v28, 0  ;;  %v9233_v32 = vadd.s32 3, %v15538_v31  ;;  %v1681_v23 = vsel %vm1677_vm14, %v1665_v36, %v1680_v62 }
 0x279   : > { %v4063_v0 = vsub.s32 32, %v4062_v48  ;;  %v4064_v21 = vshll.u32 %v4055_v53, %v4062_v48  ;;  %v4067_v46 = vsub.s32 4294967266, %v4062_v48  ;;  %v15552_v53 = vadd.f32 1.0, %v1622_v18 }
 0x27a   : > { %v1694_v10 = vand.u32 65535, %v1690_v13  ;;  %v1686_v3 = vsel %vm1676_vm11, %v1683_v58, %v1685_v25  ;;  %v1695_v49 = vshrl.u32 %v1690_v13, 16  ;;  %v15562_v61 = vand.u32 3, %v6753_v29 }
 0x27b   : > { %v4065_v51 = vshrl.u32 %v15489_v17, %v4063_v0  ;;  %v4068_v43 = vadd.s32 127, %v4067_v46  ;;  %20556 = vst [vmem:[#allocation67_spill] sm:$0xff] %v15552_v53  ;;  %v15560_v17 = vmul.f32 %v1630_v34, %v15473_v41  ;;  %v1716_v54 = vand.u32 65535, %v1686_v3 }
 0x27c   : > { %v1698_v42 = vmul.u32 %v1694_v10, %v1693_v60  ;;  %v1696_v0 = vmul.u32 %v1694_v10, %v15518_v47  ;;  %v1697_v36 = vmul.u32 %v1695_v49, %v15518_v47  ;;  %v1717_v46 = vshrl.u32 %v1686_v3, 16 }
 0x27d   : > { %v4066_v20 = vor.u32 %v4065_v51, %v4064_v21  ;;  %v4069_v26 = vshll.u32 %v4068_v43, 23  ;;  %20557 = vst [vmem:[#allocation68_spill] sm:$0xff] %v15560_v17  ;;  %v15569_v21 = vsel %vm1676_vm11, %v1679_v44, %v1681_v23  ;;  %v4119_v41 = vsel %vm4118_vm7, %v4117_v28, 0 }
 0x27e   : > { %v1699_v34 = vmul.u32 %v1695_v49, %v1693_v60  ;;  %v1700_v29 = vshll.u32 %v1697_v36, 16  ;;  %v1720_v25 = vmul.u32 %v1716_v54, %v1693_v60  ;;  %v15572_v13 = vand.u32 3, %v9233_v32 }
 0x27f   : > { %v4070_v18 = vor.u32 4788187, %v4069_v26  ;;  %v4073_v48 = vcvt.s32.f32 %v4066_v20  ;;  %v1702_v51 = vshll.u32 %v1698_v42, 16  ;;  %v1718_v43 = vmul.u32 %v1716_v54, %v15518_v47 }
 0x280   : > { %v1719_v10 = vmul.u32 %v1717_v46, %v15518_v47  ;;  %v20226_v20 = vxor.u32 2147483648, %v15560_v17  ;;  %vm6756_vm2 = vcmp.eq.s32.totalorder %v15562_v61, 0  ;;  %vm1704_vm14 = vc.u32 %v1696_v0, %v1700_v29 }
 0x281   : > { %v4071_v58 = vand.u32 2147483647, %v4070_v18  ;;  %v1705_v4 = vsel %vm1704_vm14, 1, %v20499_v56  ;;  %v1706_v28 = vadd.s32 %v1700_v29, %v1696_v0  ;;  %v1721_v44 = vmul.u32 %v1717_v46, %v1693_v60 }
 0x282   : > { %v1722_v23 = vshll.u32 %v1719_v10, 16  ;;  %v1703_v49 = vshrl.u32 %v1698_v42, 16  ;;  %v1707_v32 = vadd.s32 %v1705_v4, %v1699_v34  ;;  %v1724_v18 = vshll.u32 %v1720_v25, 16 }
 0x283   : > { %v4074_v26 = vmul.f32 %v4073_v48, %v4071_v58  ;;  %vm6755_vm11 = vcmp.lt.s32.totalorder %v15562_v61, 2  ;;  %v1701_v54 = vshrl.u32 %v1697_v36, 16  ;;  %vm1708_vm1 = vc.u32 %v1706_v28, %v1702_v51 }
 0x284   : > { %vm1726_vm7 = vc.u32 %v1718_v43, %v1722_v23  ;;  %v1728_v47 = vadd.s32 %v1722_v23, %v1718_v43  ;;  %v1709_v58 = vsel %vm1708_vm1, 1, %v20499_v56  ;;  %v1723_v62 = vshrl.u32 %v1719_v10, 16 }
 0x285   : > { %v4075_v3 = vxor.u32 2147483648, %v4074_v26  ;;  %v1727_v0 = vsel %vm1726_vm7, 1, %v20499_v56  ;;  %v1711_v42 = vadd.s32 %v1709_v58, %v1707_v32  ;;  %vm6759_vm3 = vcmp.eq.s32.totalorder %v15562_v61, 2 }
 0x286   : > { %v1729_v46 = vadd.s32 %v1727_v0, %v1721_v44  ;;  %vm1730_vm14 = vc.u32 %v1728_v47, %v1724_v18  ;;  %v4121_v29 = vand.u32 31, %v4119_v41  ;;  %v6758_v51 = vsel %vm6756_vm2, %v15552_v53, %v20226_v20 }
 0x287   : > { %v4076_v48 = vsel %vm3955_vm8, %v4075_v3, %v4074_v26  ;;  %v1731_v36 = vsel %vm1730_vm14, 1, %v20499_v56  ;;  %v1712_v43 = vadd.s32 %v1711_v42, %v1701_v54  ;;  %v1725_v10 = vshrl.u32 %v1720_v25, 16 }
 0x288   : > { %v4079_v60 = vsel %vm15507_vm13, %v15168_v39, %v4076_v48  ;;  %v1733_v26 = vadd.s32 %v1731_v36, %v1729_v46  ;;  %vm20321_vm8 = vweird.f32 %v15159_v16  ;;  %v15595_v28 = vadd.s32 %v1728_v47, %v1724_v18 }
 0x289   : > { %v4081_v34 = vmul.f32 %v4079_v60, %v4079_v60  ;;  %v15597_v44 = vsub.s32 32, %v4121_v29  ;;  %v20558_v23 = vxor.u32 2147483648, %v15552_v53  ;;  %v15602_v32 = vadd.s32 %v1712_v43, %v1703_v49 }
 0x28a   : > { %v1734_v48 = vadd.s32 %v1733_v26, %v1723_v62  ;;  %v1736_v54 = vmul.u32 %v15498_v6, %v15569_v21  ;;  %v15606_v0 = vshrl.u32 %v4119_v41, 5  ;;  %v4124_v42 = vshll.u32 %v20495_v27, %v4121_v29 }
 0x28b   : > { %v4082_v2 = vmul.f32 -0.001358992, %v4081_v34  ;;  %v4089_v4 = vmul.f32 -0.00019511016, %v4081_v34  ;;  %v6761_v3 = vsel %vm6759_vm3, %v20558_v23, %v15560_v17  ;;  %v4125_v47 = vshrl.u32 %v20500_v8, %v15597_v44 }
 0x28c   : > { %v1735_v18 = vadd.s32 %v1734_v48, %v1725_v10  ;;  %v4127_v46 = vshll.u32 %v20500_v8, %v4121_v29  ;;  %v4130_v36 = vshll.u32 %v20501_v50, %v4121_v29  ;;  %vm1738_vm3 = vc.u32 %v15602_v32, %v15595_v28 }
 0x28d   : > { %v4083_v25 = vadd.f32 0.041655596, %v4082_v2  ;;  %v4090_v58 = vadd.f32 0.008332121, %v4089_v4  ;;  %v4128_v6 = vshrl.u32 %v20501_v50, %v15597_v44  ;;  %v4131_v21 = vshrl.u32 %v20502_v14, %v15597_v44 }
 0x28e   : > { %v1739_v62 = vadd.s32 1, %v1735_v18  ;;  %v4133_v41 = vshll.u32 %v20502_v14, %v4121_v29  ;;  %v4134_v10 = vshrl.u32 %v20503_v37, %v15597_v44  ;;  %v6762_v4 = vsel %vm6755_vm11, %v6758_v51, %v6761_v3 }
 0x28f   : > { %v4084_v49 = vmul.f32 %v4083_v25, %v4081_v34  ;;  %v4091_v43 = vmul.f32 %v4090_v58, %v4081_v34  ;;  %vm9235_vm13 = vcmp.lt.s32.totalorder %v15572_v13, 2  ;;  %v4136_v23 = vshll.u32 %v20503_v37, %v4121_v29 }
 0x290   : > { %vm9236_vm2 = vcmp.eq.s32.totalorder %v15572_v13, 0  ;;  %v1740_v48 = vsel %vm1738_vm3, %v1739_v62, %v1735_v18  ;;  %v4135_v25 = vor.u32 %v4134_v10, %v4133_v41  ;;  %v4137_v58 = vshrl.u32 %v20505_v59, %v15597_v44 }
 0x291   : > { %v4085_v26 = vadd.f32 -0.4999988, %v4084_v49  ;;  %v4092_v2 = vadd.f32 -0.16666654, %v4091_v43  ;;  %v1741_v38 = vadd.s32 %v1740_v48, %v1736_v54  ;;  %v15629_v30 = vor.u32 %v4125_v47, %v4124_v42 }
 0x292   : > { %v15631_v49 = vor.u32 %v4128_v6, %v4127_v46  ;;  %v15633_v61 = vor.u32 %v4131_v21, %v4130_v36  ;;  %v4138_v51 = vor.u32 %v4137_v58, %v4136_v23  ;;  %vm4142_vm11 = vcmp.lt.s32.totalorder %v15606_v0, 4 }
 0x293   : > { %v4086_v20 = vmul.f32 %v4085_v26, %v4081_v34  ;;  %v4093_v35 = vmul.f32 %v4092_v2, %v4081_v34  ;;  %v1742_v18 = vadd.s32 536870912, %v1741_v38  ;;  %vm4139_vm1 = vcmp.lt.s32.totalorder %v15606_v0, 1 }
 0x294   : > { %v6763_v43 = vsel %vm20321_vm8, nan, %v6762_v4  ;;  %vm9239_vm7 = vcmp.eq.s32.totalorder %v15572_v13, 2  ;;  %vm4141_vm14 = vcmp.lt.s32.totalorder %v15606_v0, 3  ;;  %v4148_v34 = vsel %vm4142_vm11, %v4135_v25, 920167782 }
 0x295   : > { %v15636_v29 = vadd.f32 1.0, %v4086_v20  ;;  %v4094_v3 = vadd.f32 1.0, %v4093_v35  ;;  %v15648_v20 = vshrl.u32 %v1742_v18, 30  ;;  %vm4140_vm3 = vcmp.lt.s32.totalorder %v15606_v0, 2 }
 0x296   : > { %v4147_v35 = vsel %vm4139_vm1, %v15629_v30, %v15631_v49  ;;  %v4151_v47 = vsel %vm4139_vm1, %v15631_v49, %v15633_v61  ;;  %v20561_v46 = vor.u32 8388608, %v15493_v12  ;;  %v4149_v41 = vsel %vm4141_vm14, %v15633_v61, %v4148_v34 }
 0x297   : > { %20559 = vst [vmem:[#allocation69_spill] sm:$0xff] %v15636_v29  ;;  %v15645_v54 = vmul.f32 %v4094_v3, %v4079_v60  ;;  %v20233_v42 = vxor.u32 2147483648, %v15636_v29  ;;  %v4152_v60 = vsel %vm4142_vm11, %v4138_v51, 1326507024  ;;  %v1744_v21 = vshll.u32 %v15648_v20, 30 }
 0x298   : > { %v15663_v36 = vshll.u32 %v20561_v46, 8  ;;  %vm20295_vm6 = vweird.f32 %v15168_v39  ;;  %v4153_v10 = vsel %vm4141_vm14, %v4135_v25, %v4152_v60  ;;  %v10799_v4 = vmul.f32 %v6763_v43, %v15477_v22 }
 0x299   : > { %20560 = vst [vmem:[#allocation70_spill] sm:$0xff] %v15645_v54  ;;  %v20234_v6 = vxor.u32 2147483648, %v15645_v54  ;;  %v9241_v62 = vsel %vm9239_vm7, %v20233_v42, %v15645_v54  ;;  %v1745_v23 = vsub.s32 %v1741_v38, %v1744_v21  ;;  %v4154_v48 = vsel %vm4140_vm3, %v4151_v47, %v4153_v10 }
 0x29a   : > { %v4156_v12 = vand.u32 65535, %v15663_v36  ;;  %v4157_v26 = vshrl.u32 %v15663_v36, 16  ;;  %v4150_v25 = vsel %vm4140_vm3, %v4147_v35, %v4149_v41  ;;  %v4158_v51 = vand.u32 65535, %v4154_v48 }
 0x29b   : > { %v9238_v2 = vsel %vm9236_vm2, %v15636_v29, %v20234_v6  ;;  %v4159_v3 = vshrl.u32 %v4154_v48, 16  ;;  %vm1746_vm7 = vcmp.lt.s32.totalorder %v1745_v23, 0  ;;  %v1747_v34 = vsub.s32 0, %v1745_v23  ;;  %v621_v48 = vld [vmem:[%s13759_s0 + $0x38] sm:$0xff] }
 0x29c   : > { %v9242_v58 = vsel %vm9235_vm13, %v9238_v2, %v9241_v62  ;;  %v4180_v60 = vand.u32 65535, %v4150_v25  ;;  %v4160_v43 = vmul.u32 %v4158_v51, %v4156_v12  ;;  %v4162_v47 = vmul.u32 %v4158_v51, %v4157_v26 }
 0x29d   : > { %v9243_v18 = vsel %vm20295_vm6, nan, %v9242_v58  ;;  %v4161_v46 = vmul.u32 %v4159_v3, %v4156_v12  ;;  %v1748_v21 = vsel %vm1746_vm7, %v1747_v34, %v1745_v23  ;;  %v4123_v13 = vshrl.u32 %v20495_v27, %v15597_v44 }
 0x29e   : > { %v10815_v38 = vmul.f32 %v9243_v18, %v15483_v19  ;;  %v4181_v62 = vshrl.u32 %v4150_v25, 16  ;;  %v1749_v41 = vclz %v1748_v21  ;;  %v4163_v10 = vmul.u32 %v4159_v3, %v4157_v26 }
 0x29f   : > { %v4164_v2 = vshll.u32 %v4161_v46, 16  ;;  %v4166_v42 = vshll.u32 %v4162_v47, 16  ;;  %v4182_v58 = vmul.u32 %v4180_v60, %v4156_v12  ;;  %v4184_v15 = vmul.u32 %v4180_v60, %v4157_v26 }
 0x2a0   : > { %v13240_v35 = vpack.i.bf16 %v10815_v38, %v10799_v4  ;;  %v4183_v6 = vmul.u32 %v4181_v62, %v4156_v12  ;;  %v1737_v18 = vadd.s32 %v15595_v28, %v15602_v32  ;;  %v12717_v19 = vadd.s32 4294967294, %v1749_v41 }
 0x2a1   : > { %vm4168_vm13 = vc.u32 %v4160_v43, %v4164_v2  ;;  %v4170_v51 = vadd.s32 %v4164_v2, %v4160_v43  ;;  %v4165_v34 = vshrl.u32 %v4161_v46, 16  ;;  %v15701_v4 = vsel %vm652_vm0, %v621_v48, 0.0 }
 0x2a2   : > { %13241 = vxpose.xlu0.b32.cont [6/16] %v13240_v35, 128  ;;  %v4169_v44 = vsel %vm4168_vm13, 1, %v20499_v56  ;;  %v4186_v25 = vshll.u32 %v4183_v6, 16  ;;  %20562 = vst [vmem:[#allocation71_spill] sm:$0xff] %v15701_v4  ;;  %vm12718_vm2 = vcmp.lt.s32.totalorder %v12717_v19, 0  ;;  %v4185_v12 = vmul.u32 %v4181_v62, %v4157_v26 }
 0x2a3   : > { %v4171_v3 = vadd.s32 %v4169_v44, %v4163_v10  ;;  %vm4172_vm7 = vc.u32 %v4170_v51, %v4166_v42  ;;  %v1752_v60 = vsel %vm12718_vm2, 0, %v12717_v19  ;;  %v4188_v21 = vshll.u32 %v4184_v15, 16 }
 0x2a4   : > { %v4173_v38 = vsel %vm4172_vm7, 1, %v20499_v56  ;;  %vm4190_vm12 = vc.u32 %v4182_v58, %v4186_v25  ;;  %v1753_v28 = vsub.s32 32, %v1752_v60  ;;  %v1754_v32 = vshll.u32 %v1745_v23, %v1752_v60 }
 0x2a5   : > { %v1757_v43 = vsub.s32 4294967266, %v1752_v60  ;;  %v4175_v46 = vadd.s32 %v4173_v38, %v4171_v3  ;;  %v4144_v35 = vsel %vm4142_vm11, %v15633_v61, 2102212464  ;;  %v4167_v41 = vshrl.u32 %v4162_v47, 16 }
 0x2a6   : > { %v4191_v2 = vsel %vm4190_vm12, 1, %v20499_v56  ;;  %v4192_v48 = vadd.s32 %v4186_v25, %v4182_v58  ;;  %v1755_v10 = vshrl.u32 %v1737_v18, %v1753_v28  ;;  %v4143_v62 = vsel %vm4139_vm1, %v4123_v13, %v15629_v30 }
 0x2a7   : > { %v1758_v42 = vadd.s32 127, %v1757_v43  ;;  %v4176_v26 = vadd.s32 %v4175_v46, %v4165_v34  ;;  %v4193_v19 = vadd.s32 %v4191_v2, %v4185_v12  ;;  %v4187_v51 = vshrl.u32 %v4183_v6, 16  ;;  %v603_v2 = vld [vmem:[%s14075_s18 + $0xb0] sm:$0xff] }
 0x2a8   : > { %vm4194_vm13 = vc.u32 %v4192_v48, %v4188_v21  ;;  %v1800_v23 = vand.u32 2139095040, %v15701_v4  ;;  %v1756_v44 = vor.u32 %v1755_v10, %v1754_v32  ;;  %v4145_v61 = vsel %vm4141_vm14, %v15631_v49, %v4144_v35  ;;  %v587_v35 = vld [vmem:[%s14075_s18 + $0x30] sm:$0xff] }
 0x2a9   : > { %v1759_v3 = vshll.u32 %v1758_v42, 23  ;;  %v4195_v47 = vsel %vm4194_vm13, 1, %v20499_v56  ;;  %v4189_v58 = vshrl.u32 %v4184_v15, 16  ;;  %v4177_v30 = vadd.s32 %v4176_v26, %v4167_v41 }
 0x2aa   : > { %v4197_v18 = vadd.s32 %v4195_v47, %v4193_v19  ;;  %v1801_v34 = vshrl.u32 %v1800_v23, 23  ;;  %v1763_v12 = vcvt.s32.f32 %v1756_v44  ;;  %v4196_v6 = vadd.s32 %v4192_v48, %v4188_v21  ;;  %v637_v21 = vld [vmem:[%s13759_s0 + $0xb8] sm:$0xff] }
 0x2ab   : > { %v1760_v25 = vor.u32 4788187, %v1759_v3  ;;  %v4146_v13 = vsel %vm4140_vm3, %v4143_v62, %v4145_v61  ;;  %v1767_v49 = vsub.s32 4, %v15648_v20  ;;  %vm1645_vm11 = vcmp.lt.s32.totalorder %v15433_v40, 0 }
 0x2ac   : > { %v4198_v60 = vadd.s32 %v4197_v18, %v4187_v51  ;;  %v12719_v38 = vadd.s32 4294967169, %v1801_v34  ;;  %v4200_v46 = vmul.u32 %v15663_v36, %v4146_v13  ;;  %vm4202_vm12 = vc.u32 %v4177_v30, %v4196_v6 }
 0x2ad   : > { %v1761_v28 = vand.u32 2147483647, %v1760_v25  ;;  %v20563_v0 = vand.u32 2147483647, %v15433_v40  ;;  %v20239_v10 = vand.u32 2147483647, %v15701_v4  ;;  %v1768_v26 = vsel %vm1645_vm11, %v1767_v49, %v15648_v20 }
 0x2ae   : > { %v4199_v32 = vadd.s32 %v4198_v60, %v4189_v58  ;;  %v1807_v43 = vadd.s32 1, %v12719_v38  ;;  %v15730_v23 = vsel %vm652_vm0, %v637_v21, 0.0  ;;  %v15734_v44 = vsel %vm652_vm0, %v587_v35, 0.0 }
 0x2af   : > { %v1764_v15 = vmul.f32 %v1763_v12, %v1761_v28  ;;  %vm1644_vm14 = vcmp.le.f32.partialorder %v20563_v0, 0.7853982  ;;  %20564 = vst [vmem:[#allocation72_spill] sm:$0xff] %v15730_v23  ;;  %v15738_v3 = vsel %vm652_vm0, %v603_v2, 0.0  ;;  %v1804_v34 = vand.u32 8388607, %v20239_v10 }
 0x2b0   : > { %v4203_v41 = vadd.s32 1, %v4199_v32  ;;  %vm1808_vm1 = vcmp.gt.s32.totalorder %v1807_v43, 0  ;;  %20565 = vst [vmem:[#allocation73_spill] sm:$0xff] %v15734_v44  ;;  %v15743_v47 = vsel %vm1644_vm14, 0, %v1768_v26  ;;  %v15749_v25 = vadd.s32 %v4196_v6, %v4177_v30 }
 0x2b1   : > { %v1765_v48 = vxor.u32 2147483648, %v1764_v15  ;;  %v1809_v42 = vsel %vm1808_vm1, %v1807_v43, 0  ;;  %20566 = vst [vmem:[#allocation74_spill] sm:$0xff] %v15738_v3  ;;  %v20246_v13 = vand.u32 2147483647, %v15730_v23  ;;  %v4264_v60 = vand.u32 2139095040, %v15730_v23 }
 0x2b2   : > { %v4204_v19 = vsel %vm4202_vm12, %v4203_v41, %v4199_v32  ;;  %v1811_v62 = vand.u32 31, %v1809_v42  ;;  %20567 = vst [vmem:[#allocation75_spill] sm:$0xff] %v15743_v47  ;;  %v15755_v43 = vshrl.u32 %v1809_v42, 5  ;;  %vm4109_vm3 = vcmp.lt.s32.totalorder %v15452_v55, 0 }
 0x2b3   : > { %v1766_v36 = vsel %vm1645_vm11, %v1765_v48, %v1764_v15  ;;  %v4205_v51 = vadd.s32 %v4204_v19, %v4200_v46  ;;  %v1805_v10 = vor.u32 8388608, %v1804_v34  ;;  %v20568_v34 = vand.u32 2147483647, %v15452_v55 }
 0x2b4   : > { %v15741_v61 = vsel %vm1644_vm14, %v15433_v40, %v1766_v36  ;;  %v1812_v20 = vsub.s32 32, %v1811_v62  ;;  %v1823_v12 = vshll.u32 %v20502_v14, %v1811_v62  ;;  %v1814_v15 = vshll.u32 %v20495_v27, %v1811_v62 }
 0x2b5   : > { %v1771_v58 = vmul.f32 %v15741_v61, %v15741_v61  ;;  %v4206_v18 = vadd.s32 536870912, %v4205_v51  ;;  %v1817_v46 = vshll.u32 %v20500_v8, %v1811_v62  ;;  %v1826_v30 = vshll.u32 %v20503_v37, %v1811_v62 }
 0x2b6   : > { %v1824_v32 = vshrl.u32 %v20503_v37, %v1812_v20  ;;  %v1820_v41 = vshll.u32 %v20501_v50, %v1811_v62  ;;  %v1815_v21 = vshrl.u32 %v20500_v8, %v1812_v20  ;;  %v1818_v0 = vshrl.u32 %v20501_v50, %v1812_v20 }
 0x2b7   : > { %v1772_v38 = vmul.f32 -0.001358992, %v1771_v58  ;;  %v1779_v28 = vmul.f32 -0.00019511016, %v1771_v58  ;;  %v4207_v49 = vshrl.u32 %v4206_v18, 30  ;;  %v1821_v48 = vshrl.u32 %v20502_v14, %v1812_v20 }
 0x2b8   : > { %v1827_v42 = vshrl.u32 %v20505_v59, %v1812_v20  ;;  %v1825_v18 = vor.u32 %v1824_v32, %v1823_v12  ;;  %vm1832_vm2 = vcmp.lt.s32.totalorder %v15755_v43, 4  ;;  %v15769_v62 = vand.u32 8388607, %v20246_v13 }
 0x2b9   : > { %v1773_v6 = vadd.f32 0.041655596, %v1772_v38  ;;  %v1780_v35 = vadd.f32 0.008332121, %v1779_v28  ;;  %v4208_v2 = vshll.u32 %v4207_v49, 30  ;;  %v1816_v11 = vor.u32 %v1815_v21, %v1814_v15 }
 0x2ba   : > { %v1828_v38 = vor.u32 %v1827_v42, %v1826_v30  ;;  %v1819_v1 = vor.u32 %v1818_v0, %v1817_v46  ;;  %vm1829_vm13 = vcmp.lt.s32.totalorder %v15755_v43, 1  ;;  %vm1831_vm12 = vcmp.lt.s32.totalorder %v15755_v43, 3 }
 0x2bb   : > { %v1774_v26 = vmul.f32 %v1773_v6, %v1771_v58  ;;  %v1781_v19 = vmul.f32 %v1780_v35, %v1771_v58  ;;  %v4209_v36 = vsub.s32 %v4205_v51, %v4208_v2  ;;  %v1822_v6 = vor.u32 %v1821_v48, %v1820_v41 }
 0x2bc   : > { %v4265_v35 = vshrl.u32 %v4264_v60, 23  ;;  %v1838_v51 = vsel %vm1832_vm2, %v1825_v18, 920167782  ;;  %vm15777_vm11 = vcmp.le.f32.partialorder %v20568_v34, 0.7853982  ;;  %v4231_v30 = vsub.s32 4, %v4207_v49 }
 0x2bd   : > { %v1775_v28 = vadd.f32 -0.4999988, %v1774_v26  ;;  %v1782_v7 = vadd.f32 -0.16666654, %v1781_v19  ;;  %vm4210_vm7 = vcmp.lt.s32.totalorder %v4209_v36, 0  ;;  %v4211_v39 = vsub.s32 0, %v4209_v36 }
 0x2be   : > { %v1813_v15 = vshrl.u32 %v20495_v27, %v1812_v20  ;;  %v15782_v46 = vshll.u32 %v1805_v10, 8  ;;  %v1834_v2 = vsel %vm1832_vm2, %v1822_v6, 2102212464  ;;  %v1842_v41 = vsel %vm1832_vm2, %v1828_v38, 1326507024 }
 0x2bf   : > { %v4212_v57 = vsel %vm4210_vm7, %v4211_v39, %v4209_v36  ;;  %v1776_v39 = vmul.f32 %v1775_v28, %v1771_v58  ;;  %v1783_v60 = vmul.f32 %v1782_v7, %v1771_v58  ;;  %vm1830_vm1 = vcmp.lt.s32.totalorder %v15755_v43, 2 }
 0x2c0   : > { %v4213_v32 = vclz %v4212_v57  ;;  %v1837_v0 = vsel %vm1829_vm13, %v1816_v11, %v1819_v1  ;;  %v1839_v57 = vsel %vm1831_vm12, %v1822_v6, %v1838_v51  ;;  %v1841_v10 = vsel %vm1829_vm13, %v1819_v1, %v1822_v6 }
 0x2c1   : > { %v1843_v7 = vsel %vm1831_vm12, %v1825_v18, %v1842_v41  ;;  %v12767_v20 = vadd.s32 4294967169, %v4265_v35  ;;  %v4232_v48 = vsel %vm4109_vm3, %v4231_v30, %v4207_v49  ;;  %v1833_v42 = vsel %vm1829_vm13, %v1813_v15, %v1816_v11 }
 0x2c2   : > { %v12765_v21 = vadd.s32 4294967294, %v4213_v32  ;;  %v1835_v26 = vsel %vm1831_vm12, %v1819_v1, %v1834_v2  ;;  %v15804_v19 = vadd.f32 1.0, %v1776_v39  ;;  %v1784_v38 = vadd.f32 1.0, %v1783_v60 }
 0x2c3   : > { %v1840_v18 = vsel %vm1830_vm1, %v1837_v0, %v1839_v57  ;;  %v1844_v34 = vsel %vm1830_vm1, %v1841_v10, %v1843_v7  ;;  %v6908_v49 = vadd.s32 3, %v15743_v47  ;;  %v1846_v11 = vand.u32 65535, %v15782_v46 }
 0x2c4   : > { %vm12766_vm14 = vcmp.lt.s32.totalorder %v12765_v21, 0  ;;  %20571 = vst [vmem:[#allocation76_spill] sm:$0xff] %v15804_v19  ;;  %v1847_v32 = vshrl.u32 %v15782_v46, 16  ;;  %v1848_v1 = vand.u32 65535, %v1844_v34  ;;  %v1871_v39 = vshrl.u32 %v1840_v18, 16 }
 0x2c5   : > { %v4216_v28 = vsel %vm12766_vm14, 0, %v12765_v21  ;;  %v4271_v60 = vadd.s32 1, %v12767_v20  ;;  %v15816_v2 = vsel %vm15777_vm11, 0, %v4232_v48  ;;  %v1849_v41 = vshrl.u32 %v1844_v34, 16 }
 0x2c6   : > { %v4217_v6 = vsub.s32 32, %v4216_v28  ;;  %v4218_v35 = vshll.u32 %v4209_v36, %v4216_v28  ;;  %v4221_v51 = vsub.s32 4294967266, %v4216_v28  ;;  %20572 = vst [vmem:[#allocation77_spill] sm:$0xff] %v15816_v2  ;;  %v15820_v36 = vsel %vm1830_vm1, %v1833_v42, %v1835_v26 }
 0x2c7   : > { %v1870_v21 = vand.u32 65535, %v1840_v18  ;;  %v15823_v0 = vmul.f32 %v1784_v38, %v15741_v61  ;;  %v15826_v7 = vand.u32 3, %v6908_v49  ;;  %v1850_v20 = vmul.u32 %v1848_v1, %v1846_v11 }
 0x2c8   : > { %v4219_v30 = vshrl.u32 %v15749_v25, %v4217_v6  ;;  %v4222_v15 = vadd.s32 127, %v4221_v51  ;;  %v1851_v28 = vmul.u32 %v1849_v41, %v1846_v11  ;;  %v1852_v6 = vmul.u32 %v1848_v1, %v1847_v32 }
 0x2c9   : > { %20573 = vst [vmem:[#allocation78_spill] sm:$0xff] %v15823_v0  ;;  %v9388_v43 = vadd.s32 3, %v15816_v2  ;;  %v1873_v42 = vmul.u32 %v1871_v39, %v1846_v11  ;;  %v1853_v26 = vmul.u32 %v1849_v41, %v1847_v32  ;;  %v1874_v13 = vmul.u32 %v1870_v21, %v1847_v32 }
 0x2ca   : > { %v4220_v10 = vor.u32 %v4219_v30, %v4218_v35  ;;  %v4223_v25 = vshll.u32 %v4222_v15, 23  ;;  %v1854_v34 = vshll.u32 %v1851_v28, 16  ;;  %v1856_v18 = vshll.u32 %v1852_v6, 16 }
 0x2cb   : > { %v1872_v58 = vmul.u32 %v1870_v21, %v1846_v11  ;;  %v1876_v35 = vshll.u32 %v1873_v42, 16  ;;  %vm6911_vm2 = vcmp.eq.s32.totalorder %v15826_v7, 0  ;;  %vm6914_vm7 = vcmp.eq.s32.totalorder %v15826_v7, 2 }
 0x2cc   : > { %v4224_v48 = vor.u32 4788187, %v4223_v25  ;;  %v4227_v51 = vcvt.s32.f32 %v4220_v10  ;;  %vm1858_vm13 = vc.u32 %v1850_v20, %v1854_v34  ;;  %v1860_v49 = vadd.s32 %v1854_v34, %v1850_v20 }
 0x2cd   : > { %v1855_v30 = vshrl.u32 %v1851_v28, 16  ;;  %v1859_v15 = vsel %vm1858_vm13, 1, %v20499_v56  ;;  %v1875_v10 = vmul.u32 %v1871_v39, %v1847_v32  ;;  %v1857_v41 = vshrl.u32 %v1852_v6, 16 }
 0x2ce   : > { %v4225_v38 = vand.u32 2147483647, %v4224_v48  ;;  %v1861_v25 = vadd.s32 %v1859_v15, %v1853_v26  ;;  %vm1862_vm12 = vc.u32 %v1860_v49, %v1856_v18  ;;  %v1878_v57 = vshll.u32 %v1874_v13, 16 }
 0x2cf   : > { %v1863_v48 = vsel %vm1862_vm12, 1, %v20499_v56  ;;  %vm1880_vm1 = vc.u32 %v1872_v58, %v1876_v35  ;;  %v1882_v11 = vadd.s32 %v1876_v35, %v1872_v58  ;;  %v1877_v61 = vshrl.u32 %v1873_v42, 16 }
 0x2d0   : > { %v4228_v1 = vmul.f32 %v4227_v51, %v4225_v38  ;;  %v1865_v21 = vadd.s32 %v1863_v48, %v1861_v25  ;;  %v1881_v52 = vsel %vm1880_vm1, 1, %v20499_v56  ;;  %vm4272_vm14 = vcmp.gt.s32.totalorder %v4271_v60, 0 }
 0x2d1   : > { %v1883_v28 = vadd.s32 %v1881_v52, %v1875_v10  ;;  %vm1884_vm13 = vc.u32 %v1882_v11, %v1878_v57  ;;  %v15837_v32 = vadd.s32 %v1882_v11, %v1878_v57  ;;  %v4273_v58 = vsel %vm4272_vm14, %v4271_v60, 0 }
 0x2d2   : > { %v4229_v9 = vxor.u32 2147483648, %v4228_v1  ;;  %v1866_v6 = vadd.s32 %v1865_v21, %v1855_v30  ;;  %v1885_v51 = vsel %vm1884_vm13, 1, %v20499_v56  ;;  %vm20351_vm12 = vweird.f32 %v15433_v40 }
 0x2d3   : > { %v1879_v26 = vshrl.u32 %v1874_v13, 16  ;;  %v1887_v34 = vadd.s32 %v1885_v51, %v1883_v28  ;;  %v4275_v18 = vand.u32 31, %v4273_v58  ;;  %v15850_v12 = vand.u32 3, %v9388_v43 }
 0x2d4   : > { %v4230_v20 = vsel %vm4109_vm3, %v4229_v9, %v4228_v1  ;;  %vm6910_vm3 = vcmp.lt.s32.totalorder %v15826_v7, 2  ;;  %v20574_v9 = vxor.u32 2147483648, %v15823_v0  ;;  %v15852_v57 = vadd.s32 %v1866_v6, %v1857_v41 }
 0x2d5   : > { %v4233_v39 = vsel %vm15777_vm11, %v15452_v55, %v4230_v20  ;;  %v1888_v35 = vadd.s32 %v1887_v34, %v1877_v61  ;;  %v4276_v49 = vsub.s32 32, %v4275_v18  ;;  %v20575_v13 = vxor.u32 2147483648, %v15804_v19 }
 0x2d6   : > { %v4235_v42 = vmul.f32 %v4233_v39, %v4233_v39  ;;  %v6913_v52 = vsel %vm6911_vm2, %v15804_v19, %v20574_v9  ;;  %v1890_v30 = vmul.u32 %v15782_v46, %v15820_v36  ;;  %vm1892_vm11 = vc.u32 %v15852_v57, %v15837_v32 }
 0x2d7   : > { %v6916_v1 = vsel %vm6914_vm7, %v20575_v13, %v15823_v0  ;;  %v4278_v43 = vshll.u32 %v20495_v27, %v4275_v18  ;;  %v1889_v41 = vadd.s32 %v1888_v35, %v1879_v26  ;;  %v4281_v61 = vshll.u32 %v20500_v8, %v4275_v18 }
 0x2d8   : > { %v4236_v38 = vmul.f32 -0.001358992, %v4235_v42  ;;  %v4243_v60 = vmul.f32 -0.00019511016, %v4235_v42  ;;  %v4279_v25 = vshrl.u32 %v20500_v8, %v4276_v49  ;;  %v4282_v48 = vshrl.u32 %v20501_v50, %v4276_v49 }
 0x2d9   : > { %v4284_v11 = vshll.u32 %v20501_v50, %v4275_v18  ;;  %v4285_v21 = vshrl.u32 %v20502_v14, %v4276_v49  ;;  %v1893_v36 = vadd.s32 1, %v1889_v41  ;;  %v4287_v28 = vshll.u32 %v20502_v14, %v4275_v18 }
 0x2da   : > { %v4237_v15 = vadd.f32 0.041655596, %v4236_v38  ;;  %v4244_v10 = vadd.f32 0.008332121, %v4243_v60  ;;  %v6917_v6 = vsel %vm6910_vm3, %v6913_v52, %v6916_v1  ;;  %vm9394_vm2 = vcmp.eq.s32.totalorder %v15850_v12, 2 }
 0x2db   : > { %v15873_v51 = vshrl.u32 %v4273_v58, 5  ;;  %v4288_v26 = vshrl.u32 %v20503_v37, %v4276_v49  ;;  %v1894_v38 = vsel %vm1892_vm11, %v1893_v36, %v1889_v41  ;;  %v4290_v60 = vshll.u32 %v20503_v37, %v4275_v18 }
 0x2dc   : > { %v4238_v20 = vmul.f32 %v4237_v15, %v4235_v42  ;;  %v4245_v46 = vmul.f32 %v4244_v10, %v4235_v42  ;;  %vm20313_vm7 = vweird.f32 %v15452_v55  ;;  %v1895_v35 = vadd.s32 %v1894_v38, %v1890_v30 }
 0x2dd   : > { %v4280_v13 = vor.u32 %v4279_v25, %v4278_v43  ;;  %v4289_v7 = vor.u32 %v4288_v26, %v4287_v28  ;;  %v4291_v52 = vshrl.u32 %v20505_v59, %v4276_v49  ;;  %v4283_v15 = vor.u32 %v4282_v48, %v4281_v61 }
 0x2de   : > { %v4239_v34 = vadd.f32 -0.4999988, %v4238_v20  ;;  %v4246_v9 = vadd.f32 -0.16666654, %v4245_v46  ;;  %v4286_v10 = vor.u32 %v4285_v21, %v4284_v11  ;;  %v6918_v20 = vsel %vm20351_vm12, nan, %v6917_v6 }
 0x2df   : > { %v1896_v46 = vadd.s32 536870912, %v1895_v35  ;;  %vm4293_vm1 = vcmp.lt.s32.totalorder %v15873_v51, 1  ;;  %vm4295_vm14 = vcmp.lt.s32.totalorder %v15873_v51, 3  ;;  %v4292_v30 = vor.u32 %v4291_v52, %v4290_v60 }
 0x2e0   : > { %v4240_v1 = vmul.f32 %v4239_v34, %v4235_v42  ;;  %v4247_v58 = vmul.f32 %v4246_v9, %v4235_v42  ;;  %vm4296_vm13 = vcmp.lt.s32.totalorder %v15873_v51, 4  ;;  %vm4294_vm3 = vcmp.lt.s32.totalorder %v15873_v51, 2 }
 0x2e1   : > { %v15889_v43 = vshrl.u32 %v1896_v46, 30  ;;  %v4302_v42 = vsel %vm4296_vm13, %v4289_v7, 920167782  ;;  %v20577_v61 = vor.u32 8388608, %v15769_v62  ;;  %v4301_v21 = vsel %vm4293_vm1, %v4280_v13, %v4283_v15  ;;  %v622_v46 = vld [vmem:[%s13759_s0 + $0x40] sm:$0xff] }
 0x2e2   : > { %v15886_v18 = vadd.f32 1.0, %v4240_v1  ;;  %v4248_v41 = vadd.f32 1.0, %v4247_v58  ;;  %v4303_v36 = vsel %vm4295_vm14, %v4286_v10, %v4302_v42  ;;  %vm9390_vm11 = vcmp.lt.s32.totalorder %v15850_v12, 2 }
 0x2e3   : > { %v15896_v25 = vshll.u32 %v20577_v61, 8  ;;  %vm9391_vm4 = vcmp.eq.s32.totalorder %v15850_v12, 0  ;;  %v10800_v28 = vmul.f32 %v6918_v20, %v15734_v44  ;;  %v1898_v62 = vshll.u32 %v15889_v43, 30 }
 0x2e4   : > { %20576 = vst [vmem:[#allocation79_spill] sm:$0xff] %v15886_v18  ;;  %v15898_v48 = vmul.f32 %v4248_v41, %v4233_v39  ;;  %v20250_v11 = vxor.u32 2147483648, %v15886_v18  ;;  %v4305_v26 = vsel %vm4293_vm1, %v4283_v15, %v4286_v10  ;;  %v4306_v34 = vsel %vm4296_vm13, %v4292_v30, 1326507024 }
 0x2e5   : > { %v15919_v9 = vsub.s32 %v1895_v35, %v1898_v62  ;;  %v4277_v38 = vshrl.u32 %v20495_v27, %v4276_v49  ;;  %v4304_v60 = vsel %vm4294_vm3, %v4301_v21, %v4303_v36  ;;  %v4307_v52 = vsel %vm4295_vm14, %v4289_v7, %v4306_v34 }
 0x2e6   : > { %20578 = vst [vmem:[#allocation80_spill] sm:$0xff] %v15898_v48  ;;  %v20251_v39 = vxor.u32 2147483648, %v15898_v48  ;;  %v9396_v6 = vsel %vm9394_vm2, %v20250_v11, %v15898_v48  ;;  %v4308_v58 = vsel %vm4294_vm3, %v4305_v26, %v4307_v52  ;;  %v4310_v20 = vand.u32 65535, %v15896_v25 }
 0x2e7   : > { %v4311_v35 = vshrl.u32 %v15896_v25, 16  ;;  %vm1900_vm2 = vcmp.lt.s32.totalorder %v15919_v9, 0  ;;  %v1901_v41 = vsub.s32 0, %v15919_v9  ;;  %v4312_v7 = vand.u32 65535, %v4308_v58 }
 0x2e8   : > { %v9393_v1 = vsel %vm9391_vm4, %v15886_v18, %v20251_v39  ;;  %v4313_v42 = vshrl.u32 %v4308_v58, 16  ;;  %v4334_v61 = vand.u32 65535, %v4304_v60  ;;  %v4335_v21 = vshrl.u32 %v4304_v60, 16 }
 0x2e9   : > { %v9397_v49 = vsel %vm9390_vm11, %v9393_v1, %v9396_v6  ;;  %v1902_v62 = vsel %vm1900_vm2, %v1901_v41, %v15919_v9  ;;  %v4316_v26 = vmul.u32 %v4312_v7, %v4311_v35  ;;  %v15944_v12 = vsel %vm652_vm0, %v622_v46, 0.0 }
 0x2ea   : > { %v9398_v30 = vsel %vm20313_vm7, nan, %v9397_v49  ;;  %20579 = vst [vmem:[#allocation81_spill] sm:$0xff] %v15944_v12  ;;  %v1903_v6 = vclz %v1902_v62  ;;  %v4298_v34 = vsel %vm4296_vm13, %v4286_v10, 2102212464  ;;  %v4314_v52 = vmul.u32 %v4312_v7, %v4310_v20 }
 0x2eb   : > { %v10816_v36 = vmul.f32 %v9398_v30, %v15738_v3  ;;  %v4315_v1 = vmul.u32 %v4313_v42, %v4310_v20  ;;  %v1891_v58 = vadd.s32 %v15837_v32, %v15852_v57  ;;  %v4297_v60 = vsel %vm4293_vm1, %v4277_v38, %v4280_v13 }
 0x2ec   : > { %v4337_v49 = vmul.u32 %v4335_v21, %v4310_v20  ;;  %v12720_v41 = vadd.s32 4294967294, %v1903_v6  ;;  %v4317_v30 = vmul.u32 %v4313_v42, %v4311_v35  ;;  %v4338_v29 = vmul.u32 %v4334_v61, %v4311_v35 }
 0x2ed   : > { %v13242_v11 = vpack.i.bf16 %v10816_v36, %v10800_v28  ;;  %v4318_v39 = vshll.u32 %v4315_v1, 16  ;;  %v4299_v46 = vsel %vm4295_vm14, %v4283_v15, %v4298_v34  ;;  %v4320_v62 = vshll.u32 %v4316_v26, 16 }
 0x2ee   : > { %v4336_v10 = vmul.u32 %v4334_v61, %v4310_v20  ;;  %v4340_v7 = vshll.u32 %v4337_v49, 16  ;;  %vm12721_vm4 = vcmp.lt.s32.totalorder %v12720_v41, 0  ;;  %v4321_v28 = vshrl.u32 %v4316_v26, 16 }
 0x2ef   : > { %13243 = vxpose.xlu0.b32.cont [7/16] %v13242_v11, 128  ;;  %vm4322_vm13 = vc.u32 %v4314_v52, %v4318_v39  ;;  %v4324_v36 = vadd.s32 %v4318_v39, %v4314_v52  ;;  %v1906_v32 = vsel %vm12721_vm4, 0, %v12720_v41  ;;  %v4339_v13 = vmul.u32 %v4335_v21, %v4311_v35 }
 0x2f0   : > { %v4323_v57 = vsel %vm4322_vm13, 1, %v20499_v56  ;;  %v4342_v38 = vshll.u32 %v4338_v29, 16  ;;  %v1907_v6 = vsub.s32 32, %v1906_v32  ;;  %v1908_v42 = vshll.u32 %v15919_v9, %v1906_v32 }
 0x2f1   : > { %v1911_v54 = vsub.s32 4294967266, %v1906_v32  ;;  %v4325_v11 = vadd.s32 %v4323_v57, %v4317_v30  ;;  %v4319_v3 = vshrl.u32 %v4315_v1, 16  ;;  %vm4326_vm1 = vc.u32 %v4324_v36, %v4320_v62 }
 0x2f2   : > { %vm4344_vm14 = vc.u32 %v4336_v10, %v4340_v7  ;;  %v4346_v15 = vadd.s32 %v4340_v7, %v4336_v10  ;;  %v1909_v20 = vshrl.u32 %v1891_v58, %v1907_v6  ;;  %v4327_v26 = vsel %vm4326_vm1, 1, %v20499_v56 }
 0x2f3   : > { %v1912_v61 = vadd.s32 127, %v1911_v54  ;;  %v4345_v39 = vsel %vm4344_vm14, 1, %v20499_v56  ;;  %v4329_v34 = vadd.s32 %v4327_v26, %v4325_v11  ;;  %v4341_v52 = vshrl.u32 %v4337_v49, 16 }
 0x2f4   : > { %v4347_v41 = vadd.s32 %v4345_v39, %v4339_v13  ;;  %vm4348_vm11 = vc.u32 %v4346_v15, %v4342_v38  ;;  %v1910_v35 = vor.u32 %v1909_v20, %v1908_v42  ;;  %v1954_v1 = vand.u32 2139095040, %v15944_v12 }
 0x2f5   : > { %v1913_v21 = vshll.u32 %v1912_v61, 23  ;;  %v4349_v9 = vsel %vm4348_vm11, 1, %v20499_v56  ;;  %v4330_v30 = vadd.s32 %v4329_v34, %v4319_v3  ;;  %v4343_v62 = vshrl.u32 %v4338_v29, 16  ;;  %v638_v3 = vld [vmem:[%s13759_s0 + $0xc0] sm:$0xff]  ;;  %v588_v34 = vld [vmem:[%s14075_s18 + $0x38] sm:$0xff] }
 0x2f6   : > { %v4351_v10 = vadd.s32 %v4349_v9, %v4347_v41  ;;  %v1917_v54 = vcvt.s32.f32 %v1910_v35  ;;  %v15960_v7 = vadd.s32 %v4346_v15, %v4342_v38  ;;  %v1955_v36 = vshrl.u32 %v1954_v1, 23 }
 0x2f7   : > { %v1914_v58 = vor.u32 4788187, %v1913_v21  ;;  %v4300_v49 = vsel %vm4294_vm3, %v4297_v60, %v4299_v46  ;;  %v15964_v32 = vadd.s32 %v4330_v30, %v4321_v28  ;;  %v20257_v13 = vand.u32 2147483647, %v15944_v12 }
 0x2f8   : > { %v4352_v57 = vadd.s32 %v4351_v10, %v4341_v52  ;;  %v12722_v42 = vadd.s32 4294967169, %v1955_v36  ;;  %v4354_v20 = vmul.u32 %v15896_v25, %v4300_v49  ;;  %vm1799_vm3 = vcmp.lt.s32.totalorder %v15701_v4, 0  ;;  %v604_v52 = vld [vmem:[%s14075_s18 + $0xb8] sm:$0xff] }
 0x2f9   : > { %v1915_v6 = vand.u32 2147483647, %v1914_v58  ;;  %vm4356_vm2 = vc.u32 %v15964_v32, %v15960_v7  ;;  %v1921_v51 = vsub.s32 4, %v15889_v43  ;;  %v1958_v46 = vand.u32 8388607, %v20257_v13 }
 0x2fa   : > { %v4353_v11 = vadd.s32 %v4352_v57, %v4343_v62  ;;  %v1961_v38 = vadd.s32 1, %v12722_v42  ;;  %v20580_v28 = vand.u32 2147483647, %v15701_v4  ;;  %v15983_v25 = vsel %vm652_vm0, %v638_v3, 0.0 }
 0x2fb   : > { %v1918_v29 = vmul.f32 %v1917_v54, %v1915_v6  ;;  %20583 = vst [vmem:[#allocation82_spill] sm:$0xff] %v15983_v25  ;;  %v1922_v9 = vsel %vm1799_vm3, %v1921_v51, %v15889_v43  ;;  %v1959_v30 = vor.u32 8388608, %v1958_v46  ;;  %v4418_v62 = vand.u32 2139095040, %v15983_v25 }
 0x2fc   : > { %v4357_v60 = vadd.s32 1, %v4353_v11  ;;  %vm15977_vm4 = vcmp.le.f32.partialorder %v20580_v28, 0.7853982  ;;  %vm1962_vm13 = vcmp.gt.s32.totalorder %v1961_v38, 0  ;;  %v15998_v54 = vsel %vm652_vm0, %v588_v34, 0.0 }
 0x2fd   : > { %v1919_v61 = vxor.u32 2147483648, %v1918_v29  ;;  %v1963_v39 = vsel %vm1962_vm13, %v1961_v38, 0  ;;  %20584 = vst [vmem:[#allocation83_spill] sm:$0xff] %v15998_v54  ;;  %v16002_v36 = vsel %vm652_vm0, %v604_v52, 0.0  ;;  %v16006_v49 = vsel %vm15977_vm4, 0, %v1922_v9 }
 0x2fe   : > { %v4358_v26 = vsel %vm4356_vm2, %v4357_v60, %v4353_v11  ;;  %v1965_v21 = vand.u32 31, %v1963_v39  ;;  %20585 = vst [vmem:[#allocation84_spill] sm:$0xff] %v16002_v36  ;;  %v16008_v11 = vshrl.u32 %v1963_v39, 5  ;;  %v16010_v3 = vshll.u32 %v1959_v30, 8 }
 0x2ff   : > { %v1920_v41 = vsel %vm1799_vm3, %v1919_v61, %v1918_v29  ;;  %v4359_v35 = vadd.s32 %v4358_v26, %v4354_v20  ;;  %20586 = vst [vmem:[#allocation85_spill] sm:$0xff] %v16006_v49  ;;  %v4419_v20 = vshrl.u32 %v4418_v62, 23  ;;  %vm4263_vm1 = vcmp.lt.s32.totalorder %v15730_v23, 0 }
 0x300   : > { %v15991_v1 = vsel %vm15977_vm4, %v15701_v4, %v1920_v41  ;;  %v1966_v43 = vsub.s32 32, %v1965_v21  ;;  %v1968_v46 = vshll.u32 %v20495_v27, %v1965_v21  ;;  %v1971_v28 = vshll.u32 %v20500_v8, %v1965_v21 }
 0x301   : > { %v1925_v10 = vmul.f32 %v15991_v1, %v15991_v1  ;;  %v4360_v58 = vadd.s32 536870912, %v4359_v35  ;;  %v1974_v15 = vshll.u32 %v20501_v50, %v1965_v21  ;;  %v1977_v61 = vshll.u32 %v20502_v14, %v1965_v21 }
 0x302   : > { %v1978_v26 = vshrl.u32 %v20503_v37, %v1966_v43  ;;  %v1980_v41 = vshll.u32 %v20503_v37, %v1965_v21  ;;  %v1969_v9 = vshrl.u32 %v20500_v8, %v1966_v43  ;;  %v1972_v30 = vshrl.u32 %v20501_v50, %v1966_v43 }
 0x303   : > { %v1926_v57 = vmul.f32 -0.001358992, %v1925_v10  ;;  %v1933_v6 = vmul.f32 -0.00019511016, %v1925_v10  ;;  %v4361_v42 = vshrl.u32 %v4360_v58, 30  ;;  %v1975_v62 = vshrl.u32 %v20502_v14, %v1966_v43 }
 0x304   : > { %v1981_v58 = vshrl.u32 %v20505_v59, %v1966_v43  ;;  %v20587_v29 = vand.u32 2147483647, %v15730_v23  ;;  %v1979_v21 = vor.u32 %v1978_v26, %v1977_v61  ;;  %vm1986_vm2 = vcmp.lt.s32.totalorder %v16008_v11, 4 }
 0x305   : > { %v1927_v38 = vadd.f32 0.041655596, %v1926_v57  ;;  %v1934_v51 = vadd.f32 0.008332121, %v1933_v6  ;;  %v4362_v60 = vshll.u32 %v4361_v42, 30  ;;  %v1970_v18 = vor.u32 %v1969_v9, %v1968_v46 }
 0x306   : > { %vm16026_vm11 = vcmp.le.f32.partialorder %v20587_v29, 0.7853982  ;;  %v1973_v29 = vor.u32 %v1972_v30, %v1971_v28  ;;  %v1982_v48 = vor.u32 %v1981_v58, %v1980_v41  ;;  %v1976_v16 = vor.u32 %v1975_v62, %v1974_v15 }
 0x307   : > { %v1928_v39 = vmul.f32 %v1927_v38, %v1925_v10  ;;  %v1935_v34 = vmul.f32 %v1934_v51, %v1925_v10  ;;  %v4363_v52 = vsub.s32 %v4359_v35, %v4362_v60  ;;  %v4355_v35 = vadd.s32 %v15960_v7, %v15964_v32 }
 0x308   : > { %v12770_v51 = vadd.s32 4294967169, %v4419_v20  ;;  %v20590_v60 = vand.u32 2147483647, %v15983_v25  ;;  %vm1983_vm3 = vcmp.lt.s32.totalorder %v16008_v11, 1  ;;  %v2000_v7 = vand.u32 65535, %v16010_v3 }
 0x309   : > { %v1929_v57 = vadd.f32 -0.4999988, %v1928_v39  ;;  %v1936_v6 = vadd.f32 -0.16666654, %v1935_v34  ;;  %vm4364_vm14 = vcmp.lt.s32.totalorder %v4363_v52, 0  ;;  %v4365_v13 = vsub.s32 0, %v4363_v52 }
 0x30a   : > { %v16034_v55 = vand.u32 8388607, %v20590_v60  ;;  %v4385_v34 = vsub.s32 4, %v4361_v42  ;;  %v1967_v20 = vshrl.u32 %v20495_v27, %v1966_v43  ;;  %vm1985_vm4 = vcmp.lt.s32.totalorder %v16008_v11, 3 }
 0x30b   : > { %v1937_v24 = vmul.f32 %v1936_v6, %v1925_v10  ;;  %v4366_v39 = vsel %vm4364_vm14, %v4365_v13, %v4363_v52  ;;  %v1930_v22 = vmul.f32 %v1929_v57, %v1925_v10  ;;  %v1992_v13 = vsel %vm1986_vm2, %v1979_v21, 920167782 }
 0x30c   : > { %v4367_v63 = vclz %v4366_v39  ;;  %v4386_v46 = vsel %vm4263_vm1, %v4385_v34, %v4361_v42  ;;  %vm1984_vm13 = vcmp.lt.s32.totalorder %v16008_v11, 2  ;;  %v1988_v10 = vsel %vm1986_vm2, %v1976_v16, 2102212464 }
 0x30d   : > { %v1938_v61 = vadd.f32 1.0, %v1937_v24  ;;  %v7063_v28 = vadd.s32 3, %v16006_v49  ;;  %v1996_v43 = vsel %vm1986_vm2, %v1982_v48, 1326507024  ;;  %v16053_v15 = vadd.f32 1.0, %v1930_v22 }
 0x30e   : > { %v12768_v32 = vadd.s32 4294967294, %v4367_v63  ;;  %v1991_v63 = vsel %vm1983_vm3, %v1970_v18, %v1973_v29  ;;  %v1993_v42 = vsel %vm1985_vm4, %v1976_v16, %v1992_v13  ;;  %v1995_v26 = vsel %vm1983_vm3, %v1973_v29, %v1976_v16 }
 0x30f   : > { %20591 = vst [vmem:[#allocation86_spill] sm:$0xff] %v16053_v15  ;;  %v1997_v62 = vsel %vm1985_vm4, %v1979_v21, %v1996_v43  ;;  %v16062_v58 = vmul.f32 %v1938_v61, %v15991_v1  ;;  %v16066_v22 = vsel %vm16026_vm11, 0, %v4386_v46  ;;  %v2001_v48 = vshrl.u32 %v16010_v3, 16 }
 0x310   : > { %vm12769_vm14 = vcmp.lt.s32.totalorder %v12768_v32, 0  ;;  %20593 = vst [vmem:[#allocation88_spill] sm:$0xff] %v16066_v22  ;;  %v4425_v57 = vadd.s32 1, %v12770_v51  ;;  %v16069_v39 = vand.u32 3, %v7063_v28  ;;  %v1994_v16 = vsel %vm1984_vm13, %v1991_v63, %v1993_v42 }
 0x311   : > { %v4370_v24 = vsel %vm12769_vm14, 0, %v12768_v32  ;;  %20592 = vst [vmem:[#allocation87_spill] sm:$0xff] %v16062_v58  ;;  %v1987_v1 = vsel %vm1983_vm3, %v1967_v20, %v1970_v18  ;;  %v1989_v21 = vsel %vm1985_vm4, %v1973_v29, %v1988_v10  ;;  %v1998_v34 = vsel %vm1984_vm13, %v1995_v26, %v1997_v62 }
 0x312   : > { %v4371_v41 = vsub.s32 32, %v4370_v24  ;;  %v4372_v9 = vshll.u32 %v4363_v52, %v4370_v24  ;;  %v4375_v30 = vsub.s32 4294967266, %v4370_v24  ;;  %v20273_v52 = vxor.u32 2147483648, %v16053_v15 }
 0x313   : > { %v2002_v13 = vand.u32 65535, %v1998_v34  ;;  %v20276_v61 = vxor.u32 2147483648, %v16062_v58  ;;  %v2003_v46 = vshrl.u32 %v1998_v34, 16  ;;  %v2024_v28 = vand.u32 65535, %v1994_v16 }
 0x314   : > { %v4373_v6 = vshrl.u32 %v4355_v35, %v4371_v41  ;;  %v4376_v60 = vadd.s32 127, %v4375_v30  ;;  %v9543_v35 = vadd.s32 3, %v16066_v22  ;;  %v2025_v63 = vshrl.u32 %v1994_v16, 16 }
 0x315   : > { %vm4426_vm2 = vcmp.gt.s32.totalorder %v4425_v57, 0  ;;  %vm7066_vm3 = vcmp.eq.s32.totalorder %v16069_v39, 0  ;;  %v2006_v18 = vmul.u32 %v2002_v13, %v2001_v48  ;;  %vm7069_vm4 = vcmp.eq.s32.totalorder %v16069_v39, 2 }
 0x316   : > { %v4374_v32 = vor.u32 %v4373_v6, %v4372_v9  ;;  %v4377_v51 = vshll.u32 %v4376_v60, 23  ;;  %v2004_v29 = vmul.u32 %v2002_v13, %v2000_v7  ;;  %v2005_v20 = vmul.u32 %v2003_v46, %v2000_v7 }
 0x317   : > { %v2027_v10 = vmul.u32 %v2025_v63, %v2000_v7  ;;  %vm7065_vm14 = vcmp.lt.s32.totalorder %v16069_v39, 2  ;;  %v2026_v26 = vmul.u32 %v2024_v28, %v2000_v7  ;;  %v2028_v41 = vmul.u32 %v2024_v28, %v2001_v48 }
 0x318   : > { %v4378_v43 = vor.u32 4788187, %v4377_v51  ;;  %v4381_v24 = vcvt.s32.f32 %v4374_v32  ;;  %v2007_v9 = vmul.u32 %v2003_v46, %v2001_v48  ;;  %v2008_v30 = vshll.u32 %v2005_v20, 16 }
 0x319   : > { %v2010_v62 = vshll.u32 %v2006_v18, 16  ;;  %v2030_v6 = vshll.u32 %v2027_v10, 16  ;;  %v7068_v16 = vsel %vm7066_vm3, %v16053_v15, %v20276_v61  ;;  %v7071_v34 = vsel %vm7069_vm4, %v20273_v52, %v16062_v58 }
 0x31a   : > { %v4379_v42 = vand.u32 2147483647, %v4378_v43  ;;  %v2029_v32 = vmul.u32 %v2025_v63, %v2001_v48  ;;  %v2009_v51 = vshrl.u32 %v2005_v20, 16  ;;  %vm2012_vm9 = vc.u32 %v2004_v29, %v2008_v30 }
 0x31b   : > { %v2014_v13 = vadd.s32 %v2008_v30, %v2004_v29  ;;  %v2032_v43 = vshll.u32 %v2028_v41, 16  ;;  %v2013_v46 = vsel %vm2012_vm9, 1, %v20499_v56  ;;  %vm2034_vm15 = vc.u32 %v2026_v26, %v2030_v6 }
 0x31c   : > { %v4382_v60 = vmul.f32 %v4381_v24, %v4379_v42  ;;  %v2036_v28 = vadd.s32 %v2030_v6, %v2026_v26  ;;  %v2015_v31 = vadd.s32 %v2013_v46, %v2007_v9  ;;  %v2031_v24 = vshrl.u32 %v2027_v10, 16 }
 0x31d   : > { %vm2016_vm5 = vc.u32 %v2014_v13, %v2010_v62  ;;  %v2035_v42 = vsel %vm2034_vm15, 1, %v20499_v56  ;;  %vm20355_vm3 = vweird.f32 %v15701_v4  ;;  %v2011_v20 = vshrl.u32 %v2006_v18, 16 }
 0x31e   : > { %v4383_v7 = vxor.u32 2147483648, %v4382_v60  ;;  %v2017_v48 = vsel %vm2016_vm5, 1, %v20499_v56  ;;  %v2037_v63 = vadd.s32 %v2035_v42, %v2029_v32  ;;  %vm2038_vm4 = vc.u32 %v2036_v28, %v2032_v43 }
 0x31f   : > { %v2019_v26 = vadd.s32 %v2017_v48, %v2015_v31  ;;  %v2039_v9 = vsel %vm2038_vm4, 1, %v20499_v56  ;;  %v2033_v30 = vshrl.u32 %v2028_v41, 16  ;;  %v4427_v6 = vsel %vm4426_vm2, %v4425_v57, 0 }
 0x320   : > { %v4384_v52 = vsel %vm4263_vm1, %v4383_v7, %v4382_v60  ;;  %v2041_v62 = vadd.s32 %v2039_v9, %v2037_v63  ;;  %v1990_v60 = vsel %vm1984_vm13, %v1987_v1, %v1989_v21  ;;  %v16104_v7 = vadd.s32 %v2036_v28, %v2032_v43 }
 0x321   : > { %v4387_v29 = vsel %vm16026_vm11, %v15730_v23, %v4384_v52  ;;  %v2020_v13 = vadd.s32 %v2019_v26, %v2009_v51  ;;  %v4429_v32 = vand.u32 31, %v4427_v6  ;;  %v4423_v52 = vor.u32 8388608, %v16034_v55 }
 0x322   : > { %v4389_v10 = vmul.f32 %v4387_v29, %v4387_v29  ;;  %v2042_v38 = vadd.s32 %v2041_v62, %v2031_v24  ;;  %v7072_v31 = vsel %vm7065_vm14, %v7068_v16, %v7071_v34  ;;  %v16109_v18 = vand.u32 3, %v9543_v35 }
 0x323   : > { %v16111_v41 = vadd.s32 %v2020_v13, %v2011_v20  ;;  %v4430_v57 = vsub.s32 32, %v4429_v32  ;;  %v2044_v21 = vmul.u32 %v16010_v3, %v1990_v60  ;;  %v4432_v51 = vshll.u32 %v20495_v27, %v4429_v32 }
 0x324   : > { %v4390_v46 = vmul.f32 -0.001358992, %v4389_v10  ;;  %v4397_v42 = vmul.f32 -0.00019511016, %v4389_v10  ;;  %v2043_v1 = vadd.s32 %v2042_v38, %v2033_v30  ;;  %v4435_v39 = vshll.u32 %v20500_v8, %v4429_v32 }
 0x325   : > { %vm2046_vm15 = vc.u32 %v16111_v41, %v16104_v7  ;;  %v4433_v55 = vshrl.u32 %v20500_v8, %v4430_v57  ;;  %v4436_v43 = vshrl.u32 %v20501_v50, %v4430_v57  ;;  %v4438_v28 = vshll.u32 %v20501_v50, %v4429_v32 }
 0x326   : > { %v4391_v48 = vadd.f32 0.041655596, %v4390_v46  ;;  %v4398_v11 = vadd.f32 0.008332121, %v4397_v42  ;;  %v2047_v34 = vadd.s32 1, %v2043_v1  ;;  %v4439_v24 = vshrl.u32 %v20502_v14, %v4430_v57 }
 0x327   : > { %v4441_v3 = vshll.u32 %v20502_v14, %v4429_v32  ;;  %v4442_v63 = vshrl.u32 %v20503_v37, %v4430_v57  ;;  %vm9545_vm9 = vcmp.lt.s32.totalorder %v16109_v18, 2  ;;  %v16125_v30 = vshrl.u32 %v4427_v6, 5 }
 0x328   : > { %v4392_v16 = vmul.f32 %v4391_v48, %v4389_v10  ;;  %v4399_v35 = vmul.f32 %v4398_v11, %v4389_v10  ;;  %v2048_v9 = vsel %vm2046_vm15, %v2047_v34, %v2043_v1  ;;  %vm20334_vm5 = vweird.f32 %v15730_v23 }
 0x329   : > { %v7073_v62 = vsel %vm20355_vm3, nan, %v7072_v31  ;;  %vm9549_vm1 = vcmp.eq.s32.totalorder %v16109_v18, 2  ;;  %v2049_v60 = vadd.s32 %v2048_v9, %v2044_v21  ;;  %v4434_v13 = vor.u32 %v4433_v55, %v4432_v51 }
 0x32a   : > { %v4393_v20 = vadd.f32 -0.4999988, %v4392_v16  ;;  %v4400_v26 = vadd.f32 -0.16666654, %v4399_v35  ;;  %v16131_v38 = vor.u32 %v4436_v43, %v4435_v39  ;;  %v4444_v48 = vshll.u32 %v20503_v37, %v4429_v32 }
 0x32b   : > { %v2050_v11 = vadd.s32 536870912, %v2049_v60  ;;  %v4440_v16 = vor.u32 %v4439_v24, %v4438_v28  ;;  %v4443_v1 = vor.u32 %v4442_v63, %v4441_v3  ;;  %v4445_v6 = vshrl.u32 %v20505_v59, %v4430_v57 }
 0x32c   : > { %v4394_v46 = vmul.f32 %v4393_v20, %v4389_v10  ;;  %v4401_v42 = vmul.f32 %v4400_v26, %v4389_v10  ;;  %vm4447_vm11 = vcmp.lt.s32.totalorder %v16125_v30, 1  ;;  %vm4450_vm13 = vcmp.lt.s32.totalorder %v16125_v30, 4 }
 0x32d   : > { %v16139_v31 = vshrl.u32 %v2050_v11, 30  ;;  %v4446_v21 = vor.u32 %v4445_v6, %v4444_v48  ;;  %vm4449_vm2 = vcmp.lt.s32.totalorder %v16125_v30, 3  ;;  %v16142_v10 = vshll.u32 %v4423_v52, 8 }
 0x32e   : > { %v16135_v35 = vadd.f32 1.0, %v4394_v46  ;;  %v4402_v34 = vadd.f32 1.0, %v4401_v42  ;;  %vm9546_vm14 = vcmp.eq.s32.totalorder %v16109_v18, 0  ;;  %v10801_v55 = vmul.f32 %v7073_v62, %v15998_v54  ;;  %v623_v62 = vld [vmem:[%s13759_s0 + $0x48] sm:$0xff] }
 0x32f   : > { %v2052_v39 = vshll.u32 %v16139_v31, 30  ;;  %vm4448_vm4 = vcmp.lt.s32.totalorder %v16125_v30, 2  ;;  %v4455_v43 = vsel %vm4447_vm11, %v4434_v13, %v16131_v38  ;;  %v4456_v52 = vsel %vm4450_vm13, %v4443_v1, 920167782 }
 0x330   : > { %20594 = vst [vmem:[#allocation89_spill] sm:$0xff] %v16135_v35  ;;  %v16144_v32 = vmul.f32 %v4402_v34, %v4387_v29  ;;  %v20274_v51 = vxor.u32 2147483648, %v16135_v35  ;;  %v4457_v24 = vsel %vm4449_vm2, %v4440_v16, %v4456_v52  ;;  %v4459_v3 = vsel %vm4447_vm11, %v16131_v38, %v4440_v16 }
 0x331   : > { %v16167_v63 = vsub.s32 %v2049_v60, %v2052_v39  ;;  %v4431_v20 = vshrl.u32 %v20495_v27, %v4430_v57  ;;  %v4460_v26 = vsel %vm4450_vm13, %v4446_v21, 1326507024  ;;  %v4464_v9 = vand.u32 65535, %v16142_v10 }
 0x332   : > { %20595 = vst [vmem:[#allocation90_spill] sm:$0xff] %v16144_v32  ;;  %v20275_v29 = vxor.u32 2147483648, %v16144_v32  ;;  %v9551_v28 = vsel %vm9549_vm1, %v20274_v51, %v16144_v32  ;;  %v4458_v42 = vsel %vm4448_vm4, %v4455_v43, %v4457_v24  ;;  %v4461_v48 = vsel %vm4449_vm2, %v4443_v1, %v4460_v26 }
 0x333   : > { %v4465_v60 = vshrl.u32 %v16142_v10, 16  ;;  %vm2054_vm15 = vcmp.lt.s32.totalorder %v16167_v63, 0  ;;  %v2055_v11 = vsub.s32 0, %v16167_v63  ;;  %v4462_v6 = vsel %vm4448_vm4, %v4459_v3, %v4461_v48 }
 0x334   : > { %v9548_v46 = vsel %vm9546_vm14, %v16135_v35, %v20275_v29  ;;  %v4466_v21 = vand.u32 65535, %v4462_v6  ;;  %v4467_v39 = vshrl.u32 %v4462_v6, 16  ;;  %v16192_v1 = vsel %vm652_vm0, %v623_v62, 0.0 }
 0x335   : > { %v9552_v57 = vsel %vm9545_vm9, %v9548_v46, %v9551_v28  ;;  %20596 = vst [vmem:[#allocation91_spill] sm:$0xff] %v16192_v1  ;;  %v2056_v18 = vsel %vm2054_vm15, %v2055_v11, %v16167_v63  ;;  %v4488_v52 = vand.u32 65535, %v4458_v42  ;;  %v4489_v28 = vshrl.u32 %v4458_v42, 16 }
 0x336   : > { %v9553_v34 = vsel %vm20334_vm5, nan, %v9552_v57  ;;  %v2057_v24 = vclz %v2056_v18  ;;  %v4468_v26 = vmul.u32 %v4466_v21, %v4464_v9  ;;  %v4469_v46 = vmul.u32 %v4467_v39, %v4464_v9 }
 0x337   : > { %v10817_v43 = vmul.f32 %v9553_v34, %v16002_v36  ;;  %v4470_v51 = vmul.u32 %v4466_v21, %v4465_v60  ;;  %v2045_v48 = vadd.s32 %v16104_v7, %v16111_v41  ;;  %v4451_v57 = vsel %vm4447_vm11, %v4431_v20, %v4434_v13 }
 0x338   : > { %v4491_v6 = vmul.u32 %v4489_v28, %v4464_v9  ;;  %v12723_v62 = vadd.s32 4294967294, %v2057_v24  ;;  %v4452_v34 = vsel %vm4450_vm13, %v4440_v16, 2102212464  ;;  %v4471_v29 = vmul.u32 %v4467_v39, %v4465_v60 }
 0x339   : > { %v13244_v3 = vpack.i.bf16 %v10817_v43, %v10801_v55  ;;  %v4472_v11 = vshll.u32 %v4469_v46, 16  ;;  %v4474_v42 = vshll.u32 %v4470_v51, 16  ;;  %v4490_v18 = vmul.u32 %v4488_v52, %v4464_v9 }
 0x33a   : > { %v4492_v61 = vmul.u32 %v4488_v52, %v4465_v60  ;;  %v4494_v36 = vshll.u32 %v4491_v6, 16  ;;  %vm12724_vm9 = vcmp.lt.s32.totalorder %v12723_v62, 0  ;;  %v4473_v55 = vshrl.u32 %v4469_v46, 16 }
 0x33b   : > { %13245 = vxpose.xlu0.b32.cont [8/16] %v13244_v3, 128  ;;  %vm4476_vm1 = vc.u32 %v4468_v26, %v4472_v11  ;;  %v4478_v21 = vadd.s32 %v4472_v11, %v4468_v26  ;;  %v2060_v7 = vsel %vm12724_vm9, 0, %v12723_v62  ;;  %v4493_v13 = vmul.u32 %v4489_v28, %v4465_v60 }
 0x33c   : > { %v4477_v41 = vsel %vm4476_vm1, 1, %v20499_v56  ;;  %v4496_v20 = vshll.u32 %v4492_v61, 16  ;;  %v2061_v43 = vsub.s32 32, %v2060_v7  ;;  %v2062_v24 = vshll.u32 %v16167_v63, %v2060_v7 }
 0x33d   : > { %v2065_v16 = vsub.s32 4294967266, %v2060_v7  ;;  %v4479_v39 = vadd.s32 %v4477_v41, %v4471_v29  ;;  %v4475_v45 = vshrl.u32 %v4470_v51, 16  ;;  %vm4480_vm11 = vc.u32 %v4478_v21, %v4474_v42 }
 0x33e   : > { %vm4498_vm13 = vc.u32 %v4490_v18, %v4494_v36  ;;  %v4500_v9 = vadd.s32 %v4494_v36, %v4490_v18  ;;  %v2063_v52 = vshrl.u32 %v2045_v48, %v2061_v43  ;;  %v4481_v46 = vsel %vm4480_vm11, 1, %v20499_v56 }
 0x33f   : > { %v2066_v3 = vadd.s32 127, %v2065_v16  ;;  %v4499_v26 = vsel %vm4498_vm13, 1, %v20499_v56  ;;  %v4483_v62 = vadd.s32 %v4481_v46, %v4479_v39  ;;  %v4495_v11 = vshrl.u32 %v4491_v6, 16 }
 0x340   : > { %v4501_v23 = vadd.s32 %v4499_v26, %v4493_v13  ;;  %vm4502_vm14 = vc.u32 %v4500_v9, %v4496_v20  ;;  %v2064_v60 = vor.u32 %v2063_v52, %v2062_v24  ;;  %v4453_v51 = vsel %vm4449_vm2, %v16131_v38, %v4452_v34  ;;  %v639_v34 = vld [vmem:[%s13759_s0 + $0xc8] sm:$0xff] }
 0x341   : > { %v2067_v28 = vshll.u32 %v2066_v3, 23  ;;  %v4503_v29 = vsel %vm4502_vm14, 1, %v20499_v56  ;;  %v4484_v36 = vadd.s32 %v4483_v62, %v4473_v55  ;;  %v4497_v63 = vshrl.u32 %v4492_v61, 16  ;;  %v589_v3 = vld [vmem:[%s14075_s18 + $0x40] sm:$0xff] }
 0x342   : > { %v4505_v48 = vadd.s32 %v4503_v29, %v4501_v23  ;;  %v2108_v42 = vand.u32 2139095040, %v16192_v1  ;;  %v2071_v21 = vcvt.s32.f32 %v2064_v60  ;;  %v16211_v7 = vadd.s32 %v4500_v9, %v4496_v20  ;;  %v605_v60 = vld [vmem:[%s14075_s18 + $0xc0] sm:$0xff] }
 0x343   : > { %v2068_v18 = vor.u32 4788187, %v2067_v28  ;;  %v4454_v6 = vsel %vm4448_vm4, %v4451_v57, %v4453_v51  ;;  %v16215_v41 = vadd.s32 %v4484_v36, %v4475_v45  ;;  %vm1953_vm15 = vcmp.lt.s32.totalorder %v15944_v12, 0 }
 0x344   : > { %v4506_v13 = vadd.s32 %v4505_v48, %v4495_v11  ;;  %v2109_v43 = vshrl.u32 %v2108_v42, 23  ;;  %v4508_v23 = vmul.u32 %v16142_v10, %v4454_v6  ;;  %v20281_v45 = vand.u32 2147483647, %v16192_v1 }
 0x345   : > { %v2069_v24 = vand.u32 2147483647, %v2068_v18  ;;  %vm4510_vm2 = vc.u32 %v16215_v41, %v16211_v7  ;;  %v20597_v20 = vand.u32 2147483647, %v15944_v12  ;;  %v2075_v9 = vsub.s32 4, %v16139_v31 }
 0x346   : > { %v4507_v38 = vadd.s32 %v4506_v13, %v4497_v63  ;;  %v12725_v55 = vadd.s32 4294967169, %v2109_v43  ;;  %v16232_v10 = vsel %vm652_vm0, %v639_v34, 0.0  ;;  %v2112_v51 = vand.u32 8388607, %v20281_v45 }
 0x347   : > { %v2072_v61 = vmul.f32 %v2071_v21, %v2069_v24  ;;  %vm16225_vm4 = vcmp.le.f32.partialorder %v20597_v20, 0.7853982  ;;  %20600 = vst [vmem:[#allocation92_spill] sm:$0xff] %v16232_v10  ;;  %v20280_v11 = vand.u32 2147483647, %v16232_v10  ;;  %v4572_v36 = vand.u32 2139095040, %v16232_v10 }
 0x348   : > { %v4511_v30 = vadd.s32 1, %v4507_v38  ;;  %v2115_v57 = vadd.s32 1, %v12725_v55  ;;  %v2076_v63 = vsel %vm1953_vm15, %v2075_v9, %v16139_v31  ;;  %v16254_v18 = vsel %vm652_vm0, %v589_v3, 0.0 }
 0x349   : > { %v2073_v39 = vxor.u32 2147483648, %v2072_v61  ;;  %20601 = vst [vmem:[#allocation93_spill] sm:$0xff] %v16254_v18  ;;  %v16258_v6 = vsel %vm652_vm0, %v605_v60, 0.0  ;;  %v2113_v31 = vor.u32 8388608, %v2112_v51  ;;  %v4573_v34 = vshrl.u32 %v4572_v36, 23 }
 0x34a   : > { %v4512_v52 = vsel %vm4510_vm2, %v4511_v30, %v4507_v38  ;;  %vm2116_vm9 = vcmp.gt.s32.totalorder %v2115_v57, 0  ;;  %20602 = vst [vmem:[#allocation94_spill] sm:$0xff] %v16258_v6  ;;  %v16262_v38 = vsel %vm16225_vm4, 0, %v2076_v63  ;;  %v16266_v55 = vand.u32 8388607, %v20280_v11 }
 0x34b   : > { %v2074_v46 = vsel %vm1953_vm15, %v2073_v39, %v2072_v61  ;;  %v4513_v26 = vadd.s32 %v4512_v52, %v4508_v23  ;;  %v2117_v62 = vsel %vm2116_vm9, %v2115_v57, 0  ;;  %20603 = vst [vmem:[#allocation95_spill] sm:$0xff] %v16262_v38  ;;  %vm4417_vm1 = vcmp.lt.s32.totalorder %v15983_v25, 0 }
 0x34c   : > { %v16242_v28 = vsel %vm16225_vm4, %v15944_v12, %v2074_v46  ;;  %v2119_v29 = vand.u32 31, %v2117_v62  ;;  %v16268_v57 = vshrl.u32 %v2117_v62, 5  ;;  %v20604_v11 = vand.u32 2147483647, %v15983_v25 }
 0x34d   : > { %v2079_v48 = vmul.f32 %v16242_v28, %v16242_v28  ;;  %v4514_v42 = vadd.s32 536870912, %v4513_v26  ;;  %v16292_v40 = vshll.u32 %v2113_v31, 8  ;;  %vm20352_vm6 = vweird.f32 %v15983_v25 }
 0x34e   : > { %v2120_v21 = vsub.s32 32, %v2119_v29  ;;  %v2122_v20 = vshll.u32 %v20495_v27, %v2119_v29  ;;  %v2125_v39 = vshll.u32 %v20500_v8, %v2119_v29  ;;  %v2131_v16 = vshll.u32 %v20502_v14, %v2119_v29 }
 0x34f   : > { %v2080_v13 = vmul.f32 -0.001358992, %v2079_v48  ;;  %v2087_v43 = vmul.f32 -0.00019511016, %v2079_v48  ;;  %v4515_v24 = vshrl.u32 %v4514_v42, 30  ;;  %v2128_v60 = vshll.u32 %v20501_v50, %v2119_v29 }
 0x350   : > { %v2132_v9 = vshrl.u32 %v20503_v37, %v2120_v21  ;;  %v2123_v51 = vshrl.u32 %v20500_v8, %v2120_v21  ;;  %v2126_v62 = vshrl.u32 %v20501_v50, %v2120_v21  ;;  %v2134_v36 = vshll.u32 %v20503_v37, %v2119_v29 }
 0x351   : > { %v2081_v61 = vadd.f32 0.041655596, %v2080_v13  ;;  %v2088_v23 = vadd.f32 0.008332121, %v2087_v43  ;;  %v4516_v30 = vshll.u32 %v4515_v24, 30  ;;  %v2135_v63 = vshrl.u32 %v20505_v59, %v2120_v21 }
 0x352   : > { %v2129_v43 = vshrl.u32 %v20502_v14, %v2120_v21  ;;  %vm16283_vm13 = vcmp.le.f32.partialorder %v20604_v11, 0.7853982  ;;  %vm2140_vm14 = vcmp.lt.s32.totalorder %v16268_v57, 4  ;;  %v2124_v17 = vor.u32 %v2123_v51, %v2122_v20 }
 0x353   : > { %v2082_v52 = vmul.f32 %v2081_v61, %v2079_v48  ;;  %v2089_v3 = vmul.f32 %v2088_v23, %v2079_v48  ;;  %v4517_v46 = vsub.s32 %v4513_v26, %v4516_v30  ;;  %v4509_v26 = vadd.s32 %v16211_v7, %v16215_v41 }
 0x354   : > { %v2133_v23 = vor.u32 %v2132_v9, %v2131_v16  ;;  %v12773_v30 = vadd.s32 4294967169, %v4573_v34  ;;  %v2127_v44 = vor.u32 %v2126_v62, %v2125_v39  ;;  %v2136_v35 = vor.u32 %v2135_v63, %v2134_v36 }
 0x355   : > { %v2090_v42 = vadd.f32 -0.16666654, %v2089_v3  ;;  %vm4518_vm11 = vcmp.lt.s32.totalorder %v4517_v46, 0  ;;  %v4519_v13 = vsub.s32 0, %v4517_v46  ;;  %v2083_v45 = vadd.f32 -0.4999988, %v2082_v52 }
 0x356   : > { %v4539_v3 = vsub.s32 4, %v4515_v24  ;;  %v2130_v32 = vor.u32 %v2129_v43, %v2128_v60  ;;  %vm2137_vm2 = vcmp.lt.s32.totalorder %v16268_v57, 1  ;;  %vm2139_vm15 = vcmp.lt.s32.totalorder %v16268_v57, 3 }
 0x357   : > { %v4520_v2 = vsel %vm4518_vm11, %v4519_v13, %v4517_v46  ;;  %v2091_v11 = vmul.f32 %v2090_v42, %v2079_v48  ;;  %v2146_v41 = vsel %vm2140_vm14, %v2133_v23, 920167782  ;;  %v16297_v34 = vadd.s32 1, %v12773_v30 }
 0x358   : > { %v4521_v53 = vclz %v4520_v2  ;;  %v2084_v16 = vmul.f32 %v2083_v45, %v2079_v48  ;;  %v4540_v2 = vsel %vm4417_vm1, %v4539_v3, %v4515_v24  ;;  %v2121_v20 = vshrl.u32 %v20495_v27, %v2120_v21 }
 0x359   : > { %vm2138_vm4 = vcmp.lt.s32.totalorder %v16268_v57, 2  ;;  %v2142_v31 = vsel %vm2140_vm14, %v2130_v32, 2102212464  ;;  %v2150_v39 = vsel %vm2140_vm14, %v2136_v35, 1326507024  ;;  %v2092_v9 = vadd.f32 1.0, %v2091_v11 }
 0x35a   : > { %v12771_v7 = vadd.s32 4294967294, %v4521_v53  ;;  %v2145_v53 = vsel %vm2137_vm2, %v2124_v17, %v2127_v44  ;;  %v2147_v45 = vsel %vm2139_vm15, %v2130_v32, %v2146_v41  ;;  %v2149_v48 = vsel %vm2137_vm2, %v2127_v44, %v2130_v32 }
 0x35b   : > { %v2151_v51 = vsel %vm2139_vm15, %v2133_v23, %v2150_v39  ;;  %v16317_v62 = vsel %vm16283_vm13, 0, %v4540_v2  ;;  %v2141_v35 = vsel %vm2137_vm2, %v2121_v20, %v2124_v17  ;;  %v2143_v36 = vsel %vm2139_vm15, %v2127_v44, %v2142_v31 }
 0x35c   : > { %vm12772_vm9 = vcmp.lt.s32.totalorder %v12771_v7, 0  ;;  %20607 = vst [vmem:[#allocation96_spill] sm:$0xff] %v16317_v62  ;;  %v2155_v63 = vshrl.u32 %v16292_v40, 16  ;;  %v2148_v13 = vsel %vm2138_vm4, %v2145_v53, %v2147_v45  ;;  %v16327_v43 = vadd.f32 1.0, %v2084_v16 }
 0x35d   : > { %v4524_v52 = vsel %vm12772_vm9, 0, %v12771_v7  ;;  %v16330_v23 = vmul.f32 %v2092_v9, %v16242_v28  ;;  %v2152_v17 = vsel %vm2138_vm4, %v2149_v48, %v2151_v51  ;;  %v2154_v30 = vand.u32 65535, %v16292_v40 }
 0x35e   : > { %v4525_v21 = vsub.s32 32, %v4524_v52  ;;  %v4526_v24 = vshll.u32 %v4517_v46, %v4524_v52  ;;  %v4529_v60 = vsub.s32 4294967266, %v4524_v52  ;;  %v7218_v46 = vadd.s32 3, %v16262_v38  ;;  %20608 = vst [vmem:[#allocation97_spill] sm:$0xff] %v16327_v43 }
 0x35f   : > { %20609 = vst [vmem:[#allocation98_spill] sm:$0xff] %v16330_v23  ;;  %v2156_v11 = vand.u32 65535, %v2152_v17  ;;  %v16338_v7 = vsel %vm2138_vm4, %v2141_v35, %v2143_v36  ;;  %v2157_v41 = vshrl.u32 %v2152_v17, 16  ;;  %v2178_v16 = vand.u32 65535, %v2148_v13 }
 0x360   : > { %v4527_v42 = vshrl.u32 %v4509_v26, %v4525_v21  ;;  %v4530_v32 = vadd.s32 127, %v4529_v60  ;;  %v9698_v26 = vadd.s32 3, %v16317_v62  ;;  %v2179_v2 = vshrl.u32 %v2148_v13, 16 }
 0x361   : > { %vm4580_vm11 = vcmp.gt.s32.totalorder %v16297_v34, 0  ;;  %v16341_v31 = vand.u32 3, %v7218_v46  ;;  %v2160_v53 = vmul.u32 %v2156_v11, %v2155_v63  ;;  %v20293_v39 = vxor.u32 2147483648, %v16327_v43 }
 0x362   : > { %v4528_v44 = vor.u32 %v4527_v42, %v4526_v24  ;;  %v4531_v3 = vshll.u32 %v4530_v32, 23  ;;  %v2158_v9 = vmul.u32 %v2156_v11, %v2154_v30  ;;  %v2159_v52 = vmul.u32 %v2157_v41, %v2154_v30 }
 0x363   : > { %v2181_v45 = vmul.u32 %v2179_v2, %v2154_v30  ;;  %v20294_v48 = vxor.u32 2147483648, %v16330_v23  ;;  %v16345_v21 = vand.u32 3, %v9698_v26  ;;  %v2182_v24 = vmul.u32 %v2178_v16, %v2155_v63 }
 0x364   : > { %v4532_v28 = vor.u32 4788187, %v4531_v3  ;;  %v4535_v20 = vcvt.s32.f32 %v4528_v44  ;;  %v2161_v60 = vmul.u32 %v2157_v41, %v2155_v63  ;;  %v2162_v51 = vshll.u32 %v2159_v52, 16 }
 0x365   : > { %v2164_v35 = vshll.u32 %v2160_v53, 16  ;;  %v2180_v36 = vmul.u32 %v2178_v16, %v2154_v30  ;;  %vm7221_vm14 = vcmp.eq.s32.totalorder %v16341_v31, 0  ;;  %vm7224_vm2 = vcmp.eq.s32.totalorder %v16341_v31, 2 }
 0x366   : > { %v4533_v57 = vand.u32 2147483647, %v4532_v28  ;;  %v2165_v32 = vshrl.u32 %v2160_v53, 16  ;;  %vm2166_vm15 = vc.u32 %v2158_v9, %v2162_v51  ;;  %v2168_v46 = vadd.s32 %v2162_v51, %v2158_v9 }
 0x367   : > { %v2183_v13 = vmul.u32 %v2179_v2, %v2155_v63  ;;  %v2184_v17 = vshll.u32 %v2181_v45, 16  ;;  %v2163_v3 = vshrl.u32 %v2159_v52, 16  ;;  %v2167_v26 = vsel %vm2166_vm15, 1, %v20499_v56 }
 0x368   : > { %v4536_v42 = vmul.f32 %v4535_v20, %v4533_v57  ;;  %v2186_v11 = vshll.u32 %v2182_v24, 16  ;;  %v2169_v28 = vadd.s32 %v2167_v26, %v2161_v60  ;;  %vm2170_vm4 = vc.u32 %v2168_v46, %v2164_v35 }
 0x369   : > { %vm2188_vm9 = vc.u32 %v2180_v36, %v2184_v17  ;;  %v2190_v41 = vadd.s32 %v2184_v17, %v2180_v36  ;;  %v2171_v16 = vsel %vm2170_vm4, 1, %v20499_v56  ;;  %v2185_v20 = vshrl.u32 %v2181_v45, 16 }
 0x36a   : > { %v4537_v44 = vxor.u32 2147483648, %v4536_v42  ;;  %v2189_v53 = vsel %vm2188_vm9, 1, %v20499_v56  ;;  %v2173_v2 = vadd.s32 %v2171_v16, %v2169_v28  ;;  %v2187_v57 = vshrl.u32 %v2182_v24, 16 }
 0x36b   : > { %v2191_v9 = vadd.s32 %v2189_v53, %v2183_v13  ;;  %vm2192_vm15 = vc.u32 %v2190_v41, %v2186_v11  ;;  %v4581_v51 = vsel %vm4580_vm11, %v16297_v34, 0  ;;  %v16361_v36 = vadd.s32 %v2190_v41, %v2186_v11 }
 0x36c   : > { %v4538_v30 = vsel %vm4417_vm1, %v4537_v44, %v4536_v42  ;;  %v2193_v60 = vsel %vm2192_vm15, 1, %v20499_v56  ;;  %v2174_v35 = vadd.s32 %v2173_v2, %v2163_v3  ;;  %v4583_v42 = vand.u32 31, %v4581_v51 }
 0x36d   : > { %v4541_v63 = vsel %vm16283_vm13, %v15983_v25, %v4538_v30  ;;  %v2195_v45 = vadd.s32 %v2193_v60, %v2191_v9  ;;  %vm20395_vm1 = vweird.f32 %v15944_v12  ;;  %vm7220_vm13 = vcmp.lt.s32.totalorder %v16341_v31, 2 }
 0x36e   : > { %v4543_v52 = vmul.f32 %v4541_v63, %v4541_v63  ;;  %v7223_v24 = vsel %vm7221_vm14, %v16327_v43, %v20294_v48  ;;  %v7226_v34 = vsel %vm7224_vm2, %v20293_v39, %v16330_v23  ;;  %v16375_v13 = vadd.s32 %v2174_v35, %v2165_v32 }
 0x36f   : > { %v2196_v17 = vadd.s32 %v2195_v45, %v2185_v20  ;;  %v4584_v44 = vsub.s32 32, %v4583_v42  ;;  %v2198_v11 = vmul.u32 %v16292_v40, %v16338_v7  ;;  %v4586_v28 = vshll.u32 %v20495_v27, %v4583_v42 }
 0x370   : > { %v4544_v61 = vmul.f32 -0.001358992, %v4543_v52  ;;  %v4551_v46 = vmul.f32 -0.00019511016, %v4543_v52  ;;  %vm2200_vm11 = vc.u32 %v16375_v13, %v16361_v36  ;;  %v4589_v30 = vshll.u32 %v20500_v8, %v4583_v42 }
 0x371   : > { %v2197_v41 = vadd.s32 %v2196_v17, %v2187_v57  ;;  %v4592_v16 = vshll.u32 %v20501_v50, %v4583_v42  ;;  %v4587_v20 = vshrl.u32 %v20500_v8, %v4584_v44  ;;  %v4590_v2 = vshrl.u32 %v20501_v50, %v4584_v44 }
 0x372   : > { %v4545_v3 = vadd.f32 0.041655596, %v4544_v61  ;;  %v4552_v26 = vadd.f32 0.008332121, %v4551_v46  ;;  %v4593_v60 = vshrl.u32 %v20502_v14, %v4584_v44  ;;  %v4595_v40 = vshll.u32 %v20502_v14, %v4583_v42 }
 0x373   : > { %v2201_v9 = vadd.s32 1, %v2197_v41  ;;  %v4596_v7 = vshrl.u32 %v20503_v37, %v4584_v44  ;;  %v7227_v45 = vsel %vm7220_vm13, %v7223_v24, %v7226_v34  ;;  %vm9700_vm14 = vcmp.lt.s32.totalorder %v16345_v21, 2 }
 0x374   : > { %v4546_v53 = vmul.f32 %v4545_v3, %v4543_v52  ;;  %v4553_v32 = vmul.f32 %v4552_v26, %v4543_v52  ;;  %v16392_v61 = vshrl.u32 %v4581_v51, 5  ;;  %vm9701_vm2 = vcmp.eq.s32.totalorder %v16345_v21, 0 }
 0x375   : > { %vm9704_vm4 = vcmp.eq.s32.totalorder %v16345_v21, 2  ;;  %v2202_v46 = vsel %vm2200_vm11, %v2201_v9, %v2197_v41  ;;  %v4598_v17 = vshll.u32 %v20503_v37, %v4583_v42  ;;  %v4591_v31 = vor.u32 %v4590_v2, %v4589_v30  ;;  %v624_v21 = vld [vmem:[%s13759_s0 + $0x50] sm:$0xff] }
 0x376   : > { %v4547_v57 = vadd.f32 -0.4999988, %v4546_v53  ;;  %v4554_v35 = vadd.f32 -0.16666654, %v4553_v32  ;;  %v2203_v53 = vadd.s32 %v2202_v46, %v2198_v11  ;;  %v4588_v32 = vor.u32 %v4587_v20, %v4586_v28 }
 0x377   : > { %v4594_v24 = vor.u32 %v4593_v60, %v4592_v16  ;;  %v4597_v34 = vor.u32 %v4596_v7, %v4595_v40  ;;  %v4599_v51 = vshrl.u32 %v20505_v59, %v4584_v44  ;;  %vm4601_vm9 = vcmp.lt.s32.totalorder %v16392_v61, 1 }
 0x378   : > { %v4548_v3 = vmul.f32 %v4547_v57, %v4543_v52  ;;  %v4555_v26 = vmul.f32 %v4554_v35, %v4543_v52  ;;  %v2204_v29 = vadd.s32 536870912, %v2203_v53  ;;  %v7228_v41 = vsel %vm20395_vm1, nan, %v7227_v45 }
 0x379   : > { %v4600_v9 = vor.u32 %v4599_v51, %v4598_v17  ;;  %vm4604_vm15 = vcmp.lt.s32.totalorder %v16392_v61, 4  ;;  %v20611_v52 = vor.u32 8388608, %v16266_v55  ;;  %vm4603_vm13 = vcmp.lt.s32.totalorder %v16392_v61, 3 }
 0x37a   : > { %v16401_v39 = vadd.f32 1.0, %v4548_v3  ;;  %v4556_v48 = vadd.f32 1.0, %v4555_v26  ;;  %v16414_v30 = vshrl.u32 %v2204_v29, 30  ;;  %vm4602_vm11 = vcmp.lt.s32.totalorder %v16392_v61, 2 }
 0x37b   : > { %v16409_v42 = vshll.u32 %v20611_v52, 8  ;;  %v4609_v16 = vsel %vm4601_vm9, %v4588_v32, %v4591_v31  ;;  %v4610_v20 = vsel %vm4604_vm15, %v4597_v34, 920167782  ;;  %v4614_v55 = vsel %vm4604_vm15, %v4600_v9, 1326507024 }
 0x37c   : > { %20610 = vst [vmem:[#allocation99_spill] sm:$0xff] %v16401_v39  ;;  %v16411_v11 = vmul.f32 %v4556_v48, %v4541_v63  ;;  %v20296_v28 = vxor.u32 2147483648, %v16401_v39  ;;  %v2206_v63 = vshll.u32 %v16414_v30, 30  ;;  %v4613_v2 = vsel %vm4601_vm9, %v4591_v31, %v4594_v24 }
 0x37d   : > { %v10802_v60 = vmul.f32 %v7228_v41, %v16254_v18  ;;  %v4611_v40 = vsel %vm4603_vm13, %v4594_v24, %v4610_v20  ;;  %v4615_v7 = vsel %vm4603_vm13, %v4597_v34, %v4614_v55  ;;  %v4585_v45 = vshrl.u32 %v20495_v27, %v4584_v44 }
 0x37e   : > { %20612 = vst [vmem:[#allocation100_spill] sm:$0xff] %v16411_v11  ;;  %v20297_v48 = vxor.u32 2147483648, %v16411_v11  ;;  %v9706_v29 = vsel %vm9704_vm4, %v20296_v28, %v16411_v11  ;;  %v2207_v35 = vsub.s32 %v2203_v53, %v2206_v63  ;;  %v4612_v46 = vsel %vm4602_vm11, %v4609_v16, %v4611_v40 }
 0x37f   : > { %v4616_v3 = vsel %vm4602_vm11, %v4613_v2, %v4615_v7  ;;  %v4618_v26 = vand.u32 65535, %v16409_v42  ;;  %v4619_v34 = vshrl.u32 %v16409_v42, 16  ;;  %v4642_v52 = vand.u32 65535, %v4612_v46 }
 0x380   : > { %v9703_v57 = vsel %vm9701_vm2, %v16401_v39, %v20297_v48  ;;  %vm2208_vm2 = vcmp.lt.s32.totalorder %v2207_v35, 0  ;;  %v2209_v53 = vsub.s32 0, %v2207_v35  ;;  %v4620_v41 = vand.u32 65535, %v4616_v3 }
 0x381   : > { %v9707_v17 = vsel %vm9700_vm14, %v9703_v57, %v9706_v29  ;;  %v4621_v9 = vshrl.u32 %v4616_v3, 16  ;;  %v4643_v16 = vshrl.u32 %v4612_v46, 16  ;;  %v4606_v55 = vsel %vm4604_vm15, %v4594_v24, 2102212464 }
 0x382   : > { %v9708_v51 = vsel %vm20352_vm6, nan, %v9707_v17  ;;  %v2210_v20 = vsel %vm2208_vm2, %v2209_v53, %v2207_v35  ;;  %v4624_v29 = vmul.u32 %v4620_v41, %v4619_v34  ;;  %v4622_v40 = vmul.u32 %v4620_v41, %v4618_v26 }
 0x383   : > { %v10818_v44 = vmul.f32 %v9708_v51, %v16258_v6  ;;  %v2211_v2 = vclz %v2210_v20  ;;  %v4623_v7 = vmul.u32 %v4621_v9, %v4618_v26  ;;  %v2199_v57 = vadd.s32 %v16361_v36, %v16375_v13 }
 0x384   : > { %v4605_v17 = vsel %vm4601_vm9, %v4585_v45, %v4588_v32  ;;  %v4645_v51 = vmul.u32 %v4643_v16, %v4618_v26  ;;  %v16465_v46 = vsel %vm652_vm0, %v624_v21, 0.0  ;;  %v4625_v53 = vmul.u32 %v4621_v9, %v4619_v34 }
 0x385   : > { %v13246_v63 = vpack.i.bf16 %v10818_v44, %v10802_v60  ;;  %20613 = vst [vmem:[#allocation101_spill] sm:$0xff] %v16465_v46  ;;  %v12726_v3 = vadd.s32 4294967294, %v2211_v2  ;;  %v4626_v24 = vshll.u32 %v4623_v7, 16  ;;  %v4646_v28 = vmul.u32 %v4642_v52, %v4619_v34 }
 0x386   : > { %v4607_v60 = vsel %vm4603_vm13, %v4591_v31, %v4606_v55  ;;  %v4628_v41 = vshll.u32 %v4624_v29, 16  ;;  %v4644_v44 = vmul.u32 %v4642_v52, %v4618_v26  ;;  %v4648_v20 = vshll.u32 %v4645_v51, 16 }
 0x387   : > { %13247 = vxpose.xlu0.b32.cont [9/16] %v13246_v63, 128  ;;  %vm12727_vm14 = vcmp.lt.s32.totalorder %v12726_v3, 0  ;;  %v4629_v36 = vshrl.u32 %v4624_v29, 16  ;;  %vm4630_vm4 = vc.u32 %v4622_v40, %v4626_v24  ;;  %v4632_v13 = vadd.s32 %v4626_v24, %v4622_v40 }
 0x388   : > { %v2214_v32 = vsel %vm12727_vm14, 0, %v12726_v3  ;;  %v4631_v45 = vsel %vm4630_vm4, 1, %v20499_v56  ;;  %v4647_v21 = vmul.u32 %v4643_v16, %v4619_v34  ;;  %v4650_v48 = vshll.u32 %v4646_v28, 16 }
 0x389   : > { %v2215_v63 = vsub.s32 32, %v2214_v32  ;;  %v2216_v2 = vshll.u32 %v2207_v35, %v2214_v32  ;;  %v2219_v9 = vsub.s32 4294967266, %v2214_v32  ;;  %v4633_v6 = vadd.s32 %v4631_v45, %v4625_v53 }
 0x38a   : > { %v4627_v19 = vshrl.u32 %v4623_v7, 16  ;;  %vm4634_vm9 = vc.u32 %v4632_v13, %v4628_v41  ;;  %vm4652_vm15 = vc.u32 %v4644_v44, %v4648_v20  ;;  %v4654_v31 = vadd.s32 %v4648_v20, %v4644_v44 }
 0x38b   : > { %v2217_v55 = vshrl.u32 %v2199_v57, %v2215_v63  ;;  %v2220_v26 = vadd.s32 127, %v2219_v9  ;;  %v4635_v52 = vsel %vm4634_vm9, 1, %v20499_v56  ;;  %v4653_v29 = vsel %vm4652_vm15, 1, %v20499_v56 }
 0x38c   : > { %v4637_v40 = vadd.s32 %v4635_v52, %v4633_v6  ;;  %v4649_v3 = vshrl.u32 %v4645_v51, 16  ;;  %v4655_v24 = vadd.s32 %v4653_v29, %v4647_v21  ;;  %vm4656_vm13 = vc.u32 %v4654_v31, %v4650_v48  ;;  %v590_v29 = vld [vmem:[%s14075_s18 + $0x48] sm:$0xff] }
 0x38d   : > { %v2218_v34 = vor.u32 %v2217_v55, %v2216_v2  ;;  %v2221_v16 = vshll.u32 %v2220_v26, 23  ;;  %v4657_v35 = vsel %vm4656_vm13, 1, %v20499_v56  ;;  %v2262_v7 = vand.u32 2139095040, %v16465_v46  ;;  %v640_v55 = vld [vmem:[%s13759_s0 + $0xd0] sm:$0xff] }
 0x38e   : > { %v4638_v53 = vadd.s32 %v4637_v40, %v4627_v19  ;;  %v4651_v41 = vshrl.u32 %v4646_v28, 16  ;;  %v4659_v44 = vadd.s32 %v4657_v35, %v4655_v24  ;;  %v4658_v13 = vadd.s32 %v4654_v31, %v4650_v48  ;;  %v606_v40 = vld [vmem:[%s14075_s18 + $0xc8] sm:$0xff] }
 0x38f   : > { %v2222_v57 = vor.u32 4788187, %v2221_v16  ;;  %v2225_v20 = vcvt.s32.f32 %v2218_v34  ;;  %v2263_v32 = vshrl.u32 %v2262_v7, 23  ;;  %v4608_v6 = vsel %vm4602_vm11, %v4605_v17, %v4607_v60 }
 0x390   : > { %v4639_v51 = vadd.s32 %v4638_v53, %v4629_v36  ;;  %v4660_v45 = vadd.s32 %v4659_v44, %v4649_v3  ;;  %v2229_v2 = vsub.s32 4, %v16414_v30  ;;  %v4662_v28 = vmul.u32 %v16409_v42, %v4608_v6 }
 0x391   : > { %v2223_v21 = vand.u32 2147483647, %v2222_v57  ;;  %v12728_v63 = vadd.s32 4294967169, %v2263_v32  ;;  %vm2107_vm14 = vcmp.lt.s32.totalorder %v16192_v1, 0  ;;  %v20302_v61 = vand.u32 2147483647, %v16465_v46 }
 0x392   : > { %v4661_v9 = vadd.s32 %v4660_v45, %v4651_v41  ;;  %vm4664_vm2 = vc.u32 %v4639_v51, %v4658_v13  ;;  %v20614_v17 = vand.u32 2147483647, %v16192_v1  ;;  %v16489_v31 = vsel %vm652_vm0, %v640_v55, 0.0 }
 0x393   : > { %v2226_v19 = vmul.f32 %v2225_v20, %v2223_v21  ;;  %v2269_v26 = vadd.s32 1, %v12728_v63  ;;  %20617 = vst [vmem:[#allocation102_spill] sm:$0xff] %v16489_v31  ;;  %v2230_v24 = vsel %vm2107_vm14, %v2229_v2, %v16414_v30  ;;  %v2266_v7 = vand.u32 8388607, %v20302_v61 }
 0x394   : > { %v4665_v48 = vadd.s32 1, %v4661_v9  ;;  %vm16483_vm11 = vcmp.le.f32.partialorder %v20614_v17, 0.7853982  ;;  %v20301_v53 = vand.u32 2147483647, %v16489_v31  ;;  %v4726_v41 = vand.u32 2139095040, %v16489_v31 }
 0x395   : > { %v2227_v36 = vxor.u32 2147483648, %v2226_v19  ;;  %vm2270_vm4 = vcmp.gt.s32.totalorder %v2269_v26, 0  ;;  %v16507_v30 = vsel %vm652_vm0, %v590_v29, 0.0  ;;  %v16511_v20 = vsel %vm652_vm0, %v606_v40, 0.0 }
 0x396   : > { %v4666_v42 = vsel %vm4664_vm2, %v4665_v48, %v4661_v9  ;;  %v2271_v52 = vsel %vm2270_vm4, %v2269_v26, 0  ;;  %20618 = vst [vmem:[#allocation103_spill] sm:$0xff] %v16507_v30  ;;  %v16515_v32 = vsel %vm16483_vm11, 0, %v2230_v24  ;;  %v16517_v2 = vadd.s32 %v4658_v13, %v4639_v51 }
 0x397   : > { %v2228_v3 = vsel %vm2107_vm14, %v2227_v36, %v2226_v19  ;;  %v4667_v34 = vadd.s32 %v4666_v42, %v4662_v28  ;;  %v2273_v16 = vand.u32 31, %v2271_v52  ;;  %20619 = vst [vmem:[#allocation104_spill] sm:$0xff] %v16511_v20  ;;  %v2267_v9 = vor.u32 8388608, %v2266_v7 }
 0x398   : > { %v16497_v35 = vsel %vm16483_vm11, %v16192_v1, %v2228_v3  ;;  %20620 = vst [vmem:[#allocation105_spill] sm:$0xff] %v16515_v32  ;;  %v4727_v55 = vshrl.u32 %v4726_v41, 23  ;;  %v16521_v19 = vand.u32 8388607, %v20301_v53  ;;  %v16523_v17 = vshrl.u32 %v2271_v52, 5 }
 0x399   : > { %v2233_v44 = vmul.f32 %v16497_v35, %v16497_v35  ;;  %v4668_v57 = vadd.s32 536870912, %v4667_v34  ;;  %v2274_v63 = vsub.s32 32, %v2273_v16  ;;  %vm4571_vm9 = vcmp.lt.s32.totalorder %v16232_v10, 0 }
 0x39a   : > { %v2276_v60 = vshll.u32 %v20495_v27, %v2273_v16  ;;  %v2279_v36 = vshll.u32 %v20500_v8, %v2273_v16  ;;  %v2282_v13 = vshll.u32 %v20501_v50, %v2273_v16  ;;  %v2288_v51 = vshll.u32 %v20503_v37, %v2273_v16 }
 0x39b   : > { %v2234_v6 = vmul.f32 -0.001358992, %v2233_v44  ;;  %v2241_v45 = vmul.f32 -0.00019511016, %v2233_v44  ;;  %v4669_v21 = vshrl.u32 %v4668_v57, 30  ;;  %v2285_v40 = vshll.u32 %v20502_v14, %v2273_v16 }
 0x39c   : > { %v2286_v3 = vshrl.u32 %v20503_v37, %v2274_v63  ;;  %v2280_v52 = vshrl.u32 %v20501_v50, %v2274_v63  ;;  %v2283_v7 = vshrl.u32 %v20502_v14, %v2274_v63  ;;  %v2289_v41 = vshrl.u32 %v20505_v59, %v2274_v63 }
 0x39d   : > { %v2235_v28 = vadd.f32 0.041655596, %v2234_v6  ;;  %v2242_v26 = vadd.f32 0.008332121, %v2241_v45  ;;  %v4670_v48 = vshll.u32 %v4669_v21, 30  ;;  %v2277_v45 = vshrl.u32 %v20500_v8, %v2274_v63 }
 0x39e   : > { %v20621_v53 = vand.u32 2147483647, %v16232_v10  ;;  %v2290_v16 = vor.u32 %v2289_v41, %v2288_v51  ;;  %v4693_v0 = vsub.s32 4, %v4669_v21  ;;  %v2287_v25 = vor.u32 %v2286_v3, %v2285_v40 }
 0x39f   : > { %v2243_v42 = vmul.f32 %v2242_v26, %v2233_v44  ;;  %v4671_v29 = vsub.s32 %v4667_v34, %v4670_v48  ;;  %v2236_v24 = vmul.f32 %v2235_v28, %v2233_v44  ;;  %v16542_v26 = vshll.u32 %v2267_v9, 8 }
 0x3a0   : > { %vm16538_vm13 = vcmp.le.f32.partialorder %v20621_v53, 0.7853982  ;;  %v12776_v28 = vadd.s32 4294967169, %v4727_v55  ;;  %vm2294_vm2 = vcmp.lt.s32.totalorder %v16523_v17, 4  ;;  %v2281_v11 = vor.u32 %v2280_v52, %v2279_v36 }
 0x3a1   : > { %v2244_v57 = vadd.f32 -0.16666654, %v2243_v42  ;;  %vm4672_vm15 = vcmp.lt.s32.totalorder %v4671_v29, 0  ;;  %v4673_v6 = vsub.s32 0, %v4671_v29  ;;  %v2237_v42 = vadd.f32 -0.4999988, %v2236_v24 }
 0x3a2   : > { %v2284_v54 = vor.u32 %v2283_v7, %v2282_v13  ;;  %v2278_v53 = vor.u32 %v2277_v45, %v2276_v60  ;;  %vm2291_vm14 = vcmp.lt.s32.totalorder %v16523_v17, 1  ;;  %vm2293_vm11 = vcmp.lt.s32.totalorder %v16523_v17, 3 }
 0x3a3   : > { %v4674_v61 = vsel %vm4672_vm15, %v4673_v6, %v4671_v29  ;;  %v2245_v4 = vmul.f32 %v2244_v57, %v2233_v44  ;;  %v2304_v55 = vsel %vm2294_vm2, %v2290_v16, 1326507024  ;;  %v2308_v51 = vand.u32 65535, %v16542_v26 }
 0x3a4   : > { %v4675_v39 = vclz %v4674_v61  ;;  %v2309_v40 = vshrl.u32 %v16542_v26, 16  ;;  %v4694_v3 = vsel %vm4571_vm9, %v4693_v0, %v4669_v21  ;;  %v2275_v61 = vshrl.u32 %v20495_v27, %v2274_v63 }
 0x3a5   : > { %vm2292_vm4 = vcmp.lt.s32.totalorder %v16523_v17, 2  ;;  %v2300_v60 = vsel %vm2294_vm2, %v2287_v25, 920167782  ;;  %v2238_v36 = vmul.f32 %v2237_v42, %v2233_v44  ;;  %v2305_v13 = vsel %vm2293_vm11, %v2287_v25, %v2304_v55 }
 0x3a6   : > { %v12774_v9 = vadd.s32 4294967294, %v4675_v39  ;;  %v2303_v39 = vsel %vm2291_vm14, %v2281_v11, %v2284_v54  ;;  %v2246_v24 = vadd.f32 1.0, %v2245_v4  ;;  %v2296_v0 = vsel %vm2294_vm2, %v2284_v54, 2102212464 }
 0x3a7   : > { %v2299_v21 = vsel %vm2291_vm14, %v2278_v53, %v2281_v11  ;;  %v2301_v44 = vsel %vm2293_vm11, %v2284_v54, %v2300_v60  ;;  %v16570_v57 = vsel %vm16538_vm13, 0, %v4694_v3  ;;  %v7373_v25 = vadd.s32 3, %v16515_v32 }
 0x3a8   : > { %vm12775_vm15 = vcmp.lt.s32.totalorder %v12774_v9, 0  ;;  %20624 = vst [vmem:[#allocation106_spill] sm:$0xff] %v16570_v57  ;;  %v2306_v4 = vsel %vm2292_vm4, %v2303_v39, %v2305_v13  ;;  %v4733_v6 = vadd.s32 1, %v12776_v28  ;;  %v2297_v42 = vsel %vm2293_vm11, %v2281_v11, %v2296_v0 }
 0x3a9   : > { %v4678_v52 = vsel %vm12775_vm15, 0, %v12774_v9  ;;  %v16580_v54 = vadd.f32 1.0, %v2238_v36  ;;  %v16583_v9 = vmul.f32 %v2246_v24, %v16497_v35  ;;  %v2302_v55 = vsel %vm2292_vm4, %v2299_v21, %v2301_v44 }
 0x3aa   : > { %v4679_v63 = vsub.s32 32, %v4678_v52  ;;  %v4680_v7 = vshll.u32 %v4671_v29, %v4678_v52  ;;  %v4683_v41 = vsub.s32 4294967266, %v4678_v52  ;;  %v2295_v29 = vsel %vm2291_vm14, %v2275_v61, %v2278_v53 }
 0x3ab   : > { %20625 = vst [vmem:[#allocation107_spill] sm:$0xff] %v16580_v54  ;;  %v2310_v3 = vand.u32 65535, %v2306_v4  ;;  %v2311_v39 = vshrl.u32 %v2306_v4, 16  ;;  %v16588_v13 = vand.u32 3, %v7373_v25  ;;  %v2332_v61 = vand.u32 65535, %v2302_v55 }
 0x3ac   : > { %v4681_v45 = vshrl.u32 %v16517_v2, %v4679_v63  ;;  %v4684_v16 = vadd.s32 127, %v4683_v41  ;;  %20626 = vst [vmem:[#allocation108_spill] sm:$0xff] %v16583_v9  ;;  %v9853_v2 = vadd.s32 3, %v16570_v57  ;;  %vm4734_vm2 = vcmp.gt.s32.totalorder %v4733_v6, 0 }
 0x3ad   : > { %v2314_v53 = vmul.u32 %v2310_v3, %v2309_v40  ;;  %v2312_v52 = vmul.u32 %v2310_v3, %v2308_v51  ;;  %v2313_v0 = vmul.u32 %v2311_v39, %v2308_v51  ;;  %v20314_v35 = vxor.u32 2147483648, %v16583_v9 }
 0x3ae   : > { %v4682_v60 = vor.u32 %v4681_v45, %v4680_v7  ;;  %v4685_v28 = vshll.u32 %v4684_v16, 23  ;;  %v16594_v21 = vsel %vm2292_vm4, %v2295_v29, %v2297_v42  ;;  %v2333_v63 = vshrl.u32 %v2302_v55, 16 }
 0x3af   : > { %v16596_v41 = vand.u32 3, %v9853_v2  ;;  %v2315_v44 = vmul.u32 %v2311_v39, %v2309_v40  ;;  %v2316_v25 = vshll.u32 %v2313_v0, 16  ;;  %v2318_v4 = vshll.u32 %v2314_v53, 16 }
 0x3b0   : > { %v4686_v11 = vor.u32 4788187, %v4685_v28  ;;  %v4689_v36 = vcvt.s32.f32 %v4682_v60  ;;  %v2334_v45 = vmul.u32 %v2332_v61, %v2308_v51  ;;  %v2335_v16 = vmul.u32 %v2333_v63, %v2308_v51 }
 0x3b1   : > { %v2336_v60 = vmul.u32 %v2332_v61, %v2309_v40  ;;  %vm7376_vm14 = vcmp.eq.s32.totalorder %v16588_v13, 0  ;;  %v2319_v28 = vshrl.u32 %v2314_v53, 16  ;;  %vm2320_vm11 = vc.u32 %v2312_v52, %v2316_v25 }
 0x3b2   : > { %v4687_v7 = vand.u32 2147483647, %v4686_v11  ;;  %v2321_v48 = vsel %vm2320_vm11, 1, %v20499_v56  ;;  %v2322_v17 = vadd.s32 %v2316_v25, %v2312_v52  ;;  %v2337_v29 = vmul.u32 %v2333_v63, %v2309_v40 }
 0x3b3   : > { %v2338_v42 = vshll.u32 %v2335_v16, 16  ;;  %v2317_v11 = vshrl.u32 %v2313_v0, 16  ;;  %v2323_v2 = vadd.s32 %v2321_v48, %v2315_v44  ;;  %v2340_v24 = vshll.u32 %v2336_v60, 16 }
 0x3b4   : > { %v4690_v3 = vmul.f32 %v4689_v36, %v4687_v7  ;;  %vm7375_vm4 = vcmp.lt.s32.totalorder %v16588_v13, 2  ;;  %vm2324_vm15 = vc.u32 %v2322_v17, %v2318_v4  ;;  %v4735_v39 = vsel %vm4734_vm2, %v4733_v6, 0 }
 0x3b5   : > { %vm2342_vm10 = vc.u32 %v2334_v45, %v2338_v42  ;;  %v2344_v51 = vadd.s32 %v2338_v42, %v2334_v45  ;;  %v2325_v61 = vsel %vm2324_vm15, 1, %v20499_v56  ;;  %v2339_v36 = vshrl.u32 %v2335_v16, 16 }
 0x3b6   : > { %v4691_v55 = vxor.u32 2147483648, %v4690_v3  ;;  %v2343_v40 = vsel %vm2342_vm10, 1, %v20499_v56  ;;  %v2327_v52 = vadd.s32 %v2325_v61, %v2323_v2  ;;  %vm7379_vm7 = vcmp.eq.s32.totalorder %v16588_v13, 2 }
 0x3b7   : > { %v2345_v0 = vadd.s32 %v2343_v40, %v2337_v29  ;;  %vm2346_vm11 = vc.u32 %v2344_v51, %v2340_v24  ;;  %v4737_v7 = vand.u32 31, %v4735_v39  ;;  %v7378_v44 = vsel %vm7376_vm14, %v16580_v54, %v20314_v35 }
 0x3b8   : > { %v4692_v53 = vsel %vm4571_vm9, %v4691_v55, %v4690_v3  ;;  %v2347_v6 = vsel %vm2346_vm11, 1, %v20499_v56  ;;  %v2328_v25 = vadd.s32 %v2327_v52, %v2317_v11  ;;  %v2341_v4 = vshrl.u32 %v2336_v60, 16 }
 0x3b9   : > { %v4695_v48 = vsel %vm16538_vm13, %v16232_v10, %v4692_v53  ;;  %v2349_v45 = vadd.s32 %v2347_v6, %v2345_v0  ;;  %vm20406_vm10 = vweird.f32 %v16192_v1  ;;  %v16617_v3 = vadd.s32 %v2344_v51, %v2340_v24 }
 0x3ba   : > { %v4697_v63 = vmul.f32 %v4695_v48, %v4695_v48  ;;  %v16619_v17 = vsub.s32 32, %v4737_v7  ;;  %v20627_v29 = vxor.u32 2147483648, %v16580_v54  ;;  %v16624_v55 = vadd.s32 %v2328_v25, %v2319_v28 }
 0x3bb   : > { %v2350_v2 = vadd.s32 %v2349_v45, %v2339_v36  ;;  %v2352_v11 = vmul.u32 %v16542_v26, %v16594_v21  ;;  %v16628_v61 = vshrl.u32 %v4735_v39, 5  ;;  %v4740_v40 = vshll.u32 %v20495_v27, %v4737_v7 }
 0x3bc   : > { %v4698_v34 = vmul.f32 -0.001358992, %v4697_v63  ;;  %v4705_v16 = vmul.f32 -0.00019511016, %v4697_v63  ;;  %v7381_v42 = vsel %vm7379_vm7, %v20627_v29, %v16583_v9  ;;  %v4741_v51 = vshrl.u32 %v20500_v8, %v16619_v17 }
 0x3bd   : > { %v2351_v24 = vadd.s32 %v2350_v2, %v2341_v4  ;;  %v4743_v52 = vshll.u32 %v20500_v8, %v4737_v7  ;;  %v4746_v0 = vshll.u32 %v20501_v50, %v4737_v7  ;;  %vm2354_vm7 = vc.u32 %v16624_v55, %v16617_v3 }
 0x3be   : > { %v4699_v60 = vadd.f32 0.041655596, %v4698_v34  ;;  %v4706_v53 = vadd.f32 0.008332121, %v4705_v16  ;;  %v4744_v26 = vshrl.u32 %v20501_v50, %v16619_v17  ;;  %v4747_v39 = vshrl.u32 %v20502_v14, %v16619_v17 }
 0x3bf   : > { %v2355_v21 = vadd.s32 1, %v2351_v24  ;;  %v4749_v36 = vshll.u32 %v20502_v14, %v4737_v7  ;;  %v4750_v25 = vshrl.u32 %v20503_v37, %v16619_v17  ;;  %v7382_v34 = vsel %vm7375_vm4, %v7378_v44, %v7381_v42 }
 0x3c0   : > { %v4700_v28 = vmul.f32 %v4699_v60, %v4697_v63  ;;  %v4707_v6 = vmul.f32 %v4706_v53, %v4697_v63  ;;  %vm9855_vm9 = vcmp.lt.s32.totalorder %v16596_v41, 2  ;;  %v4752_v16 = vshll.u32 %v20503_v37, %v4737_v7 }
 0x3c1   : > { %vm9856_vm13 = vcmp.eq.s32.totalorder %v16596_v41, 0  ;;  %v2356_v29 = vsel %vm2354_vm7, %v2355_v21, %v2351_v24  ;;  %v4751_v2 = vor.u32 %v4750_v25, %v4749_v36  ;;  %v4753_v60 = vshrl.u32 %v20505_v59, %v16619_v17 }
 0x3c2   : > { %v4701_v4 = vadd.f32 -0.4999988, %v4700_v28  ;;  %v4708_v45 = vadd.f32 -0.16666654, %v4707_v6  ;;  %v2357_v33 = vadd.s32 %v2356_v29, %v2352_v11  ;;  %v16651_v22 = vor.u32 %v4741_v51, %v4740_v40 }
 0x3c3   : > { %v16653_v28 = vor.u32 %v4744_v26, %v4743_v52  ;;  %v16655_v13 = vor.u32 %v4747_v39, %v4746_v0  ;;  %v4754_v44 = vor.u32 %v4753_v60, %v4752_v16  ;;  %vm4758_vm2 = vcmp.lt.s32.totalorder %v16628_v61, 4 }
 0x3c4   : > { %v4702_v53 = vmul.f32 %v4701_v4, %v4697_v63  ;;  %v4709_v35 = vmul.f32 %v4708_v45, %v4697_v63  ;;  %v2358_v24 = vadd.s32 536870912, %v2357_v33  ;;  %vm4755_vm14 = vcmp.lt.s32.totalorder %v16628_v61, 1 }
 0x3c5   : > { %v7383_v6 = vsel %vm20406_vm10, nan, %v7382_v34  ;;  %vm9859_vm4 = vcmp.eq.s32.totalorder %v16596_v41, 2  ;;  %vm4757_vm15 = vcmp.lt.s32.totalorder %v16628_v61, 3  ;;  %v4764_v63 = vsel %vm4758_vm2, %v4751_v2, 920167782 }
 0x3c6   : > { %v16658_v7 = vadd.f32 1.0, %v4702_v53  ;;  %v4710_v42 = vadd.f32 1.0, %v4709_v35  ;;  %v16670_v51 = vshrl.u32 %v2358_v24, 30  ;;  %vm4756_vm11 = vcmp.lt.s32.totalorder %v16628_v61, 2 }
 0x3c7   : > { %v4763_v35 = vsel %vm4755_vm14, %v16651_v22, %v16653_v28  ;;  %v4767_v52 = vsel %vm4755_vm14, %v16653_v28, %v16655_v13  ;;  %v20630_v0 = vor.u32 8388608, %v16521_v19  ;;  %v4765_v25 = vsel %vm4757_vm15, %v16655_v13, %v4764_v63 }
 0x3c8   : > { %20628 = vst [vmem:[#allocation109_spill] sm:$0xff] %v16658_v7  ;;  %v16667_v11 = vmul.f32 %v4710_v42, %v4695_v48  ;;  %v20317_v40 = vxor.u32 2147483648, %v16658_v7  ;;  %v4768_v48 = vsel %vm4758_vm2, %v4754_v44, 1326507024  ;;  %v2360_v36 = vshll.u32 %v16670_v51, 30 }
 0x3c9   : > { %v16685_v26 = vshll.u32 %v20630_v0, 8  ;;  %vm20379_vm7 = vweird.f32 %v16232_v10  ;;  %v4769_v4 = vsel %vm4757_vm15, %v4751_v2, %v4768_v48  ;;  %v10803_v16 = vmul.f32 %v7383_v6, %v16507_v30 }
 0x3ca   : > { %20629 = vst [vmem:[#allocation110_spill] sm:$0xff] %v16667_v11  ;;  %v20318_v21 = vxor.u32 2147483648, %v16667_v11  ;;  %v9861_v39 = vsel %vm9859_vm4, %v20317_v40, %v16667_v11  ;;  %v2361_v29 = vsub.s32 %v2357_v33, %v2360_v36  ;;  %v4770_v60 = vsel %vm4756_vm11, %v4767_v52, %v4769_v4 }
 0x3cb   : > { %v4772_v19 = vand.u32 65535, %v16685_v26  ;;  %v4773_v45 = vshrl.u32 %v16685_v26, 16  ;;  %v4766_v2 = vsel %vm4756_vm11, %v4763_v35, %v4765_v25  ;;  %v4774_v44 = vand.u32 65535, %v4770_v60 }
 0x3cc   : > { %v9858_v34 = vsel %vm9856_vm13, %v16658_v7, %v20318_v21  ;;  %v4775_v42 = vshrl.u32 %v4770_v60, 16  ;;  %vm2362_vm4 = vcmp.lt.s32.totalorder %v2361_v29, 0  ;;  %v2363_v63 = vsub.s32 0, %v2361_v29  ;;  %v625_v60 = vld [vmem:[%s13759_s0 + $0x58] sm:$0xff] }
 0x3cd   : > { %v9862_v53 = vsel %vm9855_vm9, %v9858_v34, %v9861_v39  ;;  %v4796_v48 = vand.u32 65535, %v4766_v2  ;;  %v4776_v6 = vmul.u32 %v4774_v44, %v4772_v19  ;;  %v4778_v52 = vmul.u32 %v4774_v44, %v4773_v45 }
 0x3ce   : > { %v9863_v24 = vsel %vm20379_vm7, nan, %v9862_v53  ;;  %v4777_v0 = vmul.u32 %v4775_v42, %v4772_v19  ;;  %v2364_v36 = vsel %vm2362_vm4, %v2363_v63, %v2361_v29  ;;  %v4739_v41 = vshrl.u32 %v20495_v27, %v16619_v17 }
 0x3cf   : > { %v10819_v33 = vmul.f32 %v9863_v24, %v16511_v20  ;;  %v4797_v39 = vshrl.u32 %v4766_v2, 16  ;;  %v2365_v25 = vclz %v2364_v36  ;;  %v4779_v4 = vmul.u32 %v4775_v42, %v4773_v45 }
 0x3d0   : > { %v4780_v34 = vshll.u32 %v4777_v0, 16  ;;  %v4782_v40 = vshll.u32 %v4778_v52, 16  ;;  %v4798_v53 = vmul.u32 %v4796_v48, %v4772_v19  ;;  %v4800_v47 = vmul.u32 %v4796_v48, %v4773_v45 }
 0x3d1   : > { %v13248_v35 = vpack.i.bf16 %v10819_v33, %v10803_v16  ;;  %v4799_v21 = vmul.u32 %v4797_v39, %v4772_v19  ;;  %v2353_v24 = vadd.s32 %v16617_v3, %v16624_v55  ;;  %v12729_v62 = vadd.s32 4294967294, %v2365_v25 }
 0x3d2   : > { %vm4784_vm9 = vc.u32 %v4776_v6, %v4780_v34  ;;  %v4786_v44 = vadd.s32 %v4780_v34, %v4776_v6  ;;  %v4781_v63 = vshrl.u32 %v4777_v0, 16  ;;  %v16723_v16 = vsel %vm652_vm0, %v625_v60, 0.0 }
 0x3d3   : > { %13249 = vxpose.xlu0.b32.cont [10/16] %v13248_v35, 128  ;;  %v4785_v17 = vsel %vm4784_vm9, 1, %v20499_v56  ;;  %v4802_v2 = vshll.u32 %v4799_v21, 16  ;;  %20631 = vst [vmem:[#allocation111_spill] sm:$0xff] %v16723_v16  ;;  %vm12730_vm13 = vcmp.lt.s32.totalorder %v12729_v62, 0  ;;  %v4801_v19 = vmul.u32 %v4797_v39, %v4773_v45 }
 0x3d4   : > { %v4787_v42 = vadd.s32 %v4785_v17, %v4779_v4  ;;  %vm4788_vm4 = vc.u32 %v4786_v44, %v4782_v40  ;;  %v2368_v48 = vsel %vm12730_vm13, 0, %v12729_v62  ;;  %v4804_v36 = vshll.u32 %v4800_v47, 16 }
 0x3d5   : > { %v4789_v33 = vsel %vm4788_vm4, 1, %v20499_v56  ;;  %vm4806_vm8 = vc.u32 %v4798_v53, %v4802_v2  ;;  %v2369_v3 = vsub.s32 32, %v2368_v48  ;;  %v2370_v55 = vshll.u32 %v2361_v29, %v2368_v48 }
 0x3d6   : > { %v2373_v6 = vsub.s32 4294967266, %v2368_v48  ;;  %v4791_v0 = vadd.s32 %v4789_v33, %v4787_v42  ;;  %v4760_v35 = vsel %vm4758_vm2, %v16655_v13, 2102212464  ;;  %v4783_v25 = vshrl.u32 %v4778_v52, 16 }
 0x3d7   : > { %v4807_v34 = vsel %vm4806_vm8, 1, %v20499_v56  ;;  %v4808_v60 = vadd.s32 %v4802_v2, %v4798_v53  ;;  %v2371_v4 = vshrl.u32 %v2353_v24, %v2369_v3  ;;  %v4759_v39 = vsel %vm4755_vm14, %v4739_v41, %v16651_v22 }
 0x3d8   : > { %v2374_v40 = vadd.s32 127, %v2373_v6  ;;  %v4792_v45 = vadd.s32 %v4791_v0, %v4781_v63  ;;  %v4809_v62 = vadd.s32 %v4807_v34, %v4801_v19  ;;  %v4803_v44 = vshrl.u32 %v4799_v21, 16  ;;  %v591_v34 = vld [vmem:[%s14075_s18 + $0x50] sm:$0xff] }
 0x3d9   : > { %vm4810_vm9 = vc.u32 %v4808_v60, %v4804_v36  ;;  %v2416_v29 = vand.u32 2139095040, %v16723_v16  ;;  %v2372_v17 = vor.u32 %v2371_v4, %v2370_v55  ;;  %v4761_v13 = vsel %vm4757_vm15, %v16653_v28, %v4760_v35 }
 0x3da   : > { %v2375_v42 = vshll.u32 %v2374_v40, 23  ;;  %v4811_v52 = vsel %vm4810_vm9, 1, %v20499_v56  ;;  %v4805_v53 = vshrl.u32 %v4800_v47, 16  ;;  %v4793_v48 = vadd.s32 %v4792_v45, %v4783_v25  ;;  %v641_v25 = vld [vmem:[%s13759_s0 + $0xd8] sm:$0xff] }
 0x3db   : > { %v4813_v24 = vadd.s32 %v4811_v52, %v4809_v62  ;;  %v2417_v63 = vshrl.u32 %v2416_v29, 23  ;;  %v2379_v19 = vcvt.s32.f32 %v2372_v17  ;;  %v4812_v22 = vadd.s32 %v4808_v60, %v4804_v36  ;;  %v607_v60 = vld [vmem:[%s14075_s18 + $0xd0] sm:$0xff] }
 0x3dc   : > { %v2376_v2 = vor.u32 4788187, %v2375_v42  ;;  %v4762_v21 = vsel %vm4756_vm11, %v4759_v39, %v4761_v13  ;;  %v2383_v28 = vsub.s32 4, %v16670_v51  ;;  %v20632_v35 = vand.u32 2147483647, %v16465_v46 }
 0x3dd   : > { %v4814_v41 = vadd.s32 %v4813_v24, %v4803_v44  ;;  %v12731_v33 = vadd.s32 4294967169, %v2417_v63  ;;  %v4816_v0 = vmul.u32 %v16685_v26, %v4762_v21  ;;  %vm4818_vm8 = vc.u32 %v4793_v48, %v4812_v22 }
 0x3de   : > { %v2377_v3 = vand.u32 2147483647, %v2376_v2  ;;  %vm16744_vm2 = vcmp.le.f32.partialorder %v20632_v35, 0.7853982  ;;  %vm2261_vm14 = vcmp.lt.s32.totalorder %v16465_v46, 0  ;;  %v16756_v17 = vsel %vm652_vm0, %v641_v25, 0.0 }
 0x3df   : > { %v4815_v55 = vadd.s32 %v4814_v41, %v4805_v53  ;;  %v2423_v6 = vadd.s32 1, %v12731_v33  ;;  %v20322_v40 = vand.u32 2147483647, %v16723_v16  ;;  %v2384_v26 = vsel %vm2261_vm14, %v2383_v28, %v16670_v51  ;;  %20635 = vst [vmem:[#allocation112_spill] sm:$0xff] %v16756_v17 }
 0x3e0   : > { %v2380_v47 = vmul.f32 %v2379_v19, %v2377_v3  ;;  %v16760_v42 = vsel %vm652_vm0, %v591_v34, 0.0  ;;  %v16764_v13 = vsel %vm652_vm0, %v607_v60, 0.0  ;;  %v16773_v53 = vsel %vm16744_vm2, 0, %v2384_v26 }
 0x3e1   : > { %v4819_v61 = vadd.s32 1, %v4815_v55  ;;  %vm2424_vm15 = vcmp.gt.s32.totalorder %v2423_v6, 0  ;;  %20636 = vst [vmem:[#allocation113_spill] sm:$0xff] %v16760_v42  ;;  %v2420_v2 = vand.u32 8388607, %v20322_v40  ;;  %v16779_v19 = vadd.s32 %v4812_v22, %v4793_v48 }
 0x3e2   : > { %v2381_v4 = vxor.u32 2147483648, %v2380_v47  ;;  %v2425_v45 = vsel %vm2424_vm15, %v2423_v6, 0  ;;  %20637 = vst [vmem:[#allocation114_spill] sm:$0xff] %v16764_v13  ;;  %v20330_v41 = vand.u32 2147483647, %v16756_v17  ;;  %v4880_v33 = vand.u32 2139095040, %v16756_v17 }
 0x3e3   : > { %v4820_v62 = vsel %vm4818_vm8, %v4819_v61, %v4815_v55  ;;  %v2427_v39 = vand.u32 31, %v2425_v45  ;;  %20638 = vst [vmem:[#allocation115_spill] sm:$0xff] %v16773_v53  ;;  %vm4725_vm11 = vcmp.lt.s32.totalorder %v16489_v31, 0  ;;  %v2421_v40 = vor.u32 8388608, %v2420_v2 }
 0x3e4   : > { %v2382_v44 = vsel %vm2261_vm14, %v2381_v4, %v2380_v47  ;;  %v4821_v29 = vadd.s32 %v4820_v62, %v4816_v0  ;;  %v16785_v47 = vshrl.u32 %v2425_v45, 5  ;;  %v20639_v2 = vand.u32 2147483647, %v16489_v31 }
 0x3e5   : > { %v16769_v51 = vsel %vm16744_vm2, %v16465_v46, %v2382_v44  ;;  %v2428_v52 = vsub.s32 32, %v2427_v39  ;;  %v2439_v21 = vshll.u32 %v20502_v14, %v2427_v39  ;;  %v2430_v0 = vshll.u32 %v20495_v27, %v2427_v39 }
 0x3e6   : > { %v2387_v24 = vmul.f32 %v16769_v51, %v16769_v51  ;;  %v4822_v63 = vadd.s32 536870912, %v4821_v29  ;;  %v2433_v35 = vshll.u32 %v20500_v8, %v2427_v39  ;;  %v2442_v48 = vshll.u32 %v20503_v37, %v2427_v39 }
 0x3e7   : > { %v2440_v6 = vshrl.u32 %v20503_v37, %v2428_v52  ;;  %v2436_v25 = vshll.u32 %v20501_v50, %v2427_v39  ;;  %v2431_v34 = vshrl.u32 %v20500_v8, %v2428_v52  ;;  %v2434_v60 = vshrl.u32 %v20501_v50, %v2428_v52 }
 0x3e8   : > { %v2388_v3 = vmul.f32 -0.001358992, %v2387_v24  ;;  %v2395_v28 = vmul.f32 -0.00019511016, %v2387_v24  ;;  %v4823_v55 = vshrl.u32 %v4822_v63, 30  ;;  %v2437_v4 = vshrl.u32 %v20502_v14, %v2428_v52 }
 0x3e9   : > { %v2443_v45 = vshrl.u32 %v20505_v59, %v2428_v52  ;;  %v2441_v63 = vor.u32 %v2440_v6, %v2439_v21  ;;  %vm2448_vm13 = vcmp.lt.s32.totalorder %v16785_v47, 4  ;;  %v16799_v39 = vand.u32 8388607, %v20330_v41 }
 0x3ea   : > { %v2389_v22 = vadd.f32 0.041655596, %v2388_v3  ;;  %v2396_v36 = vadd.f32 0.008332121, %v2395_v28  ;;  %v4824_v61 = vshll.u32 %v4823_v55, 30  ;;  %v2432_v20 = vor.u32 %v2431_v34, %v2430_v0 }
 0x3eb   : > { %v2444_v3 = vor.u32 %v2443_v45, %v2442_v48  ;;  %v2435_v10 = vor.u32 %v2434_v60, %v2433_v35  ;;  %vm2445_vm9 = vcmp.lt.s32.totalorder %v16785_v47, 1  ;;  %vm2447_vm8 = vcmp.lt.s32.totalorder %v16785_v47, 3 }
 0x3ec   : > { %v2390_v26 = vmul.f32 %v2389_v22, %v2387_v24  ;;  %v2397_v62 = vmul.f32 %v2396_v36, %v2387_v24  ;;  %v4825_v44 = vsub.s32 %v4821_v29, %v4824_v61  ;;  %v2438_v22 = vor.u32 %v2437_v4, %v2436_v25 }
 0x3ed   : > { %v4881_v36 = vshrl.u32 %v4880_v33, 23  ;;  %v2454_v29 = vsel %vm2448_vm13, %v2441_v63, 920167782  ;;  %vm16807_vm2 = vcmp.le.f32.partialorder %v20639_v2, 0.7853982  ;;  %v4847_v48 = vsub.s32 4, %v4823_v55 }
 0x3ee   : > { %v2391_v28 = vadd.f32 -0.4999988, %v2390_v26  ;;  %v2398_v15 = vadd.f32 -0.16666654, %v2397_v62  ;;  %vm4826_vm4 = vcmp.lt.s32.totalorder %v4825_v44, 0  ;;  %v4827_v58 = vsub.s32 0, %v4825_v44 }
 0x3ef   : > { %v2429_v0 = vshrl.u32 %v20495_v27, %v2428_v52  ;;  %v16812_v35 = vshll.u32 %v2421_v40, 8  ;;  %v2450_v61 = vsel %vm2448_vm13, %v2438_v22, 2102212464  ;;  %v2458_v25 = vsel %vm2448_vm13, %v2444_v3, 1326507024 }
 0x3f0   : > { %v4828_v18 = vsel %vm4826_vm4, %v4827_v58, %v4825_v44  ;;  %v2392_v58 = vmul.f32 %v2391_v28, %v2387_v24  ;;  %v2399_v33 = vmul.f32 %v2398_v15, %v2387_v24  ;;  %vm2446_vm14 = vcmp.lt.s32.totalorder %v16785_v47, 2 }
 0x3f1   : > { %v4829_v6 = vclz %v4828_v18  ;;  %v2453_v60 = vsel %vm2445_vm9, %v2432_v20, %v2435_v10  ;;  %v2455_v18 = vsel %vm2447_vm8, %v2438_v22, %v2454_v29  ;;  %v2457_v40 = vsel %vm2445_vm9, %v2435_v10, %v2438_v22 }
 0x3f2   : > { %v2459_v15 = vsel %vm2447_vm8, %v2441_v63, %v2458_v25  ;;  %v12779_v52 = vadd.s32 4294967169, %v4881_v36  ;;  %v4848_v4 = vsel %vm4725_vm11, %v4847_v48, %v4823_v55  ;;  %v2449_v45 = vsel %vm2445_vm9, %v2429_v0, %v2432_v20 }
 0x3f3   : > { %v12777_v34 = vadd.s32 4294967294, %v4829_v6  ;;  %v2451_v26 = vsel %vm2447_vm8, %v2435_v10, %v2450_v61  ;;  %v16834_v62 = vadd.f32 1.0, %v2392_v58  ;;  %v2400_v3 = vadd.f32 1.0, %v2399_v33 }
 0x3f4   : > { %v2456_v63 = vsel %vm2446_vm14, %v2453_v60, %v2455_v18  ;;  %v2460_v2 = vsel %vm2446_vm14, %v2457_v40, %v2459_v15  ;;  %v7528_v55 = vadd.s32 3, %v16773_v53  ;;  %v2462_v20 = vand.u32 65535, %v16812_v35 }
 0x3f5   : > { %vm12778_vm15 = vcmp.lt.s32.totalorder %v12777_v34, 0  ;;  %20642 = vst [vmem:[#allocation116_spill] sm:$0xff] %v16834_v62  ;;  %v2463_v6 = vshrl.u32 %v16812_v35, 16  ;;  %v2464_v10 = vand.u32 65535, %v2460_v2  ;;  %v2487_v58 = vshrl.u32 %v2456_v63, 16 }
 0x3f6   : > { %v4832_v28 = vsel %vm12778_vm15, 0, %v12777_v34  ;;  %v4887_v33 = vadd.s32 1, %v12779_v52  ;;  %v16846_v61 = vsel %vm16807_vm2, 0, %v4848_v4  ;;  %v2465_v25 = vshrl.u32 %v2460_v2, 16 }
 0x3f7   : > { %v4833_v22 = vsub.s32 32, %v4832_v28  ;;  %v4834_v36 = vshll.u32 %v4825_v44, %v4832_v28  ;;  %v4837_v29 = vsub.s32 4294967266, %v4832_v28  ;;  %20643 = vst [vmem:[#allocation117_spill] sm:$0xff] %v16846_v61  ;;  %v16850_v44 = vsel %vm2446_vm14, %v2449_v45, %v2451_v26 }
 0x3f8   : > { %v2486_v34 = vand.u32 65535, %v2456_v63  ;;  %v16853_v60 = vmul.f32 %v2400_v3, %v16769_v51  ;;  %v16856_v15 = vand.u32 3, %v7528_v55  ;;  %v2466_v52 = vmul.u32 %v2464_v10, %v2462_v20 }
 0x3f9   : > { %v4835_v48 = vshrl.u32 %v16779_v19, %v4833_v22  ;;  %v4838_v0 = vadd.s32 127, %v4837_v29  ;;  %v2467_v28 = vmul.u32 %v2465_v25, %v2462_v20  ;;  %v2468_v22 = vmul.u32 %v2464_v10, %v2463_v6 }
 0x3fa   : > { %20644 = vst [vmem:[#allocation118_spill] sm:$0xff] %v16853_v60  ;;  %v10008_v47 = vadd.s32 3, %v16846_v61  ;;  %v2489_v45 = vmul.u32 %v2487_v58, %v2462_v20  ;;  %v2469_v26 = vmul.u32 %v2465_v25, %v2463_v6  ;;  %v2490_v41 = vmul.u32 %v2486_v34, %v2463_v6 }
 0x3fb   : > { %v4836_v40 = vor.u32 %v4835_v48, %v4834_v36  ;;  %v4839_v19 = vshll.u32 %v4838_v0, 23  ;;  %v2470_v2 = vshll.u32 %v2467_v28, 16  ;;  %v2472_v63 = vshll.u32 %v2468_v22, 16 }
 0x3fc   : > { %v2488_v24 = vmul.u32 %v2486_v34, %v2462_v20  ;;  %v2492_v36 = vshll.u32 %v2489_v45, 16  ;;  %vm7531_vm13 = vcmp.eq.s32.totalorder %v16856_v15, 0  ;;  %vm7534_vm4 = vcmp.eq.s32.totalorder %v16856_v15, 2 }
 0x3fd   : > { %v4840_v4 = vor.u32 4788187, %v4839_v19  ;;  %v4843_v29 = vcvt.s32.f32 %v4836_v40  ;;  %vm2474_vm9 = vc.u32 %v2466_v52, %v2470_v2  ;;  %v2476_v55 = vadd.s32 %v2470_v2, %v2466_v52 }
 0x3fe   : > { %v2471_v48 = vshrl.u32 %v2467_v28, 16  ;;  %v2475_v0 = vsel %vm2474_vm9, 1, %v20499_v56  ;;  %v2491_v40 = vmul.u32 %v2487_v58, %v2463_v6  ;;  %v2473_v25 = vshrl.u32 %v2468_v22, 16 }
 0x3ff   : > { %v4841_v3 = vand.u32 2147483647, %v4840_v4  ;;  %v2477_v19 = vadd.s32 %v2475_v0, %v2469_v26  ;;  %vm2478_vm8 = vc.u32 %v2476_v55, %v2472_v63  ;;  %v2494_v18 = vshll.u32 %v2490_v41, 16 }
 0x400   : > { %v2479_v4 = vsel %vm2478_vm8, 1, %v20499_v56  ;;  %vm2496_vm14 = vc.u32 %v2488_v24, %v2492_v36  ;;  %v2498_v20 = vadd.s32 %v2492_v36, %v2488_v24  ;;  %v2493_v51 = vshrl.u32 %v2489_v45, 16 }
 0x401   : > { %v4844_v10 = vmul.f32 %v4843_v29, %v4841_v3  ;;  %v2481_v34 = vadd.s32 %v2479_v4, %v2477_v19  ;;  %v2497_v7 = vsel %vm2496_vm14, 1, %v20499_v56  ;;  %vm4888_vm15 = vcmp.gt.s32.totalorder %v4887_v33, 0 }
 0x402   : > { %v2499_v28 = vadd.s32 %v2497_v7, %v2491_v40  ;;  %vm2500_vm9 = vc.u32 %v2498_v20, %v2494_v18  ;;  %v16867_v6 = vadd.s32 %v2498_v20, %v2494_v18  ;;  %v4889_v24 = vsel %vm4888_vm15, %v4887_v33, 0 }
 0x403   : > { %v4845_v12 = vxor.u32 2147483648, %v4844_v10  ;;  %v2482_v22 = vadd.s32 %v2481_v34, %v2471_v48  ;;  %v2501_v29 = vsel %vm2500_vm9, 1, %v20499_v56  ;;  %vm2402_vm8 = vweird.f32 %v16465_v46 }
 0x404   : > { %v2495_v26 = vshrl.u32 %v2490_v41, 16  ;;  %v2503_v2 = vadd.s32 %v2501_v29, %v2499_v28  ;;  %v4891_v63 = vand.u32 31, %v4889_v24  ;;  %v16880_v21 = vand.u32 3, %v10008_v47 }
 0x405   : > { %v4846_v52 = vsel %vm4725_vm11, %v4845_v12, %v4844_v10  ;;  %vm7530_vm11 = vcmp.lt.s32.totalorder %v16856_v15, 2  ;;  %v20645_v12 = vxor.u32 2147483648, %v16853_v60  ;;  %v16882_v18 = vadd.s32 %v2482_v22, %v2473_v25 }
 0x406   : > { %v4849_v58 = vsel %vm16807_vm2, %v16489_v31, %v4846_v52  ;;  %v2504_v36 = vadd.s32 %v2503_v2, %v2493_v51  ;;  %v4892_v55 = vsub.s32 32, %v4891_v63  ;;  %v20646_v41 = vxor.u32 2147483648, %v16834_v62 }
 0x407   : > { %v4851_v45 = vmul.f32 %v4849_v58, %v4849_v58  ;;  %v7533_v7 = vsel %vm7531_vm13, %v16834_v62, %v20645_v12  ;;  %v2506_v48 = vmul.u32 %v16812_v35, %v16850_v44  ;;  %vm2508_vm2 = vc.u32 %v16882_v18, %v16867_v6 }
 0x408   : > { %v7536_v10 = vsel %vm7534_vm4, %v20646_v41, %v16853_v60  ;;  %v4894_v47 = vshll.u32 %v20495_v27, %v4891_v63  ;;  %v2505_v25 = vadd.s32 %v2504_v36, %v2495_v26  ;;  %v4897_v51 = vshll.u32 %v20500_v8, %v4891_v63 }
 0x409   : > { %v4852_v3 = vmul.f32 -0.001358992, %v4851_v45  ;;  %v4859_v33 = vmul.f32 -0.00019511016, %v4851_v45  ;;  %v4895_v19 = vshrl.u32 %v20500_v8, %v4892_v55  ;;  %v4898_v4 = vshrl.u32 %v20501_v50, %v4892_v55 }
 0x40a   : > { %v4900_v20 = vshll.u32 %v20501_v50, %v4891_v63  ;;  %v4901_v34 = vshrl.u32 %v20502_v14, %v4892_v55  ;;  %v2509_v44 = vadd.s32 1, %v2505_v25  ;;  %v4903_v28 = vshll.u32 %v20502_v14, %v4891_v63 }
 0x40b   : > { %v4853_v0 = vadd.f32 0.041655596, %v4852_v3  ;;  %v4860_v40 = vadd.f32 0.008332121, %v4859_v33  ;;  %v7537_v22 = vsel %vm7530_vm11, %v7533_v7, %v7536_v10  ;;  %vm10014_vm13 = vcmp.eq.s32.totalorder %v16880_v21, 2 }
 0x40c   : > { %v16903_v29 = vshrl.u32 %v4889_v24, 5  ;;  %v4904_v26 = vshrl.u32 %v20503_v37, %v4892_v55  ;;  %v2510_v3 = vsel %vm2508_vm2, %v2509_v44, %v2505_v25  ;;  %v4906_v33 = vshll.u32 %v20503_v37, %v4891_v63 }
 0x40d   : > { %v4854_v52 = vmul.f32 %v4853_v0, %v4851_v45  ;;  %v4861_v35 = vmul.f32 %v4860_v40, %v4851_v45  ;;  %vm20396_vm4 = vweird.f32 %v16489_v31  ;;  %v2511_v36 = vadd.s32 %v2510_v3, %v2506_v48 }
 0x40e   : > { %v4896_v41 = vor.u32 %v4895_v19, %v4894_v47  ;;  %v4905_v15 = vor.u32 %v4904_v26, %v4903_v28  ;;  %v4907_v7 = vshrl.u32 %v20505_v59, %v4892_v55  ;;  %v4899_v0 = vor.u32 %v4898_v4, %v4897_v51 }
 0x40f   : > { %v4855_v2 = vadd.f32 -0.4999988, %v4854_v52  ;;  %v4862_v12 = vadd.f32 -0.16666654, %v4861_v35  ;;  %v4902_v40 = vor.u32 %v4901_v34, %v4900_v20  ;;  %v7538_v52 = vsel %vm2402_vm8, nan, %v7537_v22 }
 0x410   : > { %v2512_v35 = vadd.s32 536870912, %v2511_v36  ;;  %vm4909_vm14 = vcmp.lt.s32.totalorder %v16903_v29, 1  ;;  %vm4911_vm15 = vcmp.lt.s32.totalorder %v16903_v29, 3  ;;  %v4908_v48 = vor.u32 %v4907_v7, %v4906_v33 }
 0x411   : > { %v4856_v10 = vmul.f32 %v4855_v2, %v4851_v45  ;;  %v4863_v24 = vmul.f32 %v4862_v12, %v4851_v45  ;;  %vm4912_vm9 = vcmp.lt.s32.totalorder %v16903_v29, 4  ;;  %vm4910_vm11 = vcmp.lt.s32.totalorder %v16903_v29, 2 }
 0x412   : > { %v16919_v47 = vshrl.u32 %v2512_v35, 30  ;;  %v4918_v45 = vsel %vm4912_vm9, %v4905_v15, 920167782  ;;  %v20648_v51 = vor.u32 8388608, %v16799_v39  ;;  %v4917_v34 = vsel %vm4909_vm14, %v4896_v41, %v4899_v0  ;;  %v626_v35 = vld [vmem:[%s13759_s0 + $0x60] sm:$0xff] }
 0x413   : > { %v16916_v63 = vadd.f32 1.0, %v4856_v10  ;;  %v4864_v25 = vadd.f32 1.0, %v4863_v24  ;;  %v4919_v44 = vsel %vm4911_vm15, %v4902_v40, %v4918_v45  ;;  %vm10010_vm2 = vcmp.lt.s32.totalorder %v16880_v21, 2 }
 0x414   : > { %v16926_v19 = vshll.u32 %v20648_v51, 8  ;;  %vm10011_vm5 = vcmp.eq.s32.totalorder %v16880_v21, 0  ;;  %v10804_v28 = vmul.f32 %v7538_v52, %v16760_v42  ;;  %v2514_v39 = vshll.u32 %v16919_v47, 30 }
 0x415   : > { %20647 = vst [vmem:[#allocation119_spill] sm:$0xff] %v16916_v63  ;;  %v16928_v4 = vmul.f32 %v4864_v25, %v4849_v58  ;;  %v20335_v20 = vxor.u32 2147483648, %v16916_v63  ;;  %v4921_v26 = vsel %vm4909_vm14, %v4899_v0, %v4902_v40  ;;  %v4922_v2 = vsel %vm4912_vm9, %v4908_v48, 1326507024 }
 0x416   : > { %v16949_v12 = vsub.s32 %v2511_v36, %v2514_v39  ;;  %v4893_v3 = vshrl.u32 %v20495_v27, %v4892_v55  ;;  %v4920_v33 = vsel %vm4910_vm11, %v4917_v34, %v4919_v44  ;;  %v4923_v7 = vsel %vm4911_vm15, %v4905_v15, %v4922_v2 }
 0x417   : > { %20649 = vst [vmem:[#allocation120_spill] sm:$0xff] %v16928_v4  ;;  %v20336_v58 = vxor.u32 2147483648, %v16928_v4  ;;  %v10016_v22 = vsel %vm10014_vm13, %v20335_v20, %v16928_v4  ;;  %v4924_v24 = vsel %vm4910_vm11, %v4921_v26, %v4923_v7  ;;  %v4926_v52 = vand.u32 65535, %v16926_v19 }
 0x418   : > { %v4927_v36 = vshrl.u32 %v16926_v19, 16  ;;  %vm2516_vm13 = vcmp.lt.s32.totalorder %v16949_v12, 0  ;;  %v2517_v25 = vsub.s32 0, %v16949_v12  ;;  %v4928_v15 = vand.u32 65535, %v4924_v24 }
 0x419   : > { %v10013_v10 = vsel %vm10011_vm5, %v16916_v63, %v20336_v58  ;;  %v4929_v45 = vshrl.u32 %v4924_v24, 16  ;;  %v4950_v51 = vand.u32 65535, %v4920_v33  ;;  %v4951_v34 = vshrl.u32 %v4920_v33, 16 }
 0x41a   : > { %v10017_v55 = vsel %vm10010_vm2, %v10013_v10, %v10016_v22  ;;  %v2518_v39 = vsel %vm2516_vm13, %v2517_v25, %v16949_v12  ;;  %v4932_v26 = vmul.u32 %v4928_v15, %v4927_v36  ;;  %v16974_v21 = vsel %vm652_vm0, %v626_v35, 0.0 }
 0x41b   : > { %v10018_v48 = vsel %vm20396_vm4, nan, %v10017_v55  ;;  %20650 = vst [vmem:[#allocation121_spill] sm:$0xff] %v16974_v21  ;;  %v2519_v22 = vclz %v2518_v39  ;;  %v4914_v2 = vsel %vm4912_vm9, %v4902_v40, 2102212464  ;;  %v4930_v7 = vmul.u32 %v4928_v15, %v4926_v52 }
 0x41c   : > { %v10820_v44 = vmul.f32 %v10018_v48, %v16764_v13  ;;  %v4931_v10 = vmul.u32 %v4929_v45, %v4926_v52  ;;  %v2507_v24 = vadd.s32 %v16867_v6, %v16882_v18  ;;  %v4913_v33 = vsel %vm4909_vm14, %v4893_v3, %v4896_v41 }
 0x41d   : > { %v4953_v55 = vmul.u32 %v4951_v34, %v4926_v52  ;;  %v12732_v25 = vadd.s32 4294967294, %v2519_v22  ;;  %v4933_v48 = vmul.u32 %v4929_v45, %v4927_v36  ;;  %v4954_v11 = vmul.u32 %v4950_v51, %v4927_v36 }
 0x41e   : > { %v13250_v20 = vpack.i.bf16 %v10820_v44, %v10804_v28  ;;  %v4934_v58 = vshll.u32 %v4931_v10, 16  ;;  %v4915_v35 = vsel %vm4911_vm15, %v4899_v0, %v4914_v2  ;;  %v4936_v39 = vshll.u32 %v4932_v26, 16 }
 0x41f   : > { %v4952_v40 = vmul.u32 %v4950_v51, %v4926_v52  ;;  %v4956_v15 = vshll.u32 %v4953_v55, 16  ;;  %vm12733_vm5 = vcmp.lt.s32.totalorder %v12732_v25, 0  ;;  %v4937_v28 = vshrl.u32 %v4932_v26, 16 }
 0x420   : > { %13251 = vxpose.xlu0.b32.cont [11/16] %v13250_v20, 128  ;;  %vm4938_vm9 = vc.u32 %v4930_v7, %v4934_v58  ;;  %v4940_v44 = vadd.s32 %v4934_v58, %v4930_v7  ;;  %v2522_v6 = vsel %vm12733_vm5, 0, %v12732_v25  ;;  %v4955_v41 = vmul.u32 %v4951_v34, %v4927_v36 }
 0x421   : > { %v4939_v18 = vsel %vm4938_vm9, 1, %v20499_v56  ;;  %v4958_v3 = vshll.u32 %v4954_v11, 16  ;;  %v2523_v22 = vsub.s32 32, %v2522_v6  ;;  %v2524_v45 = vshll.u32 %v16949_v12, %v2522_v6 }
 0x422   : > { %v2527_v13 = vsub.s32 4294967266, %v2522_v6  ;;  %v4941_v20 = vadd.s32 %v4939_v18, %v4933_v48  ;;  %v4935_v43 = vshrl.u32 %v4931_v10, 16  ;;  %vm4942_vm14 = vc.u32 %v4940_v44, %v4936_v39 }
 0x423   : > { %vm4960_vm15 = vc.u32 %v4952_v40, %v4956_v15  ;;  %v4962_v0 = vadd.s32 %v4956_v15, %v4952_v40  ;;  %v2525_v52 = vshrl.u32 %v2507_v24, %v2523_v22  ;;  %v4943_v26 = vsel %vm4942_vm14, 1, %v20499_v56 }
 0x424   : > { %v2528_v51 = vadd.s32 127, %v2527_v13  ;;  %v4961_v58 = vsel %vm4960_vm15, 1, %v20499_v56  ;;  %v4945_v2 = vadd.s32 %v4943_v26, %v4941_v20  ;;  %v4957_v7 = vshrl.u32 %v4953_v55, 16 }
 0x425   : > { %v4963_v25 = vadd.s32 %v4961_v58, %v4955_v41  ;;  %vm4964_vm2 = vc.u32 %v4962_v0, %v4958_v3  ;;  %v2526_v36 = vor.u32 %v2525_v52, %v2524_v45  ;;  %v2570_v10 = vand.u32 2139095040, %v16974_v21 }
 0x426   : > { %v2529_v34 = vshll.u32 %v2528_v51, 23  ;;  %v4965_v12 = vsel %vm4964_vm2, 1, %v20499_v56  ;;  %v4946_v48 = vadd.s32 %v4945_v2, %v4935_v43  ;;  %v4959_v39 = vshrl.u32 %v4954_v11, 16  ;;  %v642_v43 = vld [vmem:[%s13759_s0 + $0xe0] sm:$0xff]  ;;  %v592_v2 = vld [vmem:[%s14075_s18 + $0x58] sm:$0xff] }
 0x427   : > { %v4967_v40 = vadd.s32 %v4965_v12, %v4963_v25  ;;  %v2533_v13 = vcvt.s32.f32 %v2526_v36  ;;  %v16990_v15 = vadd.s32 %v4962_v0, %v4958_v3  ;;  %v2571_v44 = vshrl.u32 %v2570_v10, 23 }
 0x428   : > { %v2530_v24 = vor.u32 4788187, %v2529_v34  ;;  %v4916_v55 = vsel %vm4910_vm11, %v4913_v33, %v4915_v35  ;;  %v16994_v6 = vadd.s32 %v4946_v48, %v4937_v28  ;;  %v20342_v41 = vand.u32 2147483647, %v16974_v21 }
 0x429   : > { %v4968_v18 = vadd.s32 %v4967_v40, %v4957_v7  ;;  %v12734_v45 = vadd.s32 4294967169, %v2571_v44  ;;  %v4970_v52 = vmul.u32 %v16926_v19, %v4916_v55  ;;  %vm2415_vm11 = vcmp.lt.s32.totalorder %v16723_v16, 0  ;;  %v608_v7 = vld [vmem:[%s14075_s18 + $0xd8] sm:$0xff] }
 0x42a   : > { %v2531_v22 = vand.u32 2147483647, %v2530_v24  ;;  %vm4972_vm13 = vc.u32 %v16994_v6, %v16990_v15  ;;  %v2537_v29 = vsub.s32 4, %v16919_v47  ;;  %v2574_v35 = vand.u32 8388607, %v20342_v41 }
 0x42b   : > { %v4969_v20 = vadd.s32 %v4968_v18, %v4959_v39  ;;  %v2577_v3 = vadd.s32 1, %v12734_v45  ;;  %v20651_v28 = vand.u32 2147483647, %v16723_v16  ;;  %v17013_v19 = vsel %vm652_vm0, %v642_v43, 0.0 }
 0x42c   : > { %v2534_v11 = vmul.f32 %v2533_v13, %v2531_v22  ;;  %20654 = vst [vmem:[#allocation122_spill] sm:$0xff] %v17013_v19  ;;  %v2538_v12 = vsel %vm2415_vm11, %v2537_v29, %v16919_v47  ;;  %v2575_v48 = vor.u32 8388608, %v2574_v35  ;;  %v5034_v39 = vand.u32 2139095040, %v17013_v19 }
 0x42d   : > { %v4973_v33 = vadd.s32 1, %v4969_v20  ;;  %vm17007_vm5 = vcmp.le.f32.partialorder %v20651_v28, 0.7853982  ;;  %vm2578_vm9 = vcmp.gt.s32.totalorder %v2577_v3, 0  ;;  %v17028_v13 = vsel %vm652_vm0, %v592_v2, 0.0 }
 0x42e   : > { %v2535_v51 = vxor.u32 2147483648, %v2534_v11  ;;  %v2579_v58 = vsel %vm2578_vm9, %v2577_v3, 0  ;;  %20655 = vst [vmem:[#allocation123_spill] sm:$0xff] %v17028_v13  ;;  %v17032_v44 = vsel %vm652_vm0, %v608_v7, 0.0  ;;  %v17036_v55 = vsel %vm17007_vm5, 0, %v2538_v12 }
 0x42f   : > { %v4974_v26 = vsel %vm4972_vm13, %v4973_v33, %v4969_v20  ;;  %v2581_v34 = vand.u32 31, %v2579_v58  ;;  %20656 = vst [vmem:[#allocation124_spill] sm:$0xff] %v17032_v44  ;;  %v17038_v20 = vshrl.u32 %v2579_v58, 5  ;;  %v17040_v43 = vshll.u32 %v2575_v48, 8 }
 0x430   : > { %v2536_v25 = vsel %vm2415_vm11, %v2535_v51, %v2534_v11  ;;  %v4975_v36 = vadd.s32 %v4974_v26, %v4970_v52  ;;  %v5035_v52 = vshrl.u32 %v5034_v39, 23  ;;  %vm4879_vm14 = vcmp.lt.s32.totalorder %v16756_v17, 0 }
 0x431   : > { %v17021_v10 = vsel %vm17007_vm5, %v16723_v16, %v2536_v25  ;;  %v2582_v47 = vsub.s32 32, %v2581_v34  ;;  %v2584_v35 = vshll.u32 %v20495_v27, %v2581_v34  ;;  %v2587_v28 = vshll.u32 %v20500_v8, %v2581_v34 }
 0x432   : > { %v2541_v40 = vmul.f32 %v17021_v10, %v17021_v10  ;;  %v4976_v24 = vadd.s32 536870912, %v4975_v36  ;;  %v2590_v0 = vshll.u32 %v20501_v50, %v2581_v34  ;;  %v2593_v51 = vshll.u32 %v20502_v14, %v2581_v34 }
 0x433   : > { %v2594_v26 = vshrl.u32 %v20503_v37, %v2582_v47  ;;  %v2596_v25 = vshll.u32 %v20503_v37, %v2581_v34  ;;  %v2585_v12 = vshrl.u32 %v20500_v8, %v2582_v47  ;;  %v2588_v48 = vshrl.u32 %v20501_v50, %v2582_v47 }
 0x434   : > { %v2542_v18 = vmul.f32 -0.001358992, %v2541_v40  ;;  %v2549_v22 = vmul.f32 -0.00019511016, %v2541_v40  ;;  %v4977_v45 = vshrl.u32 %v4976_v24, 30  ;;  %v2591_v39 = vshrl.u32 %v20502_v14, %v2582_v47 }
 0x435   : > { %v2597_v24 = vshrl.u32 %v20505_v59, %v2582_v47  ;;  %v20657_v11 = vand.u32 2147483647, %v16756_v17  ;;  %v2595_v34 = vor.u32 %v2594_v26, %v2593_v51  ;;  %vm2602_vm13 = vcmp.lt.s32.totalorder %v17038_v20, 4 }
 0x436   : > { %v2543_v3 = vadd.f32 0.041655596, %v2542_v18  ;;  %v2550_v29 = vadd.f32 0.008332121, %v2549_v22  ;;  %v4978_v33 = vshll.u32 %v4977_v45, 30  ;;  %v2586_v49 = vor.u32 %v2585_v12, %v2584_v35 }
 0x437   : > { %vm17056_vm2 = vcmp.le.f32.partialorder %v20657_v11, 0.7853982  ;;  %v2589_v11 = vor.u32 %v2588_v48, %v2587_v28  ;;  %v2598_v57 = vor.u32 %v2597_v24, %v2596_v25  ;;  %v2592_v38 = vor.u32 %v2591_v39, %v2590_v0 }
 0x438   : > { %v2544_v58 = vmul.f32 %v2543_v3, %v2541_v40  ;;  %v2551_v2 = vmul.f32 %v2550_v29, %v2541_v40  ;;  %v4979_v7 = vsub.s32 %v4975_v36, %v4978_v33  ;;  %v4971_v36 = vadd.s32 %v16990_v15, %v16994_v6 }
 0x439   : > { %v12782_v29 = vadd.s32 4294967169, %v5035_v52  ;;  %v20660_v33 = vand.u32 2147483647, %v17013_v19  ;;  %vm2599_vm11 = vcmp.lt.s32.totalorder %v17038_v20, 1  ;;  %v2616_v15 = vand.u32 65535, %v17040_v43 }
 0x43a   : > { %v2545_v18 = vadd.f32 -0.4999988, %v2544_v58  ;;  %v2552_v22 = vadd.f32 -0.16666654, %v2551_v2  ;;  %vm4980_vm15 = vcmp.lt.s32.totalorder %v4979_v7, 0  ;;  %v4981_v41 = vsub.s32 0, %v4979_v7 }
 0x43b   : > { %v17064_v23 = vand.u32 8388607, %v20660_v33  ;;  %v5001_v2 = vsub.s32 4, %v4977_v45  ;;  %v2583_v52 = vshrl.u32 %v20495_v27, %v2582_v47  ;;  %vm2601_vm5 = vcmp.lt.s32.totalorder %v17038_v20, 3 }
 0x43c   : > { %v2553_v31 = vmul.f32 %v2552_v22, %v2541_v40  ;;  %v4982_v58 = vsel %vm4980_vm15, %v4981_v41, %v4979_v7  ;;  %v2546_v1 = vmul.f32 %v2545_v18, %v2541_v40  ;;  %v2608_v41 = vsel %vm2602_vm13, %v2595_v34, 920167782 }
 0x43d   : > { %v4983_v30 = vclz %v4982_v58  ;;  %v5002_v35 = vsel %vm4879_vm14, %v5001_v2, %v4977_v45  ;;  %vm2600_vm9 = vcmp.lt.s32.totalorder %v17038_v20, 2  ;;  %v2604_v40 = vsel %vm2602_vm13, %v2592_v38, 2102212464 }
 0x43e   : > { %v2554_v51 = vadd.f32 1.0, %v2553_v31  ;;  %v7683_v28 = vadd.s32 3, %v17036_v55  ;;  %v2612_v47 = vsel %vm2602_vm13, %v2598_v57, 1326507024  ;;  %v17083_v0 = vadd.f32 1.0, %v2546_v1 }
 0x43f   : > { %v12780_v6 = vadd.s32 4294967294, %v4983_v30  ;;  %v2607_v30 = vsel %vm2599_vm11, %v2586_v49, %v2589_v11  ;;  %v2609_v45 = vsel %vm2601_vm5, %v2592_v38, %v2608_v41  ;;  %v2611_v26 = vsel %vm2599_vm11, %v2589_v11, %v2592_v38 }
 0x440   : > { %20661 = vst [vmem:[#allocation125_spill] sm:$0xff] %v17083_v0  ;;  %v2613_v39 = vsel %vm2601_vm5, %v2595_v34, %v2612_v47  ;;  %v17092_v24 = vmul.f32 %v2554_v51, %v17021_v10  ;;  %v17096_v1 = vsel %vm17056_vm2, 0, %v5002_v35  ;;  %v2617_v57 = vshrl.u32 %v17040_v43, 16 }
 0x441   : > { %vm12781_vm15 = vcmp.lt.s32.totalorder %v12780_v6, 0  ;;  %20663 = vst [vmem:[#allocation127_spill] sm:$0xff] %v17096_v1  ;;  %v5041_v18 = vadd.s32 1, %v12782_v29  ;;  %v17099_v58 = vand.u32 3, %v7683_v28  ;;  %v2610_v38 = vsel %vm2600_vm9, %v2607_v30, %v2609_v45 }
 0x442   : > { %v4986_v31 = vsel %vm12781_vm15, 0, %v12780_v6  ;;  %20662 = vst [vmem:[#allocation126_spill] sm:$0xff] %v17092_v24  ;;  %v2603_v10 = vsel %vm2599_vm11, %v2583_v52, %v2586_v49  ;;  %v2605_v34 = vsel %vm2601_vm5, %v2589_v11, %v2604_v40  ;;  %v2614_v2 = vsel %vm2600_vm9, %v2611_v26, %v2613_v39 }
 0x443   : > { %v4987_v25 = vsub.s32 32, %v4986_v31  ;;  %v4988_v12 = vshll.u32 %v4979_v7, %v4986_v31  ;;  %v4991_v48 = vsub.s32 4294967266, %v4986_v31  ;;  %v20356_v7 = vxor.u32 2147483648, %v17083_v0 }
 0x444   : > { %v2618_v41 = vand.u32 65535, %v2614_v2  ;;  %v20359_v51 = vxor.u32 2147483648, %v17092_v24  ;;  %v2619_v35 = vshrl.u32 %v2614_v2, 16  ;;  %v2640_v28 = vand.u32 65535, %v2610_v38 }
 0x445   : > { %v4989_v22 = vshrl.u32 %v4971_v36, %v4987_v25  ;;  %v4992_v33 = vadd.s32 127, %v4991_v48  ;;  %v10163_v36 = vadd.s32 3, %v17096_v1  ;;  %v2641_v30 = vshrl.u32 %v2610_v38, 16 }
 0x446   : > { %vm5042_vm13 = vcmp.gt.s32.totalorder %v5041_v18, 0  ;;  %vm7686_vm11 = vcmp.eq.s32.totalorder %v17099_v58, 0  ;;  %v2622_v49 = vmul.u32 %v2618_v41, %v2617_v57  ;;  %vm7689_vm5 = vcmp.eq.s32.totalorder %v17099_v58, 2 }
 0x447   : > { %v4990_v6 = vor.u32 %v4989_v22, %v4988_v12  ;;  %v4993_v29 = vshll.u32 %v4992_v33, 23  ;;  %v2620_v11 = vmul.u32 %v2618_v41, %v2616_v15  ;;  %v2621_v52 = vmul.u32 %v2619_v35, %v2616_v15 }
 0x448   : > { %v2643_v40 = vmul.u32 %v2641_v30, %v2616_v15  ;;  %vm7685_vm15 = vcmp.lt.s32.totalorder %v17099_v58, 2  ;;  %v2642_v26 = vmul.u32 %v2640_v28, %v2616_v15  ;;  %v2644_v25 = vmul.u32 %v2640_v28, %v2617_v57 }
 0x449   : > { %v4994_v47 = vor.u32 4788187, %v4993_v29  ;;  %v4997_v31 = vcvt.s32.f32 %v4990_v6  ;;  %v2623_v12 = vmul.u32 %v2619_v35, %v2617_v57  ;;  %v2624_v48 = vshll.u32 %v2621_v52, 16 }
 0x44a   : > { %v2626_v39 = vshll.u32 %v2622_v49, 16  ;;  %v2646_v22 = vshll.u32 %v2643_v40, 16  ;;  %v7688_v38 = vsel %vm7686_vm11, %v17083_v0, %v20359_v51  ;;  %v7691_v2 = vsel %vm7689_vm5, %v20356_v7, %v17092_v24 }
 0x44b   : > { %v4995_v45 = vand.u32 2147483647, %v4994_v47  ;;  %v2645_v6 = vmul.u32 %v2641_v30, %v2617_v57  ;;  %v2625_v29 = vshrl.u32 %v2621_v52, 16  ;;  %vm2628_vm12 = vc.u32 %v2620_v11, %v2624_v48 }
 0x44c   : > { %v2630_v41 = vadd.s32 %v2624_v48, %v2620_v11  ;;  %v2648_v47 = vshll.u32 %v2644_v25, 16  ;;  %v2629_v35 = vsel %vm2628_vm12, 1, %v20499_v56  ;;  %vm2650_vm6 = vc.u32 %v2642_v26, %v2646_v22 }
 0x44d   : > { %v4998_v33 = vmul.f32 %v4997_v31, %v4995_v45  ;;  %v2652_v28 = vadd.s32 %v2646_v22, %v2642_v26  ;;  %v2631_v63 = vadd.s32 %v2629_v35, %v2623_v12  ;;  %v2647_v31 = vshrl.u32 %v2643_v40, 16 }
 0x44e   : > { %vm2632_vm3 = vc.u32 %v2630_v41, %v2626_v39  ;;  %v2651_v45 = vsel %vm2650_vm6, 1, %v20499_v56  ;;  %vm2556_vm11 = vweird.f32 %v16723_v16  ;;  %v2627_v52 = vshrl.u32 %v2622_v49, 16 }
 0x44f   : > { %v4999_v15 = vxor.u32 2147483648, %v4998_v33  ;;  %v2633_v57 = vsel %vm2632_vm3, 1, %v20499_v56  ;;  %v2653_v30 = vadd.s32 %v2651_v45, %v2645_v6  ;;  %vm2654_vm5 = vc.u32 %v2652_v28, %v2648_v47 }
 0x450   : > { %v2635_v26 = vadd.s32 %v2633_v57, %v2631_v63  ;;  %v2655_v12 = vsel %vm2654_vm5, 1, %v20499_v56  ;;  %v2649_v48 = vshrl.u32 %v2644_v25, 16  ;;  %v5043_v22 = vsel %vm5042_vm13, %v5041_v18, 0 }
 0x451   : > { %v5000_v7 = vsel %vm4879_vm14, %v4999_v15, %v4998_v33  ;;  %v2657_v39 = vadd.s32 %v2655_v12, %v2653_v30  ;;  %v2606_v33 = vsel %vm2600_vm9, %v2603_v10, %v2605_v34  ;;  %v17134_v15 = vadd.s32 %v2652_v28, %v2648_v47 }
 0x452   : > { %v5003_v11 = vsel %vm17056_vm2, %v16756_v17, %v5000_v7  ;;  %v2636_v41 = vadd.s32 %v2635_v26, %v2625_v29  ;;  %v5045_v6 = vand.u32 31, %v5043_v22  ;;  %v5039_v7 = vor.u32 8388608, %v17064_v23 }
 0x453   : > { %v5005_v40 = vmul.f32 %v5003_v11, %v5003_v11  ;;  %v2658_v3 = vadd.s32 %v2657_v39, %v2647_v31  ;;  %v7692_v63 = vsel %vm7685_vm15, %v7688_v38, %v7691_v2  ;;  %v17139_v49 = vand.u32 3, %v10163_v36 }
 0x454   : > { %v17141_v25 = vadd.s32 %v2636_v41, %v2627_v52  ;;  %v5046_v18 = vsub.s32 32, %v5045_v6  ;;  %v2660_v34 = vmul.u32 %v17040_v43, %v2606_v33  ;;  %v5048_v29 = vshll.u32 %v20495_v27, %v5045_v6 }
 0x455   : > { %v5006_v35 = vmul.f32 -0.001358992, %v5005_v40  ;;  %v5013_v45 = vmul.f32 -0.00019511016, %v5005_v40  ;;  %v2659_v10 = vadd.s32 %v2658_v3, %v2649_v48  ;;  %v5051_v58 = vshll.u32 %v20500_v8, %v5045_v6 }
 0x456   : > { %vm2662_vm6 = vc.u32 %v17141_v25, %v17134_v15  ;;  %v5049_v23 = vshrl.u32 %v20500_v8, %v5046_v18  ;;  %v5052_v47 = vshrl.u32 %v20501_v50, %v5046_v18  ;;  %v5054_v28 = vshll.u32 %v20501_v50, %v5045_v6 }
 0x457   : > { %v5007_v57 = vadd.f32 0.041655596, %v5006_v35  ;;  %v5014_v20 = vadd.f32 0.008332121, %v5013_v45  ;;  %v2663_v2 = vadd.s32 1, %v2659_v10  ;;  %v5055_v31 = vshrl.u32 %v20502_v14, %v5046_v18 }
 0x458   : > { %v5057_v43 = vshll.u32 %v20502_v14, %v5045_v6  ;;  %v5058_v30 = vshrl.u32 %v20503_v37, %v5046_v18  ;;  %vm10165_vm12 = vcmp.lt.s32.totalorder %v17139_v49, 2  ;;  %v17155_v48 = vshrl.u32 %v5043_v22, 5 }
 0x459   : > { %v5008_v38 = vmul.f32 %v5007_v57, %v5005_v40  ;;  %v5015_v36 = vmul.f32 %v5014_v20, %v5005_v40  ;;  %v2664_v12 = vsel %vm2662_vm6, %v2663_v2, %v2659_v10  ;;  %vm20419_vm3 = vweird.f32 %v16756_v17 }
 0x45a   : > { %v7693_v39 = vsel %vm2556_vm11, nan, %v7692_v63  ;;  %vm10169_vm14 = vcmp.eq.s32.totalorder %v17139_v49, 2  ;;  %v2665_v33 = vadd.s32 %v2664_v12, %v2660_v34  ;;  %v5050_v41 = vor.u32 %v5049_v23, %v5048_v29 }
 0x45b   : > { %v5009_v52 = vadd.f32 -0.4999988, %v5008_v38  ;;  %v5016_v26 = vadd.f32 -0.16666654, %v5015_v36  ;;  %v17161_v3 = vor.u32 %v5052_v47, %v5051_v58  ;;  %v5060_v57 = vshll.u32 %v20503_v37, %v5045_v6 }
 0x45c   : > { %v2666_v20 = vadd.s32 536870912, %v2665_v33  ;;  %v5056_v38 = vor.u32 %v5055_v31, %v5054_v28  ;;  %v5059_v10 = vor.u32 %v5058_v30, %v5057_v43  ;;  %v5061_v22 = vshrl.u32 %v20505_v59, %v5046_v18 }
 0x45d   : > { %v5010_v35 = vmul.f32 %v5009_v52, %v5005_v40  ;;  %v5017_v45 = vmul.f32 %v5016_v26, %v5005_v40  ;;  %vm5063_vm2 = vcmp.lt.s32.totalorder %v17155_v48, 1  ;;  %vm5066_vm9 = vcmp.lt.s32.totalorder %v17155_v48, 4 }
 0x45e   : > { %v17169_v63 = vshrl.u32 %v2666_v20, 30  ;;  %v5062_v34 = vor.u32 %v5061_v22, %v5060_v57  ;;  %vm5065_vm13 = vcmp.lt.s32.totalorder %v17155_v48, 3  ;;  %v17172_v40 = vshll.u32 %v5039_v7, 8 }
 0x45f   : > { %v17165_v36 = vadd.f32 1.0, %v5010_v35  ;;  %v5018_v2 = vadd.f32 1.0, %v5017_v45  ;;  %vm10166_vm15 = vcmp.eq.s32.totalorder %v17139_v49, 0  ;;  %v10805_v23 = vmul.f32 %v7693_v39, %v17028_v13  ;;  %v627_v39 = vld [vmem:[%s13759_s0 + $0x68] sm:$0xff] }
 0x460   : > { %v2668_v58 = vshll.u32 %v17169_v63, 30  ;;  %vm5064_vm5 = vcmp.lt.s32.totalorder %v17155_v48, 2  ;;  %v5071_v47 = vsel %vm5063_vm2, %v5050_v41, %v17161_v3  ;;  %v5072_v7 = vsel %vm5066_vm9, %v5059_v10, 920167782 }
 0x461   : > { %20664 = vst [vmem:[#allocation128_spill] sm:$0xff] %v17165_v36  ;;  %v17174_v6 = vmul.f32 %v5018_v2, %v5003_v11  ;;  %v20357_v29 = vxor.u32 2147483648, %v17165_v36  ;;  %v5073_v31 = vsel %vm5065_vm13, %v5056_v38, %v5072_v7  ;;  %v5075_v43 = vsel %vm5063_vm2, %v17161_v3, %v5056_v38 }
 0x462   : > { %v17197_v30 = vsub.s32 %v2665_v33, %v2668_v58  ;;  %v5047_v52 = vshrl.u32 %v20495_v27, %v5046_v18  ;;  %v5076_v26 = vsel %vm5066_vm9, %v5062_v34, 1326507024  ;;  %v5080_v12 = vand.u32 65535, %v17172_v40 }
 0x463   : > { %20665 = vst [vmem:[#allocation129_spill] sm:$0xff] %v17174_v6  ;;  %v20358_v11 = vxor.u32 2147483648, %v17174_v6  ;;  %v10171_v28 = vsel %vm10169_vm14, %v20357_v29, %v17174_v6  ;;  %v5074_v45 = vsel %vm5064_vm5, %v5071_v47, %v5073_v31  ;;  %v5077_v57 = vsel %vm5065_vm13, %v5059_v10, %v5076_v26 }
 0x464   : > { %v5081_v33 = vshrl.u32 %v17172_v40, 16  ;;  %vm2670_vm6 = vcmp.lt.s32.totalorder %v17197_v30, 0  ;;  %v2671_v20 = vsub.s32 0, %v17197_v30  ;;  %v5078_v22 = vsel %vm5064_vm5, %v5075_v43, %v5077_v57 }
 0x465   : > { %v10168_v35 = vsel %vm10166_vm15, %v17165_v36, %v20358_v11  ;;  %v5082_v34 = vand.u32 65535, %v5078_v22  ;;  %v5083_v58 = vshrl.u32 %v5078_v22, 16  ;;  %v17222_v10 = vsel %vm652_vm0, %v627_v39, 0.0 }
 0x466   : > { %v10172_v18 = vsel %vm10165_vm12, %v10168_v35, %v10171_v28  ;;  %v2672_v49 = vsel %vm2670_vm6, %v2671_v20, %v17197_v30  ;;  %v5104_v7 = vand.u32 65535, %v5074_v45  ;;  %v5105_v28 = vshrl.u32 %v5074_v45, 16 }
 0x467   : > { %v10173_v2 = vsel %vm20419_vm3, nan, %v10172_v18  ;;  %v2673_v31 = vclz %v2672_v49  ;;  %v5084_v26 = vmul.u32 %v5082_v34, %v5080_v12  ;;  %v5085_v35 = vmul.u32 %v5083_v58, %v5080_v12 }
 0x468   : > { %v10821_v47 = vmul.f32 %v10173_v2, %v17032_v44  ;;  %v5086_v29 = vmul.u32 %v5082_v34, %v5081_v33  ;;  %v2661_v57 = vadd.s32 %v17134_v15, %v17141_v25  ;;  %v5067_v18 = vsel %vm5063_vm2, %v5047_v52, %v5050_v41 }
 0x469   : > { %v5107_v22 = vmul.u32 %v5105_v28, %v5080_v12  ;;  %v12735_v39 = vadd.s32 4294967294, %v2673_v31  ;;  %v5068_v2 = vsel %vm5066_vm9, %v5056_v38, 2102212464  ;;  %v5087_v11 = vmul.u32 %v5083_v58, %v5081_v33 }
 0x46a   : > { %v13252_v43 = vpack.i.bf16 %v10821_v47, %v10805_v23  ;;  %v5088_v20 = vshll.u32 %v5085_v35, 16  ;;  %v5090_v45 = vshll.u32 %v5086_v29, 16  ;;  %v5106_v49 = vmul.u32 %v5104_v7, %v5080_v12 }
 0x46b   : > { %v5108_v51 = vmul.u32 %v5104_v7, %v5081_v33  ;;  %v5110_v4 = vshll.u32 %v5107_v22, 16  ;;  %vm12736_vm12 = vcmp.lt.s32.totalorder %v12735_v39, 0  ;;  %v5089_v23 = vshrl.u32 %v5085_v35, 16 }
 0x46c   : > { %13253 = vxpose.xlu0.b32.cont [12/16] %v13252_v43, 128  ;;  %vm5092_vm14 = vc.u32 %v5084_v26, %v5088_v20  ;;  %v5094_v34 = vadd.s32 %v5088_v20, %v5084_v26  ;;  %v2676_v15 = vsel %vm12736_vm12, 0, %v12735_v39  ;;  %v5109_v41 = vmul.u32 %v5105_v28, %v5081_v33 }
 0x46d   : > { %v5093_v25 = vsel %vm5092_vm14, 1, %v20499_v56  ;;  %v5112_v52 = vshll.u32 %v5108_v51, 16  ;;  %v2677_v47 = vsub.s32 32, %v2676_v15  ;;  %v2678_v31 = vshll.u32 %v17197_v30, %v2676_v15 }
 0x46e   : > { %v2681_v38 = vsub.s32 4294967266, %v2676_v15  ;;  %v5095_v58 = vadd.s32 %v5093_v25, %v5087_v11  ;;  %v5091_v44 = vshrl.u32 %v5086_v29, 16  ;;  %vm5096_vm2 = vc.u32 %v5094_v34, %v5090_v45 }
 0x46f   : > { %vm5114_vm9 = vc.u32 %v5106_v49, %v5110_v4  ;;  %v5116_v12 = vadd.s32 %v5110_v4, %v5106_v49  ;;  %v2679_v7 = vshrl.u32 %v2661_v57, %v2677_v47  ;;  %v5097_v35 = vsel %vm5096_vm2, 1, %v20499_v56 }
 0x470   : > { %v2682_v43 = vadd.s32 127, %v2681_v38  ;;  %v5115_v26 = vsel %vm5114_vm9, 1, %v20499_v56  ;;  %v5099_v39 = vadd.s32 %v5097_v35, %v5095_v58  ;;  %v5111_v20 = vshrl.u32 %v5107_v22, 16 }
 0x471   : > { %v5117_v17 = vadd.s32 %v5115_v26, %v5109_v41  ;;  %vm5118_vm15 = vc.u32 %v5116_v12, %v5112_v52  ;;  %v2680_v33 = vor.u32 %v2679_v7, %v2678_v31  ;;  %v5069_v29 = vsel %vm5065_vm13, %v17161_v3, %v5068_v2  ;;  %v643_v2 = vld [vmem:[%s13759_s0 + $0xe8] sm:$0xff] }
 0x472   : > { %v2683_v28 = vshll.u32 %v2682_v43, 23  ;;  %v5119_v11 = vsel %vm5118_vm15, 1, %v20499_v56  ;;  %v5100_v4 = vadd.s32 %v5099_v39, %v5089_v23  ;;  %v5113_v30 = vshrl.u32 %v5108_v51, 16  ;;  %v593_v43 = vld [vmem:[%s14075_s18 + $0x60] sm:$0xff] }
 0x473   : > { %v5121_v57 = vadd.s32 %v5119_v11, %v5117_v17  ;;  %v2724_v45 = vand.u32 2139095040, %v17222_v10  ;;  %v2687_v34 = vcvt.s32.f32 %v2680_v33  ;;  %v17241_v15 = vadd.s32 %v5116_v12, %v5112_v52  ;;  %v609_v33 = vld [vmem:[%s14075_s18 + $0xe0] sm:$0xff] }
 0x474   : > { %v2684_v49 = vor.u32 4788187, %v2683_v28  ;;  %v5070_v22 = vsel %vm5064_vm5, %v5067_v18, %v5069_v29  ;;  %v17245_v25 = vadd.s32 %v5100_v4, %v5091_v44  ;;  %vm2569_vm6 = vcmp.lt.s32.totalorder %v16974_v21, 0 }
 0x475   : > { %v5122_v41 = vadd.s32 %v5121_v57, %v5111_v20  ;;  %v2725_v47 = vshrl.u32 %v2724_v45, 23  ;;  %v5124_v17 = vmul.u32 %v17172_v40, %v5070_v22  ;;  %v20365_v44 = vand.u32 2147483647, %v17222_v10 }
 0x476   : > { %v2685_v31 = vand.u32 2147483647, %v2684_v49  ;;  %vm5126_vm13 = vc.u32 %v17245_v25, %v17241_v15  ;;  %v20666_v52 = vand.u32 2147483647, %v16974_v21  ;;  %v2691_v12 = vsub.s32 4, %v17169_v63 }
 0x477   : > { %v5123_v3 = vadd.s32 %v5122_v41, %v5113_v30  ;;  %v12737_v23 = vadd.s32 4294967169, %v2725_v47  ;;  %v17262_v40 = vsel %vm652_vm0, %v643_v2, 0.0  ;;  %v2728_v29 = vand.u32 8388607, %v20365_v44 }
 0x478   : > { %v2688_v51 = vmul.f32 %v2687_v34, %v2685_v31  ;;  %vm17255_vm5 = vcmp.le.f32.partialorder %v20666_v52, 0.7853982  ;;  %20669 = vst [vmem:[#allocation130_spill] sm:$0xff] %v17262_v40  ;;  %v20364_v20 = vand.u32 2147483647, %v17262_v40  ;;  %v5188_v4 = vand.u32 2139095040, %v17262_v40 }
 0x479   : > { %v5127_v48 = vadd.s32 1, %v5123_v3  ;;  %v2731_v18 = vadd.s32 1, %v12737_v23  ;;  %v2692_v30 = vsel %vm2569_vm6, %v2691_v12, %v17169_v63  ;;  %v17284_v49 = vsel %vm652_vm0, %v593_v43, 0.0 }
 0x47a   : > { %v2689_v58 = vxor.u32 2147483648, %v2688_v51  ;;  %20670 = vst [vmem:[#allocation131_spill] sm:$0xff] %v17284_v49  ;;  %v17288_v22 = vsel %vm652_vm0, %v609_v33, 0.0  ;;  %v2729_v63 = vor.u32 8388608, %v2728_v29  ;;  %v5189_v2 = vshrl.u32 %v5188_v4, 23 }
 0x47b   : > { %v5128_v7 = vsel %vm5126_vm13, %v5127_v48, %v5123_v3  ;;  %vm2732_vm12 = vcmp.gt.s32.totalorder %v2731_v18, 0  ;;  %20671 = vst [vmem:[#allocation132_spill] sm:$0xff] %v17288_v22  ;;  %v17292_v3 = vsel %vm17255_vm5, 0, %v2692_v30  ;;  %v17296_v23 = vand.u32 8388607, %v20364_v20 }
 0x47c   : > { %v2690_v35 = vsel %vm2569_vm6, %v2689_v58, %v2688_v51  ;;  %v5129_v26 = vadd.s32 %v5128_v7, %v5124_v17  ;;  %v2733_v39 = vsel %vm2732_vm12, %v2731_v18, 0  ;;  %vm5033_vm14 = vcmp.lt.s32.totalorder %v17013_v19, 0 }
 0x47d   : > { %v17272_v28 = vsel %vm17255_vm5, %v16974_v21, %v2690_v35  ;;  %v2735_v11 = vand.u32 31, %v2733_v39  ;;  %v17298_v18 = vshrl.u32 %v2733_v39, 5  ;;  %v20672_v20 = vand.u32 2147483647, %v17013_v19 }
 0x47e   : > { %v2695_v57 = vmul.f32 %v17272_v28, %v17272_v28  ;;  %v5130_v45 = vadd.s32 536870912, %v5129_v26  ;;  %v17322_v61 = vshll.u32 %v2729_v63, 8  ;;  %vm5174_vm7 = vweird.f32 %v17013_v19 }
 0x47f   : > { %v2736_v34 = vsub.s32 32, %v2735_v11  ;;  %v2738_v52 = vshll.u32 %v20495_v27, %v2735_v11  ;;  %v2741_v58 = vshll.u32 %v20500_v8, %v2735_v11  ;;  %v2747_v38 = vshll.u32 %v20502_v14, %v2735_v11 }
 0x480   : > { %v2696_v41 = vmul.f32 -0.001358992, %v2695_v57  ;;  %v2703_v47 = vmul.f32 -0.00019511016, %v2695_v57  ;;  %v5131_v31 = vshrl.u32 %v5130_v45, 30  ;;  %v2744_v33 = vshll.u32 %v20501_v50, %v2735_v11 }
 0x481   : > { %v2748_v12 = vshrl.u32 %v20503_v37, %v2736_v34  ;;  %v2739_v29 = vshrl.u32 %v20500_v8, %v2736_v34  ;;  %v2742_v39 = vshrl.u32 %v20501_v50, %v2736_v34  ;;  %v2750_v4 = vshll.u32 %v20503_v37, %v2735_v11 }
 0x482   : > { %v2697_v51 = vadd.f32 0.041655596, %v2696_v41  ;;  %v2704_v17 = vadd.f32 0.008332121, %v2703_v47  ;;  %v5132_v48 = vshll.u32 %v5131_v31, 30  ;;  %v2751_v30 = vshrl.u32 %v20505_v59, %v2736_v34 }
 0x483   : > { %v2745_v47 = vshrl.u32 %v20502_v14, %v2736_v34  ;;  %vm17313_vm9 = vcmp.le.f32.partialorder %v20672_v20, 0.7853982  ;;  %vm2756_vm15 = vcmp.lt.s32.totalorder %v17298_v18, 4  ;;  %v2740_v36 = vor.u32 %v2739_v29, %v2738_v52 }
 0x484   : > { %v2698_v7 = vmul.f32 %v2697_v51, %v2695_v57  ;;  %v2705_v43 = vmul.f32 %v2704_v17, %v2695_v57  ;;  %v5133_v35 = vsub.s32 %v5129_v26, %v5132_v48  ;;  %v5125_v26 = vadd.s32 %v17241_v15, %v17245_v25 }
 0x485   : > { %v2749_v17 = vor.u32 %v2748_v12, %v2747_v38  ;;  %v12785_v48 = vadd.s32 4294967169, %v5189_v2  ;;  %v2743_v6 = vor.u32 %v2742_v39, %v2741_v58  ;;  %v2752_v42 = vor.u32 %v2751_v30, %v2750_v4 }
 0x486   : > { %v2706_v45 = vadd.f32 -0.16666654, %v2705_v43  ;;  %vm5134_vm2 = vcmp.lt.s32.totalorder %v5133_v35, 0  ;;  %v5135_v41 = vsub.s32 0, %v5133_v35  ;;  %v2699_v44 = vadd.f32 -0.4999988, %v2698_v7 }
 0x487   : > { %v5155_v43 = vsub.s32 4, %v5131_v31  ;;  %v2746_v46 = vor.u32 %v2745_v47, %v2744_v33  ;;  %vm2753_vm13 = vcmp.lt.s32.totalorder %v17298_v18, 1  ;;  %vm2755_vm6 = vcmp.lt.s32.totalorder %v17298_v18, 3 }
 0x488   : > { %v5136_v54 = vsel %vm5134_vm2, %v5135_v41, %v5133_v35  ;;  %v2707_v20 = vmul.f32 %v2706_v45, %v2695_v57  ;;  %v2762_v25 = vsel %vm2756_vm15, %v2749_v17, 920167782  ;;  %v17327_v2 = vadd.s32 1, %v12785_v48 }
 0x489   : > { %v5137_v9 = vclz %v5136_v54  ;;  %v2700_v38 = vmul.f32 %v2699_v44, %v2695_v57  ;;  %v5156_v54 = vsel %vm5033_vm14, %v5155_v43, %v5131_v31  ;;  %v2737_v52 = vshrl.u32 %v20495_v27, %v2736_v34 }
 0x48a   : > { %vm2754_vm5 = vcmp.lt.s32.totalorder %v17298_v18, 2  ;;  %v2758_v63 = vsel %vm2756_vm15, %v2746_v46, 2102212464  ;;  %v2766_v58 = vsel %vm2756_vm15, %v2752_v42, 1326507024  ;;  %v2708_v12 = vadd.f32 1.0, %v2707_v20 }
 0x48b   : > { %v12783_v15 = vadd.s32 4294967294, %v5137_v9  ;;  %v2761_v9 = vsel %vm2753_vm13, %v2740_v36, %v2743_v6  ;;  %v2763_v44 = vsel %vm2755_vm6, %v2746_v46, %v2762_v25  ;;  %v2765_v57 = vsel %vm2753_vm13, %v2743_v6, %v2746_v46 }
 0x48c   : > { %v2767_v29 = vsel %vm2755_vm6, %v2749_v17, %v2766_v58  ;;  %v17347_v39 = vsel %vm17313_vm9, 0, %v5156_v54  ;;  %v2757_v42 = vsel %vm2753_vm13, %v2737_v52, %v2740_v36  ;;  %v2759_v4 = vsel %vm2755_vm6, %v2743_v6, %v2758_v63 }
 0x48d   : > { %vm12784_vm12 = vcmp.lt.s32.totalorder %v12783_v15, 0  ;;  %v2771_v30 = vshrl.u32 %v17322_v61, 16  ;;  %v2764_v41 = vsel %vm2754_vm5, %v2761_v9, %v2763_v44  ;;  %v17357_v47 = vadd.f32 1.0, %v2700_v38 }
 0x48e   : > { %v5140_v7 = vsel %vm12784_vm12, 0, %v12783_v15  ;;  %v17360_v17 = vmul.f32 %v2708_v12, %v17272_v28  ;;  %v2768_v36 = vsel %vm2754_vm5, %v2765_v57, %v2767_v29  ;;  %v2770_v48 = vand.u32 65535, %v17322_v61 }
 0x48f   : > { %v5141_v34 = vsub.s32 32, %v5140_v7  ;;  %v5142_v31 = vshll.u32 %v5133_v35, %v5140_v7  ;;  %v5145_v33 = vsub.s32 4294967266, %v5140_v7  ;;  %v7838_v35 = vadd.s32 3, %v17292_v3 }
 0x490   : > { %v2772_v20 = vand.u32 65535, %v2768_v36  ;;  %v17368_v15 = vsel %vm2754_vm5, %v2757_v42, %v2759_v4  ;;  %v2773_v25 = vshrl.u32 %v2768_v36, 16  ;;  %v2794_v38 = vand.u32 65535, %v2764_v41 }
 0x491   : > { %v5143_v45 = vshrl.u32 %v5125_v26, %v5141_v34  ;;  %v5146_v46 = vadd.s32 127, %v5145_v33  ;;  %v10318_v26 = vadd.s32 3, %v17347_v39  ;;  %v2795_v54 = vshrl.u32 %v2764_v41, 16 }
 0x492   : > { %vm5196_vm2 = vcmp.gt.s32.totalorder %v17327_v2, 0  ;;  %v17371_v63 = vand.u32 3, %v7838_v35  ;;  %v2776_v9 = vmul.u32 %v2772_v20, %v2771_v30  ;;  %v20377_v58 = vxor.u32 2147483648, %v17357_v47 }
 0x493   : > { %v5144_v6 = vor.u32 %v5143_v45, %v5142_v31  ;;  %v5147_v43 = vshll.u32 %v5146_v46, 23  ;;  %v2774_v12 = vmul.u32 %v2772_v20, %v2770_v48  ;;  %v2775_v7 = vmul.u32 %v2773_v25, %v2770_v48 }
 0x494   : > { %v2797_v44 = vmul.u32 %v2795_v54, %v2770_v48  ;;  %v20378_v57 = vxor.u32 2147483648, %v17360_v17  ;;  %v17375_v34 = vand.u32 3, %v10318_v26  ;;  %v2798_v31 = vmul.u32 %v2794_v38, %v2771_v30 }
 0x495   : > { %v5148_v28 = vor.u32 4788187, %v5147_v43  ;;  %v5151_v52 = vcvt.s32.f32 %v5144_v6  ;;  %v2777_v33 = vmul.u32 %v2773_v25, %v2771_v30  ;;  %v2778_v29 = vshll.u32 %v2775_v7, 16 }
 0x496   : > { %v2780_v42 = vshll.u32 %v2776_v9, 16  ;;  %v2796_v4 = vmul.u32 %v2794_v38, %v2770_v48  ;;  %vm7841_vm15 = vcmp.eq.s32.totalorder %v17371_v63, 0  ;;  %vm7844_vm13 = vcmp.eq.s32.totalorder %v17371_v63, 2 }
 0x497   : > { %v5149_v18 = vand.u32 2147483647, %v5148_v28  ;;  %v2781_v46 = vshrl.u32 %v2776_v9, 16  ;;  %vm2782_vm6 = vc.u32 %v2774_v12, %v2778_v29  ;;  %v2784_v35 = vadd.s32 %v2778_v29, %v2774_v12 }
 0x498   : > { %v2799_v41 = vmul.u32 %v2795_v54, %v2771_v30  ;;  %v2800_v36 = vshll.u32 %v2797_v44, 16  ;;  %v2779_v43 = vshrl.u32 %v2775_v7, 16  ;;  %v2783_v26 = vsel %vm2782_vm6, 1, %v20499_v56 }
 0x499   : > { %v5152_v45 = vmul.f32 %v5151_v52, %v5149_v18  ;;  %v2802_v20 = vshll.u32 %v2798_v31, 16  ;;  %v2785_v28 = vadd.s32 %v2783_v26, %v2777_v33  ;;  %vm2786_vm5 = vc.u32 %v2784_v35, %v2780_v42 }
 0x49a   : > { %vm2804_vm12 = vc.u32 %v2796_v4, %v2800_v36  ;;  %v2806_v25 = vadd.s32 %v2800_v36, %v2796_v4  ;;  %v2787_v38 = vsel %vm2786_vm5, 1, %v20499_v56  ;;  %v2801_v52 = vshrl.u32 %v2797_v44, 16 }
 0x49b   : > { %v5153_v6 = vxor.u32 2147483648, %v5152_v45  ;;  %v2805_v9 = vsel %vm2804_vm12, 1, %v20499_v56  ;;  %v2789_v54 = vadd.s32 %v2787_v38, %v2785_v28  ;;  %v2803_v18 = vshrl.u32 %v2798_v31, 16 }
 0x49c   : > { %v2807_v12 = vadd.s32 %v2805_v9, %v2799_v41  ;;  %vm2808_vm6 = vc.u32 %v2806_v25, %v2802_v20  ;;  %v5197_v29 = vsel %vm5196_vm2, %v17327_v2, 0  ;;  %v17391_v4 = vadd.s32 %v2806_v25, %v2802_v20 }
 0x49d   : > { %v5154_v48 = vsel %vm5033_vm14, %v5153_v6, %v5152_v45  ;;  %v2809_v33 = vsel %vm2808_vm6, 1, %v20499_v56  ;;  %v2790_v42 = vadd.s32 %v2789_v54, %v2779_v43  ;;  %v5199_v45 = vand.u32 31, %v5197_v29 }
 0x49e   : > { %v5157_v30 = vsel %vm17313_vm9, %v17013_v19, %v5154_v48  ;;  %v2811_v44 = vadd.s32 %v2809_v33, %v2807_v12  ;;  %vm2710_vm14 = vweird.f32 %v16974_v21  ;;  %vm7840_vm9 = vcmp.lt.s32.totalorder %v17371_v63, 2 }
 0x49f   : > { %v5159_v7 = vmul.f32 %v5157_v30, %v5157_v30  ;;  %v7843_v31 = vsel %vm7841_vm15, %v17357_v47, %v20378_v57  ;;  %v7846_v2 = vsel %vm7844_vm13, %v20377_v58, %v17360_v17  ;;  %v17405_v41 = vadd.s32 %v2790_v42, %v2781_v46 }
 0x4a0   : > { %v2812_v36 = vadd.s32 %v2811_v44, %v2801_v52  ;;  %v5200_v6 = vsub.s32 32, %v5199_v45  ;;  %v2814_v20 = vmul.u32 %v17322_v61, %v17368_v15  ;;  %v5202_v28 = vshll.u32 %v20495_v27, %v5199_v45 }
 0x4a1   : > { %v5160_v51 = vmul.f32 -0.001358992, %v5159_v7  ;;  %v5167_v35 = vmul.f32 -0.00019511016, %v5159_v7  ;;  %vm2816_vm2 = vc.u32 %v17405_v41, %v17391_v4  ;;  %v5205_v48 = vshll.u32 %v20500_v8, %v5199_v45 }
 0x4a2   : > { %v2813_v25 = vadd.s32 %v2812_v36, %v2803_v18  ;;  %v5208_v38 = vshll.u32 %v20501_v50, %v5199_v45  ;;  %v5203_v52 = vshrl.u32 %v20500_v8, %v5200_v6  ;;  %v5206_v54 = vshrl.u32 %v20501_v50, %v5200_v6 }
 0x4a3   : > { %v5161_v43 = vadd.f32 0.041655596, %v5160_v51  ;;  %v5168_v26 = vadd.f32 0.008332121, %v5167_v35  ;;  %v5209_v33 = vshrl.u32 %v20502_v14, %v5200_v6  ;;  %v5211_v61 = vshll.u32 %v20502_v14, %v5199_v45 }
 0x4a4   : > { %v2817_v12 = vadd.s32 1, %v2813_v25  ;;  %v5212_v15 = vshrl.u32 %v20503_v37, %v5200_v6  ;;  %v7847_v44 = vsel %vm7840_vm9, %v7843_v31, %v7846_v2  ;;  %vm10320_vm15 = vcmp.lt.s32.totalorder %v17375_v34, 2 }
 0x4a5   : > { %v5162_v9 = vmul.f32 %v5161_v43, %v5159_v7  ;;  %v5169_v46 = vmul.f32 %v5168_v26, %v5159_v7  ;;  %v17422_v51 = vshrl.u32 %v5197_v29, 5  ;;  %vm10321_vm13 = vcmp.eq.s32.totalorder %v17375_v34, 0 }
 0x4a6   : > { %vm10324_vm5 = vcmp.eq.s32.totalorder %v17375_v34, 2  ;;  %v2818_v35 = vsel %vm2816_vm2, %v2817_v12, %v2813_v25  ;;  %v5214_v36 = vshll.u32 %v20503_v37, %v5199_v45  ;;  %v5207_v63 = vor.u32 %v5206_v54, %v5205_v48  ;;  %v628_v34 = vld [vmem:[%s13759_s0 + $0x70] sm:$0xff] }
 0x4a7   : > { %v5163_v18 = vadd.f32 -0.4999988, %v5162_v9  ;;  %v5170_v42 = vadd.f32 -0.16666654, %v5169_v46  ;;  %v2819_v9 = vadd.s32 %v2818_v35, %v2814_v20  ;;  %v5204_v46 = vor.u32 %v5203_v52, %v5202_v28 }
 0x4a8   : > { %v5210_v31 = vor.u32 %v5209_v33, %v5208_v38  ;;  %v5213_v2 = vor.u32 %v5212_v15, %v5211_v61  ;;  %v5215_v29 = vshrl.u32 %v20505_v59, %v5200_v6  ;;  %vm5217_vm12 = vcmp.lt.s32.totalorder %v17422_v51, 1 }
 0x4a9   : > { %v5164_v43 = vmul.f32 %v5163_v18, %v5159_v7  ;;  %v5171_v26 = vmul.f32 %v5170_v42, %v5159_v7  ;;  %v2820_v11 = vadd.s32 536870912, %v2819_v9  ;;  %v7848_v25 = vsel %vm2710_vm14, nan, %v7847_v44 }
 0x4aa   : > { %v5216_v12 = vor.u32 %v5215_v29, %v5214_v36  ;;  %vm5220_vm6 = vcmp.lt.s32.totalorder %v17422_v51, 4  ;;  %v20676_v7 = vor.u32 8388608, %v17296_v23  ;;  %vm5219_vm9 = vcmp.lt.s32.totalorder %v17422_v51, 3 }
 0x4ab   : > { %v17431_v58 = vadd.f32 1.0, %v5164_v43  ;;  %v5172_v57 = vadd.f32 1.0, %v5171_v26  ;;  %v17444_v48 = vshrl.u32 %v2820_v11, 30  ;;  %vm5218_vm2 = vcmp.lt.s32.totalorder %v17422_v51, 2 }
 0x4ac   : > { %v17439_v45 = vshll.u32 %v20676_v7, 8  ;;  %v5225_v38 = vsel %vm5217_vm12, %v5204_v46, %v5207_v63  ;;  %v5226_v52 = vsel %vm5220_vm6, %v5213_v2, 920167782  ;;  %v5230_v23 = vsel %vm5220_vm6, %v5216_v12, 1326507024 }
 0x4ad   : > { %20675 = vst [vmem:[#allocation133_spill] sm:$0xff] %v17431_v58  ;;  %v17441_v20 = vmul.f32 %v5172_v57, %v5157_v30  ;;  %v20380_v28 = vxor.u32 2147483648, %v17431_v58  ;;  %v2822_v30 = vshll.u32 %v17444_v48, 30  ;;  %v5229_v54 = vsel %vm5217_vm12, %v5207_v63, %v5210_v31 }
 0x4ae   : > { %v10806_v33 = vmul.f32 %v7848_v25, %v17284_v49  ;;  %v5227_v61 = vsel %vm5219_vm9, %v5210_v31, %v5226_v52  ;;  %v5231_v15 = vsel %vm5219_vm9, %v5213_v2, %v5230_v23  ;;  %v5201_v44 = vshrl.u32 %v20495_v27, %v5200_v6 }
 0x4af   : > { %20677 = vst [vmem:[#allocation134_spill] sm:$0xff] %v17441_v20  ;;  %v20381_v57 = vxor.u32 2147483648, %v17441_v20  ;;  %v10326_v11 = vsel %vm10324_vm5, %v20380_v28, %v17441_v20  ;;  %v2823_v42 = vsub.s32 %v2819_v9, %v2822_v30  ;;  %v5228_v35 = vsel %vm5218_vm2, %v5225_v38, %v5227_v61 }
 0x4b0   : > { %v5232_v43 = vsel %vm5218_vm2, %v5229_v54, %v5231_v15  ;;  %v5234_v26 = vand.u32 65535, %v17439_v45  ;;  %v5235_v2 = vshrl.u32 %v17439_v45, 16  ;;  %v5258_v7 = vand.u32 65535, %v5228_v35 }
 0x4b1   : > { %v10323_v18 = vsel %vm10321_vm13, %v17431_v58, %v20381_v57  ;;  %vm2824_vm13 = vcmp.lt.s32.totalorder %v2823_v42, 0  ;;  %v2825_v9 = vsub.s32 0, %v2823_v42  ;;  %v5236_v25 = vand.u32 65535, %v5232_v43 }
 0x4b2   : > { %v10327_v36 = vsel %vm10320_vm15, %v10323_v18, %v10326_v11  ;;  %v5237_v12 = vshrl.u32 %v5232_v43, 16  ;;  %v5259_v38 = vshrl.u32 %v5228_v35, 16  ;;  %v5222_v23 = vsel %vm5220_vm6, %v5210_v31, 2102212464 }
 0x4b3   : > { %v10328_v29 = vsel %vm5174_vm7, nan, %v10327_v36  ;;  %v2826_v52 = vsel %vm2824_vm13, %v2825_v9, %v2823_v42  ;;  %v5240_v11 = vmul.u32 %v5236_v25, %v5235_v2  ;;  %v5238_v61 = vmul.u32 %v5236_v25, %v5234_v26 }
 0x4b4   : > { %v10822_v6 = vmul.f32 %v10328_v29, %v17288_v22  ;;  %v2827_v54 = vclz %v2826_v52  ;;  %v5239_v15 = vmul.u32 %v5237_v12, %v5234_v26  ;;  %v2815_v18 = vadd.s32 %v17391_v4, %v17405_v41 }
 0x4b5   : > { %v5221_v36 = vsel %vm5217_vm12, %v5201_v44, %v5204_v46  ;;  %v5261_v29 = vmul.u32 %v5259_v38, %v5234_v26  ;;  %v17495_v35 = vsel %vm652_vm0, %v628_v34, 0.0  ;;  %v5241_v9 = vmul.u32 %v5237_v12, %v5235_v2 }
 0x4b6   : > { %v13254_v30 = vpack.i.bf16 %v10822_v6, %v10806_v33  ;;  %v12738_v43 = vadd.s32 4294967294, %v2827_v54  ;;  %v5242_v31 = vshll.u32 %v5239_v15, 16  ;;  %v5262_v28 = vmul.u32 %v5258_v7, %v5235_v2 }
 0x4b7   : > { %v5223_v33 = vsel %vm5219_vm9, %v5207_v63, %v5222_v23  ;;  %v5244_v25 = vshll.u32 %v5240_v11, 16  ;;  %v5260_v6 = vmul.u32 %v5258_v7, %v5234_v26  ;;  %v5264_v52 = vshll.u32 %v5261_v29, 16 }
 0x4b8   : > { %13255 = vxpose.xlu0.b32.cont [13/16] %v13254_v30, 128  ;;  %vm12739_vm15 = vcmp.lt.s32.totalorder %v12738_v43, 0  ;;  %v5245_v4 = vshrl.u32 %v5240_v11, 16  ;;  %vm5246_vm5 = vc.u32 %v5238_v61, %v5242_v31  ;;  %v5248_v41 = vadd.s32 %v5242_v31, %v5238_v61 }
 0x4b9   : > { %v2830_v46 = vsel %vm12739_vm15, 0, %v12738_v43  ;;  %v5247_v44 = vsel %vm5246_vm5, 1, %v20499_v56  ;;  %v5263_v34 = vmul.u32 %v5259_v38, %v5235_v2  ;;  %v5266_v57 = vshll.u32 %v5262_v28, 16 }
 0x4ba   : > { %v2831_v30 = vsub.s32 32, %v2830_v46  ;;  %v2832_v54 = vshll.u32 %v2823_v42, %v2830_v46  ;;  %v2835_v12 = vsub.s32 4294967266, %v2830_v46  ;;  %v5249_v22 = vadd.s32 %v5247_v44, %v5241_v9 }
 0x4bb   : > { %v5243_v32 = vshrl.u32 %v5239_v15, 16  ;;  %vm5250_vm12 = vc.u32 %v5248_v41, %v5244_v25  ;;  %vm5268_vm6 = vc.u32 %v5260_v6, %v5264_v52  ;;  %v5270_v63 = vadd.s32 %v5264_v52, %v5260_v6 }
 0x4bc   : > { %v2833_v23 = vshrl.u32 %v2815_v18, %v2831_v30  ;;  %v2836_v26 = vadd.s32 127, %v2835_v12  ;;  %v5251_v7 = vsel %vm5250_vm12, 1, %v20499_v56  ;;  %v5269_v11 = vsel %vm5268_vm6, 1, %v20499_v56 }
 0x4bd   : > { %v5253_v61 = vadd.s32 %v5251_v7, %v5249_v22  ;;  %v5265_v43 = vshrl.u32 %v5261_v29, 16  ;;  %v5271_v31 = vadd.s32 %v5269_v11, %v5263_v34  ;;  %vm5272_vm9 = vc.u32 %v5270_v63, %v5266_v57  ;;  %v594_v11 = vld [vmem:[%s14075_s18 + $0x68] sm:$0xff] }
 0x4be   : > { %v2834_v2 = vor.u32 %v2833_v23, %v2832_v54  ;;  %v2837_v38 = vshll.u32 %v2836_v26, 23  ;;  %v5273_v42 = vsel %vm5272_vm9, 1, %v20499_v56  ;;  %v2878_v15 = vand.u32 2139095040, %v17495_v35  ;;  %v644_v23 = vld [vmem:[%s13759_s0 + $0xf0] sm:$0xff] }
 0x4bf   : > { %v5254_v9 = vadd.s32 %v5253_v61, %v5243_v32  ;;  %v5267_v25 = vshrl.u32 %v5262_v28, 16  ;;  %v5275_v6 = vadd.s32 %v5273_v42, %v5271_v31  ;;  %v5274_v41 = vadd.s32 %v5270_v63, %v5266_v57  ;;  %v610_v61 = vld [vmem:[%s14075_s18 + $0xe8] sm:$0xff] }
 0x4c0   : > { %v2838_v18 = vor.u32 4788187, %v2837_v38  ;;  %v2841_v52 = vcvt.s32.f32 %v2834_v2  ;;  %v2879_v46 = vshrl.u32 %v2878_v15, 23  ;;  %v5224_v22 = vsel %vm5218_vm2, %v5221_v36, %v5223_v33 }
 0x4c1   : > { %v5255_v29 = vadd.s32 %v5254_v9, %v5245_v4  ;;  %v5276_v44 = vadd.s32 %v5275_v6, %v5265_v43  ;;  %v2845_v54 = vsub.s32 4, %v17444_v48  ;;  %v5278_v28 = vmul.u32 %v17439_v45, %v5224_v22 }
 0x4c2   : > { %v2839_v34 = vand.u32 2147483647, %v2838_v18  ;;  %v12740_v30 = vadd.s32 4294967169, %v2879_v46  ;;  %vm2723_vm15 = vcmp.lt.s32.totalorder %v17222_v10, 0  ;;  %v20385_v51 = vand.u32 2147483647, %v17495_v35 }
 0x4c3   : > { %v5277_v12 = vadd.s32 %v5276_v44, %v5267_v25  ;;  %vm5280_vm13 = vc.u32 %v5255_v29, %v5274_v41  ;;  %v20678_v36 = vand.u32 2147483647, %v17222_v10  ;;  %v17519_v63 = vsel %vm652_vm0, %v644_v23, 0.0 }
 0x4c4   : > { %v2842_v32 = vmul.f32 %v2841_v52, %v2839_v34  ;;  %v2885_v26 = vadd.s32 1, %v12740_v30  ;;  %v2846_v31 = vsel %vm2723_vm15, %v2845_v54, %v17444_v48  ;;  %v2882_v15 = vand.u32 8388607, %v20385_v51 }
 0x4c5   : > { %v5281_v57 = vadd.s32 1, %v5277_v12  ;;  %vm17513_vm2 = vcmp.le.f32.partialorder %v20678_v36, 0.7853982  ;;  %v20384_v9 = vand.u32 2147483647, %v17519_v63  ;;  %v5342_v25 = vand.u32 2139095040, %v17519_v63 }
 0x4c6   : > { %v2843_v4 = vxor.u32 2147483648, %v2842_v32  ;;  %vm2886_vm5 = vcmp.gt.s32.totalorder %v2885_v26, 0  ;;  %v17537_v48 = vsel %vm652_vm0, %v594_v11, 0.0  ;;  %v17541_v52 = vsel %vm652_vm0, %v610_v61, 0.0 }
 0x4c7   : > { %v5282_v45 = vsel %vm5280_vm13, %v5281_v57, %v5277_v12  ;;  %v2887_v7 = vsel %vm2886_vm5, %v2885_v26, 0  ;;  %20681 = vst [vmem:[#allocation135_spill] sm:$0xff] %v17541_v52  ;;  %v17545_v46 = vsel %vm17513_vm2, 0, %v2846_v31  ;;  %v17547_v54 = vadd.s32 %v5274_v41, %v5255_v29 }
 0x4c8   : > { %v2844_v43 = vsel %vm2723_vm15, %v2843_v4, %v2842_v32  ;;  %v5283_v2 = vadd.s32 %v5282_v45, %v5278_v28  ;;  %v2889_v38 = vand.u32 31, %v2887_v7  ;;  %v2883_v12 = vor.u32 8388608, %v2882_v15 }
 0x4c9   : > { %v17527_v42 = vsel %vm17513_vm2, %v17222_v10, %v2844_v43  ;;  %v5343_v23 = vshrl.u32 %v5342_v25, 23  ;;  %v17551_v32 = vand.u32 8388607, %v20384_v9  ;;  %v17553_v36 = vshrl.u32 %v2887_v7, 5 }
 0x4ca   : > { %v2849_v6 = vmul.f32 %v17527_v42, %v17527_v42  ;;  %v5284_v18 = vadd.s32 536870912, %v5283_v2  ;;  %v2890_v30 = vsub.s32 32, %v2889_v38  ;;  %vm5187_vm12 = vcmp.lt.s32.totalorder %v17262_v40, 0 }
 0x4cb   : > { %v2892_v33 = vshll.u32 %v20495_v27, %v2889_v38  ;;  %v2895_v4 = vshll.u32 %v20500_v8, %v2889_v38  ;;  %v2898_v41 = vshll.u32 %v20501_v50, %v2889_v38  ;;  %v2904_v29 = vshll.u32 %v20503_v37, %v2889_v38 }
 0x4cc   : > { %v2850_v22 = vmul.f32 -0.001358992, %v2849_v6  ;;  %v2857_v44 = vmul.f32 -0.00019511016, %v2849_v6  ;;  %v5285_v34 = vshrl.u32 %v5284_v18, 30  ;;  %v2901_v61 = vshll.u32 %v20502_v14, %v2889_v38 }
 0x4cd   : > { %v2902_v43 = vshrl.u32 %v20503_v37, %v2890_v30  ;;  %v2896_v7 = vshrl.u32 %v20501_v50, %v2890_v30  ;;  %v2899_v15 = vshrl.u32 %v20502_v14, %v2890_v30  ;;  %v2905_v25 = vshrl.u32 %v20505_v59, %v2890_v30 }
 0x4ce   : > { %v2851_v28 = vadd.f32 0.041655596, %v2850_v22  ;;  %v2858_v26 = vadd.f32 0.008332121, %v2857_v44  ;;  %v5286_v57 = vshll.u32 %v5285_v34, 30  ;;  %v2893_v44 = vshrl.u32 %v20500_v8, %v2890_v30 }
 0x4cf   : > { %v20682_v9 = vand.u32 2147483647, %v17262_v40  ;;  %v2906_v38 = vor.u32 %v2905_v25, %v2904_v29  ;;  %v5309_v19 = vsub.s32 4, %v5285_v34  ;;  %v2903_v1 = vor.u32 %v2902_v43, %v2901_v61 }
 0x4d0   : > { %v2859_v45 = vmul.f32 %v2858_v26, %v2849_v6  ;;  %v5287_v11 = vsub.s32 %v5283_v2, %v5286_v57  ;;  %v2852_v31 = vmul.f32 %v2851_v28, %v2849_v6  ;;  %v17572_v26 = vshll.u32 %v2883_v12, 8 }
 0x4d1   : > { %vm17568_vm9 = vcmp.le.f32.partialorder %v20682_v9, 0.7853982  ;;  %v12788_v28 = vadd.s32 4294967169, %v5343_v23  ;;  %vm2910_vm13 = vcmp.lt.s32.totalorder %v17553_v36, 4  ;;  %v2897_v60 = vor.u32 %v2896_v7, %v2895_v4 }
 0x4d2   : > { %v2860_v18 = vadd.f32 -0.16666654, %v2859_v45  ;;  %vm5288_vm6 = vcmp.lt.s32.totalorder %v5287_v11, 0  ;;  %v5289_v22 = vsub.s32 0, %v5287_v11  ;;  %v2853_v45 = vadd.f32 -0.4999988, %v2852_v31 }
 0x4d3   : > { %v2900_v13 = vor.u32 %v2899_v15, %v2898_v41  ;;  %v2894_v9 = vor.u32 %v2893_v44, %v2892_v33  ;;  %vm2907_vm15 = vcmp.lt.s32.totalorder %v17553_v36, 1  ;;  %vm2909_vm2 = vcmp.lt.s32.totalorder %v17553_v36, 3 }
 0x4d4   : > { %v5290_v51 = vsel %vm5288_vm6, %v5289_v22, %v5287_v11  ;;  %v2861_v58 = vmul.f32 %v2860_v18, %v2849_v6  ;;  %v2920_v23 = vsel %vm2910_vm13, %v2906_v38, 1326507024  ;;  %v2924_v29 = vand.u32 65535, %v17572_v26 }
 0x4d5   : > { %v5291_v62 = vclz %v5290_v51  ;;  %v2925_v61 = vshrl.u32 %v17572_v26, 16  ;;  %v5310_v43 = vsel %vm5187_vm12, %v5309_v19, %v5285_v34  ;;  %v2891_v51 = vshrl.u32 %v20495_v27, %v2890_v30 }
 0x4d6   : > { %vm2908_vm5 = vcmp.lt.s32.totalorder %v17553_v36, 2  ;;  %v2916_v33 = vsel %vm2910_vm13, %v2903_v1, 920167782  ;;  %v2854_v4 = vmul.f32 %v2853_v45, %v2849_v6  ;;  %v2921_v41 = vsel %vm2909_vm2, %v2903_v1, %v2920_v23 }
 0x4d7   : > { %v12786_v12 = vadd.s32 4294967294, %v5291_v62  ;;  %v2919_v62 = vsel %vm2907_vm15, %v2897_v60, %v2900_v13  ;;  %v2862_v31 = vadd.f32 1.0, %v2861_v58  ;;  %v2912_v19 = vsel %vm2910_vm13, %v2900_v13, 2102212464 }
 0x4d8   : > { %v2915_v34 = vsel %vm2907_vm15, %v2894_v9, %v2897_v60  ;;  %v2917_v6 = vsel %vm2909_vm2, %v2900_v13, %v2916_v33  ;;  %v17600_v18 = vsel %vm17568_vm9, 0, %v5310_v43  ;;  %v7993_v1 = vadd.s32 3, %v17545_v46 }
 0x4d9   : > { %vm12787_vm6 = vcmp.lt.s32.totalorder %v12786_v12, 0  ;;  %v2922_v58 = vsel %vm2908_vm5, %v2919_v62, %v2921_v41  ;;  %v5349_v22 = vadd.s32 1, %v12788_v28  ;;  %v2913_v45 = vsel %vm2909_vm2, %v2897_v60, %v2912_v19 }
 0x4da   : > { %v5294_v7 = vsel %vm12787_vm6, 0, %v12786_v12  ;;  %v17610_v13 = vadd.f32 1.0, %v2854_v4  ;;  %v17613_v12 = vmul.f32 %v2862_v31, %v17527_v42  ;;  %v2918_v23 = vsel %vm2908_vm5, %v2915_v34, %v2917_v6 }
 0x4db   : > { %v5295_v30 = vsub.s32 32, %v5294_v7  ;;  %v5296_v15 = vshll.u32 %v5287_v11, %v5294_v7  ;;  %v5299_v25 = vsub.s32 4294967266, %v5294_v7  ;;  %v2911_v11 = vsel %vm2907_vm15, %v2891_v51, %v2894_v9 }
 0x4dc   : > { %v2926_v43 = vand.u32 65535, %v2922_v58  ;;  %v2927_v62 = vshrl.u32 %v2922_v58, 16  ;;  %v17618_v41 = vand.u32 3, %v7993_v1  ;;  %v2948_v51 = vand.u32 65535, %v2918_v23 }
 0x4dd   : > { %v5297_v44 = vshrl.u32 %v17547_v54, %v5295_v30  ;;  %v5300_v38 = vadd.s32 127, %v5299_v25  ;;  %v10473_v54 = vadd.s32 3, %v17600_v18  ;;  %vm5350_vm13 = vcmp.gt.s32.totalorder %v5349_v22, 0 }
 0x4de   : > { %v2930_v9 = vmul.u32 %v2926_v43, %v2925_v61  ;;  %v2928_v7 = vmul.u32 %v2926_v43, %v2924_v29  ;;  %v2929_v19 = vmul.u32 %v2927_v62, %v2924_v29  ;;  %v20397_v42 = vxor.u32 2147483648, %v17613_v12 }
 0x4df   : > { %v5298_v33 = vor.u32 %v5297_v44, %v5296_v15  ;;  %v5301_v28 = vshll.u32 %v5300_v38, 23  ;;  %v17624_v34 = vsel %vm2908_vm5, %v2911_v11, %v2913_v45  ;;  %v2949_v30 = vshrl.u32 %v2918_v23, 16 }
 0x4e0   : > { %v17626_v25 = vand.u32 3, %v10473_v54  ;;  %v2931_v6 = vmul.u32 %v2927_v62, %v2925_v61  ;;  %v2932_v1 = vshll.u32 %v2929_v19, 16  ;;  %v2934_v58 = vshll.u32 %v2930_v9, 16 }
 0x4e1   : > { %v5302_v60 = vor.u32 4788187, %v5301_v28  ;;  %v5305_v4 = vcvt.s32.f32 %v5298_v33  ;;  %v2950_v44 = vmul.u32 %v2948_v51, %v2924_v29  ;;  %v2951_v38 = vmul.u32 %v2949_v30, %v2924_v29 }
 0x4e2   : > { %v2952_v33 = vmul.u32 %v2948_v51, %v2925_v61  ;;  %vm7996_vm15 = vcmp.eq.s32.totalorder %v17618_v41, 0  ;;  %v2935_v28 = vshrl.u32 %v2930_v9, 16  ;;  %vm2936_vm2 = vc.u32 %v2928_v7, %v2932_v1 }
 0x4e3   : > { %v5303_v15 = vand.u32 2147483647, %v5302_v60  ;;  %v2937_v57 = vsel %vm2936_vm2, 1, %v20499_v56  ;;  %v2938_v36 = vadd.s32 %v2932_v1, %v2928_v7  ;;  %v2953_v11 = vmul.u32 %v2949_v30, %v2925_v61 }
 0x4e4   : > { %v2954_v45 = vshll.u32 %v2951_v38, 16  ;;  %v2933_v60 = vshrl.u32 %v2929_v19, 16  ;;  %v2939_v54 = vadd.s32 %v2937_v57, %v2931_v6  ;;  %v2956_v31 = vshll.u32 %v2952_v33, 16 }
 0x4e5   : > { %v5306_v43 = vmul.f32 %v5305_v4, %v5303_v15  ;;  %vm7995_vm5 = vcmp.lt.s32.totalorder %v17618_v41, 2  ;;  %vm2940_vm6 = vc.u32 %v2938_v36, %v2934_v58  ;;  %v5351_v62 = vsel %vm5350_vm13, %v5349_v22, 0 }
 0x4e6   : > { %vm2958_vm1 = vc.u32 %v2950_v44, %v2954_v45  ;;  %v2960_v29 = vadd.s32 %v2954_v45, %v2950_v44  ;;  %v2941_v51 = vsel %vm2940_vm6, 1, %v20499_v56  ;;  %v2955_v4 = vshrl.u32 %v2951_v38, 16 }
 0x4e7   : > { %v5307_v23 = vxor.u32 2147483648, %v5306_v43  ;;  %v2959_v61 = vsel %vm2958_vm1, 1, %v20499_v56  ;;  %v2943_v7 = vadd.s32 %v2941_v51, %v2939_v54  ;;  %vm7999_vm4 = vcmp.eq.s32.totalorder %v17618_v41, 2 }
 0x4e8   : > { %v2961_v19 = vadd.s32 %v2959_v61, %v2953_v11  ;;  %vm2962_vm2 = vc.u32 %v2960_v29, %v2956_v31  ;;  %v5353_v15 = vand.u32 31, %v5351_v62  ;;  %v7998_v6 = vsel %vm7996_vm15, %v17610_v13, %v20397_v42 }
 0x4e9   : > { %v5308_v9 = vsel %vm5187_vm12, %v5307_v23, %v5306_v43  ;;  %v2963_v22 = vsel %vm2962_vm2, 1, %v20499_v56  ;;  %v2944_v1 = vadd.s32 %v2943_v7, %v2933_v60  ;;  %v2957_v58 = vshrl.u32 %v2952_v33, 16 }
 0x4ea   : > { %v5311_v57 = vsel %vm17568_vm9, %v17262_v40, %v5308_v9  ;;  %v2965_v44 = vadd.s32 %v2963_v22, %v2961_v19  ;;  %vm2864_vm1 = vweird.f32 %v17222_v10  ;;  %v17647_v43 = vadd.s32 %v2960_v29, %v2956_v31 }
 0x4eb   : > { %v5313_v30 = vmul.f32 %v5311_v57, %v5311_v57  ;;  %v17649_v36 = vsub.s32 32, %v5353_v15  ;;  %v20685_v11 = vxor.u32 2147483648, %v17610_v13  ;;  %v17654_v23 = vadd.s32 %v2944_v1, %v2935_v28 }
 0x4ec   : > { %v2966_v54 = vadd.s32 %v2965_v44, %v2955_v4  ;;  %v2968_v60 = vmul.u32 %v17572_v26, %v17624_v34  ;;  %v17658_v51 = vshrl.u32 %v5351_v62, 5  ;;  %v5356_v61 = vshll.u32 %v20495_v27, %v5353_v15 }
 0x4ed   : > { %v5314_v2 = vmul.f32 -0.001358992, %v5313_v30  ;;  %v5321_v38 = vmul.f32 -0.00019511016, %v5313_v30  ;;  %v8001_v45 = vsel %vm7999_vm4, %v20685_v11, %v17613_v12  ;;  %v5357_v29 = vshrl.u32 %v20500_v8, %v17649_v36 }
 0x4ee   : > { %v2967_v31 = vadd.s32 %v2966_v54, %v2957_v58  ;;  %v5359_v7 = vshll.u32 %v20500_v8, %v5353_v15  ;;  %v5362_v19 = vshll.u32 %v20501_v50, %v5353_v15  ;;  %vm2970_vm4 = vc.u32 %v17654_v23, %v17647_v43 }
 0x4ef   : > { %v5315_v33 = vadd.f32 0.041655596, %v5314_v2  ;;  %v5322_v9 = vadd.f32 0.008332121, %v5321_v38  ;;  %v5360_v26 = vshrl.u32 %v20501_v50, %v17649_v36  ;;  %v5363_v62 = vshrl.u32 %v20502_v14, %v17649_v36 }
 0x4f0   : > { %v2971_v34 = vadd.s32 1, %v2967_v31  ;;  %v5365_v4 = vshll.u32 %v20502_v14, %v5353_v15  ;;  %v5366_v1 = vshrl.u32 %v20503_v37, %v17649_v36  ;;  %v8002_v2 = vsel %vm7995_vm5, %v7998_v6, %v8001_v45 }
 0x4f1   : > { %v5316_v28 = vmul.f32 %v5315_v33, %v5313_v30  ;;  %v5323_v22 = vmul.f32 %v5322_v9, %v5313_v30  ;;  %vm10475_vm12 = vcmp.lt.s32.totalorder %v17626_v25, 2  ;;  %v5368_v38 = vshll.u32 %v20503_v37, %v5353_v15 }
 0x4f2   : > { %vm10476_vm9 = vcmp.eq.s32.totalorder %v17626_v25, 0  ;;  %v2972_v11 = vsel %vm2970_vm4, %v2971_v34, %v2967_v31  ;;  %v5367_v54 = vor.u32 %v5366_v1, %v5365_v4  ;;  %v5369_v33 = vshrl.u32 %v20505_v59, %v17649_v36 }
 0x4f3   : > { %v5317_v58 = vadd.f32 -0.4999988, %v5316_v28  ;;  %v5324_v44 = vadd.f32 -0.16666654, %v5323_v22  ;;  %v2973_v20 = vadd.s32 %v2972_v11, %v2968_v60  ;;  %v17681_v16 = vor.u32 %v5357_v29, %v5356_v61 }
 0x4f4   : > { %v17683_v28 = vor.u32 %v5360_v26, %v5359_v7  ;;  %v17685_v41 = vor.u32 %v5363_v62, %v5362_v19  ;;  %v5370_v6 = vor.u32 %v5369_v33, %v5368_v38  ;;  %vm5374_vm13 = vcmp.lt.s32.totalorder %v17658_v51, 4 }
 0x4f5   : > { %v5318_v9 = vmul.f32 %v5317_v58, %v5313_v30  ;;  %v5325_v42 = vmul.f32 %v5324_v44, %v5313_v30  ;;  %v2974_v31 = vadd.s32 536870912, %v2973_v20  ;;  %vm5371_vm15 = vcmp.lt.s32.totalorder %v17658_v51, 1 }
 0x4f6   : > { %v8003_v22 = vsel %vm2864_vm1, nan, %v8002_v2  ;;  %vm10479_vm5 = vcmp.eq.s32.totalorder %v17626_v25, 2  ;;  %vm5373_vm6 = vcmp.lt.s32.totalorder %v17658_v51, 3  ;;  %v5380_v30 = vsel %vm5374_vm13, %v5367_v54, 920167782 }
 0x4f7   : > { %v17688_v15 = vadd.f32 1.0, %v5318_v9  ;;  %v5326_v45 = vadd.f32 1.0, %v5325_v42  ;;  %v17700_v29 = vshrl.u32 %v2974_v31, 30  ;;  %vm5372_vm2 = vcmp.lt.s32.totalorder %v17658_v51, 2 }
 0x4f8   : > { %v5379_v42 = vsel %vm5371_vm15, %v17681_v16, %v17683_v28  ;;  %v5383_v7 = vsel %vm5371_vm15, %v17683_v28, %v17685_v41  ;;  %v20688_v19 = vor.u32 8388608, %v17551_v32  ;;  %v5381_v1 = vsel %vm5373_vm6, %v17685_v41, %v5380_v30 }
 0x4f9   : > { %20686 = vst [vmem:[#allocation136_spill] sm:$0xff] %v17688_v15  ;;  %v17697_v60 = vmul.f32 %v5326_v45, %v5311_v57  ;;  %v20401_v61 = vxor.u32 2147483648, %v17688_v15  ;;  %v5384_v57 = vsel %vm5374_vm13, %v5370_v6, 1326507024  ;;  %v2976_v4 = vshll.u32 %v17700_v29, 30 }
 0x4fa   : > { %v17715_v26 = vshll.u32 %v20688_v19, 8  ;;  %vm5328_vm4 = vweird.f32 %v17262_v40  ;;  %v5385_v58 = vsel %vm5373_vm6, %v5367_v54, %v5384_v57  ;;  %v10807_v38 = vmul.f32 %v8003_v22, %v17537_v48 }
 0x4fb   : > { %20687 = vst [vmem:[#allocation137_spill] sm:$0xff] %v17697_v60  ;;  %v20402_v34 = vxor.u32 2147483648, %v17697_v60  ;;  %v10481_v62 = vsel %vm10479_vm5, %v20401_v61, %v17697_v60  ;;  %v2977_v11 = vsub.s32 %v2973_v20, %v2976_v4  ;;  %v5386_v33 = vsel %vm5372_vm2, %v5383_v7, %v5385_v58 }
 0x4fc   : > { %v5388_v32 = vand.u32 65535, %v17715_v26  ;;  %v5389_v44 = vshrl.u32 %v17715_v26, 16  ;;  %v5382_v54 = vsel %vm5372_vm2, %v5379_v42, %v5381_v1  ;;  %v5390_v6 = vand.u32 65535, %v5386_v33 }
 0x4fd   : > { %v10478_v2 = vsel %vm10476_vm9, %v17688_v15, %v20402_v34  ;;  %v5391_v45 = vshrl.u32 %v5386_v33, 16  ;;  %vm2978_vm5 = vcmp.lt.s32.totalorder %v2977_v11, 0  ;;  %v2979_v30 = vsub.s32 0, %v2977_v11  ;;  %v629_v33 = vld [vmem:[%s13759_s0 + $0x78] sm:$0xff] }
 0x4fe   : > { %v10482_v9 = vsel %vm10475_vm12, %v10478_v2, %v10481_v62  ;;  %v5412_v57 = vand.u32 65535, %v5382_v54  ;;  %v5392_v22 = vmul.u32 %v5390_v6, %v5388_v32  ;;  %v5394_v7 = vmul.u32 %v5390_v6, %v5389_v44 }
 0x4ff   : > { %v10483_v31 = vsel %vm5328_vm4, nan, %v10482_v9  ;;  %v5393_v19 = vmul.u32 %v5391_v45, %v5388_v32  ;;  %v2980_v4 = vsel %vm2978_vm5, %v2979_v30, %v2977_v11  ;;  %v5355_v25 = vshrl.u32 %v20495_v27, %v17649_v36 }
 0x500   : > { %v10823_v20 = vmul.f32 %v10483_v31, %v17541_v52  ;;  %v5413_v62 = vshrl.u32 %v5382_v54, 16  ;;  %v2981_v1 = vclz %v2980_v4  ;;  %v5395_v58 = vmul.u32 %v5391_v45, %v5389_v44 }
 0x501   : > { %v5396_v2 = vshll.u32 %v5393_v19, 16  ;;  %v5398_v61 = vshll.u32 %v5394_v7, 16  ;;  %v5414_v9 = vmul.u32 %v5412_v57, %v5388_v32  ;;  %v5416_v0 = vmul.u32 %v5412_v57, %v5389_v44 }
 0x502   : > { %v13256_v42 = vpack.i.bf16 %v10823_v20, %v10807_v38  ;;  %v5415_v34 = vmul.u32 %v5413_v62, %v5388_v32  ;;  %v2969_v31 = vadd.s32 %v17647_v43, %v17654_v23  ;;  %v12741_v52 = vadd.s32 4294967294, %v2981_v1 }
 0x503   : > { %vm5400_vm12 = vc.u32 %v5392_v22, %v5396_v2  ;;  %v5402_v6 = vadd.s32 %v5396_v2, %v5392_v22  ;;  %v5397_v30 = vshrl.u32 %v5393_v19, 16  ;;  %v17753_v38 = vsel %vm652_vm0, %v629_v33, 0.0 }
 0x504   : > { %13257 = vxpose.xlu0.b32.cont [14/16] %v13256_v42, 128  ;;  %v5401_v36 = vsel %vm5400_vm12, 1, %v20499_v56  ;;  %v5418_v54 = vshll.u32 %v5415_v34, 16  ;;  %vm12742_vm9 = vcmp.lt.s32.totalorder %v12741_v52, 0  ;;  %v5417_v32 = vmul.u32 %v5413_v62, %v5389_v44 }
 0x505   : > { %v5403_v45 = vadd.s32 %v5401_v36, %v5395_v58  ;;  %vm5404_vm5 = vc.u32 %v5402_v6, %v5398_v61  ;;  %v2984_v57 = vsel %vm12742_vm9, 0, %v12741_v52  ;;  %v5420_v4 = vshll.u32 %v5416_v0, 16 }
 0x506   : > { %v5405_v20 = vsel %vm5404_vm5, 1, %v20499_v56  ;;  %vm5422_vm10 = vc.u32 %v5414_v9, %v5418_v54  ;;  %v2985_v43 = vsub.s32 32, %v2984_v57  ;;  %v2986_v23 = vshll.u32 %v2977_v11, %v2984_v57 }
 0x507   : > { %v2989_v22 = vsub.s32 4294967266, %v2984_v57  ;;  %v5407_v19 = vadd.s32 %v5405_v20, %v5403_v45  ;;  %v5376_v42 = vsel %vm5374_vm13, %v17685_v41, 2102212464  ;;  %v5399_v1 = vshrl.u32 %v5394_v7, 16 }
 0x508   : > { %v5423_v2 = vsel %vm5422_vm10, 1, %v20499_v56  ;;  %v5424_v33 = vadd.s32 %v5418_v54, %v5414_v9  ;;  %v2987_v58 = vshrl.u32 %v2969_v31, %v2985_v43  ;;  %v5375_v62 = vsel %vm5371_vm15, %v5355_v25, %v17681_v16 }
 0x509   : > { %v2990_v61 = vadd.s32 127, %v2989_v22  ;;  %v5408_v44 = vadd.s32 %v5407_v19, %v5397_v30  ;;  %v5425_v52 = vadd.s32 %v5423_v2, %v5417_v32  ;;  %v5419_v6 = vshrl.u32 %v5415_v34, 16  ;;  %v595_v2 = vld [vmem:[%s14075_s18 + $0x70] sm:$0xff] }
 0x50a   : > { %vm5426_vm12 = vc.u32 %v5424_v33, %v5420_v4  ;;  %v3032_v11 = vand.u32 2139095040, %v17753_v38  ;;  %v2988_v36 = vor.u32 %v2987_v58, %v2986_v23  ;;  %v5377_v41 = vsel %vm5373_vm6, %v17683_v28, %v5376_v42 }
 0x50b   : > { %v2991_v45 = vshll.u32 %v2990_v61, 23  ;;  %v5427_v7 = vsel %vm5426_vm12, 1, %v20499_v56  ;;  %v5421_v9 = vshrl.u32 %v5416_v0, 16  ;;  %v5409_v57 = vadd.s32 %v5408_v44, %v5399_v1  ;;  %v645_v1 = vld [vmem:[%s13759_s0 + $0xf8] sm:$0xff] }
 0x50c   : > { %v5429_v31 = vadd.s32 %v5427_v7, %v5425_v52  ;;  %v3033_v30 = vshrl.u32 %v3032_v11, 23  ;;  %v2995_v32 = vcvt.s32.f32 %v2988_v36  ;;  %v5428_v16 = vadd.s32 %v5424_v33, %v5420_v4  ;;  %v611_v33 = vld [vmem:[%s14075_s18 + $0xf0] sm:$0xff] }
 0x50d   : > { %v2992_v54 = vor.u32 4788187, %v2991_v45  ;;  %v5378_v34 = vsel %vm5372_vm2, %v5375_v62, %v5377_v41  ;;  %v2999_v28 = vsub.s32 4, %v17700_v29  ;;  %v20689_v42 = vand.u32 2147483647, %v17495_v35 }
 0x50e   : > { %v5430_v25 = vadd.s32 %v5429_v31, %v5419_v6  ;;  %v12743_v20 = vadd.s32 4294967169, %v3033_v30  ;;  %v5432_v19 = vmul.u32 %v17715_v26, %v5378_v34  ;;  %vm5434_vm10 = vc.u32 %v5409_v57, %v5428_v16 }
 0x50f   : > { %v2993_v43 = vand.u32 2147483647, %v2992_v54  ;;  %vm17774_vm13 = vcmp.le.f32.partialorder %v20689_v42, 0.7853982  ;;  %vm2877_vm15 = vcmp.lt.s32.totalorder %v17495_v35, 0  ;;  %v17786_v36 = vsel %vm652_vm0, %v645_v1, 0.0 }
 0x510   : > { %v5431_v23 = vadd.s32 %v5430_v25, %v5421_v9  ;;  %v3039_v22 = vadd.s32 1, %v12743_v20  ;;  %v20407_v61 = vand.u32 2147483647, %v17753_v38  ;;  %v3000_v26 = vsel %vm2877_vm15, %v2999_v28, %v17700_v29 }
 0x511   : > { %v2996_v0 = vmul.f32 %v2995_v32, %v2993_v43  ;;  %v17790_v45 = vsel %vm652_vm0, %v595_v2, 0.0  ;;  %v17794_v41 = vsel %vm652_vm0, %v611_v33, 0.0  ;;  %v17803_v9 = vsel %vm17774_vm13, 0, %v3000_v26 }
 0x512   : > { %v5435_v51 = vadd.s32 1, %v5431_v23  ;;  %vm3040_vm6 = vcmp.gt.s32.totalorder %v3039_v22, 0  ;;  %v3036_v54 = vand.u32 8388607, %v20407_v61  ;;  %v17809_v32 = vadd.s32 %v5428_v16, %v5409_v57 }
 0x513   : > { %v2997_v58 = vxor.u32 2147483648, %v2996_v0  ;;  %v3041_v44 = vsel %vm3040_vm6, %v3039_v22, 0  ;;  %v20411_v25 = vand.u32 2147483647, %v17786_v36  ;;  %v5496_v20 = vand.u32 2139095040, %v17786_v36 }
 0x514   : > { %v5436_v52 = vsel %vm5434_vm10, %v5435_v51, %v5431_v23  ;;  %v3043_v62 = vand.u32 31, %v3041_v44  ;;  %vm5341_vm2 = vcmp.lt.s32.totalorder %v17519_v63, 0 }
 0x515   : > { %v2998_v6 = vsel %vm2877_vm15, %v2997_v58, %v2996_v0  ;;  %v5437_v11 = vadd.s32 %v5436_v52, %v5432_v19  ;;  %v17815_v0 = vshrl.u32 %v3041_v44, 5 }
 0x516   : > { %v17799_v29 = vsel %vm17774_vm13, %v17495_v35, %v2998_v6  ;;  %v3044_v7 = vsub.s32 32, %v3043_v62  ;;  %v3055_v34 = vshll.u32 %v20502_v14, %v3043_v62  ;;  %v3046_v19 = vshll.u32 %v20495_v27, %v3043_v62 }
 0x517   : > { %v3003_v31 = vmul.f32 %v17799_v29, %v17799_v29  ;;  %v5438_v30 = vadd.s32 536870912, %v5437_v11  ;;  %v3049_v42 = vshll.u32 %v20500_v8, %v3043_v62  ;;  %v3058_v57 = vshll.u32 %v20503_v37, %v3043_v62 }
 0x518   : > { %v3056_v22 = vshrl.u32 %v20503_v37, %v3044_v7  ;;  %v3052_v1 = vshll.u32 %v20501_v50, %v3043_v62  ;;  %v3047_v2 = vshrl.u32 %v20500_v8, %v3044_v7  ;;  %v3050_v33 = vshrl.u32 %v20501_v50, %v3044_v7 }
 0x519   : > { %v3004_v43 = vmul.f32 -0.001358992, %v3003_v31  ;;  %v3011_v28 = vmul.f32 -0.00019511016, %v3003_v31  ;;  %v5439_v23 = vshrl.u32 %v5438_v30, 30  ;;  %v3053_v58 = vshrl.u32 %v20502_v14, %v3044_v7 }
 0x51a   : > { %v3059_v44 = vshrl.u32 %v20505_v59, %v3044_v7  ;;  %v3057_v30 = vor.u32 %v3056_v22, %v3055_v34  ;;  %vm3064_vm9 = vcmp.lt.s32.totalorder %v17815_v0, 4  ;;  %v17831_v62 = vand.u32 8388607, %v20411_v25 }
 0x51b   : > { %v3005_v16 = vadd.f32 0.041655596, %v3004_v43  ;;  %v3012_v4 = vadd.f32 0.008332121, %v3011_v28  ;;  %v5440_v51 = vshll.u32 %v5439_v23, 30  ;;  %v3037_v43 = vor.u32 8388608, %v3036_v54 }
 0x51c   : > { %v3060_v28 = vor.u32 %v3059_v44, %v3058_v57  ;;  %v3051_v40 = vor.u32 %v3050_v33, %v3049_v42  ;;  %vm3061_vm12 = vcmp.lt.s32.totalorder %v17815_v0, 1  ;;  %vm3063_vm10 = vcmp.lt.s32.totalorder %v17815_v0, 3 }
 0x51d   : > { %v3006_v26 = vmul.f32 %v3005_v16, %v3003_v31  ;;  %v3013_v52 = vmul.f32 %v3012_v4, %v3003_v31  ;;  %v17826_v6 = vsub.s32 %v5437_v11, %v5440_v51  ;;  %v3048_v4 = vor.u32 %v3047_v2, %v3046_v19 }
 0x51e   : > { %v3054_v11 = vor.u32 %v3053_v58, %v3052_v1  ;;  %v5497_v51 = vshrl.u32 %v5496_v20, 23  ;;  %v3070_v34 = vsel %vm3064_vm9, %v3057_v30, 920167782  ;;  %v20692_v22 = vand.u32 2147483647, %v17519_v63 }
 0x51f   : > { %v3007_v61 = vadd.f32 -0.4999988, %v3006_v26  ;;  %v3014_v24 = vadd.f32 -0.16666654, %v3013_v52  ;;  %vm5442_vm5 = vcmp.lt.s32.totalorder %v17826_v6, 0  ;;  %v5443_v16 = vsub.s32 0, %v17826_v6 }
 0x520   : > { %vm17847_vm13 = vcmp.le.f32.partialorder %v20692_v22, 0.7853982  ;;  %v5463_v20 = vsub.s32 4, %v5439_v23  ;;  %v3045_v42 = vshrl.u32 %v20495_v27, %v3044_v7  ;;  %v17852_v1 = vshll.u32 %v3037_v43, 8 }
 0x521   : > { %v5444_v54 = vsel %vm5442_vm5, %v5443_v16, %v17826_v6  ;;  %v3008_v2 = vmul.f32 %v3007_v61, %v3003_v31  ;;  %v3015_v33 = vmul.f32 %v3014_v24, %v3003_v31  ;;  %v3066_v58 = vsel %vm3064_vm9, %v3054_v11, 2102212464 }
 0x522   : > { %v5445_v19 = vclz %v5444_v54  ;;  %v3074_v44 = vsel %vm3064_vm9, %v3060_v28, 1326507024  ;;  %vm3062_vm15 = vcmp.lt.s32.totalorder %v17815_v0, 2  ;;  %v3069_v52 = vsel %vm3061_vm12, %v3048_v4, %v3051_v40 }
 0x523   : > { %v3071_v16 = vsel %vm3063_vm10, %v3054_v11, %v3070_v34  ;;  %v3073_v7 = vsel %vm3061_vm12, %v3051_v40, %v3054_v11  ;;  %v3075_v24 = vsel %vm3063_vm10, %v3057_v30, %v3074_v44  ;;  %v12791_v61 = vadd.s32 4294967169, %v5497_v51 }
 0x524   : > { %v12789_v26 = vadd.s32 4294967294, %v5445_v19  ;;  %v5464_v43 = vsel %vm5341_vm2, %v5463_v20, %v5439_v23  ;;  %v3065_v28 = vsel %vm3061_vm12, %v3045_v42, %v3048_v4  ;;  %v3067_v54 = vsel %vm3063_vm10, %v3051_v40, %v3066_v58 }
 0x525   : > { %v17874_v34 = vadd.f32 1.0, %v3008_v2  ;;  %v3016_v22 = vadd.f32 1.0, %v3015_v33  ;;  %v3072_v30 = vsel %vm3062_vm15, %v3069_v52, %v3071_v16  ;;  %v3076_v23 = vsel %vm3062_vm15, %v3073_v7, %v3075_v24 }
 0x526   : > { %vm12790_vm6 = vcmp.lt.s32.totalorder %v12789_v26, 0  ;;  %v8148_v20 = vadd.s32 3, %v17803_v9  ;;  %v3078_v4 = vand.u32 65535, %v17852_v1  ;;  %v3079_v40 = vshrl.u32 %v17852_v1, 16 }
 0x527   : > { %v5448_v11 = vsel %vm12790_vm6, 0, %v12789_v26  ;;  %v3080_v42 = vand.u32 65535, %v3076_v23  ;;  %v3103_v58 = vshrl.u32 %v3072_v30, 16  ;;  %v5503_v26 = vadd.s32 1, %v12791_v61 }
 0x528   : > { %v5449_v51 = vsub.s32 32, %v5448_v11  ;;  %v5450_v19 = vshll.u32 %v17826_v6, %v5448_v11  ;;  %v5453_v44 = vsub.s32 4294967266, %v5448_v11  ;;  %v17887_v52 = vsel %vm17847_vm13, 0, %v5464_v43 }
 0x529   : > { %v17891_v6 = vsel %vm3062_vm15, %v3065_v28, %v3067_v54  ;;  %v3081_v16 = vshrl.u32 %v3076_v23, 16  ;;  %v3102_v7 = vand.u32 65535, %v3072_v30  ;;  %v17894_v24 = vmul.f32 %v3016_v22, %v17799_v29 }
 0x52a   : > { %v5451_v2 = vshrl.u32 %v17809_v32, %v5449_v51  ;;  %v5454_v33 = vadd.s32 127, %v5453_v44  ;;  %v17897_v51 = vand.u32 3, %v8148_v20  ;;  %v3082_v61 = vmul.u32 %v3080_v42, %v3078_v4 }
 0x52b   : > { %v3083_v44 = vmul.u32 %v3081_v16, %v3078_v4  ;;  %v3084_v31 = vmul.u32 %v3080_v42, %v3079_v40  ;;  %v10628_v0 = vadd.s32 3, %v17887_v52  ;;  %v3105_v28 = vmul.u32 %v3103_v58, %v3078_v4 }
 0x52c   : > { %v5452_v25 = vor.u32 %v5451_v2, %v5450_v19  ;;  %v5455_v32 = vshll.u32 %v5454_v33, 23  ;;  %v3085_v54 = vmul.u32 %v3081_v16, %v3079_v40  ;;  %v3106_v60 = vmul.u32 %v3102_v7, %v3079_v40 }
 0x52d   : > { %v3086_v23 = vshll.u32 %v3083_v44, 16  ;;  %v3088_v30 = vshll.u32 %v3084_v31, 16  ;;  %v3104_v11 = vmul.u32 %v3102_v7, %v3078_v4  ;;  %v3108_v19 = vshll.u32 %v3105_v28, 16 }
 0x52e   : > { %v5456_v43 = vor.u32 4788187, %v5455_v32  ;;  %v5459_v15 = vcvt.s32.f32 %v5452_v25  ;;  %vm8151_vm9 = vcmp.eq.s32.totalorder %v17897_v51, 0  ;;  %vm8154_vm5 = vcmp.eq.s32.totalorder %v17897_v51, 2 }
 0x52f   : > { %vm3090_vm12 = vc.u32 %v3082_v61, %v3086_v23  ;;  %v3092_v20 = vadd.s32 %v3086_v23, %v3082_v61  ;;  %v3087_v25 = vshrl.u32 %v3083_v44, 16  ;;  %v3107_v33 = vmul.u32 %v3103_v58, %v3079_v40 }
 0x530   : > { %v5457_v22 = vand.u32 2147483647, %v5456_v43  ;;  %v3091_v2 = vsel %vm3090_vm12, 1, %v20499_v56  ;;  %v3089_v16 = vshrl.u32 %v3084_v31, 16  ;;  %v3110_v49 = vshll.u32 %v3106_v60, 16 }
 0x531   : > { %v3093_v32 = vadd.s32 %v3091_v2, %v3085_v54  ;;  %vm3094_vm10 = vc.u32 %v3092_v20, %v3088_v30  ;;  %vm3112_vm15 = vc.u32 %v3104_v11, %v3108_v19  ;;  %v3114_v4 = vadd.s32 %v3108_v19, %v3104_v11 }
 0x532   : > { %v5460_v42 = vmul.f32 %v5459_v15, %v5457_v22  ;;  %v3095_v43 = vsel %vm3094_vm10, 1, %v20499_v56  ;;  %v3109_v29 = vshrl.u32 %v3105_v28, 16  ;;  %v3113_v53 = vsel %vm3112_vm15, 1, %v20499_v56 }
 0x533   : > { %v3097_v7 = vadd.s32 %v3095_v43, %v3093_v32  ;;  %vm5504_vm6 = vcmp.gt.s32.totalorder %v5503_v26, 0  ;;  %v3115_v61 = vadd.s32 %v3113_v53, %v3107_v33  ;;  %vm3116_vm12 = vc.u32 %v3114_v4, %v3110_v49 }
 0x534   : > { %v5461_v21 = vxor.u32 2147483648, %v5460_v42  ;;  %v17908_v40 = vadd.s32 %v3114_v4, %v3110_v49  ;;  %v3117_v44 = vsel %vm3116_vm12, 1, %v20499_v56  ;;  %v5505_v11 = vsel %vm5504_vm6, %v5503_v26, 0 }
 0x535   : > { %v3098_v58 = vadd.s32 %v3097_v7, %v3087_v25  ;;  %vm3018_vm10 = vweird.f32 %v17495_v35  ;;  %v3111_v54 = vshrl.u32 %v3106_v60, 16  ;;  %v3119_v23 = vadd.s32 %v3117_v44, %v3115_v61 }
 0x536   : > { %v5462_v15 = vsel %vm5341_vm2, %v5461_v21, %v5460_v42  ;;  %v5507_v30 = vand.u32 31, %v5505_v11  ;;  %vm8150_vm2 = vcmp.lt.s32.totalorder %v17897_v51, 2  ;;  %v20695_v53 = vxor.u32 2147483648, %v17894_v24 }
 0x537   : > { %v5465_v31 = vsel %vm17847_vm13, %v17519_v63, %v5462_v15  ;;  %v17921_v49 = vand.u32 3, %v10628_v0  ;;  %v17923_v57 = vadd.s32 %v3098_v58, %v3089_v16  ;;  %v3120_v19 = vadd.s32 %v3119_v23, %v3109_v29 }
 0x538   : > { %v5467_v28 = vmul.f32 %v5465_v31, %v5465_v31  ;;  %v8153_v21 = vsel %vm8151_vm9, %v17874_v34, %v20695_v53  ;;  %v5508_v20 = vsub.s32 32, %v5507_v30  ;;  %v20696_v60 = vxor.u32 2147483648, %v17874_v34 }
 0x539   : > { %v3122_v25 = vmul.u32 %v17852_v1, %v17891_v6  ;;  %vm3124_vm13 = vc.u32 %v17923_v57, %v17908_v40  ;;  %v5510_v0 = vshll.u32 %v20495_v27, %v5507_v30  ;;  %v3121_v16 = vadd.s32 %v3120_v19, %v3111_v54 }
 0x53a   : > { %v5468_v22 = vmul.f32 -0.001358992, %v5467_v28  ;;  %v5475_v26 = vmul.f32 -0.00019511016, %v5467_v28  ;;  %v8156_v42 = vsel %vm8154_vm5, %v20696_v60, %v17894_v24  ;;  %v5513_v29 = vshll.u32 %v20500_v8, %v5507_v30 }
 0x53b   : > { %v5511_v32 = vshrl.u32 %v20500_v8, %v5508_v20  ;;  %v5514_v43 = vshrl.u32 %v20501_v50, %v5508_v20  ;;  %v5516_v4 = vshll.u32 %v20501_v50, %v5507_v30  ;;  %v5517_v7 = vshrl.u32 %v20502_v14, %v5508_v20 }
 0x53c   : > { %v5469_v2 = vadd.f32 0.041655596, %v5468_v22  ;;  %v5476_v33 = vadd.f32 0.008332121, %v5475_v26  ;;  %v3125_v6 = vadd.s32 1, %v3121_v16  ;;  %v5519_v61 = vshll.u32 %v20502_v14, %v5507_v30 }
 0x53d   : > { %v8157_v58 = vsel %vm8150_vm2, %v8153_v21, %v8156_v42  ;;  %vm10634_vm9 = vcmp.eq.s32.totalorder %v17921_v49, 2  ;;  %v17944_v44 = vshrl.u32 %v5505_v11, 5  ;;  %v5520_v8 = vshrl.u32 %v20503_v37, %v5508_v20 }
 0x53e   : > { %v5470_v15 = vmul.f32 %v5469_v2, %v5467_v28  ;;  %v5477_v1 = vmul.f32 %v5476_v33, %v5467_v28  ;;  %v3126_v50 = vsel %vm3124_vm13, %v3125_v6, %v3121_v16  ;;  %v5522_v53 = vshll.u32 %v20503_v37, %v5507_v30 }
 0x53f   : > { %vm5482_vm5 = vweird.f32 %v17519_v63  ;;  %v3127_v14 = vadd.s32 %v3126_v50, %v3122_v25  ;;  %v5512_v22 = vor.u32 %v5511_v32, %v5510_v0  ;;  %v5521_v51 = vor.u32 %v5520_v8, %v5519_v61 }
 0x540   : > { %v5471_v54 = vadd.f32 -0.4999988, %v5470_v15  ;;  %v5478_v23 = vadd.f32 -0.16666654, %v5477_v1  ;;  %v5523_v21 = vshrl.u32 %v20505_v59, %v5508_v20  ;;  %v17953_v19 = vor.u32 %v5514_v43, %v5513_v29 }
 0x541   : > { %v5518_v60 = vor.u32 %v5517_v7, %v5516_v4  ;;  %v8158_v42 = vsel %vm3018_vm10, nan, %v8157_v58  ;;  %v3128_v2 = vadd.s32 536870912, %v3127_v14  ;;  %vm5525_vm15 = vcmp.lt.s32.totalorder %v17944_v44, 1 }
 0x542   : > { %v5472_v26 = vmul.f32 %v5471_v54, %v5467_v28  ;;  %v5479_v11 = vmul.f32 %v5478_v23, %v5467_v28  ;;  %vm5527_vm6 = vcmp.lt.s32.totalorder %v17944_v44, 3  ;;  %v5524_v25 = vor.u32 %v5523_v21, %v5522_v53 }
 0x543   : > { %vm5528_vm12 = vcmp.lt.s32.totalorder %v17944_v44, 4  ;;  %v17962_v59 = vshrl.u32 %v3128_v2, 30  ;;  %vm5526_vm2 = vcmp.lt.s32.totalorder %v17944_v44, 2  ;;  %v20697_v0 = vor.u32 8388608, %v17831_v62 }
 0x544   : > { %v17959_v37 = vadd.f32 1.0, %v5472_v26  ;;  %v5480_v30 = vadd.f32 1.0, %v5479_v11  ;;  %v5534_v28 = vsel %vm5528_vm12, %v5521_v51, 920167782  ;;  %v5533_v32 = vsel %vm5525_vm15, %v5512_v22, %v17953_v19 }
 0x545   : > { %v17969_v33 = vshll.u32 %v20697_v0, 8  ;;  %v5535_v43 = vsel %vm5527_vm6, %v5518_v60, %v5534_v28  ;;  %vm10630_vm13 = vcmp.lt.s32.totalorder %v17921_v49, 2  ;;  %vm10631_vm3 = vcmp.eq.s32.totalorder %v17921_v49, 0 }
 0x546   : > { %v17971_v16 = vmul.f32 %v5480_v30, %v5465_v31  ;;  %v20420_v29 = vxor.u32 2147483648, %v17959_v37  ;;  %v10808_v4 = vmul.f32 %v8158_v42, %v17790_v45  ;;  %v3130_v62 = vshll.u32 %v17962_v59, 30 }
 0x547   : > { %v5537_v15 = vsel %vm5525_vm15, %v17953_v19, %v5518_v60  ;;  %v5538_v1 = vsel %vm5528_vm12, %v5524_v25, 1326507024  ;;  %v5509_v61 = vshrl.u32 %v20495_v27, %v5508_v20  ;;  %v5536_v58 = vsel %vm5526_vm2, %v5533_v32, %v5535_v43 }
 0x548   : > { %v20421_v31 = vxor.u32 2147483648, %v17971_v16  ;;  %v10636_v7 = vsel %vm10634_vm9, %v20420_v29, %v17971_v16  ;;  %v3131_v6 = vsub.s32 %v3127_v14, %v3130_v62  ;;  %v5539_v8 = vsel %vm5527_vm6, %v5521_v51, %v5538_v1 }
 0x549   : > { %v5540_v23 = vsel %vm5526_vm2, %v5537_v15, %v5539_v8  ;;  %v5542_v50 = vand.u32 65535, %v17969_v33  ;;  %v5543_v53 = vshrl.u32 %v17969_v33, 16  ;;  %v5566_v26 = vand.u32 65535, %v5536_v58 }
 0x54a   : > { %v10633_v54 = vsel %vm10631_vm3, %v17959_v37, %v20421_v31  ;;  %vm3132_vm9 = vcmp.lt.s32.totalorder %v3131_v6, 0  ;;  %v3133_v20 = vsub.s32 0, %v3131_v6  ;;  %v5544_v14 = vand.u32 65535, %v5540_v23  ;;  %v11186_v31 = vld [vmem:[%s20126_s3 + $0x30] sm:$0xff] }
 0x54b   : > { %v10637_v27 = vsel %vm10630_vm13, %v10633_v54, %v10636_v7  ;;  %v5545_v21 = vshrl.u32 %v5540_v23, 16  ;;  %v5567_v11 = vshrl.u32 %v5536_v58, 16  ;;  %v3123_v49 = vadd.s32 %v17908_v40, %v17923_v57 }
 0x54c   : > { %v10638_v51 = vsel %vm5482_vm5, nan, %v10637_v27  ;;  %v3134_v2 = vsel %vm3132_vm9, %v3133_v20, %v3131_v6  ;;  %v5548_v30 = vmul.u32 %v5544_v14, %v5543_v53  ;;  %v5546_v28 = vmul.u32 %v5544_v14, %v5542_v50 }
 0x54d   : > { %v10824_v42 = vmul.f32 %v10638_v51, %v17794_v41  ;;  %v3135_v25 = vclz %v3134_v2  ;;  %v5547_v0 = vmul.u32 %v5545_v21, %v5542_v50  ;;  %v5529_v43 = vsel %vm5525_vm15, %v5509_v61, %v5512_v22 }
 0x54e   : > { %v5569_v62 = vmul.u32 %v5567_v11, %v5542_v50  ;;  %v5549_v15 = vmul.u32 %v5545_v21, %v5543_v53  ;;  %v5570_v8 = vmul.u32 %v5566_v26, %v5543_v53  ;;  %v5530_v58 = vsel %vm5528_vm12, %v5518_v60, 2102212464 }
 0x54f   : > { %v13258_v32 = vpack.i.bf16 %v10824_v42, %v10808_v4  ;;  %v12744_v7 = vadd.s32 4294967294, %v3135_v25  ;;  %v5550_v1 = vshll.u32 %v5547_v0, 16  ;;  %v5552_v54 = vshll.u32 %v5548_v30, 16 }
 0x550   : > { %v5568_v23 = vmul.u32 %v5566_v26, %v5542_v50  ;;  %v5572_v27 = vshll.u32 %v5569_v62, 16  ;;  %v5553_v4 = vshrl.u32 %v5548_v30, 16  ;;  %v5571_v22 = vmul.u32 %v5567_v11, %v5543_v53 }
 0x551   : > { %13259 = vxpose.xlu0.b32.cont [15/16] %v13258_v32, 128  ;;  %vm12745_vm3 = vcmp.lt.s32.totalorder %v12744_v7, 0  ;;  %vm5554_vm13 = vc.u32 %v5546_v28, %v5550_v1  ;;  %v5556_v20 = vadd.s32 %v5550_v1, %v5546_v28  ;;  %v5574_v61 = vshll.u32 %v5570_v8, 16 }
 0x552   : > { %v3138_v40 = vsel %vm12745_vm3, 0, %v12744_v7  ;;  %v5555_v57 = vsel %vm5554_vm13, 1, %v20499_v56  ;;  %v5551_v2 = vshrl.u32 %v5547_v0, 16  ;;  %vm5576_vm9 = vc.u32 %v5568_v23, %v5572_v27 }
 0x553   : > { %v3139_v14 = vsub.s32 32, %v3138_v40  ;;  %v3140_v51 = vshll.u32 %v3131_v6, %v3138_v40  ;;  %v3143_v21 = vsub.s32 4294967266, %v3138_v40  ;;  %v5557_v42 = vadd.s32 %v5555_v57, %v5549_v15 }
 0x554   : > { %vm5558_vm15 = vc.u32 %v5556_v20, %v5552_v54  ;;  %v5578_v60 = vadd.s32 %v5572_v27, %v5568_v23  ;;  %v5577_v30 = vsel %vm5576_vm9, 1, %v20499_v56  ;;  %v5573_v32 = vshrl.u32 %v5569_v62, 16 }
 0x555   : > { %v3141_v25 = vshrl.u32 %v3123_v49, %v3139_v14  ;;  %v3144_v50 = vadd.s32 127, %v3143_v21  ;;  %v5559_v26 = vsel %vm5558_vm15, 1, %v20499_v56  ;;  %v5579_v7 = vadd.s32 %v5577_v30, %v5571_v22 }
 0x556   : > { %v5561_v28 = vadd.s32 %v5559_v26, %v5557_v42  ;;  %vm5580_vm12 = vc.u32 %v5578_v60, %v5574_v61  ;;  %v5531_v6 = vsel %vm5527_vm6, %v17953_v19, %v5530_v58  ;;  %v5575_v1 = vshrl.u32 %v5570_v8, 16 }
 0x557   : > { %v3142_v53 = vor.u32 %v3141_v25, %v3140_v51  ;;  %v3145_v11 = vshll.u32 %v3144_v50, 23  ;;  %v5581_v0 = vsel %vm5580_vm12, 1, %v20499_v56  ;;  %v5582_v27 = vadd.s32 %v5578_v60, %v5574_v61  ;;  %v11300_v61 = vld [vmem:[%s20126_s3 + $0x3c0] sm:$0xff] }
 0x558   : > { %v5562_v15 = vadd.s32 %v5561_v28, %v5551_v2  ;;  %v5583_v49 = vadd.s32 %v5581_v0, %v5579_v7  ;;  %v5532_v20 = vsel %vm5526_vm2, %v5529_v43, %v5531_v6  ;;  %vm3031_vm6 = vcmp.lt.s32.totalorder %v17753_v38, 0 }
 0x559   : > { %v3146_v54 = vor.u32 4788187, %v3145_v11  ;;  %v3149_v23 = vcvt.s32.f32 %v3142_v53  ;;  %v5586_v51 = vmul.u32 %v17969_v33, %v5532_v20  ;;  %v20698_v21 = vand.u32 2147483647, %v17753_v38 }
 0x55a   : > { %v5563_v62 = vadd.s32 %v5562_v15, %v5553_v4  ;;  %v5584_v40 = vadd.s32 %v5583_v49, %v5573_v32  ;;  %v3153_v20 = vsub.s32 4, %v17962_v59  ;;  %vm5495_vm9 = vcmp.lt.s32.totalorder %v17786_v36, 0 }
 0x55b   : > { %v3147_v57 = vand.u32 2147483647, %v3146_v54  ;;  %vm18030_vm13 = vcmp.le.f32.partialorder %v20698_v21, 0.7853982  ;;  %v11240_v21 = vld [vmem:[%s20126_s3 + $0x1e0] sm:$0xff]  ;;  %v5329_v63 = vand.u32 3, %v17600_v18 }
 0x55c   : > { %v5585_v22 = vadd.s32 %v5584_v40, %v5575_v1  ;;  %vm5588_vm3 = vc.u32 %v5563_v62, %v5582_v27  ;;  %v5587_v53 = vadd.s32 %v5582_v27, %v5563_v62  ;;  %v3154_v27 = vsel %vm3031_vm6, %v3153_v20, %v17962_v59  ;;  %11308 = vmatpush.msra.mxu0 %v11240_v21  ;;  %v11292_v20 = vld [vmem:[%s20126_s3 + $0x380] sm:$0xff] }
 0x55d   : > { %v3150_v14 = vmul.f32 %v3149_v23, %v3147_v57  ;;  %v11220_v21 = vld [vmem:[%s20126_s3 + $0x140] sm:$0xff] }
 0x55e   : > { %v5589_v19 = vadd.s32 1, %v5585_v22 }
 0x55f   : > { %v3151_v58 = vxor.u32 2147483648, %v3150_v14 }
 0x560   : > { %v5590_v56 = vsel %vm5588_vm3, %v5589_v19, %v5585_v22 }
 0x561   : > { %v5591_v8 = vadd.s32 %v5590_v56, %v5586_v51  ;;  %v3152_v44 = vsel %vm3031_vm6, %v3151_v58, %v3150_v14 }
 0x562   : > { %v18041_v33 = vsel %vm18030_vm13, %v17753_v38, %v3152_v44  ;;  %v11304_v44 = vld [vmem:[%s20126_s3 + $0x3e0] sm:$0xff] }
 0x563   : > { %v5592_v43 = vadd.s32 536870912, %v5591_v8  ;;  %v3157_v2 = vmul.f32 %v18041_v33, %v18041_v33  ;;  %11373 = vmatpush.msra.mxu1 %v11304_v44 }
 0x565   : > { %v18036_v4 = vshrl.u32 %v5592_v43, 30  ;;  %v3165_v50 = vmul.f32 -0.00019511016, %v3157_v2  ;;  %v3158_v32 = vmul.f32 -0.001358992, %v3157_v2  ;;  %v18061_v43 = vsel %vm18030_vm13, 0, %v3154_v27  ;;  %11374 = vmatpush.msra.mxu1 %v11300_v61 }
 0x567   : > { %v5594_v42 = vshll.u32 %v18036_v4, 30  ;;  %v3166_v7 = vadd.f32 0.008332121, %v3165_v50  ;;  %v3159_v1 = vadd.f32 0.041655596, %v3158_v32  ;;  %v11236_v50 = vld [vmem:[%s20126_s3 + $0x1c0] sm:$0xff] }
 0x568   : > { %11309 = vmatpush.msra.mxu0 %v11236_v50 }
 0x569   : > { %v5595_v60 = vsub.s32 %v5591_v8, %v5594_v42  ;;  %v3167_v49 = vmul.f32 %v3166_v7, %v3157_v2  ;;  %v3160_v22 = vmul.f32 %v3159_v1, %v3157_v2  ;;  %v11241_v8 = vld [vmem:[%s20126_s3 + $0x1e8] sm:$0xff]  ;;  %v5617_v42 = vsub.s32 4, %v18036_v4 }
 0x56a   : > { %11438 = vmatpush.msra.mxu2 %v11241_v8  ;;  %v8303_v1 = vadd.s32 3, %v18061_v43  ;;  %v11221_v8 = vld [vmem:[%s20126_s3 + $0x148] sm:$0xff] }
 0x56b   : > { %vm5596_vm2 = vcmp.lt.s32.totalorder %v5595_v60, 0  ;;  %v5597_v25 = vsub.s32 0, %v5595_v60  ;;  %v3168_v14 = vadd.f32 -0.16666654, %v3167_v49  ;;  %v3161_v58 = vadd.f32 -0.4999988, %v3160_v22 }
 0x56c   : > { %v11229_v49 = vld [vmem:[%s20126_s3 + $0x188] sm:$0xff]  ;;  %v11224_v22 = vld [vmem:[%s20126_s3 + $0x160] sm:$0xff] }
 0x56d   : > { %v5598_v26 = vsel %vm5596_vm2, %v5597_v25, %v5595_v60  ;;  %v3169_v56 = vmul.f32 %v3168_v14, %v3157_v2  ;;  %v11237_v25 = vld [vmem:[%s20126_s3 + $0x1c8] sm:$0xff]  ;;  %vm3172_vm2 = vweird.f32 %v17753_v38 }
 0x56e   : > { %v5599_v30 = vclz %v5598_v26  ;;  %v11301_v26 = vld [vmem:[%s20126_s3 + $0x3c8] sm:$0xff]  ;;  %11439 = vmatpush.msra.mxu2 %v11237_v25  ;;  %v11216_v25 = vld [vmem:[%s20126_s3 + $0x120] sm:$0xff] }
 0x570   : > { %v12792_v28 = vadd.s32 4294967294, %v5599_v30  ;;  %v11233_v30 = vld [vmem:[%s20126_s3 + $0x1a8] sm:$0xff] }
 0x571   : > { %11440 = vmatpush.msra.mxu2 %v11233_v30  ;;  %v11281_v30 = vld [vmem:[%s20126_s3 + $0x328] sm:$0xff] }
 0x572   : > { %vm12793_vm15 = vcmp.lt.s32.totalorder %v12792_v28, 0 }
 0x573   : > { %v5602_v11 = vsel %vm12793_vm15, 0, %v12792_v28  ;;  %v20701_v28 = vand.u32 2147483647, %v17786_v36  ;;  %11441 = vmatpush.msra.mxu2 %v11229_v49  ;;  %v11209_v49 = vld [vmem:[%s20126_s3 + $0xe8] sm:$0xff] }
 0x574   : > { %v5603_v6 = vsub.s32 32, %v5602_v11  ;;  %v5604_v0 = vshll.u32 %v5595_v60, %v5602_v11  ;;  %v5607_v15 = vsub.s32 4294967266, %v5602_v11  ;;  %v11305_v60 = vld [vmem:[%s20126_s3 + $0x3e8] sm:$0xff]  ;;  %v11296_v11 = vld [vmem:[%s20126_s3 + $0x3a0] sm:$0xff] }
 0x575   : > { %11503 = vmatpush.msra.mxu3 %v11305_v60  ;;  %vm18085_vm12 = vcmp.le.f32.partialorder %v20701_v28, 0.7853982  ;;  %11375 = vmatpush.msra.mxu1 %v11296_v11  ;;  %v11217_v60 = vld [vmem:[%s20126_s3 + $0x128] sm:$0xff] }
 0x576   : > { %v5605_v54 = vshrl.u32 %v5587_v53, %v5603_v6  ;;  %v5608_v23 = vadd.s32 127, %v5607_v15  ;;  %v11232_v53 = vld [vmem:[%s20126_s3 + $0x1a0] sm:$0xff]  ;;  %v11297_v6 = vld [vmem:[%s20126_s3 + $0x3a8] sm:$0xff]  ;;  %v3170_v15 = vadd.f32 1.0, %v3169_v56  ;;  %v18144_v56 = vand.u32 3, %v8303_v1 }
 0x577   : > { %11504 = vmatpush.msra.mxu3 %v11301_v26  ;;  %11310 = vmatpush.msra.mxu0 %v11232_v53  ;;  %v11280_v26 = vld [vmem:[%s20126_s3 + $0x320] sm:$0xff]  ;;  %v11277_v1 = vld [vmem:[%s20126_s3 + $0x308] sm:$0xff] }
 0x578   : > { %v5606_v40 = vor.u32 %v5605_v54, %v5604_v0  ;;  %v5609_v57 = vshll.u32 %v5608_v23, 23  ;;  %v3162_v0 = vmul.f32 %v3161_v58, %v3157_v2  ;;  %v11228_v54 = vld [vmem:[%s20126_s3 + $0x180] sm:$0xff]  ;;  %v5618_v2 = vsel %vm5495_vm9, %v5617_v42, %v18036_v4  ;;  %v11225_v4 = vld [vmem:[%s20126_s3 + $0x168] sm:$0xff]  ;;  %11376 = vmatpush.msra.mxu1 %v11292_v20 }
 0x579   : > { %11505 = vmatpush.msra.mxu3 %v11297_v6  ;;  %11311 = vmatpush.msra.mxu0 %v11228_v54  ;;  %v18142_v58 = vsel %vm18085_vm12, 0, %v5618_v2  ;;  %v11285_v42 = vld [vmem:[%s20126_s3 + $0x348] sm:$0xff]  ;;  %v11212_v53 = vld [vmem:[%s20126_s3 + $0x100] sm:$0xff]  ;;  %vm8306_vm3 = vcmp.eq.s32.totalorder %v18144_v56, 0  ;;  %vm8309_vm6 = vcmp.eq.s32.totalorder %v18144_v56, 2  ;;  %vm8305_vm13 = vcmp.lt.s32.totalorder %v18144_v56, 2 }
 0x57a   : > { %v5610_v51 = vor.u32 4788187, %v5609_v57  ;;  %v5613_v19 = vcvt.s32.f32 %v5606_v40  ;;  %v11293_v40 = vld [vmem:[%s20126_s3 + $0x388] sm:$0xff]  ;;  %v18135_v27 = vadd.f32 1.0, %v3162_v0  ;;  %11442 = vmatpush.msra.mxu2 %v11225_v4  ;;  %v10783_v32 = vadd.s32 3, %v18142_v58  ;;  %v11208_v54 = vld [vmem:[%s20126_s3 + $0xe0] sm:$0xff] }
 0x57b   : > { %11506 = vmatpush.msra.mxu3 %v11293_v40  ;;  %11312 = vmatpush.msra.mxu0 %v11224_v22  ;;  %v11272_v20 = vld [vmem:[%s20126_s3 + $0x2e0] sm:$0xff]  ;;  %v11273_v40 = vld [vmem:[%s20126_s3 + $0x2e8] sm:$0xff] }
 0x57c   : > { %v5611_v62 = vand.u32 2147483647, %v5610_v51  ;;  %v11288_v51 = vld [vmem:[%s20126_s3 + $0x360] sm:$0xff]  ;;  %11443 = vmatpush.msra.mxu2 %v11221_v8  ;;  %v20424_v11 = vxor.u32 2147483648, %v18135_v27  ;;  %v18204_v22 = vand.u32 3, %v10783_v32  ;;  %v11197_v32 = vld [vmem:[%s20126_s3 + $0x88] sm:$0xff] }
 0x57d   : > { %11377 = vmatpush.msra.mxu1 %v11288_v51  ;;  %11313 = vmatpush.msra.mxu0 %v11220_v21  ;;  %v11205_v51 = vld [vmem:[%s20126_s3 + $0xc8] sm:$0xff]  ;;  %v11260_v56 = vld [vmem:[%s20126_s3 + $0x280] sm:$0xff] }
 0x57e   : > { %v5614_v59 = vmul.f32 %v5613_v19, %v5611_v62  ;;  %v11289_v19 = vld [vmem:[%s20126_s3 + $0x368] sm:$0xff]  ;;  %v18138_v62 = vmul.f32 %v3170_v15, %v18041_v33  ;;  %v11284_v33 = vld [vmem:[%s20126_s3 + $0x340] sm:$0xff]  ;;  %11444 = vmatpush.msra.mxu2 %v11217_v60  ;;  %vm10789_vm15 = vcmp.eq.s32.totalorder %v18204_v22, 2 }
 0x57f   : > { %11507 = vmatpush.msra.mxu3 %v11289_v19  ;;  %11378 = vmatpush.msra.mxu1 %v11284_v33  ;;  %v11276_v15 = vld [vmem:[%s20126_s3 + $0x300] sm:$0xff]  ;;  %v11269_v33 = vld [vmem:[%s20126_s3 + $0x2c8] sm:$0xff] }
 0x580   : > { %v5615_v7 = vxor.u32 2147483648, %v5614_v59  ;;  %v20425_v28 = vxor.u32 2147483648, %v18138_v62  ;;  %11314 = vmatpush.msra.mxu0 %v11216_v25  ;;  %v11204_v19 = vld [vmem:[%s20126_s3 + $0xc0] sm:$0xff] }
 0x581   : > { %11508 = vmatpush.msra.mxu3 %v11285_v42  ;;  %11379 = vmatpush.msra.mxu1 %v11280_v26  ;;  %v11200_v42 = vld [vmem:[%s20126_s3 + $0xa0] sm:$0xff]  ;;  %v11265_v26 = vld [vmem:[%s20126_s3 + $0x2a8] sm:$0xff] }
 0x582   : > { %v5616_v23 = vsel %vm5495_vm9, %v5615_v7, %v5614_v59  ;;  %v11213_v7 = vld [vmem:[%s20126_s3 + $0x108] sm:$0xff]  ;;  %11315 = vmatpush.msra.mxu0 %v11212_v53  ;;  %v8308_v4 = vsel %vm8306_vm3, %v18135_v27, %v20425_v28  ;;  %vm10786_vm9 = vcmp.eq.s32.totalorder %v18204_v22, 0  ;;  %vm5636_vm3 = vweird.f32 %v17786_v36 }
 0x583   : > { %v18119_v57 = vsel %vm18085_vm12, %v17786_v36, %v5616_v23  ;;  %11509 = vmatpush.msra.mxu3 %v11281_v30  ;;  %11445 = vmatpush.msra.mxu2 %v11213_v7  ;;  %v596_v60 = vld [vmem:[%s14075_s18 + $0x78] sm:$0xff]  ;;  %vm10785_vm12 = vcmp.lt.s32.totalorder %v18204_v22, 2 }
 0x584   : > { %v5621_v14 = vmul.f32 %v18119_v57, %v18119_v57  ;;  %11380 = vmatpush.msra.mxu1 %v11276_v15  ;;  %11316 = vmatpush.msra.mxu0 %v11208_v54  ;;  %v11196_v7 = vld [vmem:[%s20126_s3 + $0x80] sm:$0xff] }
 0x585   : > { %11510 = vmatpush.msra.mxu3 %v11277_v1  ;;  %11446 = vmatpush.msra.mxu2 %v11209_v49  ;;  %v612_v15 = vld [vmem:[%s14075_s18 + $0xf8] sm:$0xff]  ;;  %v18262_v1 = vsel %vm652_vm0, %v596_v60, 0.0 }
 0x586   : > { %v5622_v44 = vmul.f32 -0.001358992, %v5621_v14  ;;  %v5629_v59 = vmul.f32 -0.00019511016, %v5621_v14  ;;  %11381 = vmatpush.msra.mxu1 %v11272_v20  ;;  %11317 = vmatpush.msra.mxu0 %v11204_v19  ;;  %v11192_v49 = vld [vmem:[%s20126_s3 + $0x60] sm:$0xff]  ;;  %v18295_v19 = vsel %vm652_vm0, %v612_v15, 0.0 }
 0x587   : > { %11511 = vmatpush.msra.mxu3 %v11273_v40  ;;  %11447 = vmatpush.msra.mxu2 %v11205_v51  ;;  %v11256_v20 = vld [vmem:[%s20126_s3 + $0x260] sm:$0xff]  ;;  %v11257_v40 = vld [vmem:[%s20126_s3 + $0x268] sm:$0xff] }
 0x588   : > { %v5623_v50 = vadd.f32 0.041655596, %v5622_v44  ;;  %v5630_v61 = vadd.f32 0.008332121, %v5629_v59  ;;  %v8311_v44 = vsel %vm8309_vm6, %v20424_v11, %v18138_v62  ;;  %v11268_v59 = vld [vmem:[%s20126_s3 + $0x2c0] sm:$0xff]  ;;  %11318 = vmatpush.msra.mxu0 %v11200_v42  ;;  %v11249_v60 = vld [vmem:[%s20126_s3 + $0x228] sm:$0xff] }
 0x589   : > { %v8312_v30 = vsel %vm8305_vm13, %v8308_v4, %v8311_v44  ;;  %11382 = vmatpush.msra.mxu1 %v11268_v59  ;;  %11512 = vmatpush.msra.mxu3 %v11269_v33  ;;  %v11189_v4 = vld [vmem:[%s20126_s3 + $0x48] sm:$0xff]  ;;  %v11188_v51 = vld [vmem:[%s20126_s3 + $0x40] sm:$0xff]  ;;  %v11246_v11 = vld [vmem:[%s20126_s3 + $0x210] sm:$0xff] }
 0x58a   : > { %v5624_v6 = vmul.f32 %v5623_v50, %v5621_v14  ;;  %v5631_v0 = vmul.f32 %v5630_v61, %v5621_v14  ;;  %v11264_v61 = vld [vmem:[%s20126_s3 + $0x2a0] sm:$0xff]  ;;  %11319 = vmatpush.msra.mxu0 %v11196_v7  ;;  %v11253_v44 = vld [vmem:[%s20126_s3 + $0x248] sm:$0xff] }
 0x58b   : > { %11383 = vmatpush.msra.mxu1 %v11264_v61  ;;  %11513 = vmatpush.msra.mxu3 %v11265_v26  ;;  %v11185_v33 = vld [vmem:[%s20126_s3 + $0x28] sm:$0xff]  ;;  %v11248_v22 = vld [vmem:[%s20126_s3 + $0x220] sm:$0xff] }
 0x58c   : > { %v5625_v23 = vadd.f32 -0.4999988, %v5624_v6  ;;  %v5632_v2 = vadd.f32 -0.16666654, %v5631_v0  ;;  %v11261_v0 = vld [vmem:[%s20126_s3 + $0x288] sm:$0xff]  ;;  %11320 = vmatpush.msra.mxu0 %v11192_v49  ;;  %v11307_v49 = vld [vmem:[%s20126_s3 + $0x3f8] sm:$0xff] }
 0x58d   : > { %11384 = vmatpush.msra.mxu1 %v11260_v56  ;;  %11514 = vmatpush.msra.mxu3 %v11261_v0  ;;  %v11181_v26 = vld [vmem:[%s20126_s3 + $0x8] sm:$0xff] }
 0x58e   : > { %v5626_v8 = vmul.f32 %v5625_v23, %v5621_v14  ;;  %v5633_v21 = vmul.f32 %v5632_v2, %v5621_v14  ;;  %v11201_v14 = vld [vmem:[%s20126_s3 + $0xa8] sm:$0xff]  ;;  %v8313_v23 = vsel %vm3172_vm2, nan, %v8312_v30  ;;  %11321 = vmatpush.msra.mxu0 %v11188_v51  ;;  %v11180_v30 = vld [vmem:[%s20126_s3] sm:$0xff]  ;;  %v11302_v51 = vld [vmem:[%s20126_s3 + $0x3d0] sm:$0xff] }
 0x58f   : > { %11448 = vmatpush.msra.mxu2 %v11201_v14  ;;  %v10809_v59 = vmul.f32 %v8313_v23, %v18262_v1  ;;  %11385 = vmatpush.msra.mxu1 %v11256_v20  ;;  %v11184_v14 = vld [vmem:[%s20126_s3 + $0x20] sm:$0xff]  ;;  %v11245_v7 = vld [vmem:[%s20126_s3 + $0x208] sm:$0xff]  ;;  %v11242_v23 = vld [vmem:[%s20126_s3 + $0x1f0] sm:$0xff] }
 0x590   : > { %v18231_v25 = vadd.f32 1.0, %v5626_v8  ;;  %v5634_v50 = vadd.f32 1.0, %v5633_v21  ;;  %v11252_v21 = vld [vmem:[%s20126_s3 + $0x240] sm:$0xff]  ;;  %11515 = vmatpush.msra.mxu3 %v11257_v40  ;;  %11322 = vmatpush.msra.mxu0 %v11184_v14  ;;  %v11239_v20 = vld [vmem:[%s20126_s3 + $0x1d8] sm:$0xff] }
 0x591   : > { %11449 = vmatpush.msra.mxu2 %v11197_v32  ;;  %11386 = vmatpush.msra.mxu1 %v11252_v21  ;;  %v11244_v32 = vld [vmem:[%s20126_s3 + $0x200] sm:$0xff]  ;;  %v11303_v40 = vld [vmem:[%s20126_s3 + $0x3d8] sm:$0xff] }
 0x592   : > { %v18250_v53 = vmul.f32 %v5634_v50, %v18119_v57  ;;  %v20422_v6 = vxor.u32 2147483648, %v18231_v25  ;;  %v11193_v57 = vld [vmem:[%s20126_s3 + $0x68] sm:$0xff]  ;;  %11516 = vmatpush.msra.mxu3 %v11253_v44  ;;  %11323 = vmatpush.msra.mxu0 %v11180_v30  ;;  %v11299_v21 = vld [vmem:[%s20126_s3 + $0x3b8] sm:$0xff]  ;;  %v11234_v44 = vld [vmem:[%s20126_s3 + $0x1b0] sm:$0xff] }
 0x593   : > { %11450 = vmatpush.msra.mxu2 %v11193_v57  ;;  %11387 = vmatpush.msra.mxu1 %v11248_v22  ;;  %v11243_v57 = vld [vmem:[%s20126_s3 + $0x1f8] sm:$0xff]  ;;  %v11226_v30 = vld [vmem:[%s20126_s3 + $0x170] sm:$0xff] }
 0x594   : > { %v20423_v54 = vxor.u32 2147483648, %v18250_v53  ;;  %v10791_v2 = vsel %vm10789_vm15, %v20422_v6, %v18250_v53  ;;  %11517 = vmatpush.msra.mxu3 %v11249_v60  ;;  %v11295_v22 = vld [vmem:[%s20126_s3 + $0x398] sm:$0xff]  ;;  %v11230_v60 = vld [vmem:[%s20126_s3 + $0x190] sm:$0xff] }
 0x595   : > { %11451 = vmatpush.msra.mxu2 %v11189_v4  ;;  %11388 = vmatpush.msra.mxu1 %v11244_v32  ;;  %v11238_v4 = vld [vmem:[%s20126_s3 + $0x1d0] sm:$0xff] }
 0x596   : > { %v10788_v8 = vsel %vm10786_vm9, %v18231_v25, %v20423_v54  ;;  %11518 = vmatpush.msra.mxu3 %v11245_v7  ;;  %v11290_v32 = vld [vmem:[%s20126_s3 + $0x370] sm:$0xff]  ;;  %v11223_v7 = vld [vmem:[%s20126_s3 + $0x158] sm:$0xff] }
 0x597   : > { %v10792_v5 = vsel %vm10785_vm12, %v10788_v8, %v10791_v2  ;;  %11452 = vmatpush.msra.mxu2 %v11185_v33  ;;  %v11306_v2 = vld [vmem:[%s20126_s3 + $0x3f0] sm:$0xff]  ;;  %v11235_v8 = vld [vmem:[%s20126_s3 + $0x1b8] sm:$0xff] }
 0x598   : > { %v10793_v42 = vsel %vm5636_vm3, nan, %v10792_v5  ;;  %v11298_v5 = vld [vmem:[%s20126_s3 + $0x3b0] sm:$0xff] }
 0x599   : > { %v10825_v50 = vmul.f32 %v10793_v42, %v18295_v19  ;;  %11453 = vmatpush.msra.mxu2 %v11181_v26  ;;  %v11231_v42 = vld [vmem:[%s20126_s3 + $0x198] sm:$0xff]  ;;  %v11182_v54 = vld [vmem:[%s20126_s3 + $0x10] sm:$0xff] }
 0x59a   : > { %v11291_v26 = vld [vmem:[%s20126_s3 + $0x378] sm:$0xff] }
 0x59b   : > { %v13260_v61 = vpack.i.bf16 %v10825_v50, %v10809_v59  ;;  %v11294_v50 = vld [vmem:[%s20126_s3 + $0x390] sm:$0xff] }
 0x59d   : > { %13261 = vxpose.xlu0.b32.end [16/16] %v13260_v61, 128  ;;  %v11227_v61 = vld [vmem:[%s20126_s3 + $0x178] sm:$0xff] }
 0x5c9   : > { %v13262_v56 = vpop.trf.xlu0 }
 0x5ca   : > { %v18338_v0 = vunpack.i.h.bf16 %v13262_v56  ;;  %v18340_v15 = vunpack.i.l.bf16 %v13262_v56  ;;  %v11287_v56 = vld [vmem:[%s20126_s3 + $0x358] sm:$0xff] }
 0x5cc   : > { %11324 = vmatmul.f32.vlgmr.msra.gmra.mxu0 %v18340_v15  ;;  %11389 = vmatmul.f32.vlgmr.msra.gmra.mxu1 %v18338_v0 }
 0x5cd   : > { %11454 = vmatmul.f32.vlgmr.msra.gmra.mxu2 %v18340_v15  ;;  %11519 = vmatmul.f32.vlgmr.msra.gmra.mxu3 %v18338_v0 }
 0x5ce   : > { %11698 = vmatpush.msra.mxu2 %v11243_v57  ;;  %11763 = vmatpush.msra.mxu3 %v11307_v49 }
 0x5cf   : > { %11568 = vmatpush.msra.mxu0 %v11242_v23  ;;  %11633 = vmatpush.msra.mxu1 %v11306_v2  ;;  %v11222_v2 = vld [vmem:[%s20126_s3 + $0x150] sm:$0xff] }
 0x5d0   : > { %11699 = vmatpush.msra.mxu2 %v11239_v20  ;;  %11764 = vmatpush.msra.mxu3 %v11303_v40  ;;  %v11286_v20 = vld [vmem:[%s20126_s3 + $0x350] sm:$0xff]  ;;  %v11219_v40 = vld [vmem:[%s20126_s3 + $0x138] sm:$0xff] }
 0x5d1   : > { %v13267_v59 = vpop.trf.xlu0  ;;  %11569 = vmatpush.msra.mxu0 %v11238_v4  ;;  %11634 = vmatpush.msra.mxu1 %v11302_v51  ;;  %v11283_v4 = vld [vmem:[%s20126_s3 + $0x338] sm:$0xff] }
 0x5d2   : > { %v18382_v33 = vunpack.i.h.bf16 %v13267_v59  ;;  %v18384_v14 = vunpack.i.l.bf16 %v13267_v59  ;;  %11700 = vmatpush.msra.mxu2 %v11235_v8  ;;  %11765 = vmatpush.msra.mxu3 %v11299_v21  ;;  %v11215_v59 = vld [vmem:[%s20126_s3 + $0x118] sm:$0xff] }
 0x5d3   : > { %11570 = vmatpush.msra.mxu0 %v11234_v44  ;;  %11635 = vmatpush.msra.mxu1 %v11298_v5  ;;  %v11218_v44 = vld [vmem:[%s20126_s3 + $0x130] sm:$0xff] }
 0x5d4   : > { %11327 = vmatmul.f32.gmra.mxu0 %v18384_v14  ;;  %11392 = vmatmul.f32.gmra.mxu1 %v18382_v33  ;;  %v11282_v5 = vld [vmem:[%s20126_s3 + $0x330] sm:$0xff] }
 0x5d5   : > { %11457 = vmatmul.f32.gmra.mxu2 %v18384_v14  ;;  %11522 = vmatmul.f32.gmra.mxu3 %v18382_v33 }
 0x5d6   : > { %11701 = vmatpush.msra.mxu2 %v11231_v42  ;;  %11766 = vmatpush.msra.mxu3 %v11295_v22  ;;  %v11279_v42 = vld [vmem:[%s20126_s3 + $0x318] sm:$0xff] }
 0x5d7   : > { %11571 = vmatpush.msra.mxu0 %v11230_v60  ;;  %11636 = vmatpush.msra.mxu1 %v11294_v50 }
 0x5d8   : > { %11702 = vmatpush.msra.mxu2 %v11227_v61  ;;  %11767 = vmatpush.msra.mxu3 %v11291_v26  ;;  %v11214_v61 = vld [vmem:[%s20126_s3 + $0x110] sm:$0xff] }
 0x5d9   : > { %v13272_v57 = vpop.trf.xlu0  ;;  %11572 = vmatpush.msra.mxu0 %v11226_v30  ;;  %11637 = vmatpush.msra.mxu1 %v11290_v32  ;;  %v11278_v26 = vld [vmem:[%s20126_s3 + $0x310] sm:$0xff]  ;;  %v11211_v30 = vld [vmem:[%s20126_s3 + $0xf8] sm:$0xff] }
 0x5da   : > { %v18420_v49 = vunpack.i.h.bf16 %v13272_v57  ;;  %v18422_v23 = vunpack.i.l.bf16 %v13272_v57  ;;  %11703 = vmatpush.msra.mxu2 %v11223_v7  ;;  %11768 = vmatpush.msra.mxu3 %v11287_v56  ;;  %v11275_v32 = vld [vmem:[%s20126_s3 + $0x2f8] sm:$0xff] }
 0x5db   : > { %11573 = vmatpush.msra.mxu0 %v11222_v2  ;;  %11638 = vmatpush.msra.mxu1 %v11286_v20  ;;  %v11210_v2 = vld [vmem:[%s20126_s3 + $0xf0] sm:$0xff] }
 0x5dc   : > { %11330 = vmatmul.f32.gmra.mxu0 %v18422_v23  ;;  %11395 = vmatmul.f32.gmra.mxu1 %v18420_v49  ;;  %v11274_v20 = vld [vmem:[%s20126_s3 + $0x2f0] sm:$0xff] }
 0x5dd   : > { %11460 = vmatmul.f32.gmra.mxu2 %v18422_v23  ;;  %11525 = vmatmul.f32.gmra.mxu3 %v18420_v49 }
 0x5de   : > { %11704 = vmatpush.msra.mxu2 %v11219_v40  ;;  %11769 = vmatpush.msra.mxu3 %v11283_v4  ;;  %v11207_v40 = vld [vmem:[%s20126_s3 + $0xd8] sm:$0xff] }
 0x5df   : > { %11574 = vmatpush.msra.mxu0 %v11218_v44  ;;  %11639 = vmatpush.msra.mxu1 %v11282_v5  ;;  %v11271_v4 = vld [vmem:[%s20126_s3 + $0x2d8] sm:$0xff] }
 0x5e0   : > { %11705 = vmatpush.msra.mxu2 %v11215_v59  ;;  %11770 = vmatpush.msra.mxu3 %v11279_v42  ;;  %v11206_v59 = vld [vmem:[%s20126_s3 + $0xd0] sm:$0xff] }
 0x5e1   : > { %v13277_v51 = vpop.trf.xlu0  ;;  %11575 = vmatpush.msra.mxu0 %v11214_v61  ;;  %11640 = vmatpush.msra.mxu1 %v11278_v26  ;;  %v11270_v42 = vld [vmem:[%s20126_s3 + $0x2d0] sm:$0xff]  ;;  %v11267_v61 = vld [vmem:[%s20126_s3 + $0x2b8] sm:$0xff] }
 0x5e2   : > { %v18440_v8 = vunpack.i.h.bf16 %v13277_v51  ;;  %v18442_v21 = vunpack.i.l.bf16 %v13277_v51  ;;  %11706 = vmatpush.msra.mxu2 %v11211_v30  ;;  %11771 = vmatpush.msra.mxu3 %v11275_v32 }
 0x5e3   : > { %11576 = vmatpush.msra.mxu0 %v11210_v2  ;;  %11641 = vmatpush.msra.mxu1 %v11274_v20  ;;  %v11266_v2 = vld [vmem:[%s20126_s3 + $0x2b0] sm:$0xff]  ;;  %v11199_v20 = vld [vmem:[%s20126_s3 + $0x98] sm:$0xff] }
 0x5e4   : > { %11333 = vmatmul.f32.gmra.mxu0 %v18442_v21  ;;  %11398 = vmatmul.f32.gmra.mxu1 %v18440_v8 }
 0x5e5   : > { %11463 = vmatmul.f32.gmra.mxu2 %v18442_v21  ;;  %11528 = vmatmul.f32.gmra.mxu3 %v18440_v8 }
 0x5e6   : > { %11707 = vmatpush.msra.mxu2 %v11207_v40  ;;  %11772 = vmatpush.msra.mxu3 %v11271_v4  ;;  %v11263_v40 = vld [vmem:[%s20126_s3 + $0x298] sm:$0xff] }
 0x5e7   : > { %11577 = vmatpush.msra.mxu0 %v11206_v59  ;;  %11642 = vmatpush.msra.mxu1 %v11270_v42  ;;  %v11198_v42 = vld [vmem:[%s20126_s3 + $0x90] sm:$0xff] }
 0x5e8   : > { %11773 = vmatpush.msra.mxu3 %v11267_v61  ;;  %v11195_v61 = vld [vmem:[%s20126_s3 + $0x78] sm:$0xff] }
 0x5e9   : > { %v13282_v22 = vpop.trf.xlu0  ;;  %11643 = vmatpush.msra.mxu1 %v11266_v2 }
 0x5ea   : > { %v18460_v60 = vunpack.i.h.bf16 %v13282_v22  ;;  %v18462_v50 = vunpack.i.l.bf16 %v13282_v22  ;;  %v11203_v22 = vld [vmem:[%s20126_s3 + $0xb8] sm:$0xff]  ;;  %11774 = vmatpush.msra.mxu3 %v11263_v40  ;;  %v11194_v40 = vld [vmem:[%s20126_s3 + $0x70] sm:$0xff] }
 0x5eb   : > { %11708 = vmatpush.msra.mxu2 %v11203_v22  ;;  %v11262_v22 = vld [vmem:[%s20126_s3 + $0x290] sm:$0xff] }
 0x5ec   : > { %11336 = vmatmul.f32.gmra.mxu0 %v18462_v50  ;;  %11401 = vmatmul.f32.gmra.mxu1 %v18460_v60 }
 0x5ed   : > { %11466 = vmatmul.f32.gmra.mxu2 %v18462_v50  ;;  %11531 = vmatmul.f32.gmra.mxu3 %v18460_v60 }
 0x5ee   : > { %11709 = vmatpush.msra.mxu2 %v11199_v20  ;;  %11644 = vmatpush.msra.mxu1 %v11262_v22  ;;  %v11255_v22 = vld [vmem:[%s20126_s3 + $0x258] sm:$0xff] }
 0x5f0   : > { %11710 = vmatpush.msra.mxu2 %v11195_v61 }
 0x5f1   : > { %v13287_v7 = vpop.trf.xlu0 }
 0x5f2   : > { %v18480_v56 = vunpack.i.h.bf16 %v13287_v7  ;;  %v18482_v57 = vunpack.i.l.bf16 %v13287_v7  ;;  %v11202_v7 = vld [vmem:[%s20126_s3 + $0xb0] sm:$0xff] }
 0x5f3   : > { %11578 = vmatpush.msra.mxu0 %v11202_v7 }
 0x5f4   : > { %11339 = vmatmul.f32.gmra.mxu0 %v18482_v57  ;;  %11404 = vmatmul.f32.gmra.mxu1 %v18480_v56 }
 0x5f5   : > { %11469 = vmatmul.f32.gmra.mxu2 %v18482_v57  ;;  %11534 = vmatmul.f32.gmra.mxu3 %v18480_v56 }
 0x5f6   : > { %11579 = vmatpush.msra.mxu0 %v11198_v42  ;;  %v11191_v42 = vld [vmem:[%s20126_s3 + $0x58] sm:$0xff] }
 0x5f7   : > { %11711 = vmatpush.msra.mxu2 %v11191_v42  ;;  %v11187_v42 = vld [vmem:[%s20126_s3 + $0x38] sm:$0xff] }
 0x5f8   : > { %11580 = vmatpush.msra.mxu0 %v11194_v40  ;;  %v11190_v40 = vld [vmem:[%s20126_s3 + $0x50] sm:$0xff] }
 0x5f9   : > { %v13292_v51 = vpop.trf.xlu0  ;;  %11712 = vmatpush.msra.mxu2 %v11187_v42  ;;  %v11183_v42 = vld [vmem:[%s20126_s3 + $0x18] sm:$0xff] }
 0x5fa   : > { %v18500_v44 = vunpack.i.h.bf16 %v13292_v51  ;;  %v18502_v5 = vunpack.i.l.bf16 %v13292_v51  ;;  %11581 = vmatpush.msra.mxu0 %v11190_v40 }
 0x5fb   : > { %11713 = vmatpush.msra.mxu2 %v11183_v42 }
 0x5fc   : > { %11342 = vmatmul.f32.gmra.mxu0 %v18502_v5  ;;  %11407 = vmatmul.f32.gmra.mxu1 %v18500_v44 }
 0x5fd   : > { %11472 = vmatmul.f32.gmra.mxu2 %v18502_v5  ;;  %11537 = vmatmul.f32.gmra.mxu3 %v18500_v44 }
 0x5fe   : > { %11582 = vmatpush.msra.mxu0 %v11186_v31  ;;  %v11247_v31 = vld [vmem:[%s20126_s3 + $0x218] sm:$0xff] }
 0x600   : > { %11583 = vmatpush.msra.mxu0 %v11182_v54 }
 0x601   : > { %v13297_v26 = vpop.trf.xlu0 }
 0x602   : > { %v18520_v30 = vunpack.i.h.bf16 %v13297_v26  ;;  %v18522_v32 = vunpack.i.l.bf16 %v13297_v26  ;;  %v11259_v26 = vld [vmem:[%s20126_s3 + $0x278] sm:$0xff] }
 0x603   : > { %11775 = vmatpush.msra.mxu3 %v11259_v26 }
 0x604   : > { %11345 = vmatmul.f32.gmra.mxu0 %v18522_v32  ;;  %11410 = vmatmul.f32.gmra.mxu1 %v18520_v30 }
 0x605   : > { %11475 = vmatmul.f32.gmra.mxu2 %v18522_v32  ;;  %11540 = vmatmul.f32.gmra.mxu3 %v18520_v30 }
 0x606   : > { %11776 = vmatpush.msra.mxu3 %v11255_v22  ;;  %v11251_v22 = vld [vmem:[%s20126_s3 + $0x238] sm:$0xff] }
 0x608   : > { %11777 = vmatpush.msra.mxu3 %v11251_v22 }
 0x609   : > { %v13302_v4 = vpop.trf.xlu0 }
 0x60a   : > { %v18540_v51 = vunpack.i.h.bf16 %v13302_v4  ;;  %v18542_v59 = vunpack.i.l.bf16 %v13302_v4  ;;  %v11258_v4 = vld [vmem:[%s20126_s3 + $0x270] sm:$0xff]  ;;  %11778 = vmatpush.msra.mxu3 %v11247_v31 }
 0x60b   : > { %11645 = vmatpush.msra.mxu1 %v11258_v4  ;;  %v11254_v4 = vld [vmem:[%s20126_s3 + $0x250] sm:$0xff] }
 0x60c   : > { %11348 = vmatmul.f32.gmra.mxu0 %v18542_v59  ;;  %11413 = vmatmul.f32.gmra.mxu1 %v18540_v51 }
 0x60d   : > { %11478 = vmatmul.f32.gmra.mxu2 %v18542_v59  ;;  %11543 = vmatmul.f32.gmra.mxu3 %v18540_v51 }
 0x60e   : > { %11646 = vmatpush.msra.mxu1 %v11254_v4  ;;  %v11250_v4 = vld [vmem:[%s20126_s3 + $0x230] sm:$0xff] }
 0x610   : > { %11647 = vmatpush.msra.mxu1 %v11250_v4 }
 0x611   : > { %v13307_v7 = vpop.trf.xlu0 }
 0x612   : > { %v18560_v2 = vunpack.i.h.bf16 %v13307_v7  ;;  %v18562_v20 = vunpack.i.l.bf16 %v13307_v7  ;;  %11648 = vmatpush.msra.mxu1 %v11246_v11 }
 0x614   : > { %11351 = vmatmul.f32.gmra.mxu0 %v18562_v20  ;;  %11416 = vmatmul.f32.gmra.mxu1 %v18560_v2 }
 0x615   : > { %11481 = vmatmul.f32.gmra.mxu2 %v18562_v20  ;;  %11546 = vmatmul.f32.gmra.mxu3 %v18560_v2 }
 0x619   : > { %v13312_v61 = vpop.trf.xlu0 }
 0x61a   : > { %v18580_v26 = vunpack.i.h.bf16 %v13312_v61  ;;  %v18582_v7 = vunpack.i.l.bf16 %v13312_v61 }
 0x61c   : > { %11354 = vmatmul.f32.gmra.mxu0 %v18582_v7  ;;  %11419 = vmatmul.f32.gmra.mxu1 %v18580_v26 }
 0x61d   : > { %11484 = vmatmul.f32.gmra.mxu2 %v18582_v7  ;;  %11549 = vmatmul.f32.gmra.mxu3 %v18580_v26 }
 0x621   : > { %v13317_v61 = vpop.trf.xlu0 }
 0x622   : > { %v18600_v40 = vunpack.i.h.bf16 %v13317_v61  ;;  %v18602_v29 = vunpack.i.l.bf16 %v13317_v61 }
 0x624   : > { %20704 = vst [vmem:[#allocation138_spill] sm:$0xff] %v18600_v40  ;;  %11357 = vmatmul.f32.gmra.mxu0 %v18602_v29  ;;  %11422 = vmatmul.f32.gmra.mxu1 %v18600_v40 }
 0x625   : > { %20705 = vst [vmem:[#allocation139_spill] sm:$0xff] %v18602_v29  ;;  %11487 = vmatmul.f32.gmra.mxu2 %v18602_v29  ;;  %11552 = vmatmul.f32.gmra.mxu3 %v18600_v40 }
 0x629   : > { %v13322_v22 = vpop.trf.xlu0 }
 0x62a   : > { %v18620_v61 = vunpack.i.h.bf16 %v13322_v22  ;;  %v18622_v6 = vunpack.i.l.bf16 %v13322_v22 }
 0x62c   : > { %20706 = vst [vmem:[#allocation140_spill] sm:$0xff] %v18620_v61  ;;  %11360 = vmatmul.f32.gmra.mxu0 %v18622_v6  ;;  %11425 = vmatmul.f32.gmra.mxu1 %v18620_v61 }
 0x62d   : > { %20707 = vst [vmem:[#allocation141_spill] sm:$0xff] %v18622_v6  ;;  %11490 = vmatmul.f32.gmra.mxu2 %v18622_v6  ;;  %11555 = vmatmul.f32.gmra.mxu3 %v18620_v61  ;;  %v11104_v6 = vld [vmem:[%s20125_s2 + $0x1a0] sm:$0xff] }
 0x631   : > { %v13327_v4 = vpop.trf.xlu0 }
 0x632   : > { %v18634_v42 = vunpack.i.h.bf16 %v13327_v4  ;;  %v18636_v31 = vunpack.i.l.bf16 %v13327_v4 }
 0x634   : > { %20708 = vst [vmem:[#allocation142_spill] sm:$0xff] %v18634_v42  ;;  %11363 = vmatmul.f32.gmra.mxu0 %v18636_v31  ;;  %11428 = vmatmul.f32.gmra.mxu1 %v18634_v42 }
 0x635   : > { %20709 = vst [vmem:[#allocation143_spill] sm:$0xff] %v18636_v31  ;;  %11493 = vmatmul.f32.gmra.mxu2 %v18636_v31  ;;  %11558 = vmatmul.f32.gmra.mxu3 %v18634_v42  ;;  %v11169_v31 = vld [vmem:[%s20125_s2 + $0x3a8] sm:$0xff] }
 0x639   : > { %v13332_v11 = vpop.trf.xlu0 }
 0x63a   : > { %v18642_v54 = vunpack.i.h.bf16 %v13332_v11  ;;  %v18644_v22 = vunpack.i.l.bf16 %v13332_v11 }
 0x63c   : > { %20710 = vst [vmem:[#allocation144_spill] sm:$0xff] %v18642_v54  ;;  %11366 = vmatmul.f32.gmra.mxu0 %v18644_v22  ;;  %11431 = vmatmul.f32.gmra.mxu1 %v18642_v54 }
 0x63d   : > { %20711 = vst [vmem:[#allocation145_spill] sm:$0xff] %v18644_v22  ;;  %11496 = vmatmul.f32.gmra.mxu2 %v18644_v22  ;;  %11561 = vmatmul.f32.gmra.mxu3 %v18642_v54  ;;  %v11113_v54 = vld [vmem:[%s20125_s2 + $0x1e8] sm:$0xff]  ;;  %v11108_v22 = vld [vmem:[%s20125_s2 + $0x1c0] sm:$0xff] }
 0x641   : > { %v13337_v4 = vpop.trf.xlu0 }
 0x642   : > { %v18650_v28 = vunpack.i.h.bf16 %v13337_v4  ;;  %v18652_v61 = vunpack.i.l.bf16 %v13337_v4  ;;  %v11177_v4 = vld [vmem:[%s20125_s2 + $0x3e8] sm:$0xff] }
 0x644   : > { %20712 = vst [vmem:[#allocation146_spill] sm:$0xff] %v18650_v28  ;;  %11369 = vmatmul.f32.gmra.mxu0 %v18652_v61  ;;  %11434 = vmatmul.f32.gmra.mxu1 %v18650_v28 }
 0x645   : > { %20713 = vst [vmem:[#allocation147_spill] sm:$0xff] %v18652_v61  ;;  %11499 = vmatmul.f32.gmra.mxu2 %v18652_v61  ;;  %11564 = vmatmul.f32.gmra.mxu3 %v18650_v28  ;;  %v11112_v28 = vld [vmem:[%s20125_s2 + $0x1e0] sm:$0xff]  ;;  %v11173_v61 = vld [vmem:[%s20125_s2 + $0x3c8] sm:$0xff] }
 0x649   : > { %v18658_v11 = vpop.f32.mrf.mxu0  ;;  %v18660_v42 = vpop.f32.mrf.mxu1 }
 0x64a   : > { %20714 = vst [vmem:[#allocation148_spill] sm:$0xff] %v18658_v11  ;;  %v11109_v11 = vld [vmem:[%s20125_s2 + $0x1c8] sm:$0xff] }
 0x64b   : > { %20715 = vst [vmem:[#allocation149_spill] sm:$0xff] %v18660_v42  ;;  %v11176_v42 = vld [vmem:[%s20125_s2 + $0x3e0] sm:$0xff] }
 0x64c   : > { %11584 = vmatmul.f32.vlgmr.msra.gmra.mxu0 %v18340_v15  ;;  %11649 = vmatmul.f32.vlgmr.msra.gmra.mxu1 %v18338_v0 }
 0x64d   : > { %11714 = vmatmul.f32.vlgmr.msra.gmra.mxu2 %v18340_v15  ;;  %11779 = vmatmul.f32.vlgmr.msra.gmra.mxu3 %v18338_v0  ;;  %v11172_v15 = vld [vmem:[%s20125_s2 + $0x3c0] sm:$0xff]  ;;  %v11105_v0 = vld [vmem:[%s20125_s2 + $0x1a8] sm:$0xff] }
 0x64e   : > { %11958 = vmatpush.msra.mxu2 %v11113_v54  ;;  %12023 = vmatpush.msra.mxu3 %v11177_v4 }
 0x64f   : > { %11828 = vmatpush.msra.mxu0 %v11112_v28  ;;  %11893 = vmatpush.msra.mxu1 %v11176_v42  ;;  %v11168_v28 = vld [vmem:[%s20125_s2 + $0x3a0] sm:$0xff] }
 0x650   : > { %v11455_v54 = vpop.f32.mrf.mxu2  ;;  %v11520_v4 = vpop.f32.mrf.mxu3  ;;  %11959 = vmatpush.msra.mxu2 %v11109_v11  ;;  %12024 = vmatpush.msra.mxu3 %v11173_v61  ;;  %v11101_v61 = vld [vmem:[%s20125_s2 + $0x188] sm:$0xff] }
 0x651   : > { %v18702_v42 = vadd.f32 %v11520_v4, %v11455_v54  ;;  %v18704_v40 = vpop.f32.mrf.mxu0  ;;  %v18706_v29 = vpop.f32.mrf.mxu1  ;;  %11829 = vmatpush.msra.mxu0 %v11108_v22  ;;  %11894 = vmatpush.msra.mxu1 %v11172_v15  ;;  %v11165_v11 = vld [vmem:[%s20125_s2 + $0x388] sm:$0xff]  ;;  %v11100_v22 = vld [vmem:[%s20125_s2 + $0x180] sm:$0xff] }
 0x652   : > { %11960 = vmatpush.msra.mxu2 %v11105_v0  ;;  %12025 = vmatpush.msra.mxu3 %v11169_v31  ;;  %v11097_v31 = vld [vmem:[%s20125_s2 + $0x168] sm:$0xff]  ;;  %v11096_v0 = vld [vmem:[%s20125_s2 + $0x160] sm:$0xff] }
 0x653   : > { %20716 = vst [vmem:[#allocation150_spill] sm:$0xff] %v18702_v42  ;;  %11830 = vmatpush.msra.mxu0 %v11104_v6  ;;  %11895 = vmatpush.msra.mxu1 %v11168_v28  ;;  %v11164_v6 = vld [vmem:[%s20125_s2 + $0x380] sm:$0xff]  ;;  %v11161_v15 = vld [vmem:[%s20125_s2 + $0x368] sm:$0xff] }
 0x654   : > { %11587 = vmatmul.f32.gmra.mxu0 %v18384_v14  ;;  %11652 = vmatmul.f32.gmra.mxu1 %v18382_v33  ;;  %v11157_v54 = vld [vmem:[%s20125_s2 + $0x348] sm:$0xff] }
 0x655   : > { %11717 = vmatmul.f32.gmra.mxu2 %v18384_v14  ;;  %11782 = vmatmul.f32.gmra.mxu3 %v18382_v33  ;;  %v11160_v14 = vld [vmem:[%s20125_s2 + $0x360] sm:$0xff]  ;;  %v11093_v33 = vld [vmem:[%s20125_s2 + $0x148] sm:$0xff] }
 0x656   : > { %11961 = vmatpush.msra.mxu2 %v11101_v61  ;;  %12026 = vmatpush.msra.mxu3 %v11165_v11 }
 0x657   : > { %11831 = vmatpush.msra.mxu0 %v11100_v22  ;;  %11896 = vmatpush.msra.mxu1 %v11164_v6  ;;  %v11092_v22 = vld [vmem:[%s20125_s2 + $0x140] sm:$0xff] }
 0x658   : > { %v11458_v4 = vpop.f32.mrf.mxu2  ;;  %v11523_v28 = vpop.f32.mrf.mxu3  ;;  %11962 = vmatpush.msra.mxu2 %v11097_v31  ;;  %12027 = vmatpush.msra.mxu3 %v11161_v15  ;;  %v11156_v6 = vld [vmem:[%s20125_s2 + $0x340] sm:$0xff]  ;;  %v11089_v31 = vld [vmem:[%s20125_s2 + $0x128] sm:$0xff] }
 0x659   : > { %v18742_v61 = vadd.f32 %v11523_v28, %v11458_v4  ;;  %v18744_v11 = vpop.f32.mrf.mxu0  ;;  %v18746_v42 = vpop.f32.mrf.mxu1  ;;  %11832 = vmatpush.msra.mxu0 %v11096_v0  ;;  %11897 = vmatpush.msra.mxu1 %v11160_v14  ;;  %v11153_v15 = vld [vmem:[%s20125_s2 + $0x328] sm:$0xff]  ;;  %v11152_v4 = vld [vmem:[%s20125_s2 + $0x320] sm:$0xff] }
 0x65a   : > { %11963 = vmatpush.msra.mxu2 %v11093_v33  ;;  %12028 = vmatpush.msra.mxu3 %v11157_v54  ;;  %v11088_v54 = vld [vmem:[%s20125_s2 + $0x120] sm:$0xff]  ;;  %v11085_v28 = vld [vmem:[%s20125_s2 + $0x108] sm:$0xff] }
 0x65b   : > { %11833 = vmatpush.msra.mxu0 %v11092_v22  ;;  %11898 = vmatpush.msra.mxu1 %v11156_v6  ;;  %v11149_v22 = vld [vmem:[%s20125_s2 + $0x308] sm:$0xff]  ;;  %v3173_v6 = vand.u32 3, %v18061_v43 }
 0x65c   : > { %11590 = vmatmul.f32.gmra.mxu0 %v18422_v23  ;;  %11655 = vmatmul.f32.gmra.mxu1 %v18420_v49 }
 0x65d   : > { %11720 = vmatmul.f32.gmra.mxu2 %v18422_v23  ;;  %11785 = vmatmul.f32.gmra.mxu3 %v18420_v49  ;;  %vm3175_vm0 = vcmp.eq.s32.totalorder %v3173_v6, 0  ;;  %vm3178_vm6 = vcmp.eq.s32.totalorder %v3173_v6, 2  ;;  %vm3174_vm13 = vcmp.lt.s32.totalorder %v3173_v6, 2 }
 0x65e   : > { %11964 = vmatpush.msra.mxu2 %v11089_v31  ;;  %12029 = vmatpush.msra.mxu3 %v11153_v15 }
 0x65f   : > { %11834 = vmatpush.msra.mxu0 %v11088_v54  ;;  %11899 = vmatpush.msra.mxu1 %v11152_v4  ;;  %v20718_v54 = vxor.u32 2147483648, %v18135_v27 }
 0x660   : > { %v11461_v0 = vpop.f32.mrf.mxu2  ;;  %v11526_v14 = vpop.f32.mrf.mxu3  ;;  %11965 = vmatpush.msra.mxu2 %v11085_v28  ;;  %12030 = vmatpush.msra.mxu3 %v11149_v22 }
 0x661   : > { %v18764_v23 = vadd.f32 %v11526_v14, %v11461_v0  ;;  %v18766_v49 = vpop.f32.mrf.mxu0  ;;  %v18768_v33 = vpop.f32.mrf.mxu1  ;;  %v20717_v0 = vxor.u32 2147483648, %v18138_v62  ;;  %v3180_v43 = vsel %vm3178_vm6, %v20718_v54, %v18138_v62  ;;  %v2865_v54 = vand.u32 3, %v17545_v46  ;;  %v11145_v46 = vld [vmem:[%s20125_s2 + $0x2e8] sm:$0xff] }
 0x662   : > { %12031 = vmatpush.msra.mxu3 %v11145_v46 }
 0x663   : > { %v3177_v14 = vsel %vm3175_vm0, %v18135_v27, %v20717_v0  ;;  %v20719_v27 = vxor.u32 2147483648, %v17894_v24 }
 0x664   : > { %11593 = vmatmul.f32.gmra.mxu0 %v18442_v21  ;;  %11658 = vmatmul.f32.gmra.mxu1 %v18440_v8 }
 0x665   : > { %11723 = vmatmul.f32.gmra.mxu2 %v18442_v21  ;;  %11788 = vmatmul.f32.gmra.mxu3 %v18440_v8  ;;  %v3019_v8 = vand.u32 3, %v17803_v9  ;;  %v5637_v21 = vand.u32 3, %v18142_v58  ;;  %v3181_v9 = vsel %vm3174_vm13, %v3177_v14, %v3180_v43  ;;  %v11084_v58 = vld [vmem:[%s20125_s2 + $0x100] sm:$0xff]  ;;  %v20722_v43 = vxor.u32 2147483648, %v18231_v25 }
 0x666   : > { %v3182_v6 = vsel %vm3172_vm2, nan, %v3181_v9  ;;  %11835 = vmatpush.msra.mxu0 %v11084_v58  ;;  %vm2866_vm13 = vcmp.lt.s32.totalorder %v2865_v54, 2 }
 0x667   : > { %vm3021_vm15 = vcmp.eq.s32.totalorder %v3019_v8, 0  ;;  %vm3024_vm9 = vcmp.eq.s32.totalorder %v3019_v8, 2  ;;  %vm3020_vm12 = vcmp.lt.s32.totalorder %v3019_v8, 2  ;;  %vm5638_vm0 = vcmp.lt.s32.totalorder %v5637_v21, 2 }
 0x668   : > { %v11464_v31 = vpop.f32.mrf.mxu2  ;;  %v11529_v15 = vpop.f32.mrf.mxu3  ;;  %v3023_v62 = vsel %vm3021_vm15, %v17874_v34, %v20719_v27  ;;  %vm5639_vm6 = vcmp.eq.s32.totalorder %v5637_v21, 0  ;;  %v20721_v8 = vxor.u32 2147483648, %v18250_v53  ;;  %vm5642_vm2 = vcmp.eq.s32.totalorder %v5637_v21, 2 }
 0x669   : > { %v18795_v4 = vadd.f32 %v11529_v15, %v11464_v31  ;;  %v18797_v28 = vpop.f32.mrf.mxu0  ;;  %v18799_v22 = vpop.f32.mrf.mxu1  ;;  %v5816_v31 = vmul.f32 %v3182_v6, %v18262_v1  ;;  %v20720_v15 = vxor.u32 2147483648, %v17874_v34  ;;  %v11148_v34 = vld [vmem:[%s20125_s2 + $0x300] sm:$0xff]  ;;  %v5644_v9 = vsel %vm5642_vm2, %v20722_v43, %v18250_v53 }
 0x66a   : > { %v5641_v14 = vsel %vm5639_vm6, %v18231_v25, %v20721_v8  ;;  %11900 = vmatpush.msra.mxu1 %v11148_v34  ;;  %v20723_v25 = vxor.u32 2147483648, %v17613_v12  ;;  %vm2870_vm15 = vcmp.eq.s32.totalorder %v2865_v54, 2  ;;  %v20724_v21 = vxor.u32 2147483648, %v17610_v13 }
 0x66b   : > { %v3026_v0 = vsel %vm3024_vm9, %v20720_v15, %v17894_v24  ;;  %v11081_v24 = vld [vmem:[%s20125_s2 + $0xe8] sm:$0xff]  ;;  %12911 = vmatpush.lsf.msrb.mxu0 %v5816_v31  ;;  %v5645_v6 = vsel %vm5638_vm0, %v5641_v14, %v5644_v9  ;;  %v11080_v14 = vld [vmem:[%s20125_s2 + $0xe0] sm:$0xff]  ;;  %v2557_v43 = vand.u32 3, %v17036_v55  ;;  %v5175_v9 = vand.u32 3, %v17347_v39 }
 0x66c   : > { %11596 = vmatmul.f32.gmra.mxu0 %v18462_v50  ;;  %11661 = vmatmul.f32.gmra.mxu1 %v18460_v60  ;;  %v3027_v38 = vsel %vm3020_vm12, %v3023_v62, %v3026_v0  ;;  %v5646_v35 = vsel %vm5636_vm3, nan, %v5645_v6  ;;  %v2872_v27 = vsel %vm2870_vm15, %v20724_v21, %v17613_v12  ;;  %v20731_v55 = vld [vmem:[#allocation131_spill] sm:$0xff] }
 0x66d   : > { %11726 = vmatmul.f32.gmra.mxu2 %v18462_v50  ;;  %11791 = vmatmul.f32.gmra.mxu3 %v18460_v60  ;;  %v3028_v1 = vsel %vm3018_vm10, nan, %v3027_v38  ;;  %v5483_v60 = vand.u32 3, %v17887_v52  ;;  %v2711_v50 = vand.u32 3, %v17292_v3  ;;  %vm2867_vm10 = vcmp.eq.s32.totalorder %v2865_v54, 0 }
 0x66e   : > { %v5815_v58 = vmul.f32 %v3028_v1, %v17790_v45  ;;  %11966 = vmatpush.msra.mxu2 %v11081_v24  ;;  %v2869_v53 = vsel %vm2867_vm10, %v17610_v13, %v20723_v25  ;;  %v5832_v45 = vmul.f32 %v5646_v35, %v18295_v19  ;;  %v20725_v38 = vxor.u32 2147483648, %v17971_v16  ;;  %v11141_v25 = vld [vmem:[%s20125_s2 + $0x2c8] sm:$0xff] }
 0x66f   : > { %vm5484_vm9 = vcmp.lt.s32.totalorder %v5483_v60, 2  ;;  %vm5485_vm12 = vcmp.eq.s32.totalorder %v5483_v60, 0  ;;  %vm5488_vm0 = vcmp.eq.s32.totalorder %v5483_v60, 2  ;;  %v2873_v0 = vsel %vm2866_vm13, %v2869_v53, %v2872_v27  ;;  %v20732_v60 = vld [vmem:[#allocation137_spill] sm:$0xff] }
 0x670   : > { %v11467_v3 = vpop.f32.mrf.mxu2  ;;  %v11532_v52 = vpop.f32.mrf.mxu3  ;;  %13024 = vmatpush.lsf.msrb.mxu2 %v5816_v31  ;;  %12912 = vmatpush.lsf.msrb.mxu0 %v5815_v58  ;;  %v5487_v31 = vsel %vm5485_vm12, %v17959_v37, %v20725_v38  ;;  %v20726_v19 = vxor.u32 2147483648, %v17959_v37  ;;  %v2874_v13 = vsel %vm2864_vm1, nan, %v2873_v0  ;;  %vm2712_vm3 = vcmp.lt.s32.totalorder %v2711_v50, 2  ;;  %v20755_v0 = vld [vmem:[#allocation117_spill] sm:$0xff] }
 0x671   : > { %v18848_v36 = vadd.f32 %v11532_v52, %v11467_v3  ;;  %v18850_v62 = vpop.f32.mrf.mxu0  ;;  %v18852_v15 = vpop.f32.mrf.mxu1  ;;  %12969 = vmatpush.lsf.msrb.mxu1 %v5832_v45  ;;  %13079 = vmatpush.lsf.msrb.mxu3 %v5832_v45  ;;  %v5814_v54 = vmul.f32 %v2874_v13, %v17537_v48  ;;  %vm2713_vm6 = vcmp.eq.s32.totalorder %v2711_v50, 0  ;;  %vm2716_vm2 = vcmp.eq.s32.totalorder %v2711_v50, 2  ;;  %v20734_v50 = vld [vmem:[#allocation136_spill] sm:$0xff] }
 0x672   : > { %v5490_v8 = vsel %vm5488_vm0, %v20726_v19, %v17971_v16  ;;  %13025 = vmatpush.lsf.msrb.mxu2 %v5815_v58  ;;  %11836 = vmatpush.msra.mxu0 %v11080_v14  ;;  %v20727_v37 = vxor.u32 2147483648, %v17360_v17  ;;  %v20728_v24 = vxor.u32 2147483648, %v17357_v47  ;;  %vm5330_vm1 = vcmp.lt.s32.totalorder %v5329_v63, 2 }
 0x673   : > { %v5491_v12 = vsel %vm5484_vm9, %v5487_v31, %v5490_v8  ;;  %vm5334_vm13 = vcmp.eq.s32.totalorder %v5329_v63, 2  ;;  %v20733_v39 = vxor.u32 2147483648, %v20732_v60  ;;  %v20735_v6 = vxor.u32 2147483648, %v20734_v50  ;;  %v20737_v31 = vld [vmem:[#allocation126_spill] sm:$0xff]  ;;  %v20739_v8 = vld [vmem:[#allocation125_spill] sm:$0xff] }
 0x674   : > { %v5492_v34 = vsel %vm5482_vm5, nan, %v5491_v12  ;;  %11599 = vmatmul.f32.gmra.mxu0 %v18482_v57  ;;  %11664 = vmatmul.f32.gmra.mxu1 %v18480_v56  ;;  %v2715_v16 = vsel %vm2713_vm6, %v17357_v47, %v20727_v37  ;;  %v2718_v48 = vsel %vm2716_vm2, %v20728_v24, %v17360_v17  ;;  %v11077_v47 = vld [vmem:[%s20125_s2 + $0xc8] sm:$0xff]  ;;  %v20729_v17 = vld [vmem:[#allocation115_spill] sm:$0xff]  ;;  %vm5331_vm5 = vcmp.eq.s32.totalorder %v5329_v63, 0 }
 0x675   : > { %v5831_v10 = vmul.f32 %v5492_v34, %v17794_v41  ;;  %11729 = vmatmul.f32.gmra.mxu2 %v18482_v57  ;;  %11794 = vmatmul.f32.gmra.mxu3 %v18480_v56  ;;  %v2719_v1 = vsel %vm2712_vm3, %v2715_v16, %v2718_v48  ;;  %v11144_v41 = vld [vmem:[%s20125_s2 + $0x2e0] sm:$0xff]  ;;  %v2403_v46 = vand.u32 3, %v20729_v17  ;;  %v5333_v58 = vsel %vm5331_vm5, %v20734_v50, %v20733_v39  ;;  %v20743_v48 = vld [vmem:[#allocation134_spill] sm:$0xff] }
 0x676   : > { %12913 = vmatpush.lsf.msrb.mxu0 %v5814_v54  ;;  %v2720_v56 = vsel %vm2710_vm14, nan, %v2719_v1  ;;  %13026 = vmatpush.lsf.msrb.mxu2 %v5814_v54  ;;  %v5336_v35 = vsel %vm5334_vm13, %v20735_v6, %v20732_v60  ;;  %vm2558_vm10 = vcmp.lt.s32.totalorder %v2557_v43, 2  ;;  %vm2559_vm14 = vcmp.eq.s32.totalorder %v2557_v43, 0  ;;  %v20741_v54 = vld [vmem:[#allocation135_spill] sm:$0xff]  ;;  %v20745_v1 = vld [vmem:[#allocation133_spill] sm:$0xff]  ;;  %v20750_v60 = vld [vmem:[#allocation116_spill] sm:$0xff] }
 0x677   : > { %12970 = vmatpush.lsf.msrb.mxu1 %v5831_v10  ;;  %13080 = vmatpush.lsf.msrb.mxu3 %v5831_v10  ;;  %v5813_v57 = vmul.f32 %v2720_v56, %v20731_v55  ;;  %v5337_v52 = vsel %vm5330_vm1, %v5333_v58, %v5336_v35  ;;  %vm2562_vm15 = vcmp.eq.s32.totalorder %v2557_v43, 2  ;;  %v20738_v19 = vxor.u32 2147483648, %v20737_v31  ;;  %v11076_v37 = vld [vmem:[%s20125_s2 + $0xc0] sm:$0xff]  ;;  %v20748_v55 = vld [vmem:[#allocation118_spill] sm:$0xff] }
 0x678   : > { %v11470_v53 = vpop.f32.mrf.mxu2  ;;  %v11535_v3 = vpop.f32.mrf.mxu3  ;;  %11967 = vmatpush.msra.mxu2 %v11077_v47  ;;  %v5338_v38 = vsel %vm5328_vm4, nan, %v5337_v52  ;;  %v20740_v12 = vxor.u32 2147483648, %v20739_v8  ;;  %vm5176_vm9 = vcmp.lt.s32.totalorder %v5175_v9, 2  ;;  %vm5177_vm12 = vcmp.eq.s32.totalorder %v5175_v9, 0  ;;  %v20746_v43 = vld [vmem:[#allocation123_spill] sm:$0xff] }
 0x679   : > { %11901 = vmatpush.msra.mxu1 %v11144_v41  ;;  %v18903_v45 = vadd.f32 %v11535_v3, %v11470_v53  ;;  %v18905_v21 = vpop.f32.mrf.mxu0  ;;  %v18907_v27 = vpop.f32.mrf.mxu1  ;;  %12914 = vmatpush.lsf.msrb.mxu0 %v5813_v57  ;;  %v2561_v13 = vsel %vm2559_vm14, %v20739_v8, %v20738_v19  ;;  %v5830_v34 = vmul.f32 %v5338_v38, %v20741_v54  ;;  %v20744_v63 = vxor.u32 2147483648, %v20743_v48  ;;  %v20752_v6 = vld [vmem:[#allocation127_spill] sm:$0xff]  ;;  %v20754_v3 = vld [vmem:[#allocation105_spill] sm:$0xff] }
 0x67a   : > { %13027 = vmatpush.lsf.msrb.mxu2 %v5813_v57  ;;  %v2564_v14 = vsel %vm2562_vm15, %v20740_v12, %v20737_v31  ;;  %12032 = vmatpush.msra.mxu3 %v11141_v25  ;;  %vm5180_vm4 = vcmp.eq.s32.totalorder %v5175_v9, 2  ;;  %vm2404_vm0 = vcmp.lt.s32.totalorder %v2403_v46, 2  ;;  %v20747_v17 = vxor.u32 2147483648, %v20745_v1  ;;  %v11140_v25 = vld [vmem:[%s20125_s2 + $0x2c0] sm:$0xff]  ;;  %v20758_v54 = vld [vmem:[#allocation113_spill] sm:$0xff] }
 0x67b   : > { %v2565_v10 = vsel %vm2558_vm10, %v2561_v13, %v2564_v14  ;;  %v5179_v41 = vsel %vm5177_vm12, %v20745_v1, %v20744_v63  ;;  %11837 = vmatpush.msra.mxu0 %v11076_v37  ;;  %vm2405_vm3 = vcmp.eq.s32.totalorder %v2403_v46, 0  ;;  %vm2408_vm6 = vcmp.eq.s32.totalorder %v2403_v46, 2  ;;  %12971 = vmatpush.lsf.msrb.mxu1 %v5830_v34  ;;  %v20756_v31 = vld [vmem:[#allocation132_spill] sm:$0xff] }
 0x67c   : > { %v2566_v24 = vsel %vm2556_vm11, nan, %v2565_v10  ;;  %11602 = vmatmul.f32.gmra.mxu0 %v18502_v5  ;;  %11667 = vmatmul.f32.gmra.mxu1 %v18500_v44  ;;  %v5182_v18 = vsel %vm5180_vm4, %v20747_v17, %v20743_v48  ;;  %v20749_v57 = vxor.u32 2147483648, %v20748_v55  ;;  %v20751_v50 = vxor.u32 2147483648, %v20750_v60  ;;  %v20759_v10 = vld [vmem:[#allocation129_spill] sm:$0xff]  ;;  %v20761_v37 = vld [vmem:[#allocation128_spill] sm:$0xff] }
 0x67d   : > { %v5812_v47 = vmul.f32 %v2566_v24, %v20746_v43  ;;  %11732 = vmatmul.f32.gmra.mxu2 %v18502_v5  ;;  %11797 = vmatmul.f32.gmra.mxu3 %v18500_v44  ;;  %v5183_v56 = vsel %vm5176_vm9, %v5179_v41, %v5182_v18  ;;  %v5021_v35 = vand.u32 3, %v20752_v6  ;;  %v11073_v44 = vld [vmem:[%s20125_s2 + $0xa8] sm:$0xff]  ;;  %v2249_v52 = vand.u32 3, %v20754_v3  ;;  %v20773_v3 = vld [vmem:[#allocation95_spill] sm:$0xff] }
 0x67e   : > { %v2407_v39 = vsel %vm2405_vm3, %v20750_v60, %v20749_v57  ;;  %v2410_v58 = vsel %vm2408_vm6, %v20751_v50, %v20748_v55  ;;  %13081 = vmatpush.lsf.msrb.mxu3 %v5830_v34  ;;  %v5184_v9 = vsel %vm5174_vm7, nan, %v5183_v56  ;;  %v4867_v38 = vand.u32 3, %v20755_v0  ;;  %11902 = vmatpush.msra.mxu1 %v11140_v25  ;;  %v11137_v24 = vld [vmem:[%s20125_s2 + $0x2a8] sm:$0xff]  ;;  %v20765_v56 = vld [vmem:[#allocation107_spill] sm:$0xff] }
 0x67f   : > { %v2411_v53 = vsel %vm2404_vm0, %v2407_v39, %v2410_v58  ;;  %12915 = vmatpush.lsf.msrb.mxu0 %v5812_v47  ;;  %v5829_v19 = vmul.f32 %v5184_v9, %v20756_v31  ;;  %13028 = vmatpush.lsf.msrb.mxu2 %v5812_v47  ;;  %vm5022_vm11 = vcmp.lt.s32.totalorder %v5021_v35, 2  ;;  %vm5023_vm2 = vcmp.eq.s32.totalorder %v5021_v35, 0  ;;  %v20763_v17 = vld [vmem:[#allocation108_spill] sm:$0xff]  ;;  %v20772_v9 = vld [vmem:[#allocation119_spill] sm:$0xff] }
 0x680   : > { %v2412_v13 = vsel %vm2402_vm8, nan, %v2411_v53  ;;  %v11473_v12 = vpop.f32.mrf.mxu2  ;;  %v11538_v14 = vpop.f32.mrf.mxu3  ;;  %v20760_v46 = vxor.u32 2147483648, %v20759_v10  ;;  %vm5026_vm7 = vcmp.eq.s32.totalorder %v5021_v35, 2  ;;  %vm2250_vm1 = vcmp.lt.s32.totalorder %v2249_v52, 2  ;;  %v11072_v57 = vld [vmem:[%s20125_s2 + $0xa0] sm:$0xff] }
 0x681   : > { %v5811_v34 = vmul.f32 %v2412_v13, %v20758_v54  ;;  %11968 = vmatpush.msra.mxu2 %v11073_v44  ;;  %v18964_v48 = vadd.f32 %v11538_v14, %v11473_v12  ;;  %v18966_v63 = vpop.f32.mrf.mxu0  ;;  %v18968_v1 = vpop.f32.mrf.mxu1  ;;  %12972 = vmatpush.lsf.msrb.mxu1 %v5829_v19  ;;  %v20762_v41 = vxor.u32 2147483648, %v20761_v37  ;;  %vm2251_vm8 = vcmp.eq.s32.totalorder %v2249_v52, 0  ;;  %v20766_v60 = vld [vmem:[#allocation112_spill] sm:$0xff]  ;;  %v20774_v31 = vld [vmem:[#allocation91_spill] sm:$0xff]  ;;  %v20777_v12 = vld [vmem:[#allocation106_spill] sm:$0xff] }
 0x682   : > { %v5025_v16 = vsel %vm5023_vm2, %v20761_v37, %v20760_v46  ;;  %13082 = vmatpush.lsf.msrb.mxu3 %v5829_v19  ;;  %vm2254_vm5 = vcmp.eq.s32.totalorder %v2249_v52, 2  ;;  %v20764_v18 = vxor.u32 2147483648, %v20763_v17  ;;  %vm4868_vm13 = vcmp.lt.s32.totalorder %v4867_v38, 2  ;;  %v20769_v6 = vld [vmem:[#allocation124_spill] sm:$0xff]  ;;  %v20778_v14 = vld [vmem:[#allocation85_spill] sm:$0xff]  ;;  %v20780_v37 = vld [vmem:[#allocation102_spill] sm:$0xff] }
 0x683   : > { %v5028_v43 = vsel %vm5026_vm7, %v20762_v41, %v20759_v10  ;;  %12916 = vmatpush.lsf.msrb.mxu0 %v5811_v34  ;;  %13029 = vmatpush.lsf.msrb.mxu2 %v5811_v34  ;;  %vm20767_vm10 = vweird.f32 %v20766_v60  ;;  %v20768_v50 = vxor.u32 2147483648, %v20765_v56  ;;  %vm4869_vm14 = vcmp.eq.s32.totalorder %v4867_v38, 0  ;;  %v20770_v44 = vld [vmem:[#allocation120_spill] sm:$0xff]  ;;  %v20779_v34 = vld [vmem:[#allocation103_spill] sm:$0xff] }
 0x684   : > { %v5029_v47 = vsel %vm5022_vm11, %v5025_v16, %v5028_v43  ;;  %v2253_v55 = vsel %vm2251_vm8, %v20765_v56, %v20764_v18  ;;  %vm4872_vm15 = vcmp.eq.s32.totalorder %v4867_v38, 2  ;;  %12033 = vmatpush.msra.mxu3 %v11137_v24  ;;  %11605 = vmatmul.f32.gmra.mxu0 %v18522_v32  ;;  %v20771_v5 = vxor.u32 2147483648, %v20770_v44  ;;  %v20782_v24 = vld [vmem:[#allocation98_spill] sm:$0xff]  ;;  %v20784_v43 = vld [vmem:[#allocation97_spill] sm:$0xff] }
 0x685   : > { %v5030_v39 = vsel %vm20767_vm10, nan, %v5029_v47  ;;  %v2256_v58 = vsel %vm2254_vm5, %v20768_v50, %v20763_v17  ;;  %11838 = vmatpush.msra.mxu0 %v11072_v57  ;;  %11670 = vmatmul.f32.gmra.mxu1 %v18520_v30  ;;  %v2095_v0 = vand.u32 3, %v20773_v3  ;;  %vm20775_vm9 = vweird.f32 %v20774_v31  ;;  %v20785_v18 = vld [vmem:[#allocation114_spill] sm:$0xff] }
 0x686   : > { %v5828_v35 = vmul.f32 %v5030_v39, %v20769_v6  ;;  %v2257_v25 = vsel %vm2250_vm1, %v2253_v55, %v2256_v58  ;;  %v4871_v53 = vsel %vm4869_vm14, %v20772_v9, %v20771_v5  ;;  %11735 = vmatmul.f32.gmra.mxu2 %v18522_v32  ;;  %11800 = vmatmul.f32.gmra.mxu3 %v18520_v30  ;;  %v20776_v8 = vxor.u32 2147483648, %v20772_v9  ;;  %v11136_v30 = vld [vmem:[%s20125_s2 + $0x2a0] sm:$0xff]  ;;  %v11069_v32 = vld [vmem:[%s20125_s2 + $0x88] sm:$0xff]  ;;  %v20787_v6 = vld [vmem:[#allocation110_spill] sm:$0xff] }
 0x687   : > { %v2258_v19 = vsel %vm20775_vm9, nan, %v2257_v25  ;;  %v4713_v52 = vand.u32 3, %v20777_v12  ;;  %v1941_v54 = vand.u32 3, %v20778_v14  ;;  %vm2096_vm12 = vcmp.lt.s32.totalorder %v2095_v0, 2  ;;  %11969 = vmatpush.msra.mxu2 %v11069_v32  ;;  %v20789_v25 = vld [vmem:[#allocation109_spill] sm:$0xff]  ;;  %v20796_v12 = vld [vmem:[#allocation104_spill] sm:$0xff] }
 0x688   : > { %v4874_v13 = vsel %vm4872_vm15, %v20776_v8, %v20770_v44  ;;  %12973 = vmatpush.lsf.msrb.mxu1 %v5828_v35  ;;  %13083 = vmatpush.lsf.msrb.mxu3 %v5828_v35  ;;  %v5810_v10 = vmul.f32 %v2258_v19, %v20779_v34  ;;  %vm2097_vm4 = vcmp.eq.s32.totalorder %v2095_v0, 0  ;;  %vm20781_vm0 = vweird.f32 %v20780_v37  ;;  %v11476_v38 = vpop.f32.mrf.mxu2  ;;  %v11541_v17 = vpop.f32.mrf.mxu3  ;;  %v20793_v19 = vld [vmem:[#allocation93_spill] sm:$0xff]  ;;  %v20797_v34 = vld [vmem:[#allocation87_spill] sm:$0xff]  ;;  %v20801_v37 = vld [vmem:[#allocation96_spill] sm:$0xff] }
 0x689   : > { %v4875_v46 = vsel %vm4868_vm13, %v4871_v53, %v4874_v13  ;;  %v20783_v41 = vxor.u32 2147483648, %v20782_v24  ;;  %vm2100_vm3 = vcmp.eq.s32.totalorder %v2095_v0, 2  ;;  %vm4714_vm6 = vcmp.lt.s32.totalorder %v4713_v52, 2  ;;  %v19021_v39 = vpop.f32.mrf.mxu0  ;;  %v19023_v50 = vpop.f32.mrf.mxu1  ;;  %v20791_v53 = vld [vmem:[#allocation81_spill] sm:$0xff]  ;;  %v20794_v0 = vld [vmem:[#allocation92_spill] sm:$0xff] }
 0x68a   : > { %v4876_v16 = vsel %vm20781_vm0, nan, %v4875_v46  ;;  %11903 = vmatpush.msra.mxu1 %v11136_v30  ;;  %12917 = vmatpush.lsf.msrb.mxu0 %v5810_v10  ;;  %v20786_v55 = vxor.u32 2147483648, %v20784_v43  ;;  %vm4715_vm11 = vcmp.eq.s32.totalorder %v4713_v52, 0  ;;  %vm4718_vm2 = vcmp.eq.s32.totalorder %v4713_v52, 2  ;;  %v20799_v46 = vld [vmem:[#allocation86_spill] sm:$0xff] }
 0x68b   : > { %v2099_v47 = vsel %vm2097_vm4, %v20784_v43, %v20783_v41  ;;  %v5827_v56 = vmul.f32 %v4876_v16, %v20785_v18  ;;  %13030 = vmatpush.lsf.msrb.mxu2 %v5810_v10  ;;  %v19019_v60 = vadd.f32 %v11541_v17, %v11476_v38  ;;  %v20788_v35 = vxor.u32 2147483648, %v20787_v6  ;;  %v20803_v43 = vld [vmem:[#allocation88_spill] sm:$0xff]  ;;  %v20804_v38 = vld [vmem:[#allocation65_spill] sm:$0xff] }
 0x68c   : > { %v2102_v57 = vsel %vm2100_vm3, %v20786_v55, %v20782_v24  ;;  %v20790_v5 = vxor.u32 2147483648, %v20789_v25  ;;  %vm20792_vm7 = vweird.f32 %v20791_v53  ;;  %vm1942_vm1 = vcmp.lt.s32.totalorder %v1941_v54, 2  ;;  %11608 = vmatmul.f32.gmra.mxu0 %v18542_v59  ;;  %v20802_v24 = vld [vmem:[#allocation75_spill] sm:$0xff]  ;;  %v11133_v18 = vld [vmem:[%s20125_s2 + $0x288] sm:$0xff] }
 0x68d   : > { %v2103_v58 = vsel %vm2096_vm12, %v2099_v47, %v2102_v57  ;;  %v4717_v44 = vsel %vm4715_vm11, %v20789_v25, %v20788_v35  ;;  %12974 = vmatpush.lsf.msrb.mxu1 %v5827_v56  ;;  %13084 = vmatpush.lsf.msrb.mxu3 %v5827_v56  ;;  %vm20795_vm8 = vweird.f32 %v20794_v0  ;;  %vm1943_vm5 = vcmp.eq.s32.totalorder %v1941_v54, 0  ;;  %v20805_v56 = vld [vmem:[#allocation71_spill] sm:$0xff]  ;;  %v20808_v57 = vld [vmem:[#allocation100_spill] sm:$0xff] }
 0x68e   : > { %v4720_v9 = vsel %vm4718_vm2, %v20790_v5, %v20787_v6  ;;  %v2104_v3 = vsel %vm20792_vm7, nan, %v2103_v58  ;;  %vm1946_vm13 = vcmp.eq.s32.totalorder %v1941_v54, 2  ;;  %11673 = vmatmul.f32.gmra.mxu1 %v18540_v51  ;;  %v20798_v10 = vxor.u32 2147483648, %v20797_v34  ;;  %11738 = vmatmul.f32.gmra.mxu2 %v18542_v59  ;;  %v20810_v6 = vld [vmem:[#allocation99_spill] sm:$0xff] }
 0x68f   : > { %v4721_v31 = vsel %vm4714_vm6, %v4717_v44, %v4720_v9  ;;  %v5809_v8 = vmul.f32 %v2104_v3, %v20793_v19  ;;  %v20800_v52 = vxor.u32 2147483648, %v20799_v46  ;;  %v4559_v16 = vand.u32 3, %v20801_v37  ;;  %11803 = vmatmul.f32.gmra.mxu3 %v18540_v51  ;;  %v20807_v51 = vld [vmem:[#allocation83_spill] sm:$0xff]  ;;  %v20819_v37 = vld [vmem:[#allocation61_spill] sm:$0xff] }
 0x690   : > { %v4722_v13 = vsel %vm20795_vm8, nan, %v4721_v31  ;;  %v1945_v30 = vsel %vm1943_vm5, %v20799_v46, %v20798_v10  ;;  %v1787_v41 = vand.u32 3, %v20802_v24  ;;  %v4405_v47 = vand.u32 3, %v20803_v43  ;;  %v19065_v5 = vpop.f32.mrf.mxu2  ;;  %v19067_v9 = vpop.f32.mrf.mxu3  ;;  %v11068_v3 = vld [vmem:[%s20125_s2 + $0x80] sm:$0xff]  ;;  %v20823_v43 = vld [vmem:[#allocation89_spill] sm:$0xff] }
 0x691   : > { %v5826_v14 = vmul.f32 %v4722_v13, %v20796_v12  ;;  %v1948_v32 = vsel %vm1946_vm13, %v20800_v52, %v20797_v34  ;;  %v1633_v17 = vand.u32 3, %v20804_v38  ;;  %12918 = vmatpush.lsf.msrb.mxu0 %v5809_v8  ;;  %vm20806_vm10 = vweird.f32 %v20805_v56  ;;  %13031 = vmatpush.lsf.msrb.mxu2 %v5809_v8  ;;  %v19072_v31 = vpop.f32.mrf.mxu0  ;;  %v19074_v19 = vpop.f32.mrf.mxu1  ;;  %v20812_v8 = vld [vmem:[#allocation82_spill] sm:$0xff] }
 0x692   : > { %v1949_v54 = vsel %vm1942_vm1, %v1945_v30, %v1948_v32  ;;  %vm4560_vm14 = vcmp.lt.s32.totalorder %v4559_v16, 2  ;;  %vm4561_vm15 = vcmp.eq.s32.totalorder %v4559_v16, 0  ;;  %vm4564_vm9 = vcmp.eq.s32.totalorder %v4559_v16, 2  ;;  %v20814_v13 = vld [vmem:[#allocation78_spill] sm:$0xff] }
 0x693   : > { %12975 = vmatpush.lsf.msrb.mxu1 %v5826_v14  ;;  %v1950_v55 = vsel %vm20806_vm10, nan, %v1949_v54  ;;  %13085 = vmatpush.lsf.msrb.mxu3 %v5826_v14  ;;  %v20809_v58 = vxor.u32 2147483648, %v20808_v57  ;;  %v20811_v25 = vxor.u32 2147483648, %v20810_v6  ;;  %vm1788_vm12 = vcmp.lt.s32.totalorder %v1787_v41, 2  ;;  %v20816_v14 = vld [vmem:[#allocation76_spill] sm:$0xff]  ;;  %v20818_v30 = vld [vmem:[#allocation94_spill] sm:$0xff] }
 0x694   : > { %v5808_v59 = vmul.f32 %v1950_v55, %v20807_v51  ;;  %vm1789_vm4 = vcmp.eq.s32.totalorder %v1787_v41, 0  ;;  %vm1792_vm0 = vcmp.eq.s32.totalorder %v1787_v41, 2  ;;  %vm20813_vm3 = vweird.f32 %v20812_v8  ;;  %v20821_v54 = vld [vmem:[#allocation90_spill] sm:$0xff]  ;;  %11611 = vmatmul.f32.gmra.mxu0 %v18562_v20  ;;  %v20833_v8 = vld [vmem:[#allocation55_spill] sm:$0xff] }
 0x695   : > { %v4563_v35 = vsel %vm4561_vm15, %v20810_v6, %v20809_v58  ;;  %v4566_v44 = vsel %vm4564_vm9, %v20811_v25, %v20808_v57  ;;  %12034 = vmatpush.msra.mxu3 %v11133_v18  ;;  %v20815_v12 = vxor.u32 2147483648, %v20814_v13  ;;  %v20817_v10 = vxor.u32 2147483648, %v20816_v14  ;;  %v20824_v18 = vld [vmem:[#allocation73_spill] sm:$0xff]  ;;  %v20828_v57 = vld [vmem:[#allocation67_spill] sm:$0xff] }
 0x696   : > { %v4567_v53 = vsel %vm4560_vm14, %v4563_v35, %v4566_v44  ;;  %12919 = vmatpush.lsf.msrb.mxu0 %v5808_v59  ;;  %13032 = vmatpush.lsf.msrb.mxu2 %v5808_v59  ;;  %vm4406_vm6 = vcmp.lt.s32.totalorder %v4405_v47, 2  ;;  %vm4407_vm11 = vcmp.eq.s32.totalorder %v4405_v47, 0  ;;  %vm20820_vm2 = vweird.f32 %v20819_v37  ;;  %v20826_v59 = vld [vmem:[#allocation68_spill] sm:$0xff]  ;;  %v20830_v25 = vld [vmem:[#allocation77_spill] sm:$0xff] }
 0x697   : > { %v4568_v0 = vsel %vm20813_vm3, nan, %v4567_v53  ;;  %v1791_v34 = vsel %vm1789_vm4, %v20816_v14, %v20815_v12  ;;  %v1794_v46 = vsel %vm1792_vm0, %v20817_v10, %v20814_v13  ;;  %v20822_v24 = vxor.u32 2147483648, %v20821_v54  ;;  %11676 = vmatmul.f32.gmra.mxu1 %v18560_v2  ;;  %11741 = vmatmul.f32.gmra.mxu2 %v18562_v20  ;;  %v11132_v53 = vld [vmem:[%s20125_s2 + $0x280] sm:$0xff]  ;;  %v20834_v13 = vld [vmem:[#allocation66_spill] sm:$0xff] }
 0x698   : > { %v5825_v52 = vmul.f32 %v4568_v0, %v20818_v30  ;;  %v1795_v32 = vsel %vm1788_vm12, %v1791_v34, %v1794_v46  ;;  %11839 = vmatpush.msra.mxu0 %v11068_v3  ;;  %vm4410_vm7 = vcmp.eq.s32.totalorder %v4405_v47, 2  ;;  %vm1634_vm1 = vcmp.lt.s32.totalorder %v1633_v17, 2  ;;  %11806 = vmatmul.f32.gmra.mxu3 %v18560_v2  ;;  %v20831_v20 = vld [vmem:[#allocation72_spill] sm:$0xff]  ;;  %v20836_v10 = vld [vmem:[#allocation51_spill] sm:$0xff] }
 0x699   : > { %v1796_v16 = vsel %vm20820_vm2, nan, %v1795_v32  ;;  %v4409_v38 = vsel %vm4407_vm11, %v20823_v43, %v20822_v24  ;;  %v20825_v41 = vxor.u32 2147483648, %v20823_v43  ;;  %vm1635_vm8 = vcmp.eq.s32.totalorder %v1633_v17, 0  ;;  %v20835_v14 = vld [vmem:[#allocation84_spill] sm:$0xff]  ;;  %v20838_v32 = vld [vmem:[#allocation63_spill] sm:$0xff] }
 0x69a   : > { %v5807_v56 = vmul.f32 %v1796_v16, %v20824_v18  ;;  %vm1638_vm5 = vcmp.eq.s32.totalorder %v1633_v17, 2  ;;  %v20827_v47 = vxor.u32 2147483648, %v20826_v59  ;;  %v20829_v6 = vxor.u32 2147483648, %v20828_v57  ;;  %12976 = vmatpush.lsf.msrb.mxu1 %v5825_v52  ;;  %13086 = vmatpush.lsf.msrb.mxu3 %v5825_v52  ;;  %v11065_v30 = vld [vmem:[%s20125_s2 + $0x68] sm:$0xff]  ;;  %v19120_v52 = vpop.f32.mrf.mxu2  ;;  %v19122_v17 = vpop.f32.mrf.mxu3  ;;  %v20841_v24 = vld [vmem:[#allocation79_spill] sm:$0xff] }
 0x69b   : > { %v4412_v55 = vsel %vm4410_vm7, %v20825_v41, %v20821_v54  ;;  %v4251_v44 = vand.u32 3, %v20830_v25  ;;  %vm20832_vm13 = vweird.f32 %v20831_v20  ;;  %v1479_v0 = vand.u32 3, %v20833_v8  ;;  %v20839_v16 = vld [vmem:[#allocation80_spill] sm:$0xff]  ;;  %v19136_v41 = vpop.f32.mrf.mxu1  ;;  %v20850_v8 = vld [vmem:[#allocation70_spill] sm:$0xff] }
 0x69c   : > { %v4413_v51 = vsel %vm4406_vm6, %v4409_v38, %v4412_v55  ;;  %v1637_v58 = vsel %vm1635_vm8, %v20828_v57, %v20827_v47  ;;  %v1640_v35 = vsel %vm1638_vm5, %v20829_v6, %v20826_v59  ;;  %v4097_v12 = vand.u32 3, %v20834_v13  ;;  %12920 = vmatpush.lsf.msrb.mxu0 %v5807_v56  ;;  %13033 = vmatpush.lsf.msrb.mxu2 %v5807_v56  ;;  %v11129_v38 = vld [vmem:[%s20125_s2 + $0x268] sm:$0xff]  ;;  %v11064_v18 = vld [vmem:[%s20125_s2 + $0x60] sm:$0xff]  ;;  %v19134_v56 = vpop.f32.mrf.mxu0  ;;  %v20843_v47 = vld [vmem:[#allocation58_spill] sm:$0xff] }
 0x69d   : > { %v4414_v2 = vsel %vm20832_vm13, nan, %v4413_v51  ;;  %v1641_v3 = vsel %vm1634_vm1, %v1637_v58, %v1640_v35  ;;  %vm20837_vm10 = vweird.f32 %v20836_v10  ;;  %vm4252_vm14 = vcmp.lt.s32.totalorder %v4251_v44, 2  ;;  %11904 = vmatpush.msra.mxu1 %v11132_v53  ;;  %v20845_v58 = vld [vmem:[#allocation57_spill] sm:$0xff]  ;;  %v20846_v35 = vld [vmem:[#allocation62_spill] sm:$0xff]  ;;  %11614 = vmatmul.f32.gmra.mxu0 %v18582_v7 }
 0x69e   : > { %v5824_v34 = vmul.f32 %v4414_v2, %v20835_v14  ;;  %v1642_v46 = vsel %vm20837_vm10, nan, %v1641_v3  ;;  %vm4253_vm15 = vcmp.eq.s32.totalorder %v4251_v44, 0  ;;  %v20840_v54 = vxor.u32 2147483648, %v20839_v16  ;;  %11970 = vmatpush.msra.mxu2 %v11065_v30  ;;  %v20852_v14 = vld [vmem:[#allocation69_spill] sm:$0xff]  ;;  %v11128_v30 = vld [vmem:[%s20125_s2 + $0x260] sm:$0xff] }
 0x69f   : > { %v5806_v37 = vmul.f32 %v1642_v46, %v20838_v32  ;;  %vm4256_vm9 = vcmp.eq.s32.totalorder %v4251_v44, 2  ;;  %v20842_v55 = vxor.u32 2147483648, %v20841_v24  ;;  %vm1480_vm12 = vcmp.lt.s32.totalorder %v1479_v0, 2  ;;  %11679 = vmatmul.f32.gmra.mxu1 %v18580_v26  ;;  %v20849_v44 = vld [vmem:[#allocation74_spill] sm:$0xff]  ;;  %v20853_v10 = vld [vmem:[#allocation45_spill] sm:$0xff]  ;;  %11744 = vmatmul.f32.gmra.mxu2 %v18582_v7  ;;  %v20860_v7 = vld [vmem:[#allocation52_spill] sm:$0xff] }
 0x6a0   : > { %v4255_v43 = vsel %vm4253_vm15, %v20841_v24, %v20840_v54  ;;  %12977 = vmatpush.lsf.msrb.mxu1 %v5824_v34  ;;  %13087 = vmatpush.lsf.msrb.mxu3 %v5824_v34  ;;  %vm1481_vm4 = vcmp.eq.s32.totalorder %v1479_v0, 0  ;;  %vm1484_vm0 = vcmp.eq.s32.totalorder %v1479_v0, 2  ;;  %v20844_v57 = vxor.u32 2147483648, %v20843_v47  ;;  %v11061_v32 = vld [vmem:[%s20125_s2 + $0x48] sm:$0xff] }
 0x6a1   : > { %v4258_v51 = vsel %vm4256_vm9, %v20842_v55, %v20839_v16  ;;  %12921 = vmatpush.lsf.msrb.mxu0 %v5806_v37  ;;  %13034 = vmatpush.lsf.msrb.mxu2 %v5806_v37  ;;  %vm4098_vm3 = vcmp.lt.s32.totalorder %v4097_v12, 2  ;;  %vm20847_vm6 = vweird.f32 %v20846_v35  ;;  %v20848_v53 = vxor.u32 2147483648, %v20845_v58  ;;  %v20854_v0 = vld [vmem:[#allocation41_spill] sm:$0xff]  ;;  %v20857_v24 = vld [vmem:[#allocation56_spill] sm:$0xff] }
 0x6a2   : > { %v4259_v59 = vsel %vm4252_vm14, %v4255_v43, %v4258_v51  ;;  %v1483_v6 = vsel %vm1481_vm4, %v20845_v58, %v20844_v57  ;;  %vm4099_vm11 = vcmp.eq.s32.totalorder %v4097_v12, 0  ;;  %vm4102_vm2 = vcmp.eq.s32.totalorder %v4097_v12, 2  ;;  %12035 = vmatpush.msra.mxu3 %v11129_v38  ;;  %v20858_v38 = vld [vmem:[#allocation35_spill] sm:$0xff]  ;;  %v20859_v55 = vld [vmem:[#allocation53_spill] sm:$0xff]  ;;  %v20862_v57 = vld [vmem:[#allocation48_spill] sm:$0xff]  ;;  %v19185_v12 = vpop.f32.mrf.mxu3 }
 0x6a3   : > { %v4260_v25 = vsel %vm20847_vm6, nan, %v4259_v59  ;;  %v1486_v20 = vsel %vm1484_vm0, %v20848_v53, %v20843_v47  ;;  %11840 = vmatpush.msra.mxu0 %v11064_v18  ;;  %v20851_v13 = vxor.u32 2147483648, %v20850_v8  ;;  %v1325_v46 = vand.u32 3, %v20853_v10  ;;  %11809 = vmatmul.f32.gmra.mxu3 %v18580_v26  ;;  %v11125_v26 = vld [vmem:[%s20125_s2 + $0x248] sm:$0xff] }
 0x6a4   : > { %v5823_v2 = vmul.f32 %v4260_v25, %v20849_v44  ;;  %v1487_v3 = vsel %vm1480_vm12, %v1483_v6, %v1486_v20  ;;  %vm20855_vm7 = vweird.f32 %v20854_v0  ;;  %v20856_v16 = vxor.u32 2147483648, %v20852_v14  ;;  %v20864_v6 = vld [vmem:[#allocation46_spill] sm:$0xff]  ;;  %11971 = vmatpush.msra.mxu2 %v11061_v32  ;;  %v19183_v25 = vpop.f32.mrf.mxu2  ;;  %v20865_v53 = vld [vmem:[#allocation64_spill] sm:$0xff] }
 0x6a5   : > { %v4101_v34 = vsel %vm4099_vm11, %v20852_v14, %v20851_v13  ;;  %v1488_v37 = vsel %vm20855_vm7, nan, %v1487_v3  ;;  %v3943_v43 = vand.u32 3, %v20857_v24  ;;  %v1171_v18 = vand.u32 3, %v20858_v38  ;;  %v11060_v3 = vld [vmem:[%s20125_s2 + $0x40] sm:$0xff]  ;;  %v19196_v13 = vpop.f32.mrf.mxu1 }
 0x6a6   : > { %v4104_v54 = vsel %vm4102_vm2, %v20856_v16, %v20850_v8  ;;  %12978 = vmatpush.lsf.msrb.mxu1 %v5823_v2  ;;  %13088 = vmatpush.lsf.msrb.mxu3 %v5823_v2  ;;  %v5805_v51 = vmul.f32 %v1488_v37, %v20859_v55  ;;  %vm1326_vm1 = vcmp.lt.s32.totalorder %v1325_v46, 2  ;;  %vm1327_vm8 = vcmp.eq.s32.totalorder %v1325_v46, 0  ;;  %v19194_v8 = vpop.f32.mrf.mxu0  ;;  %v11124_v16 = vld [vmem:[%s20125_s2 + $0x240] sm:$0xff] }
 0x6a7   : > { %v4105_v59 = vsel %vm4098_vm3, %v4101_v34, %v4104_v54  ;;  %vm20861_vm5 = vweird.f32 %v20860_v7  ;;  %v20863_v58 = vxor.u32 2147483648, %v20862_v57  ;;  %vm1330_vm13 = vcmp.eq.s32.totalorder %v1325_v46, 2  ;;  %v20867_v34 = vld [vmem:[#allocation60_spill] sm:$0xff]  ;;  %v20871_v54 = vld [vmem:[#allocation31_spill] sm:$0xff]  ;;  %v20877_v7 = vld [vmem:[#allocation138_spill] sm:$0xff] }
 0x6a8   : > { %v4106_v47 = vsel %vm20861_vm5, nan, %v4105_v59  ;;  %vm3944_vm10 = vcmp.lt.s32.totalorder %v3943_v43, 2  ;;  %11905 = vmatpush.msra.mxu1 %v11128_v30  ;;  %12922 = vmatpush.lsf.msrb.mxu0 %v5805_v51  ;;  %v20866_v44 = vxor.u32 2147483648, %v20864_v6  ;;  %vm3945_vm14 = vcmp.eq.s32.totalorder %v3943_v43, 0  ;;  %v20869_v30 = vld [vmem:[#allocation59_spill] sm:$0xff] }
 0x6a9   : > { %v1329_v35 = vsel %vm1327_vm8, %v20864_v6, %v20863_v58  ;;  %v5822_v20 = vmul.f32 %v4106_v47, %v20865_v53  ;;  %13035 = vmatpush.lsf.msrb.mxu2 %v5805_v51  ;;  %vm3948_vm15 = vcmp.eq.s32.totalorder %v3943_v43, 2  ;;  %v20868_v10 = vxor.u32 2147483648, %v20867_v34  ;;  %12036 = vmatpush.msra.mxu3 %v11125_v26  ;;  %v20873_v38 = vld [vmem:[#allocation43_spill] sm:$0xff]  ;;  %v20874_v51 = vld [vmem:[#allocation42_spill] sm:$0xff]  ;;  %v20881_v43 = vld [vmem:[#allocation37_spill] sm:$0xff] }
 0x6aa   : > { %v1332_v2 = vsel %vm1330_vm13, %v20866_v44, %v20862_v57  ;;  %v20870_v0 = vxor.u32 2147483648, %v20869_v30  ;;  %vm20872_vm9 = vweird.f32 %v20871_v54  ;;  %vm1172_vm12 = vcmp.lt.s32.totalorder %v1171_v18, 2  ;;  %11841 = vmatpush.msra.mxu0 %v11060_v3  ;;  %v20876_v26 = vld [vmem:[#allocation139_spill] sm:$0xff]  ;;  %11682 = vmatmul.f32.gmra.mxu1 %v20877_v7  ;;  %v20878_v47 = vld [vmem:[#allocation54_spill] sm:$0xff]  ;;  %v20884_v3 = vld [vmem:[#allocation24_spill] sm:$0xff] }
 0x6ab   : > { %v1333_v14 = vsel %vm1326_vm1, %v1329_v35, %v1332_v2  ;;  %v3947_v32 = vsel %vm3945_vm14, %v20869_v30, %v20868_v10  ;;  %12979 = vmatpush.lsf.msrb.mxu1 %v5822_v20  ;;  %13089 = vmatpush.lsf.msrb.mxu3 %v5822_v20  ;;  %vm20875_vm4 = vweird.f32 %v20874_v51  ;;  %vm1173_vm0 = vcmp.eq.s32.totalorder %v1171_v18, 0  ;;  %v20879_v58 = vld [vmem:[#allocation38_spill] sm:$0xff]  ;;  %v20883_v44 = vld [vmem:[#allocation47_spill] sm:$0xff]  ;;  %v11057_v30 = vld [vmem:[%s20125_s2 + $0x28] sm:$0xff] }
 0x6ac   : > { %v3950_v37 = vsel %vm3948_vm15, %v20870_v0, %v20867_v34  ;;  %v1334_v24 = vsel %vm20872_vm9, nan, %v1333_v14  ;;  %vm1176_vm3 = vcmp.eq.s32.totalorder %v1171_v18, 2  ;;  %11617 = vmatmul.f32.gmra.mxu0 %v20876_v26  ;;  %v20880_v6 = vxor.u32 2147483648, %v20879_v58  ;;  %11747 = vmatmul.f32.gmra.mxu2 %v20876_v26  ;;  %v20885_v34 = vld [vmem:[#allocation36_spill] sm:$0xff]  ;;  %v20886_v0 = vld [vmem:[#allocation21_spill] sm:$0xff] }
 0x6ad   : > { %v3951_v46 = vsel %vm3944_vm10, %v3947_v32, %v3950_v37  ;;  %v5804_v55 = vmul.f32 %v1334_v24, %v20873_v38  ;;  %11906 = vmatpush.msra.mxu1 %v11124_v16  ;;  %v20882_v53 = vxor.u32 2147483648, %v20881_v43  ;;  %v3789_v2 = vand.u32 3, %v20883_v44  ;;  %11812 = vmatmul.f32.gmra.mxu3 %v20877_v7  ;;  %v11121_v32 = vld [vmem:[%s20125_s2 + $0x228] sm:$0xff]  ;;  %v20889_v24 = vld [vmem:[#allocation50_spill] sm:$0xff]  ;;  %v11056_v7 = vld [vmem:[%s20125_s2 + $0x20] sm:$0xff] }
 0x6ae   : > { %v3952_v59 = vsel %vm20875_vm4, nan, %v3951_v46  ;;  %v1175_v35 = vsel %vm1173_vm0, %v20881_v43, %v20880_v6  ;;  %v1017_v14 = vand.u32 3, %v20884_v3  ;;  %v3635_v10 = vand.u32 3, %v20885_v34  ;;  %v20888_v16 = vld [vmem:[#allocation33_spill] sm:$0xff]  ;;  %v20894_v43 = vld [vmem:[#allocation32_spill] sm:$0xff]  ;;  %v20898_v44 = vld [vmem:[#allocation26_spill] sm:$0xff]  ;;  %v19259_v34 = vpop.f32.mrf.mxu0 }
 0x6af   : > { %v5821_v57 = vmul.f32 %v3952_v59, %v20878_v47  ;;  %v1178_v20 = vsel %vm1176_vm3, %v20882_v53, %v20879_v58  ;;  %12923 = vmatpush.lsf.msrb.mxu0 %v5804_v55  ;;  %vm20887_vm6 = vweird.f32 %v20886_v0  ;;  %vm3790_vm11 = vcmp.lt.s32.totalorder %v3789_v2, 2  ;;  %13036 = vmatpush.lsf.msrb.mxu2 %v5804_v55  ;;  %v20891_v38 = vld [vmem:[#allocation49_spill] sm:$0xff]  ;;  %v19246_v58 = vpop.f32.mrf.mxu2  ;;  %v19248_v55 = vpop.f32.mrf.mxu3  ;;  %v20896_v53 = vld [vmem:[#allocation27_spill] sm:$0xff] }
 0x6b0   : > { %v1179_v18 = vsel %vm1172_vm12, %v1175_v35, %v1178_v20  ;;  %vm3791_vm2 = vcmp.eq.s32.totalorder %v3789_v2, 0  ;;  %vm3794_vm7 = vcmp.eq.s32.totalorder %v3789_v2, 2  ;;  %v20890_v46 = vxor.u32 2147483648, %v20889_v24  ;;  %v19261_v0 = vpop.f32.mrf.mxu1 }
 0x6b1   : > { %12980 = vmatpush.lsf.msrb.mxu1 %v5821_v57  ;;  %v1180_v37 = vsel %vm20887_vm6, nan, %v1179_v18  ;;  %13090 = vmatpush.lsf.msrb.mxu3 %v5821_v57  ;;  %v20892_v59 = vxor.u32 2147483648, %v20891_v38  ;;  %vm1018_vm1 = vcmp.lt.s32.totalorder %v1017_v14, 2  ;;  %vm1019_vm8 = vcmp.eq.s32.totalorder %v1017_v14, 0  ;;  %v20893_v57 = vld [vmem:[#allocation17_spill] sm:$0xff] }
 0x6b2   : > { %v5803_v54 = vmul.f32 %v1180_v37, %v20888_v16  ;;  %v3793_v51 = vsel %vm3791_vm2, %v20891_v38, %v20890_v46  ;;  %vm1022_vm5 = vcmp.eq.s32.totalorder %v1017_v14, 2  ;;  %v863_v6 = vand.u32 3, %v20893_v57  ;;  %11972 = vmatpush.msra.mxu2 %v11057_v30  ;;  %v11120_v30 = vld [vmem:[%s20125_s2 + $0x220] sm:$0xff]  ;;  %v11117_v37 = vld [vmem:[%s20125_s2 + $0x208] sm:$0xff] }
 0x6b3   : > { %v3796_v26 = vsel %vm3794_vm7, %v20892_v59, %v20889_v24  ;;  %12037 = vmatpush.msra.mxu3 %v11121_v32  ;;  %vm20895_vm13 = vweird.f32 %v20894_v43  ;;  %v20897_v20 = vxor.u32 2147483648, %v20896_v53  ;;  %v20899_v18 = vxor.u32 2147483648, %v20898_v44  ;;  %v11053_v32 = vld [vmem:[%s20125_s2 + $0x8] sm:$0xff]  ;;  %11907 = vmatpush.msra.mxu1 %v11120_v30  ;;  %v20901_v46 = vld [vmem:[#allocation11_spill] sm:$0xff] }
 0x6b4   : > { %v3797_v47 = vsel %vm3790_vm11, %v3793_v51, %v3796_v26  ;;  %12924 = vmatpush.lsf.msrb.mxu0 %v5803_v54  ;;  %13037 = vmatpush.lsf.msrb.mxu2 %v5803_v54  ;;  %vm3636_vm10 = vcmp.lt.s32.totalorder %v3635_v10, 2  ;;  %v20900_v16 = vld [vmem:[#allocation44_spill] sm:$0xff]  ;;  %vm3637_vm14 = vcmp.eq.s32.totalorder %v3635_v10, 0  ;;  %vm3640_vm15 = vcmp.eq.s32.totalorder %v3635_v10, 2  ;;  %v20905_v26 = vld [vmem:[#allocation39_spill] sm:$0xff]  ;;  %v20913_v30 = vld [vmem:[#allocation25_spill] sm:$0xff] }
 0x6b5   : > { %v3798_v35 = vsel %vm20895_vm13, nan, %v3797_v47  ;;  %v1021_v2 = vsel %vm1019_vm8, %v20898_v44, %v20897_v20  ;;  %v1024_v3 = vsel %vm1022_vm5, %v20899_v18, %v20896_v53  ;;  %vm20902_vm9 = vweird.f32 %v20901_v46  ;;  %v20903_v51 = vld [vmem:[#allocation40_spill] sm:$0xff]  ;;  %12038 = vmatpush.msra.mxu3 %v11117_v37  ;;  %v20907_v14 = vld [vmem:[#allocation23_spill] sm:$0xff]  ;;  %v20908_v53 = vld [vmem:[#allocation22_spill] sm:$0xff] }
 0x6b6   : > { %v5820_v54 = vmul.f32 %v3798_v35, %v20900_v16  ;;  %v1025_v24 = vsel %vm1018_vm1, %v1021_v2, %v1024_v3  ;;  %11842 = vmatpush.msra.mxu0 %v11056_v7  ;;  %v20904_v59 = vxor.u32 2147483648, %v20903_v51  ;;  %v20906_v57 = vxor.u32 2147483648, %v20905_v26  ;;  %11973 = vmatpush.msra.mxu2 %v11053_v32  ;;  %v20910_v44 = vld [vmem:[#allocation15_spill] sm:$0xff]  ;;  %v20912_v18 = vld [vmem:[#allocation14_spill] sm:$0xff]  ;;  %v20914_v32 = vld [vmem:[#allocation141_spill] sm:$0xff] }
 0x6b7   : > { %v1026_v38 = vsel %vm20902_vm9, nan, %v1025_v24  ;;  %vm864_vm12 = vcmp.lt.s32.totalorder %v863_v6, 2  ;;  %vm865_vm4 = vcmp.eq.s32.totalorder %v863_v6, 0  ;;  %vm20909_vm0 = vweird.f32 %v20908_v53  ;;  %11620 = vmatmul.f32.gmra.mxu0 %v20914_v32  ;;  %v20915_v37 = vld [vmem:[#allocation140_spill] sm:$0xff]  ;;  %11750 = vmatmul.f32.gmra.mxu2 %v20914_v32 }
 0x6b8   : > { %v3639_v47 = vsel %vm3637_vm14, %v20905_v26, %v20904_v59  ;;  %v3642_v43 = vsel %vm3640_vm15, %v20906_v57, %v20903_v51  ;;  %12981 = vmatpush.lsf.msrb.mxu1 %v5820_v54  ;;  %13091 = vmatpush.lsf.msrb.mxu3 %v5820_v54  ;;  %v5802_v35 = vmul.f32 %v1026_v38, %v20907_v14  ;;  %v20911_v2 = vxor.u32 2147483648, %v20910_v44  ;;  %v20916_v54 = vld [vmem:[#allocation34_spill] sm:$0xff]  ;;  %v20919_v26 = vld [vmem:[#allocation9_spill] sm:$0xff]  ;;  %v20923_v14 = vld [vmem:[#allocation28_spill] sm:$0xff] }
 0x6b9   : > { %v3643_v7 = vsel %vm3636_vm10, %v3639_v47, %v3642_v43  ;;  %vm868_vm3 = vcmp.eq.s32.totalorder %v863_v6, 2  ;;  %v3481_v16 = vand.u32 3, %v20913_v30  ;;  %11685 = vmatmul.f32.gmra.mxu1 %v20915_v37  ;;  %v20917_v24 = vxor.u32 2147483648, %v20912_v18  ;;  %v20918_v38 = vld [vmem:[#allocation18_spill] sm:$0xff]  ;;  %v11052_v6 = vld [vmem:[%s20125_s2] sm:$0xff]  ;;  %11815 = vmatmul.f32.gmra.mxu3 %v20915_v37  ;;  %v20921_v57 = vld [vmem:[#allocation29_spill] sm:$0xff]  ;;  %v19315_v30 = vpop.f32.mrf.mxu0 }
 0x6ba   : > { %v3644_v20 = vsel %vm20909_vm0, nan, %v3643_v7  ;;  %v867_v3 = vsel %vm865_vm4, %v20912_v18, %v20911_v2  ;;  %12925 = vmatpush.lsf.msrb.mxu0 %v5802_v35  ;;  %13038 = vmatpush.lsf.msrb.mxu2 %v5802_v35  ;;  %v3327_v51 = vand.u32 3, %v20918_v38  ;;  %vm20920_vm7 = vweird.f32 %v20919_v26  ;;  %v20925_v2 = vld [vmem:[#allocation13_spill] sm:$0xff]  ;;  %v20926_v32 = vld [vmem:[#allocation12_spill] sm:$0xff]  ;;  %v20932_v26 = vld [vmem:[#allocation30_spill] sm:$0xff] }
 0x6bb   : > { %v5819_v10 = vmul.f32 %v3644_v20, %v20916_v54  ;;  %v870_v46 = vsel %vm868_vm3, %v20917_v24, %v20910_v44  ;;  %vm3482_vm6 = vcmp.lt.s32.totalorder %v3481_v16, 2  ;;  %vm3483_vm11 = vcmp.eq.s32.totalorder %v3481_v16, 0  ;;  %v19310_v20 = vpop.f32.mrf.mxu2  ;;  %v19312_v44 = vpop.f32.mrf.mxu3  ;;  %v20928_v54 = vld [vmem:[#allocation20_spill] sm:$0xff]  ;;  %v20930_v24 = vld [vmem:[#allocation19_spill] sm:$0xff] }
 0x6bc   : > { %v871_v59 = vsel %vm864_vm12, %v867_v3, %v870_v46  ;;  %vm3486_vm2 = vcmp.eq.s32.totalorder %v3481_v16, 2  ;;  %v20922_v43 = vxor.u32 2147483648, %v20921_v57  ;;  %v20924_v7 = vxor.u32 2147483648, %v20923_v14  ;;  %v19317_v16 = vpop.f32.mrf.mxu1  ;;  %11843 = vmatpush.msra.mxu0 %v11052_v6  ;;  %v20933_v6 = vld [vmem:[#allocation10_spill] sm:$0xff] }
 0x6bd   : > { %12982 = vmatpush.lsf.msrb.mxu1 %v5819_v10  ;;  %13092 = vmatpush.lsf.msrb.mxu3 %v5819_v10  ;;  %v872_v47 = vsel %vm20920_vm7, nan, %v871_v59  ;;  %vm3328_vm1 = vcmp.lt.s32.totalorder %v3327_v51, 2  ;;  %vm3329_vm8 = vcmp.eq.s32.totalorder %v3327_v51, 0  ;;  %vm3332_vm5 = vcmp.eq.s32.totalorder %v3327_v51, 2  ;;  %v11116_v51 = vld [vmem:[%s20125_s2 + $0x200] sm:$0xff] }
 0x6be   : > { %v3485_v35 = vsel %vm3483_vm11, %v20923_v14, %v20922_v43  ;;  %v3488_v53 = vsel %vm3486_vm2, %v20924_v7, %v20921_v57  ;;  %v5801_v18 = vmul.f32 %v872_v47, %v20925_v2  ;;  %vm20927_vm13 = vweird.f32 %v20926_v32  ;;  %v20935_v14 = vld [vmem:[#allocation16_spill] sm:$0xff]  ;;  %v20936_v7 = vld [vmem:[#allocation143_spill] sm:$0xff] }
 0x6bf   : > { %v3489_v3 = vsel %vm3482_vm6, %v3485_v35, %v3488_v53  ;;  %v20929_v10 = vxor.u32 2147483648, %v20928_v54  ;;  %v20931_v38 = vxor.u32 2147483648, %v20930_v24  ;;  %vm20934_vm10 = vweird.f32 %v20933_v6  ;;  %11623 = vmatmul.f32.gmra.mxu0 %v20936_v7  ;;  %v20937_v53 = vld [vmem:[#allocation142_spill] sm:$0xff]  ;;  %11753 = vmatmul.f32.gmra.mxu2 %v20936_v7 }
 0x6c0   : > { %v3490_v37 = vsel %vm20927_vm13, nan, %v3489_v3  ;;  %12926 = vmatpush.lsf.msrb.mxu0 %v5801_v18  ;;  %13039 = vmatpush.lsf.msrb.mxu2 %v5801_v18 }
 0x6c1   : > { %v3331_v46 = vsel %vm3329_vm8, %v20930_v24, %v20929_v10  ;;  %v3334_v59 = vsel %vm3332_vm5, %v20931_v38, %v20928_v54  ;;  %v5818_v47 = vmul.f32 %v3490_v37, %v20932_v26  ;;  %12927 = vllmr.16.mxu0  ;;  %13040 = vllmr.16.mxu2  ;;  %v19343_v3 = vpop.f32.mrf.mxu0  ;;  %v20938_v37 = vld [vmem:[#allocation145_spill] sm:$0xff]  ;;  %v20939_v54 = vld [vmem:[#allocation144_spill] sm:$0xff]  ;;  %v20942_v26 = vld [vmem:[#allocation146_spill] sm:$0xff] }
 0x6c2   : > { %v3335_v57 = vsel %vm3328_vm1, %v3331_v46, %v3334_v59  ;;  %11688 = vmatmul.f32.gmra.mxu1 %v20937_v53  ;;  %11818 = vmatmul.f32.gmra.mxu3 %v20937_v53  ;;  %v20941_v59 = vld [vmem:[#allocation147_spill] sm:$0xff] }
 0x6c3   : > { %v3336_v43 = vsel %vm20934_vm10, nan, %v3335_v57  ;;  %12983 = vmatpush.lsf.msrb.mxu1 %v5818_v47  ;;  %13093 = vmatpush.lsf.msrb.mxu3 %v5818_v47  ;;  %v19337_v2 = vpop.f32.mrf.mxu2  ;;  %v19339_v18 = vpop.f32.mrf.mxu3 }
 0x6c4   : > { %v5817_v35 = vmul.f32 %v3336_v43, %v20935_v14  ;;  %v19345_v32 = vpop.f32.mrf.mxu1 }
 0x6c6   : > { %12984 = vmatpush.lsf.msrb.mxu1 %v5817_v35  ;;  %13094 = vmatpush.lsf.msrb.mxu3 %v5817_v35 }
 0x6c7   : > { %13095 = vllmr.16.mxu3  ;;  %11626 = vmatmul.f32.gmra.mxu0 %v20938_v37 }
 0x6c8   : > { %11908 = vmatpush.msra.mxu1 %v11116_v51  ;;  %11756 = vmatmul.f32.gmra.mxu2 %v20938_v37  ;;  %v11115_v51 = vld [vmem:[%s20125_s2 + $0x1f8] sm:$0xff]  ;;  %v11114_v37 = vld [vmem:[%s20125_s2 + $0x1f0] sm:$0xff] }
 0x6c9   : > { %12985 = vllmr.16.mxu1  ;;  %v19355_v46 = vpop.f32.mrf.mxu0 }
 0x6ca   : > { %11691 = vmatmul.f32.gmra.mxu1 %v20939_v54  ;;  %11821 = vmatmul.f32.gmra.mxu3 %v20939_v54  ;;  %v11111_v54 = vld [vmem:[%s20125_s2 + $0x1d8] sm:$0xff] }
 0x6cb   : > { %v19349_v10 = vpop.f32.mrf.mxu2  ;;  %v19351_v24 = vpop.f32.mrf.mxu3 }
 0x6cc   : > { %v19357_v38 = vpop.f32.mrf.mxu1 }
 0x6cd   : > { %20940 = vst [vmem:[#allocation115_spill] sm:$0xff] %v19357_v38 }
 0x6cf   : > { %11629 = vmatmul.f32.gmra.mxu0 %v20941_v59 }
 0x6d0   : > { %11759 = vmatmul.f32.gmra.mxu2 %v20941_v59  ;;  %v11110_v59 = vld [vmem:[%s20125_s2 + $0x1d0] sm:$0xff] }
 0x6d1   : > { %v19367_v6 = vpop.f32.mrf.mxu0 }
 0x6d2   : > { %11694 = vmatmul.f32.gmra.mxu1 %v20942_v26  ;;  %11824 = vmatmul.f32.gmra.mxu3 %v20942_v26  ;;  %20945 = vst [vmem:[#allocation137_spill] sm:$0xff] %v19367_v6  ;;  %v11179_v26 = vld [vmem:[%s20125_s2 + $0x3f8] sm:$0xff] }
 0x6d3   : > { %v19361_v47 = vpop.f32.mrf.mxu2  ;;  %v19363_v57 = vpop.f32.mrf.mxu3 }
 0x6d4   : > { %20943 = vst [vmem:[#allocation121_spill] sm:$0xff] %v19361_v47  ;;  %v19369_v43 = vpop.f32.mrf.mxu1 }
 0x6d5   : > { %20944 = vst [vmem:[#allocation131_spill] sm:$0xff] %v19363_v57 }
 0x6d6   : > { %20946 = vst [vmem:[#allocation136_spill] sm:$0xff] %v19369_v43  ;;  %v11170_v43 = vld [vmem:[%s20125_s2 + $0x3b0] sm:$0xff] }
 0x6d9   : > { %v19375_v7 = vpop.f32.mrf.mxu0 }
 0x6da   : > { %20949 = vst [vmem:[#allocation125_spill] sm:$0xff] %v19375_v7 }
 0x6db   : > { %v19371_v14 = vpop.f32.mrf.mxu2  ;;  %v19373_v35 = vpop.f32.mrf.mxu3 }
 0x6dc   : > { %20947 = vst [vmem:[#allocation130_spill] sm:$0xff] %v19371_v14  ;;  %v19377_v53 = vpop.f32.mrf.mxu1  ;;  %v11107_v14 = vld [vmem:[%s20125_s2 + $0x1b8] sm:$0xff] }
 0x6dd   : > { %20948 = vst [vmem:[#allocation126_spill] sm:$0xff] %v19373_v35 }
 0x6de   : > { %20950 = vst [vmem:[#allocation135_spill] sm:$0xff] %v19377_v53  ;;  %v11178_v53 = vld [vmem:[%s20125_s2 + $0x3f0] sm:$0xff] }
 0x6e2   : > { %12928 = vmatmul.lmr.bf16.vlgmr.msra.gmra.16.mxu0  ;;  %13041 = vmatmul.lmr.bf16.vlgmr.msra.gmra.16.mxu2 }
 0x6e3   : > { %12218 = vmatpush.msra.mxu2 %v11115_v51  ;;  %12088 = vmatpush.msra.mxu0 %v11114_v37  ;;  %v19397_v7 = vpop.f32.mrf.mxu2  ;;  %v19399_v35 = vpop.f32.mrf.mxu3  ;;  %v11106_v51 = vld [vmem:[%s20125_s2 + $0x1b0] sm:$0xff]  ;;  %v11175_v37 = vld [vmem:[%s20125_s2 + $0x3d8] sm:$0xff] }
 0x6e4   : > { %20951 = vst [vmem:[#allocation111_spill] sm:$0xff] %v19397_v7  ;;  %v19412_v7 = vpop.f32.mrf.mxu1 }
 0x6e5   : > { %12219 = vmatpush.msra.mxu2 %v11111_v54  ;;  %20952 = vst [vmem:[#allocation134_spill] sm:$0xff] %v19399_v35  ;;  %12089 = vmatpush.msra.mxu0 %v11110_v59  ;;  %v19410_v54 = vpop.f32.mrf.mxu0  ;;  %v11174_v59 = vld [vmem:[%s20125_s2 + $0x3d0] sm:$0xff]  ;;  %v11171_v35 = vld [vmem:[%s20125_s2 + $0x3b8] sm:$0xff] }
 0x6e6   : > { %20953 = vst [vmem:[#allocation133_spill] sm:$0xff] %v19410_v54 }
 0x6e7   : > { %20954 = vst [vmem:[#allocation123_spill] sm:$0xff] %v19412_v7  ;;  %12220 = vmatpush.msra.mxu2 %v11107_v14  ;;  %12090 = vmatpush.msra.mxu0 %v11106_v51  ;;  %v11103_v7 = vld [vmem:[%s20125_s2 + $0x198] sm:$0xff] }
 0x6e8   : > { %13096 = vmatmul.lmr.bf16.vlgmr.msra.gmra.16.mxu3  ;;  %v11167_v14 = vld [vmem:[%s20125_s2 + $0x398] sm:$0xff] }
 0x6e9   : > { %12283 = vmatpush.msra.mxu3 %v11179_v26  ;;  %v11166_v26 = vld [vmem:[%s20125_s2 + $0x390] sm:$0xff]  ;;  %12221 = vmatpush.msra.mxu2 %v11103_v7  ;;  %v11099_v51 = vld [vmem:[%s20125_s2 + $0x178] sm:$0xff] }
 0x6ea   : > { %12986 = vmatmul.lmr.bf16.vlgmr.msra.gmra.16.mxu1  ;;  %12929 = vmatmul.lmr.bf16.gmra.16.mxu0 }
 0x6eb   : > { %12153 = vmatpush.msra.mxu1 %v11178_v53  ;;  %12284 = vmatpush.msra.mxu3 %v11175_v37  ;;  %v11102_v53 = vld [vmem:[%s20125_s2 + $0x190] sm:$0xff]  ;;  %v11163_v37 = vld [vmem:[%s20125_s2 + $0x378] sm:$0xff]  ;;  %v19443_v54 = vpop.f32.mrf.mxu3 }
 0x6ec   : > { %13042 = vmatmul.lmr.bf16.gmra.16.mxu2  ;;  %12091 = vmatpush.msra.mxu0 %v11102_v53  ;;  %20956 = vst [vmem:[#allocation116_spill] sm:$0xff] %v19443_v54  ;;  %v19453_v53 = vpop.f32.mrf.mxu1  ;;  %v11095_v54 = vld [vmem:[%s20125_s2 + $0x158] sm:$0xff] }
 0x6ed   : > { %12154 = vmatpush.msra.mxu1 %v11174_v59  ;;  %12285 = vmatpush.msra.mxu3 %v11171_v35  ;;  %v19441_v59 = vpop.f32.mrf.mxu2  ;;  %v11162_v35 = vld [vmem:[%s20125_s2 + $0x370] sm:$0xff]  ;;  %v19451_v7 = vpop.f32.mrf.mxu0  ;;  %20958 = vst [vmem:[#allocation122_spill] sm:$0xff] %v19453_v53 }
 0x6ee   : > { %20955 = vst [vmem:[#allocation118_spill] sm:$0xff] %v19441_v59  ;;  %12222 = vmatpush.msra.mxu2 %v11099_v51  ;;  %v11158_v53 = vld [vmem:[%s20125_s2 + $0x350] sm:$0xff] }
 0x6ef   : > { %12155 = vmatpush.msra.mxu1 %v11170_v43  ;;  %12286 = vmatpush.msra.mxu3 %v11167_v14  ;;  %v11098_v43 = vld [vmem:[%s20125_s2 + $0x170] sm:$0xff]  ;;  %20957 = vst [vmem:[#allocation127_spill] sm:$0xff] %v19451_v7  ;;  %v11159_v14 = vld [vmem:[%s20125_s2 + $0x358] sm:$0xff] }
 0x6f0   : > { %13097 = vmatmul.lmr.bf16.gmra.16.mxu3  ;;  %12092 = vmatpush.msra.mxu0 %v11098_v43  ;;  %v11091_v7 = vld [vmem:[%s20125_s2 + $0x138] sm:$0xff] }
 0x6f1   : > { %12156 = vmatpush.msra.mxu1 %v11166_v26  ;;  %12287 = vmatpush.msra.mxu3 %v11163_v37  ;;  %v11094_v26 = vld [vmem:[%s20125_s2 + $0x150] sm:$0xff] }
 0x6f2   : > { %12987 = vmatmul.lmr.bf16.gmra.16.mxu1  ;;  %12223 = vmatpush.msra.mxu2 %v11095_v54 }
 0x6f3   : > { %12157 = vmatpush.msra.mxu1 %v11162_v35  ;;  %12288 = vmatpush.msra.mxu3 %v11159_v14  ;;  %v19472_v37 = vpop.f32.mrf.mxu3  ;;  %v11155_v35 = vld [vmem:[%s20125_s2 + $0x338] sm:$0xff]  ;;  %v11090_v14 = vld [vmem:[%s20125_s2 + $0x130] sm:$0xff] }
 0x6f4   : > { %12930 = vmatmul.lmr.bf16.gmra.16.mxu0  ;;  %13043 = vmatmul.lmr.bf16.gmra.16.mxu2  ;;  %20960 = vst [vmem:[#allocation117_spill] sm:$0xff] %v19472_v37  ;;  %v19476_v43 = vpop.f32.mrf.mxu1  ;;  %v11086_v37 = vld [vmem:[%s20125_s2 + $0x110] sm:$0xff] }
 0x6f5   : > { %12093 = vmatpush.msra.mxu0 %v11094_v26  ;;  %12158 = vmatpush.msra.mxu1 %v11158_v53  ;;  %v19470_v51 = vpop.f32.mrf.mxu2  ;;  %v19474_v54 = vpop.f32.mrf.mxu0  ;;  %20962 = vst [vmem:[#allocation101_spill] sm:$0xff] %v19476_v43  ;;  %v11087_v53 = vld [vmem:[%s20125_s2 + $0x118] sm:$0xff] }
 0x6f6   : > { %12224 = vmatpush.msra.mxu2 %v11091_v7  ;;  %20959 = vst [vmem:[#allocation105_spill] sm:$0xff] %v19470_v51  ;;  %12289 = vmatpush.msra.mxu3 %v11155_v35  ;;  %v11154_v7 = vld [vmem:[%s20125_s2 + $0x330] sm:$0xff] }
 0x6f7   : > { %20961 = vst [vmem:[#allocation132_spill] sm:$0xff] %v19474_v54  ;;  %12094 = vmatpush.msra.mxu0 %v11090_v14  ;;  %12159 = vmatpush.msra.mxu1 %v11154_v7  ;;  %v11151_v54 = vld [vmem:[%s20125_s2 + $0x318] sm:$0xff]  ;;  %v11150_v7 = vld [vmem:[%s20125_s2 + $0x310] sm:$0xff] }
 0x6f8   : > { %13098 = vmatmul.lmr.bf16.gmra.16.mxu3  ;;  %12225 = vmatpush.msra.mxu2 %v11087_v53  ;;  %v11083_v53 = vld [vmem:[%s20125_s2 + $0xf8] sm:$0xff] }
 0x6f9   : > { %12290 = vmatpush.msra.mxu3 %v11151_v54  ;;  %12095 = vmatpush.msra.mxu0 %v11086_v37 }
 0x6fa   : > { %12988 = vmatmul.lmr.bf16.gmra.16.mxu1  ;;  %12226 = vmatpush.msra.mxu2 %v11083_v53  ;;  %v11079_v53 = vld [vmem:[%s20125_s2 + $0xd8] sm:$0xff] }
 0x6fb   : > { %v19492_v43 = vpop.f32.mrf.mxu3  ;;  %12160 = vmatpush.msra.mxu1 %v11150_v7  ;;  %v11146_v7 = vld [vmem:[%s20125_s2 + $0x2f0] sm:$0xff] }
 0x6fc   : > { %12931 = vmatmul.lmr.bf16.gmra.16.mxu0  ;;  %13044 = vmatmul.lmr.bf16.gmra.16.mxu2  ;;  %20964 = vst [vmem:[#allocation129_spill] sm:$0xff] %v19492_v43  ;;  %v19496_v14 = vpop.f32.mrf.mxu1  ;;  %v11147_v43 = vld [vmem:[%s20125_s2 + $0x2f8] sm:$0xff] }
 0x6fd   : > { %v19490_v26 = vpop.f32.mrf.mxu2  ;;  %v19494_v35 = vpop.f32.mrf.mxu0  ;;  %20966 = vst [vmem:[#allocation108_spill] sm:$0xff] %v19496_v14  ;;  %12291 = vmatpush.msra.mxu3 %v11147_v43  ;;  %12161 = vmatpush.msra.mxu1 %v11146_v7  ;;  %v11142_v7 = vld [vmem:[%s20125_s2 + $0x2d0] sm:$0xff] }
 0x6fe   : > { %20963 = vst [vmem:[#allocation113_spill] sm:$0xff] %v19490_v26  ;;  %v11082_v26 = vld [vmem:[%s20125_s2 + $0xf0] sm:$0xff]  ;;  %12227 = vmatpush.msra.mxu2 %v11079_v53  ;;  %v11075_v53 = vld [vmem:[%s20125_s2 + $0xb8] sm:$0xff] }
 0x6ff   : > { %20965 = vst [vmem:[#allocation128_spill] sm:$0xff] %v19494_v35  ;;  %12096 = vmatpush.msra.mxu0 %v11082_v26  ;;  %12162 = vmatpush.msra.mxu1 %v11142_v7  ;;  %v11138_v7 = vld [vmem:[%s20125_s2 + $0x2b0] sm:$0xff] }
 0x700   : > { %13099 = vmatmul.lmr.bf16.gmra.16.mxu3  ;;  %12228 = vmatpush.msra.mxu2 %v11075_v53  ;;  %v11071_v53 = vld [vmem:[%s20125_s2 + $0x98] sm:$0xff] }
 0x701   : > { %12163 = vmatpush.msra.mxu1 %v11138_v7  ;;  %v11134_v7 = vld [vmem:[%s20125_s2 + $0x290] sm:$0xff] }
 0x702   : > { %12989 = vmatmul.lmr.bf16.gmra.16.mxu1  ;;  %12229 = vmatpush.msra.mxu2 %v11071_v53  ;;  %v11067_v53 = vld [vmem:[%s20125_s2 + $0x78] sm:$0xff] }
 0x703   : > { %v19512_v35 = vpop.f32.mrf.mxu3  ;;  %12164 = vmatpush.msra.mxu1 %v11134_v7 }
 0x704   : > { %12932 = vmatmul.lmr.bf16.gmra.16.mxu0  ;;  %13045 = vmatmul.lmr.bf16.gmra.16.mxu2  ;;  %20968 = vst [vmem:[#allocation112_spill] sm:$0xff] %v19512_v35  ;;  %v19516_v37 = vpop.f32.mrf.mxu1  ;;  %v11143_v35 = vld [vmem:[%s20125_s2 + $0x2d8] sm:$0xff] }
 0x705   : > { %v19510_v14 = vpop.f32.mrf.mxu2  ;;  %v19514_v54 = vpop.f32.mrf.mxu0  ;;  %20970 = vst [vmem:[#allocation120_spill] sm:$0xff] %v19516_v37  ;;  %12292 = vmatpush.msra.mxu3 %v11143_v35  ;;  %12230 = vmatpush.msra.mxu2 %v11067_v53  ;;  %v11130_v53 = vld [vmem:[%s20125_s2 + $0x270] sm:$0xff] }
 0x706   : > { %20967 = vst [vmem:[#allocation107_spill] sm:$0xff] %v19510_v14  ;;  %v11078_v14 = vld [vmem:[%s20125_s2 + $0xd0] sm:$0xff]  ;;  %12165 = vmatpush.msra.mxu1 %v11130_v53  ;;  %v11059_v53 = vld [vmem:[%s20125_s2 + $0x38] sm:$0xff] }
 0x707   : > { %20969 = vst [vmem:[#allocation124_spill] sm:$0xff] %v19514_v54  ;;  %12097 = vmatpush.msra.mxu0 %v11078_v14 }
 0x708   : > { %13100 = vmatmul.lmr.bf16.gmra.16.mxu3 }
 0x70a   : > { %12990 = vmatmul.lmr.bf16.gmra.16.mxu1 }
 0x70b   : > { %v19532_v54 = vpop.f32.mrf.mxu3 }
 0x70c   : > { %12933 = vmatmul.lmr.bf16.gmra.16.mxu0  ;;  %13046 = vmatmul.lmr.bf16.gmra.16.mxu2  ;;  %20972 = vst [vmem:[#allocation95_spill] sm:$0xff] %v19532_v54  ;;  %v19536_v26 = vpop.f32.mrf.mxu1  ;;  %v11139_v54 = vld [vmem:[%s20125_s2 + $0x2b8] sm:$0xff] }
 0x70d   : > { %v19530_v37 = vpop.f32.mrf.mxu2  ;;  %v19534_v43 = vpop.f32.mrf.mxu0  ;;  %20974 = vst [vmem:[#allocation106_spill] sm:$0xff] %v19536_v26  ;;  %12293 = vmatpush.msra.mxu3 %v11139_v54 }
 0x70e   : > { %20971 = vst [vmem:[#allocation119_spill] sm:$0xff] %v19530_v37  ;;  %v11074_v37 = vld [vmem:[%s20125_s2 + $0xb0] sm:$0xff] }
 0x70f   : > { %20973 = vst [vmem:[#allocation91_spill] sm:$0xff] %v19534_v43  ;;  %12098 = vmatpush.msra.mxu0 %v11074_v37  ;;  %v11135_v37 = vld [vmem:[%s20125_s2 + $0x298] sm:$0xff] }
 0x710   : > { %13101 = vmatmul.lmr.bf16.gmra.16.mxu3 }
 0x711   : > { %12294 = vmatpush.msra.mxu3 %v11135_v37 }
 0x712   : > { %12991 = vmatmul.lmr.bf16.gmra.16.mxu1 }
 0x713   : > { %v19552_v43 = vpop.f32.mrf.mxu3 }
 0x714   : > { %12934 = vmatmul.lmr.bf16.gmra.16.mxu0  ;;  %13047 = vmatmul.lmr.bf16.gmra.16.mxu2  ;;  %20976 = vst [vmem:[#allocation103_spill] sm:$0xff] %v19552_v43  ;;  %v19556_v14 = vpop.f32.mrf.mxu1  ;;  %v11070_v43 = vld [vmem:[%s20125_s2 + $0x90] sm:$0xff] }
 0x715   : > { %v19550_v26 = vpop.f32.mrf.mxu2  ;;  %v19554_v35 = vpop.f32.mrf.mxu0  ;;  %20978 = vst [vmem:[#allocation98_spill] sm:$0xff] %v19556_v14  ;;  %12099 = vmatpush.msra.mxu0 %v11070_v43  ;;  %v11131_v43 = vld [vmem:[%s20125_s2 + $0x278] sm:$0xff] }
 0x716   : > { %20975 = vst [vmem:[#allocation85_spill] sm:$0xff] %v19550_v26  ;;  %12295 = vmatpush.msra.mxu3 %v11131_v43 }
 0x717   : > { %20977 = vst [vmem:[#allocation102_spill] sm:$0xff] %v19554_v35 }
 0x718   : > { %13102 = vmatmul.lmr.bf16.gmra.16.mxu3 }
 0x71a   : > { %12992 = vmatmul.lmr.bf16.gmra.16.mxu1 }
 0x71b   : > { %v19572_v35 = vpop.f32.mrf.mxu3 }
 0x71c   : > { %12935 = vmatmul.lmr.bf16.gmra.16.mxu0  ;;  %13048 = vmatmul.lmr.bf16.gmra.16.mxu2  ;;  %20980 = vst [vmem:[#allocation114_spill] sm:$0xff] %v19572_v35  ;;  %v19582_v26 = vpop.f32.mrf.mxu1 }
 0x71d   : > { %v19570_v14 = vpop.f32.mrf.mxu2  ;;  %v19574_v54 = vpop.f32.mrf.mxu0  ;;  %20982 = vst [vmem:[#allocation109_spill] sm:$0xff] %v19582_v26  ;;  %v11066_v26 = vld [vmem:[%s20125_s2 + $0x70] sm:$0xff] }
 0x71e   : > { %20979 = vst [vmem:[#allocation97_spill] sm:$0xff] %v19570_v14  ;;  %12100 = vmatpush.msra.mxu0 %v11066_v26  ;;  %v11127_v26 = vld [vmem:[%s20125_s2 + $0x258] sm:$0xff] }
 0x71f   : > { %20981 = vst [vmem:[#allocation110_spill] sm:$0xff] %v19574_v54  ;;  %12296 = vmatpush.msra.mxu3 %v11127_v26  ;;  %v11058_v26 = vld [vmem:[%s20125_s2 + $0x30] sm:$0xff] }
 0x720   : > { %13103 = vmatmul.lmr.bf16.gmra.16.mxu3 }
 0x722   : > { %12993 = vmatmul.lmr.bf16.gmra.16.mxu1 }
 0x723   : > { %v19592_v35 = vpop.f32.mrf.mxu3 }
 0x724   : > { %12936 = vmatmul.lmr.bf16.gmra.16.mxu0  ;;  %13049 = vmatmul.lmr.bf16.gmra.16.mxu2  ;;  %20984 = vst [vmem:[#allocation93_spill] sm:$0xff] %v19592_v35  ;;  %v19602_v7 = vpop.f32.mrf.mxu1 }
 0x725   : > { %v19590_v54 = vpop.f32.mrf.mxu2  ;;  %v19594_v37 = vpop.f32.mrf.mxu0  ;;  %20986 = vst [vmem:[#allocation104_spill] sm:$0xff] %v19602_v7  ;;  %v11062_v7 = vld [vmem:[%s20125_s2 + $0x50] sm:$0xff] }
 0x726   : > { %20983 = vst [vmem:[#allocation81_spill] sm:$0xff] %v19590_v54  ;;  %12101 = vmatpush.msra.mxu0 %v11062_v7  ;;  %v11123_v7 = vld [vmem:[%s20125_s2 + $0x238] sm:$0xff] }
 0x727   : > { %20985 = vst [vmem:[#allocation92_spill] sm:$0xff] %v19594_v37  ;;  %v11063_v37 = vld [vmem:[%s20125_s2 + $0x58] sm:$0xff]  ;;  %12297 = vmatpush.msra.mxu3 %v11123_v7 }
 0x728   : > { %13104 = vmatmul.lmr.bf16.gmra.16.mxu3  ;;  %12231 = vmatpush.msra.mxu2 %v11063_v37  ;;  %v11126_v37 = vld [vmem:[%s20125_s2 + $0x250] sm:$0xff]  ;;  %v11119_v7 = vld [vmem:[%s20125_s2 + $0x218] sm:$0xff] }
 0x729   : > { %12166 = vmatpush.msra.mxu1 %v11126_v37  ;;  %12102 = vmatpush.msra.mxu0 %v11058_v26  ;;  %v11122_v37 = vld [vmem:[%s20125_s2 + $0x230] sm:$0xff] }
 0x72a   : > { %12994 = vmatmul.lmr.bf16.gmra.16.mxu1  ;;  %12232 = vmatpush.msra.mxu2 %v11059_v53  ;;  %v11055_v53 = vld [vmem:[%s20125_s2 + $0x18] sm:$0xff] }
 0x72b   : > { %v19620_v54 = vpop.f32.mrf.mxu3  ;;  %12167 = vmatpush.msra.mxu1 %v11122_v37  ;;  %12298 = vmatpush.msra.mxu3 %v11119_v7 }
 0x72c   : > { %12937 = vmatmul.lmr.bf16.gmra.16.mxu0  ;;  %13050 = vmatmul.lmr.bf16.gmra.16.mxu2  ;;  %20989 = vst [vmem:[#allocation96_spill] sm:$0xff] %v19620_v54 }
 0x72d   : > { %v19610_v35 = vpop.f32.mrf.mxu2  ;;  %v19612_v43 = vpop.f32.mrf.mxu0  ;;  %12233 = vmatpush.msra.mxu2 %v11055_v53  ;;  %v11118_v53 = vld [vmem:[%s20125_s2 + $0x210] sm:$0xff] }
 0x72e   : > { %20987 = vst [vmem:[#allocation87_spill] sm:$0xff] %v19610_v35  ;;  %12168 = vmatpush.msra.mxu1 %v11118_v53 }
 0x72f   : > { %20988 = vst [vmem:[#allocation86_spill] sm:$0xff] %v19612_v43  ;;  %v19628_v43 = vpop.f32.mrf.mxu1 }
 0x730   : > { %13105 = vmatmul.lmr.bf16.gmra.16.mxu3  ;;  %20990 = vst [vmem:[#allocation75_spill] sm:$0xff] %v19628_v43  ;;  %v21009_v43 = vld [vmem:[#allocation149_spill] sm:$0xff] }
 0x732   : > { %12995 = vmatmul.lmr.bf16.gmra.16.mxu1 }
 0x733   : > { %v19640_v14 = vpop.f32.mrf.mxu3 }
 0x734   : > { %12938 = vmatmul.lmr.bf16.gmra.16.mxu0  ;;  %13051 = vmatmul.lmr.bf16.gmra.16.mxu2  ;;  %20993 = vst [vmem:[#allocation71_spill] sm:$0xff] %v19640_v14 }
 0x735   : > { %v19630_v35 = vpop.f32.mrf.mxu2  ;;  %v19638_v54 = vpop.f32.mrf.mxu0 }
 0x736   : > { %20991 = vst [vmem:[#allocation88_spill] sm:$0xff] %v19630_v35 }
 0x737   : > { %20992 = vst [vmem:[#allocation65_spill] sm:$0xff] %v19638_v54  ;;  %v19648_v35 = vpop.f32.mrf.mxu1  ;;  %v11054_v54 = vld [vmem:[%s20125_s2 + $0x10] sm:$0xff] }
 0x738   : > { %13106 = vmatmul.lmr.bf16.gmra.16.mxu3  ;;  %20994 = vst [vmem:[#allocation83_spill] sm:$0xff] %v19648_v35  ;;  %12103 = vmatpush.msra.mxu0 %v11054_v54 }
 0x73a   : > { %12996 = vmatmul.lmr.bf16.gmra.16.mxu1 }
 0x73c   : > { %12939 = vmatmul.lmr.bf16.gmra.16.mxu0  ;;  %13052 = vmatmul.lmr.bf16.gmra.16.mxu2  ;;  %v19660_v37 = vpop.f32.mrf.mxu3 }
 0x73d   : > { %v19653_v26 = vpop.f32.mrf.mxu2  ;;  %v19658_v14 = vpop.f32.mrf.mxu0  ;;  %20997 = vst [vmem:[#allocation82_spill] sm:$0xff] %v19660_v37 }
 0x73e   : > { %20995 = vst [vmem:[#allocation100_spill] sm:$0xff] %v19653_v26 }
 0x73f   : > { %20996 = vst [vmem:[#allocation99_spill] sm:$0xff] %v19658_v14  ;;  %v19665_v26 = vpop.f32.mrf.mxu1 }
 0x740   : > { %13107 = vmatmul.lmr.bf16.gmra.16.mxu3  ;;  %20998 = vst [vmem:[#allocation78_spill] sm:$0xff] %v19665_v26 }
 0x742   : > { %12997 = vmatmul.lmr.bf16.gmra.16.mxu1 }
 0x744   : > { %12940 = vmatmul.lmr.bf16.gmra.16.mxu0  ;;  %13053 = vmatmul.lmr.bf16.gmra.16.mxu2 }
 0x745   : > { %v19667_v7 = vpop.f32.mrf.mxu2  ;;  %v19669_v35 = vpop.f32.mrf.mxu0 }
 0x746   : > { %20999 = vst [vmem:[#allocation76_spill] sm:$0xff] %v19667_v7  ;;  %v19671_v54 = vpop.f32.mrf.mxu3 }
 0x747   : > { %21000 = vst [vmem:[#allocation94_spill] sm:$0xff] %v19669_v35  ;;  %v19673_v14 = vpop.f32.mrf.mxu1 }
 0x748   : > { %13108 = vmatmul.lmr.bf16.gmra.16.mxu3  ;;  %21001 = vst [vmem:[#allocation61_spill] sm:$0xff] %v19671_v54  ;;  %v21008_v54 = vld [vmem:[#allocation148_spill] sm:$0xff] }
 0x749   : > { %21002 = vst [vmem:[#allocation90_spill] sm:$0xff] %v19673_v14  ;;  %v11391_v51 = vadd.f32 %v21009_v43, %v21008_v54 }
 0x74a   : > { %12998 = vmatmul.lmr.bf16.gmra.16.mxu1 }
 0x74c   : > { %12941 = vmatmul.lmr.bf16.gmra.16.mxu0  ;;  %13054 = vmatmul.lmr.bf16.gmra.16.mxu2 }
 0x74d   : > { %v19675_v37 = vpop.f32.mrf.mxu2  ;;  %v19677_v53 = vpop.f32.mrf.mxu0 }
 0x74e   : > { %21003 = vst [vmem:[#allocation89_spill] sm:$0xff] %v19675_v37  ;;  %v19679_v26 = vpop.f32.mrf.mxu3 }
 0x74f   : > { %21004 = vst [vmem:[#allocation73_spill] sm:$0xff] %v19677_v53  ;;  %v19681_v7 = vpop.f32.mrf.mxu1 }
 0x750   : > { %13109 = vmatmul.lmr.bf16.gmra.16.mxu3  ;;  %21005 = vst [vmem:[#allocation68_spill] sm:$0xff] %v19679_v26 }
 0x751   : > { %21006 = vst [vmem:[#allocation67_spill] sm:$0xff] %v19681_v7  ;;  %v11394_v7 = vadd.f32 %v18706_v29, %v18704_v40 }
 0x752   : > { %12999 = vmatmul.lmr.bf16.gmra.16.mxu1 }
 0x754   : > { %12942 = vmatmul.lmr.bf16.gmra.16.mxu0  ;;  %13055 = vmatmul.lmr.bf16.gmra.16.mxu2 }
 0x755   : > { %v19683_v35 = vpop.f32.mrf.mxu2 }
 0x756   : > { %21007 = vst [vmem:[#allocation77_spill] sm:$0xff] %v19683_v35  ;;  %v19687_v59 = vpop.f32.mrf.mxu3  ;;  %v21010_v35 = vld [vmem:[#allocation150_spill] sm:$0xff] }
 0x758   : > { %13110 = vmatmul.lmr.bf16.gmra.16.mxu3 }
 0x75a   : > { %13000 = vmatmul.lmr.bf16.gmra.16.mxu1 }
 0x75c   : > { %12943 = vmatmul.lmr.bf16.gmra.16.mxu0  ;;  %13056 = vmatmul.lmr.bf16.gmra.16.mxu2 }
 0x75f   : > { %v11845_v37 = vpop.f32.mrf.mxu0 }
 0x760   : > { %13111 = vmatmul.lmr.bf16.gmra.16.mxu3  ;;  %v11846_v14 = vadd.f32 %v11845_v37, %v11391_v51 }
 0x762   : > { %13001 = vmatmul.lmr.bf16.gmra.16.mxu1 }
 0x764   : > { %12944 = vmatmul.lmr.bf16.vlgmr.msra.gmra.16.mxu0  ;;  %13057 = vmatmul.lmr.bf16.vlgmr.msra.gmra.16.mxu2 }
 0x765   : > { %v11975_v26 = vpop.f32.mrf.mxu2 }
 0x766   : > { %v11976_v57 = vadd.f32 %v11975_v26, %v21010_v35 }
 0x767   : > { %v11910_v53 = vpop.f32.mrf.mxu1  ;;  %v11848_v43 = vpop.f32.mrf.mxu0 }
 0x768   : > { %v19689_v6 = vadd.f32 %v11910_v53, %v11846_v14  ;;  %13112 = vmatmul.lmr.bf16.vlgmr.msra.gmra.16.mxu3  ;;  %v11849_v54 = vadd.f32 %v11848_v43, %v11394_v7  ;;  %v11397_v53 = vadd.f32 %v18746_v42, %v18744_v11 }
 0x76a   : > { %13002 = vmatmul.lmr.bf16.vlgmr.msra.gmra.16.mxu1 }
 0x76b   : > { %v12040_v47 = vpop.f32.mrf.mxu3 }
 0x76c   : > { %v19694_v38 = vadd.f32 %v12040_v47, %v11976_v57  ;;  %12945 = vmatmul.lmr.bf16.gmra.16.mxu0  ;;  %13058 = vmatmul.lmr.bf16.gmra.16.mxu2 }
 0x76f   : > { %v11913_v51 = vpop.f32.mrf.mxu1  ;;  %v11978_v14 = vpop.f32.mrf.mxu2 }
 0x770   : > { %v19696_v37 = vadd.f32 %v11913_v51, %v11849_v54  ;;  %13113 = vmatmul.lmr.bf16.gmra.16.mxu3  ;;  %v11979_v29 = vadd.f32 %v11978_v14, %v18742_v61  ;;  %v11400_v54 = vadd.f32 %v18768_v33, %v18766_v49 }
 0x771   : > { %v11851_v40 = vpop.f32.mrf.mxu0 }
 0x772   : > { %13003 = vmatmul.lmr.bf16.gmra.16.mxu1  ;;  %v11852_v35 = vadd.f32 %v11851_v40, %v11397_v53 }
 0x773   : > { %v12043_v26 = vpop.f32.mrf.mxu3 }
 0x774   : > { %v19701_v7 = vadd.f32 %v12043_v26, %v11979_v29  ;;  %12946 = vmatmul.lmr.bf16.gmra.16.mxu0  ;;  %13059 = vmatmul.lmr.bf16.gmra.16.mxu2 }
 0x777   : > { %v11916_v47 = vpop.f32.mrf.mxu1  ;;  %v11981_v43 = vpop.f32.mrf.mxu2 }
 0x778   : > { %v19703_v57 = vadd.f32 %v11916_v47, %v11852_v35  ;;  %13114 = vmatmul.lmr.bf16.gmra.16.mxu3  ;;  %v11982_v42 = vadd.f32 %v11981_v43, %v18764_v23  ;;  %v11403_v35 = vadd.f32 %v18799_v22, %v18797_v28 }
 0x779   : > { %v11854_v11 = vpop.f32.mrf.mxu0 }
 0x77a   : > { %13004 = vmatmul.lmr.bf16.gmra.16.mxu1  ;;  %v11855_v61 = vadd.f32 %v11854_v11, %v11400_v54  ;;  %v11406_v11 = vadd.f32 %v18852_v15, %v18850_v62 }
 0x77b   : > { %v12046_v51 = vpop.f32.mrf.mxu3 }
 0x77c   : > { %v19708_v14 = vadd.f32 %v12046_v51, %v11982_v42  ;;  %12947 = vmatmul.lmr.bf16.gmra.16.mxu0  ;;  %13060 = vmatmul.lmr.bf16.gmra.16.mxu2 }
 0x77f   : > { %v11919_v53 = vpop.f32.mrf.mxu1  ;;  %v11984_v40 = vpop.f32.mrf.mxu2 }
 0x780   : > { %v19710_v29 = vadd.f32 %v11919_v53, %v11855_v61  ;;  %13115 = vmatmul.lmr.bf16.gmra.16.mxu3  ;;  %v11985_v49 = vadd.f32 %v11984_v40, %v18795_v4 }
 0x781   : > { %v11857_v33 = vpop.f32.mrf.mxu0 }
 0x782   : > { %13005 = vmatmul.lmr.bf16.gmra.16.mxu1  ;;  %v11858_v23 = vadd.f32 %v11857_v33, %v11403_v35 }
 0x783   : > { %v12049_v26 = vpop.f32.mrf.mxu3 }
 0x784   : > { %v19715_v47 = vadd.f32 %v12049_v26, %v11985_v49  ;;  %12948 = vmatmul.lmr.bf16.gmra.16.mxu0  ;;  %13061 = vmatmul.lmr.bf16.gmra.16.mxu2  ;;  %v11409_v49 = vadd.f32 %v18907_v27, %v18905_v21 }
 0x787   : > { %v11922_v43 = vpop.f32.mrf.mxu1  ;;  %v11987_v42 = vpop.f32.mrf.mxu2 }
 0x788   : > { %v19717_v54 = vadd.f32 %v11922_v43, %v11858_v23  ;;  %13116 = vmatmul.lmr.bf16.gmra.16.mxu3  ;;  %v11988_v28 = vadd.f32 %v11987_v42, %v18848_v36 }
 0x789   : > { %v11860_v22 = vpop.f32.mrf.mxu0 }
 0x78a   : > { %13006 = vmatmul.lmr.bf16.gmra.16.mxu1  ;;  %v11861_v4 = vadd.f32 %v11860_v22, %v11406_v11  ;;  %v11412_v11 = vadd.f32 %v18968_v1, %v18966_v63 }
 0x78b   : > { %v12052_v61 = vpop.f32.mrf.mxu3 }
 0x78c   : > { %v19722_v51 = vadd.f32 %v12052_v61, %v11988_v28  ;;  %12949 = vmatmul.lmr.bf16.gmra.16.mxu0  ;;  %13062 = vmatmul.lmr.bf16.gmra.16.mxu2 }
 0x78f   : > { %v11925_v53 = vpop.f32.mrf.mxu1  ;;  %v11990_v35 = vpop.f32.mrf.mxu2 }
 0x790   : > { %v19724_v40 = vadd.f32 %v11925_v53, %v11861_v4  ;;  %13117 = vmatmul.lmr.bf16.gmra.16.mxu3  ;;  %v11991_v62 = vadd.f32 %v11990_v35, %v18903_v45  ;;  %v11415_v35 = vadd.f32 %v19023_v50, %v19021_v39  ;;  %v11418_v39 = vadd.f32 %v19074_v19, %v19072_v31 }
 0x791   : > { %v11863_v15 = vpop.f32.mrf.mxu0  ;;  %v11421_v31 = vadd.f32 %v19136_v41, %v19134_v56  ;;  %v11424_v56 = vadd.f32 %v19196_v13, %v19194_v8  ;;  %v11427_v8 = vadd.f32 %v19261_v0, %v19259_v34  ;;  %v11430_v34 = vadd.f32 %v19317_v16, %v19315_v30 }
 0x792   : > { %13007 = vmatmul.lmr.bf16.gmra.16.mxu1  ;;  %v11864_v36 = vadd.f32 %v11863_v15, %v11409_v49  ;;  %v11433_v30 = vadd.f32 %v19345_v32, %v19343_v3 }
 0x793   : > { %v12055_v33 = vpop.f32.mrf.mxu3 }
 0x794   : > { %v19729_v23 = vadd.f32 %v12055_v33, %v11991_v62  ;;  %12950 = vmatmul.lmr.bf16.gmra.16.mxu0  ;;  %13063 = vmatmul.lmr.bf16.gmra.16.mxu2 }
 0x797   : > { %v11928_v26 = vpop.f32.mrf.mxu1  ;;  %v11993_v42 = vpop.f32.mrf.mxu2 }
 0x798   : > { %v19731_v43 = vadd.f32 %v11928_v26, %v11864_v36  ;;  %13118 = vmatmul.lmr.bf16.gmra.16.mxu3  ;;  %v11994_v21 = vadd.f32 %v11993_v42, %v18964_v48  ;;  %v11545_v36 = vadd.f32 %v19067_v9, %v19065_v5  ;;  %v11548_v5 = vadd.f32 %v19122_v17, %v19120_v52 }
 0x799   : > { %v11866_v27 = vpop.f32.mrf.mxu0  ;;  %v11551_v52 = vadd.f32 %v19185_v12, %v19183_v25  ;;  %v11554_v25 = vadd.f32 %v19248_v55, %v19246_v58  ;;  %v11557_v58 = vadd.f32 %v19312_v44, %v19310_v20  ;;  %v11560_v20 = vadd.f32 %v19339_v18, %v19337_v2 }
 0x79a   : > { %13008 = vmatmul.lmr.bf16.gmra.16.mxu1  ;;  %v11867_v45 = vadd.f32 %v11866_v27, %v11412_v11  ;;  %v11563_v2 = vadd.f32 %v19351_v24, %v19349_v10 }
 0x79b   : > { %v12058_v28 = vpop.f32.mrf.mxu3 }
 0x79c   : > { %v19736_v22 = vadd.f32 %v12058_v28, %v11994_v21  ;;  %12951 = vmatmul.lmr.bf16.gmra.16.mxu0  ;;  %13064 = vmatmul.lmr.bf16.gmra.16.mxu2 }
 0x79f   : > { %v11931_v4 = vpop.f32.mrf.mxu1  ;;  %v11996_v53 = vpop.f32.mrf.mxu2 }
 0x7a0   : > { %v19738_v61 = vadd.f32 %v11931_v4, %v11867_v45  ;;  %13119 = vmatmul.lmr.bf16.gmra.16.mxu3  ;;  %v11997_v63 = vadd.f32 %v11996_v53, %v19019_v60 }
 0x7a1   : > { %v11869_v1 = vpop.f32.mrf.mxu0 }
 0x7a2   : > { %13009 = vmatmul.lmr.bf16.gmra.16.mxu1  ;;  %v11870_v48 = vadd.f32 %v11869_v1, %v11415_v35 }
 0x7a3   : > { %v12061_v49 = vpop.f32.mrf.mxu3 }
 0x7a4   : > { %v19743_v62 = vadd.f32 %v12061_v49, %v11997_v63  ;;  %12952 = vmatmul.lmr.bf16.gmra.16.mxu0  ;;  %13065 = vmatmul.lmr.bf16.gmra.16.mxu2 }
 0x7a7   : > { %v11934_v15 = vpop.f32.mrf.mxu1  ;;  %v11999_v26 = vpop.f32.mrf.mxu2 }
 0x7a8   : > { %v19747_v33 = vadd.f32 %v11934_v15, %v11870_v48  ;;  %13120 = vmatmul.lmr.bf16.gmra.16.mxu3  ;;  %v12000_v60 = vadd.f32 %v11999_v26, %v11545_v36 }
 0x7a9   : > { %v11872_v50 = vpop.f32.mrf.mxu0 }
 0x7aa   : > { %13010 = vmatmul.lmr.bf16.gmra.16.mxu1  ;;  %v11873_v42 = vadd.f32 %v11872_v50, %v11418_v39 }
 0x7ab   : > { %v12064_v11 = vpop.f32.mrf.mxu3 }
 0x7ac   : > { %v19751_v21 = vadd.f32 %v12064_v11, %v12000_v60  ;;  %12953 = vmatmul.lmr.bf16.gmra.16.mxu0  ;;  %13066 = vmatmul.lmr.bf16.gmra.16.mxu2 }
 0x7ae   : > { %21011 = vst [vmem:[#allocation72_spill] sm:$0xff] %v19751_v21 }
 0x7af   : > { %v11937_v27 = vpop.f32.mrf.mxu1  ;;  %v12002_v45 = vpop.f32.mrf.mxu2 }
 0x7b0   : > { %v19755_v9 = vadd.f32 %v11937_v27, %v11873_v42  ;;  %13121 = vmatmul.lmr.bf16.gmra.16.mxu3  ;;  %v12003_v19 = vadd.f32 %v12002_v45, %v11548_v5 }
 0x7b1   : > { %v11875_v28 = vpop.f32.mrf.mxu0 }
 0x7b2   : > { %21012 = vst [vmem:[#allocation55_spill] sm:$0xff] %v19755_v9  ;;  %13011 = vmatmul.lmr.bf16.gmra.16.mxu1  ;;  %v11876_v4 = vadd.f32 %v11875_v28, %v11421_v31 }
 0x7b3   : > { %v12067_v53 = vpop.f32.mrf.mxu3 }
 0x7b4   : > { %v19759_v35 = vadd.f32 %v12067_v53, %v12003_v19  ;;  %12954 = vmatmul.lmr.bf16.gmra.16.mxu0  ;;  %13067 = vmatmul.lmr.bf16.gmra.16.mxu2 }
 0x7b6   : > { %21013 = vst [vmem:[#allocation66_spill] sm:$0xff] %v19759_v35 }
 0x7b7   : > { %v11940_v63 = vpop.f32.mrf.mxu1  ;;  %v12005_v1 = vpop.f32.mrf.mxu2 }
 0x7b8   : > { %v19763_v17 = vadd.f32 %v11940_v63, %v11876_v4  ;;  %13122 = vmatmul.lmr.bf16.gmra.16.mxu3  ;;  %v12006_v41 = vadd.f32 %v12005_v1, %v11551_v52 }
 0x7b9   : > { %v11878_v48 = vpop.f32.mrf.mxu0 }
 0x7ba   : > { %21014 = vst [vmem:[#allocation84_spill] sm:$0xff] %v19763_v17  ;;  %13012 = vmatmul.lmr.bf16.gmra.16.mxu1  ;;  %v11879_v49 = vadd.f32 %v11878_v48, %v11424_v56 }
 0x7bb   : > { %v12070_v15 = vpop.f32.mrf.mxu3 }
 0x7bc   : > { %v19767_v36 = vadd.f32 %v12070_v15, %v12006_v41  ;;  %12955 = vmatmul.lmr.bf16.gmra.16.mxu0  ;;  %13068 = vmatmul.lmr.bf16.gmra.16.mxu2 }
 0x7be   : > { %21015 = vst [vmem:[#allocation51_spill] sm:$0xff] %v19767_v36 }
 0x7bf   : > { %v11943_v26 = vpop.f32.mrf.mxu1  ;;  %v12008_v39 = vpop.f32.mrf.mxu2 }
 0x7c0   : > { %v19771_v12 = vadd.f32 %v11943_v26, %v11879_v49  ;;  %13123 = vmatmul.lmr.bf16.gmra.16.mxu3  ;;  %v12009_v13 = vadd.f32 %v12008_v39, %v11554_v25  ;;  %v21023_v49 = vld [vmem:[#allocation115_spill] sm:$0xff] }
 0x7c1   : > { %v11881_v60 = vpop.f32.mrf.mxu0  ;;  %v11436_v3 = vadd.f32 %v21023_v49, %v19355_v46 }
 0x7c2   : > { %21016 = vst [vmem:[#allocation63_spill] sm:$0xff] %v19771_v12  ;;  %13013 = vmatmul.lmr.bf16.gmra.16.mxu1  ;;  %v11882_v50 = vadd.f32 %v11881_v60, %v11427_v8  ;;  %v21026_v60 = vld [vmem:[#allocation131_spill] sm:$0xff] }
 0x7c3   : > { %v12073_v42 = vpop.f32.mrf.mxu3 }
 0x7c4   : > { %v19775_v11 = vadd.f32 %v12073_v42, %v12009_v13  ;;  %12956 = vmatmul.lmr.bf16.gmra.16.mxu0  ;;  %13069 = vmatmul.lmr.bf16.gmra.16.mxu2  ;;  %v21025_v13 = vld [vmem:[#allocation121_spill] sm:$0xff] }
 0x7c5   : > { %v11566_v10 = vadd.f32 %v21026_v60, %v21025_v13  ;;  %v21028_v42 = vld [vmem:[#allocation137_spill] sm:$0xff]  ;;  %v21038_v60 = vld [vmem:[#allocation123_spill] sm:$0xff] }
 0x7c6   : > { %21017 = vst [vmem:[#allocation80_spill] sm:$0xff] %v19775_v11  ;;  %v21037_v13 = vld [vmem:[#allocation133_spill] sm:$0xff] }
 0x7c7   : > { %v11946_v27 = vpop.f32.mrf.mxu1  ;;  %v12011_v5 = vpop.f32.mrf.mxu2 }
 0x7c8   : > { %v19779_v55 = vadd.f32 %v11946_v27, %v11882_v50  ;;  %13124 = vmatmul.lmr.bf16.gmra.16.mxu3  ;;  %v12012_v0 = vadd.f32 %v12011_v5, %v11557_v58  ;;  %v21029_v27 = vld [vmem:[#allocation136_spill] sm:$0xff] }
 0x7c9   : > { %v11884_v45 = vpop.f32.mrf.mxu0  ;;  %v11651_v46 = vadd.f32 %v21029_v27, %v21028_v42 }
 0x7ca   : > { %21018 = vst [vmem:[#allocation79_spill] sm:$0xff] %v19779_v55  ;;  %13014 = vmatmul.lmr.bf16.gmra.16.mxu1  ;;  %v11885_v31 = vadd.f32 %v11884_v45, %v11430_v34 }
 0x7cb   : > { %v12076_v19 = vpop.f32.mrf.mxu3 }
 0x7cc   : > { %v19783_v28 = vadd.f32 %v12076_v19, %v12012_v0  ;;  %12957 = vmatmul.lmr.bf16.gmra.16.mxu0  ;;  %13070 = vmatmul.lmr.bf16.gmra.16.mxu2  ;;  %v21031_v19 = vld [vmem:[#allocation130_spill] sm:$0xff] }
 0x7ce   : > { %21019 = vst [vmem:[#allocation58_spill] sm:$0xff] %v19783_v28 }
 0x7cf   : > { %v11949_v4 = vpop.f32.mrf.mxu1  ;;  %v12014_v53 = vpop.f32.mrf.mxu2 }
 0x7d0   : > { %v19787_v44 = vadd.f32 %v11949_v4, %v11885_v31  ;;  %13125 = vmatmul.lmr.bf16.gmra.16.mxu3  ;;  %v12015_v16 = vadd.f32 %v12014_v53, %v11560_v20  ;;  %v21032_v4 = vld [vmem:[#allocation126_spill] sm:$0xff] }
 0x7d1   : > { %v11887_v63 = vpop.f32.mrf.mxu0  ;;  %v11781_v20 = vadd.f32 %v21032_v4, %v21031_v19 }
 0x7d2   : > { %21020 = vst [vmem:[#allocation57_spill] sm:$0xff] %v19787_v44  ;;  %13015 = vmatmul.lmr.bf16.gmra.16.mxu1  ;;  %v11888_v52 = vadd.f32 %v11887_v63, %v11433_v30  ;;  %v21034_v63 = vld [vmem:[#allocation135_spill] sm:$0xff] }
 0x7d3   : > { %v12079_v1 = vpop.f32.mrf.mxu3 }
 0x7d4   : > { %v19791_v56 = vadd.f32 %v12079_v1, %v12015_v16  ;;  %12958 = vmatmul.lmr.bf16.gmra.16.mxu0  ;;  %13071 = vmatmul.lmr.bf16.gmra.16.mxu2  ;;  %v21033_v16 = vld [vmem:[#allocation125_spill] sm:$0xff] }
 0x7d6   : > { %21021 = vst [vmem:[#allocation62_spill] sm:$0xff] %v19791_v56 }
 0x7d7   : > { %v11952_v41 = vpop.f32.mrf.mxu1  ;;  %v12017_v48 = vpop.f32.mrf.mxu2 }
 0x7d8   : > { %v19795_v18 = vadd.f32 %v11952_v41, %v11888_v52  ;;  %13126 = vmatmul.lmr.bf16.gmra.16.mxu3  ;;  %v12018_v32 = vadd.f32 %v12017_v48, %v11563_v2  ;;  %v11654_v52 = vadd.f32 %v21034_v63, %v21033_v16 }
 0x7d9   : > { %v11890_v15 = vpop.f32.mrf.mxu0 }
 0x7da   : > { %21022 = vst [vmem:[#allocation74_spill] sm:$0xff] %v19795_v18  ;;  %13016 = vmatmul.lmr.bf16.gmra.16.mxu1  ;;  %v11891_v26 = vadd.f32 %v11890_v15, %v11436_v3  ;;  %v21036_v15 = vld [vmem:[#allocation134_spill] sm:$0xff] }
 0x7db   : > { %v12082_v25 = vpop.f32.mrf.mxu3 }
 0x7dc   : > { %v19799_v39 = vadd.f32 %v12082_v25, %v12018_v32  ;;  %12959 = vmatmul.lmr.bf16.gmra.16.mxu0  ;;  %13072 = vmatmul.lmr.bf16.gmra.16.mxu2  ;;  %v21035_v32 = vld [vmem:[#allocation111_spill] sm:$0xff] }
 0x7de   : > { %21024 = vst [vmem:[#allocation70_spill] sm:$0xff] %v19799_v39 }
 0x7df   : > { %v11955_v8 = vpop.f32.mrf.mxu1  ;;  %v12020_v50 = vpop.f32.mrf.mxu2 }
 0x7e0   : > { %v19803_v24 = vadd.f32 %v11955_v8, %v11891_v26  ;;  %13127 = vmatmul.lmr.bf16.gmra.16.mxu3  ;;  %v12021_v58 = vadd.f32 %v12020_v50, %v11566_v10  ;;  %v11784_v26 = vadd.f32 %v21036_v15, %v21035_v32  ;;  %v11657_v10 = vadd.f32 %v21038_v60, %v21037_v13  ;;  %v21044_v32 = vld [vmem:[#allocation117_spill] sm:$0xff]  ;;  %v21045_v13 = vld [vmem:[#allocation132_spill] sm:$0xff] }
 0x7e1   : > { %v12105_v5 = vpop.f32.mrf.mxu0  ;;  %v21046_v60 = vld [vmem:[#allocation101_spill] sm:$0xff] }
 0x7e2   : > { %21027 = vst [vmem:[#allocation69_spill] sm:$0xff] %v19803_v24  ;;  %13017 = vmatmul.lmr.bf16.gmra.16.mxu1  ;;  %v12106_v34 = vadd.f32 %v12105_v5, %v11651_v46 }
 0x7e3   : > { %v12085_v0 = vpop.f32.mrf.mxu3 }
 0x7e4   : > { %v19807_v45 = vadd.f32 %v12085_v0, %v12021_v58  ;;  %v21040_v0 = vld [vmem:[#allocation116_spill] sm:$0xff] }
 0x7e6   : > { %21030 = vst [vmem:[#allocation45_spill] sm:$0xff] %v19807_v45 }
 0x7e7   : > { %v12170_v31 = vpop.f32.mrf.mxu1  ;;  %v12235_v30 = vpop.f32.mrf.mxu2 }
 0x7e8   : > { %v19811_v53 = vadd.f32 %v12170_v31, %v12106_v34  ;;  %v12236_v1 = vadd.f32 %v12235_v30, %v11781_v20  ;;  %v21039_v34 = vld [vmem:[#allocation118_spill] sm:$0xff]  ;;  %v21041_v20 = vld [vmem:[#allocation127_spill] sm:$0xff] }
 0x7e9   : > { %v12108_v41 = vpop.f32.mrf.mxu0  ;;  %v11787_v31 = vadd.f32 %v21040_v0, %v21039_v34  ;;  %v21042_v30 = vld [vmem:[#allocation122_spill] sm:$0xff]  ;;  %v21047_v0 = vld [vmem:[#allocation113_spill] sm:$0xff] }
 0x7ea   : > { %v12109_v2 = vadd.f32 %v12108_v41, %v11654_v52  ;;  %v11660_v16 = vadd.f32 %v21042_v30, %v21041_v20 }
 0x7eb   : > { %v12300_v48 = vpop.f32.mrf.mxu3 }
 0x7ec   : > { %v19815_v49 = vadd.f32 %v12300_v48, %v12236_v1 }
 0x7ef   : > { %v12173_v3 = vpop.f32.mrf.mxu1  ;;  %v12238_v8 = vpop.f32.mrf.mxu2 }
 0x7f0   : > { %v19819_v25 = vadd.f32 %v12173_v3, %v12109_v2  ;;  %v12239_v50 = vadd.f32 %v12238_v8, %v11784_v26  ;;  %v21043_v3 = vld [vmem:[#allocation105_spill] sm:$0xff] }
 0x7f1   : > { %v12111_v42 = vpop.f32.mrf.mxu0  ;;  %v11790_v15 = vadd.f32 %v21044_v32, %v21043_v3 }
 0x7f2   : > { %v12112_v27 = vadd.f32 %v12111_v42, %v11657_v10  ;;  %v11663_v10 = vadd.f32 %v21046_v60, %v21045_v13  ;;  %v21052_v13 = vld [vmem:[#allocation112_spill] sm:$0xff] }
 0x7f3   : > { %v12303_v46 = vpop.f32.mrf.mxu3 }
 0x7f4   : > { %v19823_v58 = vadd.f32 %v12303_v46, %v12239_v50 }
 0x7f7   : > { %v12176_v5 = vpop.f32.mrf.mxu1  ;;  %v12241_v4 = vpop.f32.mrf.mxu2 }
 0x7f8   : > { %v19827_v19 = vadd.f32 %v12176_v5, %v12112_v27  ;;  %v12242_v63 = vadd.f32 %v12241_v4, %v11787_v31  ;;  %v21048_v31 = vld [vmem:[#allocation129_spill] sm:$0xff] }
 0x7f9   : > { %v12114_v52 = vpop.f32.mrf.mxu0  ;;  %v11793_v4 = vadd.f32 %v21048_v31, %v21047_v0 }
 0x7fa   : > { %v12115_v1 = vadd.f32 %v12114_v52, %v11660_v16  ;;  %v21049_v16 = vld [vmem:[#allocation128_spill] sm:$0xff] }
 0x7fb   : > { %v12306_v41 = vpop.f32.mrf.mxu3 }
 0x7fc   : > { %v19831_v2 = vadd.f32 %v12306_v41, %v12242_v63  ;;  %v21050_v63 = vld [vmem:[#allocation108_spill] sm:$0xff] }
 0x7fd   : > { %v11666_v52 = vadd.f32 %v21050_v63, %v21049_v16  ;;  %v21055_v63 = vld [vmem:[#allocation119_spill] sm:$0xff] }
 0x7ff   : > { %v12179_v48 = vpop.f32.mrf.mxu1  ;;  %v12244_v8 = vpop.f32.mrf.mxu2 }
 0x800   : > { %v19835_v26 = vadd.f32 %v12179_v48, %v12115_v1  ;;  %v12245_v50 = vadd.f32 %v12244_v8, %v11790_v15  ;;  %v21051_v8 = vld [vmem:[#allocation107_spill] sm:$0xff] }
 0x801   : > { %v12117_v42 = vpop.f32.mrf.mxu0  ;;  %v11796_v60 = vadd.f32 %v21052_v13, %v21051_v8  ;;  %v21057_v8 = vld [vmem:[#allocation91_spill] sm:$0xff] }
 0x802   : > { %v12118_v27 = vadd.f32 %v12117_v42, %v11663_v10  ;;  %v21053_v42 = vld [vmem:[#allocation124_spill] sm:$0xff] }
 0x803   : > { %v12309_v46 = vpop.f32.mrf.mxu3 }
 0x804   : > { %v19839_v5 = vadd.f32 %v12309_v46, %v12245_v50 }
 0x807   : > { %v12182_v34 = vpop.f32.mrf.mxu1  ;;  %v12247_v30 = vpop.f32.mrf.mxu2 }
 0x808   : > { %v19843_v20 = vadd.f32 %v12182_v34, %v12118_v27  ;;  %v12248_v1 = vadd.f32 %v12247_v30, %v11793_v4  ;;  %v21054_v27 = vld [vmem:[#allocation120_spill] sm:$0xff] }
 0x809   : > { %v12120_v41 = vpop.f32.mrf.mxu0  ;;  %v11669_v46 = vadd.f32 %v21054_v27, %v21053_v42  ;;  %v21059_v27 = vld [vmem:[#allocation85_spill] sm:$0xff] }
 0x80a   : > { %v12121_v48 = vadd.f32 %v12120_v41, %v11666_v52  ;;  %v21056_v52 = vld [vmem:[#allocation95_spill] sm:$0xff] }
 0x80b   : > { %v12312_v3 = vpop.f32.mrf.mxu3 }
 0x80c   : > { %v19847_v32 = vadd.f32 %v12312_v3, %v12248_v1  ;;  %v11799_v1 = vadd.f32 %v21056_v52, %v21055_v63  ;;  %v21061_v63 = vld [vmem:[#allocation102_spill] sm:$0xff] }
 0x80f   : > { %v12185_v15 = vpop.f32.mrf.mxu1  ;;  %v12250_v50 = vpop.f32.mrf.mxu2 }
 0x810   : > { %v19851_v10 = vadd.f32 %v12185_v15, %v12121_v48  ;;  %v12251_v34 = vadd.f32 %v12250_v50, %v11796_v60  ;;  %v21058_v48 = vld [vmem:[#allocation106_spill] sm:$0xff] }
 0x811   : > { %v12123_v0 = vpop.f32.mrf.mxu0  ;;  %v11672_v15 = vadd.f32 %v21058_v48, %v21057_v8  ;;  %v21064_v48 = vld [vmem:[#allocation114_spill] sm:$0xff] }
 0x812   : > { %v12124_v31 = vadd.f32 %v12123_v0, %v11669_v46  ;;  %v21060_v46 = vld [vmem:[#allocation103_spill] sm:$0xff] }
 0x813   : > { %v12315_v16 = vpop.f32.mrf.mxu3 }
 0x814   : > { %v19855_v4 = vadd.f32 %v12315_v16, %v12251_v34  ;;  %v11802_v34 = vadd.f32 %v21060_v46, %v21059_v27  ;;  %v21065_v27 = vld [vmem:[#allocation110_spill] sm:$0xff] }
 0x817   : > { %v12188_v30 = vpop.f32.mrf.mxu1  ;;  %v12253_v3 = vpop.f32.mrf.mxu2 }
 0x818   : > { %v19859_v41 = vadd.f32 %v12188_v30, %v12124_v31  ;;  %v12254_v13 = vadd.f32 %v12253_v3, %v11799_v1  ;;  %v21062_v31 = vld [vmem:[#allocation98_spill] sm:$0xff]  ;;  %v21063_v3 = vld [vmem:[#allocation97_spill] sm:$0xff] }
 0x819   : > { %v12126_v45 = vpop.f32.mrf.mxu0  ;;  %v11675_v30 = vadd.f32 %v21062_v31, %v21061_v63  ;;  %v21068_v31 = vld [vmem:[#allocation93_spill] sm:$0xff] }
 0x81a   : > { %v12127_v24 = vadd.f32 %v12126_v45, %v11672_v15  ;;  %v11805_v15 = vadd.f32 %v21064_v48, %v21063_v3  ;;  %v21069_v3 = vld [vmem:[#allocation92_spill] sm:$0xff] }
 0x81b   : > { %v12318_v42 = vpop.f32.mrf.mxu3 }
 0x81c   : > { %v19863_v60 = vadd.f32 %v12318_v42, %v12254_v13 }
 0x81f   : > { %v12191_v50 = vpop.f32.mrf.mxu1  ;;  %v12256_v16 = vpop.f32.mrf.mxu2 }
 0x820   : > { %v19867_v0 = vadd.f32 %v12191_v50, %v12127_v24  ;;  %v12257_v52 = vadd.f32 %v12256_v16, %v11802_v34  ;;  %v21066_v24 = vld [vmem:[#allocation109_spill] sm:$0xff] }
 0x821   : > { %v12129_v39 = vpop.f32.mrf.mxu0  ;;  %v11678_v50 = vadd.f32 %v21066_v24, %v21065_v27  ;;  %v21067_v16 = vld [vmem:[#allocation81_spill] sm:$0xff]  ;;  %v21072_v24 = vld [vmem:[#allocation96_spill] sm:$0xff] }
 0x822   : > { %v12130_v18 = vadd.f32 %v12129_v39, %v11675_v30  ;;  %v11808_v30 = vadd.f32 %v21068_v31, %v21067_v16  ;;  %v21073_v16 = vld [vmem:[#allocation86_spill] sm:$0xff] }
 0x823   : > { %v12321_v8 = vpop.f32.mrf.mxu3 }
 0x824   : > { %v19871_v1 = vadd.f32 %v12321_v8, %v12257_v52 }
 0x827   : > { %v12194_v45 = vpop.f32.mrf.mxu1  ;;  %v12259_v42 = vpop.f32.mrf.mxu2 }
 0x828   : > { %v19875_v13 = vadd.f32 %v12194_v45, %v12130_v18  ;;  %v12260_v46 = vadd.f32 %v12259_v42, %v11805_v15  ;;  %v21070_v18 = vld [vmem:[#allocation104_spill] sm:$0xff]  ;;  %v21071_v42 = vld [vmem:[#allocation87_spill] sm:$0xff] }
 0x829   : > { %v12132_v56 = vpop.f32.mrf.mxu0  ;;  %v11681_v45 = vadd.f32 %v21070_v18, %v21069_v3  ;;  %v21076_v18 = vld [vmem:[#allocation71_spill] sm:$0xff] }
 0x82a   : > { %v12133_v44 = vadd.f32 %v12132_v56, %v11678_v50  ;;  %v11811_v50 = vadd.f32 %v21072_v24, %v21071_v42  ;;  %v21077_v42 = vld [vmem:[#allocation65_spill] sm:$0xff] }
 0x82b   : > { %v12324_v63 = vpop.f32.mrf.mxu3 }
 0x82c   : > { %v19879_v34 = vadd.f32 %v12324_v63, %v12260_v46 }
 0x82f   : > { %v12197_v39 = vpop.f32.mrf.mxu1  ;;  %v12262_v8 = vpop.f32.mrf.mxu2 }
 0x830   : > { %v19883_v52 = vadd.f32 %v12197_v39, %v12133_v44  ;;  %v12263_v48 = vadd.f32 %v12262_v8, %v11808_v30  ;;  %v21074_v44 = vld [vmem:[#allocation75_spill] sm:$0xff]  ;;  %v21075_v8 = vld [vmem:[#allocation88_spill] sm:$0xff] }
 0x831   : > { %v12135_v28 = vpop.f32.mrf.mxu0  ;;  %v11684_v39 = vadd.f32 %v21074_v44, %v21073_v16  ;;  %v21080_v44 = vld [vmem:[#allocation82_spill] sm:$0xff] }
 0x832   : > { %v12136_v55 = vadd.f32 %v12135_v28, %v11681_v45  ;;  %v11814_v45 = vadd.f32 %v21076_v18, %v21075_v8  ;;  %v21082_v8 = vld [vmem:[#allocation99_spill] sm:$0xff] }
 0x833   : > { %v12327_v27 = vpop.f32.mrf.mxu3 }
 0x834   : > { %v19887_v15 = vadd.f32 %v12327_v27, %v12263_v48 }
 0x837   : > { %v12200_v56 = vpop.f32.mrf.mxu1  ;;  %v12265_v63 = vpop.f32.mrf.mxu2 }
 0x838   : > { %v19891_v46 = vadd.f32 %v12200_v56, %v12136_v55  ;;  %v12266_v31 = vadd.f32 %v12265_v63, %v11811_v50  ;;  %v21078_v55 = vld [vmem:[#allocation83_spill] sm:$0xff]  ;;  %v21079_v63 = vld [vmem:[#allocation100_spill] sm:$0xff] }
 0x839   : > { %v12138_v11 = vpop.f32.mrf.mxu0  ;;  %v11687_v56 = vadd.f32 %v21078_v55, %v21077_v42  ;;  %v21085_v55 = vld [vmem:[#allocation61_spill] sm:$0xff] }
 0x83a   : > { %v12139_v12 = vadd.f32 %v12138_v11, %v11684_v39  ;;  %v11817_v39 = vadd.f32 %v21080_v44, %v21079_v63  ;;  %v21087_v63 = vld [vmem:[#allocation94_spill] sm:$0xff] }
 0x83b   : > { %v12330_v3 = vpop.f32.mrf.mxu3 }
 0x83c   : > { %v19895_v30 = vadd.f32 %v12330_v3, %v12266_v31 }
 0x83f   : > { %v12203_v28 = vpop.f32.mrf.mxu1  ;;  %v12268_v27 = vpop.f32.mrf.mxu2 }
 0x840   : > { %v19899_v48 = vadd.f32 %v12203_v28, %v12139_v12  ;;  %v12269_v24 = vadd.f32 %v12268_v27, %v11814_v45  ;;  %v21083_v12 = vld [vmem:[#allocation78_spill] sm:$0xff]  ;;  %v21084_v27 = vld [vmem:[#allocation76_spill] sm:$0xff] }
 0x841   : > { %v12141_v36 = vpop.f32.mrf.mxu0  ;;  %v11690_v28 = vadd.f32 %v21083_v12, %v21082_v8  ;;  %v21090_v12 = vld [vmem:[#allocation68_spill] sm:$0xff] }
 0x842   : > { %v12142_v17 = vadd.f32 %v12141_v36, %v11687_v56  ;;  %v11820_v56 = vadd.f32 %v21085_v55, %v21084_v27 }
 0x843   : > { %v12333_v16 = vpop.f32.mrf.mxu3 }
 0x844   : > { %v19903_v50 = vadd.f32 %v12333_v16, %v12269_v24 }
 0x847   : > { %v12206_v11 = vpop.f32.mrf.mxu1  ;;  %v12271_v3 = vpop.f32.mrf.mxu2 }
 0x848   : > { %v19907_v31 = vadd.f32 %v12206_v11, %v12142_v17  ;;  %v12272_v18 = vadd.f32 %v12271_v3, %v11817_v39  ;;  %v21088_v17 = vld [vmem:[#allocation90_spill] sm:$0xff]  ;;  %v21089_v3 = vld [vmem:[#allocation89_spill] sm:$0xff] }
 0x849   : > { %v12144_v35 = vpop.f32.mrf.mxu0  ;;  %v11693_v11 = vadd.f32 %v21088_v17, %v21087_v63  ;;  %v21093_v17 = vld [vmem:[#allocation77_spill] sm:$0xff] }
 0x84a   : > { %21081 = vst [vmem:[#allocation41_spill] sm:$0xff] %v19907_v31  ;;  %v12145_v9 = vadd.f32 %v12144_v35, %v11690_v28  ;;  %v11823_v28 = vadd.f32 %v21090_v12, %v21089_v3 }
 0x84b   : > { %v12336_v42 = vpop.f32.mrf.mxu3 }
 0x84c   : > { %v19911_v45 = vadd.f32 %v12336_v42, %v12272_v18 }
 0x84f   : > { %v12209_v36 = vpop.f32.mrf.mxu1  ;;  %v12274_v16 = vpop.f32.mrf.mxu2 }
 0x850   : > { %v19915_v24 = vadd.f32 %v12209_v36, %v12145_v9  ;;  %v12275_v44 = vadd.f32 %v12274_v16, %v11820_v56  ;;  %v21091_v9 = vld [vmem:[#allocation73_spill] sm:$0xff]  ;;  %v21092_v36 = vld [vmem:[#allocation67_spill] sm:$0xff] }
 0x851   : > { %v12147_v31 = vpop.f32.mrf.mxu0  ;;  %v11696_v27 = vadd.f32 %v21092_v36, %v21091_v9 }
 0x852   : > { %21086 = vst [vmem:[#allocation56_spill] sm:$0xff] %v19915_v24  ;;  %v12148_v21 = vadd.f32 %v12147_v31, %v11693_v11  ;;  %v11826_v11 = vadd.f32 %v19687_v59, %v21093_v17 }
 0x853   : > { %v12339_v8 = vpop.f32.mrf.mxu3 }
 0x854   : > { %v19919_v39 = vadd.f32 %v12339_v8, %v12275_v44 }
 0x857   : > { %v12212_v35 = vpop.f32.mrf.mxu1  ;;  %v12277_v42 = vpop.f32.mrf.mxu2 }
 0x858   : > { %v19923_v18 = vadd.f32 %v12212_v35, %v12148_v21  ;;  %v12278_v55 = vadd.f32 %v12277_v42, %v11823_v28 }
 0x859   : > { %v12150_v24 = vpop.f32.mrf.mxu0 }
 0x85a   : > { %v12151_v63 = vadd.f32 %v12150_v24, %v11696_v27 }
 0x85b   : > { %v12342_v56 = vpop.f32.mrf.mxu3 }
 0x85c   : > { %v19927_v16 = vadd.f32 %v12342_v56, %v12278_v55 }
 0x85f   : > { %v12215_v31 = vpop.f32.mrf.mxu1  ;;  %v12280_v8 = vpop.f32.mrf.mxu2 }
 0x860   : > { %v19931_v44 = vadd.f32 %v12215_v31, %v12151_v63  ;;  %v12281_v3 = vadd.f32 %v12280_v8, %v11826_v11  ;;  %12351 = sbr.rel (%p12893_p5) target bundleno = 2153 (0x869), region = 116 }
 0x863   : > { %v12345_v21 = vpop.f32.mrf.mxu3 }
 0x864   : > { %v19933_v35 = vadd.f32 %v12345_v21, %v12281_v3 }
 0x865   : > { %v21094_v24 = vlaneseq  ;;  %v13461_v12 = vmov 0.0  }
 0x867   : > { %vm12354_vm14 = vcmp.lt.s32.totalorder %v21094_v24, 256 }
 0x868   : > { %12356 = vst.msk [vmem:[#allocation2] sm:$0x3] %vm12354_vm14, %v13461_v12 }
 0x869 PF: > { %12524 = vst [vmem:[#allocation1] sm:$0xff] %v19931_v44  ;;  %vm12395_vm15 = vcmask 1040384   ;;  %v12396_v28 = vrot.slane %v19811_v53, 7  ;;  %v12397_v42 = vrot.slane %v19815_v49, 7  ;;  %v12398_v27 = vrot.slane %v19819_v25, 7  ;;  %s12901_s29 = sshll.u32 %s13436_s20, 5 }
 0x86a   : > { %12525 = vst [vmem:[#allocation1 + $0x9] sm:$0xff] %v19933_v35  ;;  %v12400_v55 = vrot.slane %v19823_v58, 7  ;;  %v12402_v63 = vrot.slane %v19827_v19, 7  ;;  %v12404_v56 = vrot.slane %v19831_v2, 7  ;;  %v12406_v31 = vrot.slane %v19835_v26, 7  ;;  %s12897_s30 = sshll.u32 %s13440_s21, 6 }
 0x86b   : > { %v12408_v17 = vrot.slane %v19839_v5, 7  ;;  %v12399_v11 = vsel %vm12395_vm15, %v12396_v28, %v12398_v27  ;;  %v12414_v12 = vrot.slane %v19851_v10, 7  ;;  %s12579_s20 = sadd.s32 %s12901_s29, %s12897_s30  ;;  %s12582_s0 = sshll.u32 %s19936_s10, 4  ;;  %s12583_s0 = int_to_ptr.vmem [resolvable:$true] %s12582_s0 }
 0x86c   : > { %v12401_v25 = vsel %vm12395_vm15, %v12397_v42, %v12400_v55  ;;  %v12494_v2 = vadd.f32 %v12399_v11, %v19696_v37  ;;  %v12403_v5 = vsel %vm12395_vm15, %v12398_v27, %v12402_v63  ;;  %v12405_v8 = vsel %vm12395_vm15, %v12400_v55, %v12404_v56  ;;  %s12898_s21 = sshll.u32 %s12579_s20, 3  ;;  %s12567_s26 = scalar_lea.sflag [#allocation6], %s573_s25 }
 0x86d   : > { %v12495_v26 = vadd.f32 %v12401_v25, %v19701_v7  ;;  %v12407_v3 = vsel %vm12395_vm15, %v12402_v63, %v12406_v31  ;;  %v12409_v21 = vsel %vm12395_vm15, %v12404_v56, %v12408_v17  ;;  %v12496_v24 = vadd.f32 %v12403_v5, %v19703_v57  ;;  %v21097_v25 = vld [vmem:[#allocation55_spill] sm:$0xff]  ;;  %s12581_s12 = scalar_lea.hbm %s20127_s4, %s12898_s21  ;;  %s13362_s30 = scalar_lea.hbm %s20127_s4, 1024 }
 0x86e   : > { %v12410_v37 = vrot.slane %v19843_v20, 7  ;;  %v12412_v7 = vrot.slane %v19847_v32, 7  ;;  %12536 = vst [vmem:[%s19936_s10 + $0x10] sm:$0xff] %v12494_v2  ;;  %v12418_v57 = vrot.slane %v19859_v41, 7  ;;  %v12424_v41 = vrot.slane %v19871_v1, 7  ;;  %s12584_s18 = sshll.u32 %s12581_s12, 4  ;;  %s12585_s18 = int_to_ptr.hbm [resolvable:$true] %s12584_s18 }
 0x86f   : > { %v12357_v59 = vld [vmem:[#allocation2] sm:$0x3]  ;;  %12537 = vst [vmem:[%s19936_s10 + $0x18] sm:$0xff] %v12495_v26  ;;  %v12428_v1 = vrot.slane %v19879_v34, 7  ;;  %s13356_s5 = sshra.s32 %s12585_s18, 4  ;;  %s13357_s5 = int_to_ptr.hbm [resolvable:$true] %s13356_s5 }
 0x870   : > { %v12359_v9 = vperm.slane %v12357_v59, 0  ;;  %v12360_v36 = vperm.slane %v12357_v59, 1  ;;  %v12416_v59 = vrot.slane %v19855_v4, 7  ;;  %v12411_v20 = vsel %vm12395_vm15, %v12406_v31, %v12410_v37  ;;  %12538 = vst [vmem:[%s19936_s10 + $0x20] sm:$0xff] %v12496_v24  ;;  %v21099_v26 = vld [vmem:[#allocation56_spill] sm:$0xff]  ;;  %s13358_s7 = scalar_lea.hbm %s13357_s5, 256  ;;  %p13363_p9 = scmp.lt.s32.totalorder %s13357_s5, %s20127_s4 }
 0x871   : > { %v12413_v32 = vsel %vm12395_vm15, %v12408_v17, %v12412_v7  ;;  %v12415_v10 = vsel %vm12395_vm15, %v12410_v37, %v12414_v12  ;;  %v12446_v5 = vrot.slane %v21099_v26, 7  ;;  %v12448_v24 = vrot.slane %v19919_v39, 7  ;;  %v21103_v39 = vld [vmem:[#allocation80_spill] sm:$0xff]  ;;  %p13359_p6 = scmp.ne.s32.totalorder %s13357_s5, %s13358_s7  ;;  %p13364_p10 = scmp.lt.s32.totalorder %s13362_s30, %s13358_s7 }
 0x872   : > { %v12490_v53 = vsel %vm12395_vm15, %v12359_v9, %v12396_v28  ;;  %v12491_v49 = vsel %vm12395_vm15, %v12360_v36, %v12397_v42  ;;  %v12499_v28 = vadd.f32 %v12409_v21, %v19715_v47  ;;  %v12417_v4 = vsel %vm12395_vm15, %v12412_v7, %v12416_v59  ;;  %v21102_v7 = vld [vmem:[#allocation63_spill] sm:$0xff] }
 0x873   : > { %v12492_v58 = vadd.f32 %v12490_v53, %v19689_v6  ;;  %v12493_v19 = vadd.f32 %v12491_v49, %v19694_v38  ;;  %v12497_v6 = vadd.f32 %v12405_v8, %v19708_v14  ;;  %v12498_v38 = vadd.f32 %v12407_v3, %v19710_v29  ;;  %v21100_v8 = vld [vmem:[#allocation84_spill] sm:$0xff]  ;;  %p13360_p7 = pnand %p13359_p6, %p13584_p13  ;;  %p13365_p11 = por %p13364_p10, %p13363_p9 }
 0x874   : > { %v12420_v14 = vrot.slane %v19863_v60, 7  ;;  %v12422_v29 = vrot.slane %v19867_v0, 7  ;;  %v12500_v47 = vadd.f32 %v12411_v20, %v19717_v54  ;;  %v12501_v60 = vadd.f32 %v12413_v32, %v19722_v51  ;;  %12541 = vst [vmem:[%s19936_s10 + $0x38] sm:$0xff] %v12499_v28 }
 0x875   : > { %12534 = vst [vmem:[%s19936_s10] sm:$0xff] %v12492_v58  ;;  %v12419_v0 = vsel %vm12395_vm15, %v12414_v12, %v12418_v57  ;;  %v12502_v42 = vadd.f32 %v12415_v10, %v19724_v40  ;;  %v12503_v9 = vadd.f32 %v12417_v4, %v19729_v23  ;;  %v12426_v54 = vrot.slane %v19875_v13, 7  ;;  %p13361_p8 = pneg %p13360_p7 }
 0x876   : > { %12535 = vst [vmem:[%s19936_s10 + $0x8] sm:$0xff] %v12493_v19  ;;  %v12421_v36 = vsel %vm12395_vm15, %v12416_v59, %v12420_v14  ;;  %v12423_v27 = vsel %vm12395_vm15, %v12418_v57, %v12422_v29  ;;  %v12430_v51 = vrot.slane %v19883_v52, 7  ;;  %v12504_v55 = vadd.f32 %v12419_v0, %v19731_v43  ;;  %v21107_v0 = vld [vmem:[#allocation62_spill] sm:$0xff] }
 0x877   : > { %12539 = vst [vmem:[%s19936_s10 + $0x28] sm:$0xff] %v12497_v6  ;;  %v12425_v40 = vsel %vm12395_vm15, %v12420_v14, %v12424_v41  ;;  %v12432_v23 = vrot.slane %v19887_v15, 7  ;;  %v12505_v63 = vadd.f32 %v12421_v36, %v19736_v22  ;;  %v12427_v56 = vsel %vm12395_vm15, %v12422_v29, %v12426_v54  ;;  %p13366_p12 = pnand %p13365_p11, %p13361_p8 }
 0x878   : > { %12540 = vst [vmem:[%s19936_s10 + $0x30] sm:$0xff] %v12498_v38  ;;  %v12434_v13 = vrot.slane %v19891_v46, 7  ;;  %v12506_v34 = vadd.f32 %v12423_v27, %v19738_v61  ;;  %v12429_v52 = vsel %vm12395_vm15, %v12424_v41, %v12428_v1  ;;  %v12436_v43 = vrot.slane %v19895_v30, 7  ;;  %v21095_v30 = vld [vmem:[#allocation72_spill] sm:$0xff]  ;;  %v21106_v41 = vld [vmem:[#allocation57_spill] sm:$0xff] }
 0x879   : > { %12542 = vst [vmem:[%s19936_s10 + $0x40] sm:$0xff] %v12500_v47  ;;  %v12507_v15 = vadd.f32 %v12425_v40, %v19743_v62  ;;  %v12431_v31 = vsel %vm12395_vm15, %v12426_v54, %v12430_v51  ;;  %v12438_v22 = vrot.slane %v19899_v48, 7  ;;  %v12508_v46 = vadd.f32 %v12427_v56, %v19747_v33  ;;  %v21096_v62 = vld [vmem:[#allocation41_spill] sm:$0xff]  ;;  %v21109_v54 = vld [vmem:[#allocation70_spill] sm:$0xff] }
 0x87a   : > { %12543 = vst [vmem:[%s19936_s10 + $0x48] sm:$0xff] %v12501_v60  ;;  %v12433_v17 = vsel %vm12395_vm15, %v12428_v1, %v12432_v23  ;;  %v12440_v61 = vrot.slane %v19903_v50, 7  ;;  %v12509_v53 = vadd.f32 %v12429_v52, %v21095_v30  ;;  %v12435_v49 = vsel %vm12395_vm15, %v12430_v51, %v12434_v13  ;;  %v21098_v50 = vld [vmem:[#allocation66_spill] sm:$0xff]  ;;  %v21110_v51 = vld [vmem:[#allocation69_spill] sm:$0xff] }
 0x87b   : > { %12544 = vst [vmem:[%s19936_s10 + $0x50] sm:$0xff] %v12502_v42  ;;  %v12442_v11 = vrot.slane %v21096_v62, 7  ;;  %v12510_v58 = vadd.f32 %v12431_v31, %v21097_v25  ;;  %v12437_v48 = vsel %vm12395_vm15, %v12432_v23, %v12436_v43  ;;  %v12444_v33 = vrot.slane %v19911_v45, 7  ;;  %v21101_v45 = vld [vmem:[#allocation51_spill] sm:$0xff]  ;;  %v21111_v40 = vld [vmem:[#allocation45_spill] sm:$0xff] }
 0x87c   : > { %12545 = vst [vmem:[%s19936_s10 + $0x58] sm:$0xff] %v12503_v9  ;;  %v12511_v19 = vadd.f32 %v12433_v17, %v21098_v50  ;;  %v12439_v2 = vsel %vm12395_vm15, %v12434_v13, %v12438_v22  ;;  %v12512_v3 = vadd.f32 %v12435_v49, %v21100_v8  ;;  %v12441_v21 = vsel %vm12395_vm15, %v12436_v43, %v12440_v61  ;;  %v21108_v9 = vld [vmem:[#allocation74_spill] sm:$0xff] }
 0x87d   : > { %12546 = vst [vmem:[%s19936_s10 + $0x60] sm:$0xff] %v12504_v55  ;;  %v12513_v6 = vadd.f32 %v12437_v48, %v21101_v45  ;;  %v12443_v38 = vsel %vm12395_vm15, %v12438_v22, %v12442_v11  ;;  %v12450_v37 = vrot.slane %v19923_v18, 7  ;;  %v12514_v12 = vadd.f32 %v12439_v2, %v21102_v7  ;;  %v21104_v18 = vld [vmem:[#allocation79_spill] sm:$0xff] }
 0x87e   : > { %12547 = vst [vmem:[%s19936_s10 + $0x68] sm:$0xff] %v12505_v63  ;;  %v12445_v59 = vsel %vm12395_vm15, %v12440_v61, %v12444_v33  ;;  %v12452_v28 = vrot.slane %v19927_v16, 7  ;;  %v12515_v57 = vadd.f32 %v12441_v21, %v21103_v39  ;;  %v12447_v14 = vsel %vm12395_vm15, %v12442_v11, %v12446_v5  ;;  %v21105_v16 = vld [vmem:[#allocation58_spill] sm:$0xff] }
 0x87f   : > { %12548 = vst [vmem:[%s19936_s10 + $0x70] sm:$0xff] %v12506_v34  ;;  %v12454_v29 = vrot.slane %v19931_v44, 7  ;;  %v12516_v20 = vadd.f32 %v12443_v38, %v21104_v18  ;;  %v12449_v32 = vsel %vm12395_vm15, %v12444_v33, %v12448_v24  ;;  %v12456_v10 = vrot.slane %v19933_v35, 7  ;;  %v12527_v63 = vld [vmem:[#allocation1 + $0x7] ss:$9 sm:$0xff] }
 0x880   : > { %12549 = vst [vmem:[%s19936_s10 + $0x78] sm:$0xff] %v12507_v15  ;;  %v12517_v4 = vadd.f32 %v12445_v59, %v21105_v16  ;;  %v12451_v47 = vsel %vm12395_vm15, %v12446_v5, %v12450_v37  ;;  %v12518_v44 = vadd.f32 %v12447_v14, %v21106_v41  ;;  %v12453_v60 = vsel %vm12395_vm15, %v12448_v24, %v12452_v28 }
 0x881   : > { %12550 = vst [vmem:[%s19936_s10 + $0x80] sm:$0xff] %v12508_v46  ;;  %v12519_v42 = vadd.f32 %v12449_v32, %v21107_v0  ;;  %v12455_v35 = vsel %vm12395_vm15, %v12450_v37, %v12454_v29  ;;  %v12520_v36 = vadd.f32 %v12451_v47, %v21108_v9  ;;  %v12457_v27 = vsel %vm12395_vm15, %v12452_v28, %v12456_v10 }
 0x882   : > { %12551 = vst [vmem:[%s19936_s10 + $0x88] sm:$0xff] %v12509_v53  ;;  %v12521_v1 = vadd.f32 %v12453_v60, %v21109_v54  ;;  %v12522_v55 = vadd.f32 %v12455_v35, %v21110_v51  ;;  %v12523_v23 = vadd.f32 %v12457_v27, %v21111_v40  ;;  %v21112_v56 = vlaneseq }
 0x883   : > { %12552 = vst [vmem:[%s19936_s10 + $0x90] sm:$0xff] %v12510_v58 }
 0x884   : > { %12553 = vst [vmem:[%s19936_s10 + $0x98] sm:$0xff] %v12511_v19  ;;  %vm12531_vm9 = vcmp.lt.s32.totalorder %v21112_v56, 256 }
 0x885   : > { %12554 = vst [vmem:[%s19936_s10 + $0xa0] sm:$0xff] %v12512_v3 }
 0x886   : > { %12555 = vst [vmem:[%s19936_s10 + $0xa8] sm:$0xff] %v12513_v6 }
 0x887   : > { %12556 = vst [vmem:[%s19936_s10 + $0xb0] sm:$0xff] %v12514_v12 }
 0x888   : > { %12557 = vst [vmem:[%s19936_s10 + $0xb8] sm:$0xff] %v12515_v57 }
 0x889   : > { %12558 = vst [vmem:[%s19936_s10 + $0xc0] sm:$0xff] %v12516_v20 }
 0x88a   : > { %12559 = vst [vmem:[%s19936_s10 + $0xc8] sm:$0xff] %v12517_v4 }
 0x88b   : > { %12560 = vst [vmem:[%s19936_s10 + $0xd0] sm:$0xff] %v12518_v44 }
 0x88c   : > { %12561 = vst [vmem:[%s19936_s10 + $0xd8] sm:$0xff] %v12519_v42 }
 0x88d   : > { %12562 = vst [vmem:[%s19936_s10 + $0xe0] sm:$0xff] %v12520_v36 }
 0x88e   : > { %12563 = vst [vmem:[%s19936_s10 + $0xe8] sm:$0xff] %v12521_v1 }
 0x88f   : > { %12564 = vst [vmem:[%s19936_s10 + $0xf0] sm:$0xff] %v12522_v55 }
 0x890   : > { %12565 = vst [vmem:[%s19936_s10 + $0xf8] sm:$0xff] %v12523_v23 }
 0x891   : > { %12533 = vst.msk [vmem:[#allocation2] sm:$0x3] %vm12531_vm9, %v12527_v63 }
 0x892   : > { %13369 = shalt.err (!%p13366_p12)
}
 0x893   : > { %s13462_s25 = smov 256   ;;  %s13463_s10 = smov 16  }
 0x894   : > { %13133 = dma.vmem_to_hbm [thread:$0]  (%p13584_p13), %s12583_s0, 4096, %s12585_s18, %s12567_s26, %s13462_s25, %s13462_s25, %s13463_s10  }
 0x895 PF: > { %p13139_p1 = scmp.ge.s32.totalorder %s13452_s24, 2  ;;  %s12599_s8 = sand.u32 1, %s13416_s15  }
 0x896   : > { %s12600_s11 = scalar_lea.sflag [#allocation6], %s12599_s8 }
 0x897   : > { %p13136_p2 = pnand %p13139_p1, %p13588_p0 }
 0x899   : > { %p13137_p3 = pneg %p13136_p2 }
 0x89b   : > { %13411 = dma.done.wait (%p13137_p3), %s12600_s11, 4096  }
 0x89c   : > { %13413 = vsyncadd (%p13137_p3), %s12600_s11, 4294963200  ;;  %s17_s24 = sadd.s32 1, %s13452_s24   ;;  %s21113_s28 = sld [smem:[#allocation8_spill]] }
 0x89d   : > { %p14_p4 = scmp.ge.s32.totalorder %s17_s24, 6   ;;  %s21114_s15 = smov %s13420_s16 }
 0x89e   : > { %s21115_s16 = smov %s13424_s17  ;;  %s21116_s17 = smov %s13573_s13 }
 0x89f   : > { %s21117_s18 = smov %s13432_s19  ;;  %s21118_s19 = smov %s13576_s14 }
 0x8a0   : > { %s21119_s20 = smov %s13444_s22  ;;  %s21120_s21 = smov %s13448_s23 }
 0x8a1   : > { %s21121_s22 = smov %s21124_s27  ;;  %16 = sbr.rel (!%p14_p4) target bundleno = 8 (0x8), region = 165 }
 0x8a2   : > { %s21122_s23 = smov %s21113_s28 }
 0x8a6   :  { %12606 = vsyncpa [#allocation6], 1 }
 0x8a7   :  { %12608 = vsyncpa [#allocation6 + $0x1], 1 }

</bundles_post_ra>
